<compile_context>
chip_gen: v5e
topology: v5e:2x2
jax: 0.10.0
libtpu: 0.0.40
codegen_flags: <defaults>
</compile_context>

<pallas_src>
import functools

import jax
import jax.numpy as jnp
from jax.experimental import pallas as pl
from jax.experimental.pallas import tpu as pltpu

C_HIDDEN = 1280  # fixed hidden width of yolov5 Classify


def _classify_kernel(x_ref, w1_ref, b1_ref, w2_ref, b2_ref, o_ref, acc_ref, *, inv_hw):
    # x_ref  : (c1, tp)       spatial tile of one batch element (lane-major on hw)
    # w1_ref : (c_, c1)       1x1 conv weight with BN scale folded in
    # b1_ref : (c_, 1)        folded BN bias
    # w2_ref : (c2, c_)       linear weight
    # b2_ref : (c2, 1)        linear bias
    # o_ref  : (c2, 1)        logits for this batch element
    # acc_ref: (c_, 1) f32    running spatial sum of SiLU(BN(conv(x)))
    p = pl.program_id(1)

    @pl.when(p == 0)
    def _init():
        acc_ref[...] = jnp.zeros_like(acc_ref)

    x = x_ref[...]                                                   # (c1, tp)
    y = jnp.dot(w1_ref[...], x, preferred_element_type=jnp.float32)  # (c_, tp) on MXU
    y = y + b1_ref[...]                                              # lane-broadcast bias
    y = y * (1.0 / (1.0 + jnp.exp(-y)))                              # SiLU (EUP exp)
    acc_ref[...] += jnp.sum(y, axis=1, keepdims=True)                # XLU lane reduce

    @pl.when(p == pl.num_programs(1) - 1)
    def _finalize():
        pooled = acc_ref[...] * inv_hw                               # (c_, 1) global avg pool
        logits = jnp.dot(w2_ref[...], pooled,
                         preferred_element_type=jnp.float32)         # (c2, 1)
        o_ref[...] = (logits + b2_ref[...]).astype(o_ref.dtype)


def _pick_spatial_tile(hw, cap=2048):
    # Largest multiple of 128 that divides hw (capped), else the full extent.
    if hw % 128 == 0:
        tp = 128
        while tp * 2 <= min(hw, cap) and hw % (tp * 2) == 0:
            tp *= 2
        return tp
    return hw


def classify_forward(x, w_conv, bn_gamma, bn_beta, bn_mean, bn_var,
                     w_lin, b_lin, *, eps=1e-5, spatial_tile=None):
    """Fused Classify forward: Linear(GAP(SiLU(BN(Conv1x1(x)))))."""
    if isinstance(x, (list, tuple)):           # Classify accepts a list -> cat on channels
        x = jnp.concatenate(x, axis=1)
    b, c1, h, w = x.shape
    hw = h * w
    c_, c1_w, kh, kw = w_conv.shape
    assert (kh, kw) == (1, 1) and c1_w == c1, "only the 1x1, stride-1 Classify conv is supported"
    c2 = w_lin.shape[0]

    # Fold inference BatchNorm into the 1x1 conv (scale rows of W, per-channel bias).
    scale = bn_gamma / jnp.sqrt(bn_var + eps)                              # (c_,)
    w1f = (w_conv.reshape(c_, c1) * scale[:, None]).astype(jnp.float32)    # (c_, c1)
    b1f = (bn_beta - bn_mean * scale).reshape(c_, 1).astype(jnp.float32)   # (c_, 1)
    w2 = w_lin.astype(jnp.float32)                                         # (c2, c_)
    b2 = b_lin.reshape(c2, 1).astype(jnp.float32)                          # (c2, 1)

    x3 = x.reshape(b, c1, hw).astype(jnp.float32)                          # free reshape, hw on lanes

    tp = spatial_tile if spatial_tile is not None else _pick_spatial_tile(hw)
    assert hw % tp == 0, "spatial tile must divide h*w"
    n_p = hw // tp

    kernel = functools.partial(_classify_kernel, inv_hw=1.0 / float(hw))

    out = pl.pallas_call(
        kernel,
        out_shape=jax.ShapeDtypeStruct((b, c2, 1), x.dtype),
        grid_spec=pltpu.PrefetchScalarGridSpec(
            num_scalar_prefetch=0,
            grid=(b, n_p),                       # reduction (spatial) axis last
            in_specs=[
                pl.BlockSpec((None, c1, tp), lambda i, p: (i, 0, p)),   # x tile
                pl.BlockSpec((c_, c1), lambda i, p: (0, 0)),            # fused conv weight
                pl.BlockSpec((c_, 1), lambda i, p: (0, 0)),             # fused bias
                pl.BlockSpec((c2, c_), lambda i, p: (0, 0)),            # linear weight
                pl.BlockSpec((c2, 1), lambda i, p: (0, 0)),             # linear bias
            ],
            out_specs=pl.BlockSpec((None, c2, 1), lambda i, p: (i, 0, 0)),
            scratch_shapes=[pltpu.VMEM((c_, 1), jnp.float32)],
        ),
        compiler_params=pltpu.CompilerParams(
            dimension_semantics=("parallel", "arbitrary"),
        ),
    )(x3, w1f, b1f, w2, b2)

    return out.reshape(b, c2)


def classify_ref(x, w_conv, bn_gamma, bn_beta, bn_mean, bn_var, w_lin, b_lin, eps=1e-5):
    # Pure-JAX reference mirroring the PyTorch forward (inference mode).
    if isinstance(x, (list, tuple)):
        x = jnp.concatenate(x, axis=1)
    b, c1, h, w = x.shape
    c_ = w_conv.shape[0]
    y = jnp.einsum("bchw,oc->bohw", x, w_conv.reshape(c_, c1),
                   precision=jax.lax.Precision.HIGHEST)
    scale = bn_gamma / jnp.sqrt(bn_var + eps)
    bias = bn_beta - bn_mean * scale
    y = y * scale[None, :, None, None] + bias[None, :, None, None]
    y = y * jax.nn.sigmoid(y)                       # SiLU
    pooled = y.mean(axis=(2, 3))                    # AdaptiveAvgPool2d(1) + flatten(1)
    # Dropout(p=0.0) is identity.
    return jnp.dot(pooled, w_lin.T, precision=jax.lax.Precision.HIGHEST) + b_lin


if __name__ == "__main__":
    key = jax.random.PRNGKey(0)
    ks = jax.random.split(key, 8)

    b, c1, h, w = 2, 32, 16, 16
    c2 = 10
    c_ = C_HIDDEN

    x = jax.random.normal(ks[0], (b, c1, h, w), dtype=jnp.float32)
    w_conv = 0.2 * jax.random.normal(ks[1], (c_, c1, 1, 1), dtype=jnp.float32)
    bn_gamma = 1.0 + 0.2 * jax.random.normal(ks[2], (c_,), dtype=jnp.float32)
    bn_beta = 0.1 * jax.random.normal(ks[3], (c_,), dtype=jnp.float32)
    bn_mean = 0.1 * jax.random.normal(ks[4], (c_,), dtype=jnp.float32)
    bn_var = jax.random.uniform(ks[5], (c_,), dtype=jnp.float32, minval=0.5, maxval=1.5)
    w_lin = 0.05 * jax.random.normal(ks[6], (c2, c_), dtype=jnp.float32)
    b_lin = 0.1 * jax.random.normal(ks[7], (c2,), dtype=jnp.float32)

    # spatial_tile=128 -> 2 reduction steps, exercising the accumulator path.
    out = classify_forward(x, w_conv, bn_gamma, bn_beta, bn_mean, bn_var,
                           w_lin, b_lin, spatial_tile=128)
    out = jax.block_until_ready(out)

    ref = classify_ref(x, w_conv, bn_gamma, bn_beta, bn_mean, bn_var, w_lin, b_lin)

    assert out.shape == (b, c2), out.shape
    assert out.dtype == x.dtype
    max_err = float(jnp.max(jnp.abs(out - ref)))
    assert jnp.allclose(out, ref, atol=2e-2, rtol=2e-2), f"mismatch vs reference: {max_err}"

    print("KERNEL_OK")
</pallas_src>

<mosaic_0001>
module attributes {stable_mosaic.version = 11 : i64} {
  func.func @_classify_kernel(%arg0: i32, %arg1: i32, %arg2: memref<1x32x128xf32, #tpu.memory_space<vmem>>, %arg3: memref<1280x32xf32, #tpu.memory_space<vmem>>, %arg4: memref<1280x1xf32, #tpu.memory_space<vmem>>, %arg5: memref<10x1280xf32, #tpu.memory_space<vmem>>, %arg6: memref<10x1xf32, #tpu.memory_space<vmem>>, %arg7: memref<1x10x1xf32, #tpu.memory_space<vmem>>, %arg8: memref<1280x1xf32, #tpu.memory_space<vmem>>) attributes {dimension_semantics = [#tpu.dimension_semantics<parallel>, #tpu.dimension_semantics<arbitrary>], iteration_bounds = array<i64: 2, 2>, scalar_prefetch = 0 : i64, scratch_operands = 1 : i64, tpu.core_type = #tpu.core_type<tc>, window_params = [{transform_indices = @transform_0, window_bounds = array<i64: 1, 32, 128>}, {pipeline_mode = #tpu.pipeline_mode<synchronous>, transform_indices = @transform_1, window_bounds = array<i64: 1280, 32>}, {pipeline_mode = #tpu.pipeline_mode<synchronous>, transform_indices = @transform_2, window_bounds = array<i64: 1280, 1>}, {pipeline_mode = #tpu.pipeline_mode<synchronous>, transform_indices = @transform_3, window_bounds = array<i64: 10, 1280>}, {pipeline_mode = #tpu.pipeline_mode<synchronous>, transform_indices = @transform_4, window_bounds = array<i64: 10, 1>}, {transform_indices = @transform_5, window_bounds = array<i64: 1, 10, 1>}]} {
    %c0_i32 = arith.constant 0 : i32
    %0 = arith.cmpi eq, %arg1, %c0_i32 : i32
    %1 = arith.extui %0 : i1 to i32
    %c0_i32_0 = arith.constant 0 : i32
    %2 = arith.cmpi ne, %1, %c0_i32_0 : i32
    scf.if %2 {
      %cst_16 = arith.constant 0.000000e+00 : f32
      %26 = vector.broadcast %cst_16 : f32 to vector<1280x1xf32>
      %c0_17 = arith.constant 0 : index
      %c0_18 = arith.constant 0 : index
      %27 = vector.load %arg8[%c0_17, %c0_18] : memref<1280x1xf32, #tpu.memory_space<vmem>>, vector<1280x1xf32>
      tpu.vector_store %arg8[%c0_17, %c0_18], %26 {strides = array<i32>} : memref<1280x1xf32, #tpu.memory_space<vmem>>, vector<1280x1xf32>,
    } else {
    }
    %c0 = arith.constant 0 : index
    %c0_1 = arith.constant 0 : index
    %c0_2 = arith.constant 0 : index
    %3 = vector.load %arg2[%c0, %c0_1, %c0_2] : memref<1x32x128xf32, #tpu.memory_space<vmem>>, vector<1x32x128xf32>
    %4 = vector.shape_cast %3 : vector<1x32x128xf32> to vector<32x128xf32>
    %c0_3 = arith.constant 0 : index
    %c0_4 = arith.constant 0 : index
    %5 = vector.load %arg3[%c0_3, %c0_4] : memref<1280x32xf32, #tpu.memory_space<vmem>>, vector<1280x32xf32>
    %cst = arith.constant dense<0.000000e+00> : vector<1280x128xf32>
    %6 = tpu.matmul %5, %4, %cst {dimension_numbers = #tpu.dot_dimension_numbers<[1], [0], [0], [1], [0, 0, 1, 1], [], []>} : vector<1280x32xf32>, vector<32x128xf32>, vector<1280x128xf32> -> vector<1280x128xf32>
    %c0_5 = arith.constant 0 : index
    %c0_6 = arith.constant 0 : index
    %7 = vector.load %arg4[%c0_5, %c0_6] : memref<1280x1xf32, #tpu.memory_space<vmem>>, vector<1280x1xf32>
    %8 = vector.broadcast %7 : vector<1280x1xf32> to vector<1280x128xf32>
    %9 = arith.addf %6, %8 : vector<1280x128xf32>
    %cst_7 = arith.constant 0.000000e+00 : f32
    %10 = vector.broadcast %cst_7 : f32 to vector<1280x128xf32>
    %11 = arith.subf %10, %9 : vector<1280x128xf32>
    %12 = math.exp %11 : vector<1280x128xf32>
    %cst_8 = arith.constant 1.000000e+00 : f32
    %13 = vector.broadcast %cst_8 : f32 to vector<1280x128xf32>
    %14 = arith.addf %13, %12 : vector<1280x128xf32>
    %cst_9 = arith.constant 1.000000e+00 : f32
    %15 = vector.broadcast %cst_9 : f32 to vector<1280x128xf32>
    %16 = arith.divf %15, %14 : vector<1280x128xf32>
    %17 = arith.mulf %9, %16 : vector<1280x128xf32>
    %c0_10 = arith.constant 0 : index
    %c0_11 = arith.constant 0 : index
    %18 = vector.load %arg8[%c0_10, %c0_11] : memref<1280x1xf32, #tpu.memory_space<vmem>>, vector<1280x1xf32>
    %cst_12 = arith.constant dense<0.000000e+00> : vector<1280xf32>
    %19 = vector.multi_reduction <add>, %17, %cst_12 [1] : vector<1280x128xf32> to vector<1280xf32>
    %20 = vector.shape_cast %19 : vector<1280xf32> to vector<1280x1xf32>
    %21 = arith.addf %18, %20 : vector<1280x1xf32>
    %c0_13 = arith.constant 0 : index
    %c0_14 = arith.constant 0 : index
    %22 = vector.load %arg8[%c0_13, %c0_14] : memref<1280x1xf32, #tpu.memory_space<vmem>>, vector<1280x1xf32>
    tpu.vector_store %arg8[%c0_13, %c0_14], %21 {strides = array<i32>} : memref<1280x1xf32, #tpu.memory_space<vmem>>, vector<1280x1xf32>,
    %c1_i32 = arith.constant 1 : i32
    %23 = arith.cmpi eq, %arg1, %c1_i32 : i32
    %24 = arith.extui %23 : i1 to i32
    %c0_i32_15 = arith.constant 0 : i32
    %25 = arith.cmpi ne, %24, %c0_i32_15 : i32
    scf.if %25 {
      %c0_16 = arith.constant 0 : index
      %c0_17 = arith.constant 0 : index
      %26 = vector.load %arg8[%c0_16, %c0_17] : memref<1280x1xf32, #tpu.memory_space<vmem>>, vector<1280x1xf32>
      %cst_18 = arith.constant 3.906250e-03 : f32
      %27 = vector.broadcast %cst_18 : f32 to vector<1280x1xf32>
      %28 = arith.mulf %26, %27 : vector<1280x1xf32>
      %c0_19 = arith.constant 0 : index
      %c0_20 = arith.constant 0 : index
      %29 = vector.load %arg5[%c0_19, %c0_20] : memref<10x1280xf32, #tpu.memory_space<vmem>>, vector<10x1280xf32>
      %cst_21 = arith.constant dense<0.000000e+00> : vector<10x1xf32>
      %30 = tpu.matmul %29, %28, %cst_21 {dimension_numbers = #tpu.dot_dimension_numbers<[1], [0], [0], [1], [0, 0, 1, 1], [], []>} : vector<10x1280xf32>, vector<1280x1xf32>, vector<10x1xf32> -> vector<10x1xf32>
      %c0_22 = arith.constant 0 : index
      %c0_23 = arith.constant 0 : index
      %31 = vector.load %arg6[%c0_22, %c0_23] : memref<10x1xf32, #tpu.memory_space<vmem>>, vector<10x1xf32>
      %32 = arith.addf %30, %31 : vector<10x1xf32>
      %c0_24 = arith.constant 0 : index
      %c0_25 = arith.constant 0 : index
      %c0_26 = arith.constant 0 : index
      %33 = vector.load %arg7[%c0_24, %c0_25, %c0_26] : memref<1x10x1xf32, #tpu.memory_space<vmem>>, vector<1x10x1xf32>
      %34 = vector.shape_cast %33 : vector<1x10x1xf32> to vector<10x1xf32>
      %35 = vector.shape_cast %32 : vector<10x1xf32> to vector<1x10x1xf32>
      tpu.vector_store %arg7[%c0_24, %c0_25, %c0_26], %35 {strides = array<i32>} : memref<1x10x1xf32, #tpu.memory_space<vmem>>, vector<1x10x1xf32>,
    } else {
    }
    return
  }
  func.func @transform_0(%arg0: i32, %arg1: i32) -> (i32, i32, i32) {
    %c0_i32 = arith.constant 0 : i32
    %c0_i32_0 = arith.constant 0 : i32
    return %arg0, %c0_i32, %arg1 : i32, i32, i32
  }
  func.func @transform_1(%arg0: i32, %arg1: i32) -> (i32, i32) {
    %c0_i32 = arith.constant 0 : i32
    %c0_i32_0 = arith.constant 0 : i32
    %c0_i32_1 = arith.constant 0 : i32
    return %c0_i32, %c0_i32_0 : i32, i32
  }
  func.func @transform_2(%arg0: i32, %arg1: i32) -> (i32, i32) {
    %c0_i32 = arith.constant 0 : i32
    %c0_i32_0 = arith.constant 0 : i32
    %c0_i32_1 = arith.constant 0 : i32
    return %c0_i32, %c0_i32_0 : i32, i32
  }
  func.func @transform_3(%arg0: i32, %arg1: i32) -> (i32, i32) {
    %c0_i32 = arith.constant 0 : i32
    %c0_i32_0 = arith.constant 0 : i32
    %c0_i32_1 = arith.constant 0 : i32
    return %c0_i32, %c0_i32_0 : i32, i32
  }
  func.func @transform_4(%arg0: i32, %arg1: i32) -> (i32, i32) {
    %c0_i32 = arith.constant 0 : i32
    %c0_i32_0 = arith.constant 0 : i32
    %c0_i32_1 = arith.constant 0 : i32
    return %c0_i32, %c0_i32_0 : i32, i32
  }
  func.func @transform_5(%arg0: i32, %arg1: i32) -> (i32, i32, i32) {
    %c0_i32 = arith.constant 0 : i32
    %c0_i32_0 = arith.constant 0 : i32
    %c0_i32_1 = arith.constant 0 : i32
    return %arg0, %c0_i32, %c0_i32_0 : i32, i32, i32
  }
}

</mosaic_0001>

<bundles_post_ra>
// kernel: tpu_custom_call.1
= control target key start
LH: loop header
LB: loop body
LE: loop exit
PB: predicated region body
PF: predicated region fallthrough
CT: control target
= control target key end

     0   :  { %s8218_s18 = smov 0   ;;  %s8220_s19 = smov 0   ;;  %s16417_s0 = inlined_call_operand.vmem [shape: f32[2,32,256], index: 0, kind: input, shape index: {}]   ;;  %s16418_s1 = inlined_call_operand.vmem [shape: f32[1280,32], index: 1, kind: input, shape index: {}]   ;;  %s16419_s2 = inlined_call_operand.vmem [shape: f32[1280,1], index: 2, kind: input, shape index: {}]   ;;  %s16420_s3 = inlined_call_operand.vmem [shape: f32[10,1280], index: 3, kind: input, shape index: {}]   ;;  %s16421_s4 = inlined_call_operand.vmem [shape: f32[10,1], index: 4, kind: input, shape index: {}]   ;;  %s16422_s5 = inlined_call_operand.vmem [shape: f32[2,10,1], index: 5, kind: output, shape index: {}]  }
   0x1   :  { %s8222_s20 = smov 0   ;;  %s8224_s21 = smov 0  }
   0x2   :  { %s8226_s22 = smov 0   ;;  %s8228_s23 = smov 0  }
   0x3   :  { %s8230_s24 = smov 0  }
   0x4 LB: > { %s24_s25 = sadd.s32 1, %s8176_s22  ;;  %s27_s26 = sadd.s32 1, %s8180_s23  ;;  %s8184_s24 = sphi %s8230_s24, %s15_s24   ;;  %s8180_s23 = sphi %s8228_s23, %s17463_s23   ;;  %s8176_s22 = sphi %s8226_s22, %s17462_s22   ;;  %s8172_s21 = sphi %s8224_s21, %s17461_s21   ;;  %s8168_s20 = sphi %s8222_s20, %s17460_s20   ;;  %s8164_s19 = sphi %s8220_s19, %s17459_s19   ;;  %s8160_s18 = sphi %s8218_s18, %s17458_s18  }
   0x5   : > { %p25_p0 = scmp.ge.s32.totalorder %s24_s25, 2  ;;  %p43_p1 = scmp.ne.s32.totalorder %s8164_s19, %s8160_s18 }
   0x6   : > { %p44_p2 = scmp.eq.s32.totalorder %s8184_s24, 0  ;;  %s36_s30 = sadd.s32 1, %s8164_s19 }
   0x7   : > { %s17465_s25 = smov (%p25_p0, %s24_s25), 0  ;;  %s17467_s26 = smov (!%p25_p0, %s27_s26), %s8180_s23 }
   0x8   : > { %p45_p3 = por %p44_p2, %p43_p1  ;;  %p29_p4 = scmp.ge.s32.totalorder %s17467_s26, 2 }
   0x9   : > { %s32_s27 = ssub.s32 %s8176_s22, %s17465_s25  ;;  %p7212_p6 = scmp.ge.s32.totalorder %s8184_s24, 4 }
   0xa   : > { %s17469_s26 = smov (%p29_p4, %s17467_s26), 0 }
   0xb   : > { %s31_s28 = ssub.s32 %s8180_s23, %s17469_s26  ;;  %191 = sbr.rel (%p7212_p6) target bundleno = 26 (0x1a), region = 32 }
   0xc   : > { %s33_s29 = sor.u32 %s32_s27, %s31_s28 }
   0xd   : > { %p34_p5 = scmp.eq.s32.totalorder %s33_s29, 0 }
   0xf   : > { %s8269_s6 = scalar_select %p34_p5, %s8164_s19, %s36_s30  }
  0x10   : > { %194 = sbr.rel (!%p45_p3) target bundleno = 26 (0x1a), region = 36  ;;  %s196_s7 = sand.u32 (%p45_p3), 1, %s8164_s19  }
  0x11   : > { %s7214_s8 = sshll.u32 (%p45_p3), %s8180_s23, 3  ;;  %s7213_s9 = sshll.u32 (%p45_p3), %s196_s7, 5 }
  0x12   : > { %s200_s10 = sadd.s32 (%p45_p3), %s8176_s22, %s7214_s8  ;;  %s198_s15 = scalar_lea.vmem (%p45_p3), [#allocation3], %s7213_s9 }
  0x13   : > { %s7215_s11 = sshll.u32 (%p45_p3), %s200_s10, 3 }
  0x14   : > { %s202_s14 = scalar_lea.vmem (%p45_p3), %s16417_s0, %s7215_s11 }
  0x15   : > { %v237_v0 = vld [vmem:[%s202_s14] sm:$0xff]  ;;  %v239_v1 = vld [vmem:[%s202_s14 + $0x10] sm:$0xff] }
  0x16   : > { %v241_v2 = vld [vmem:[%s202_s14 + $0x20] sm:$0xff]  ;;  %238 = vst [vmem:[%s198_s15] sm:$0xff] %v237_v0  ;;  %v243_v3 = vld [vmem:[%s202_s14 + $0x30] sm:$0xff] }
  0x17   : > { %240 = vst [vmem:[%s198_s15 + $0x8] sm:$0xff] %v239_v1 }
  0x18   : > { %242 = vst [vmem:[%s198_s15 + $0x10] sm:$0xff] %v241_v2 }
  0x19   : > { %244 = vst [vmem:[%s198_s15 + $0x18] sm:$0xff] %v243_v3 }
  0x1a PF: > { %p7216_p7 = scmp.ge.s32.totalorder %s8184_s24, 1  ;;  %p249_p8 = scmp.lt.s32.totalorder %s8184_s24, 5 }
  0x1c   : > { %p250_p9 = pnand %p7216_p7, %p249_p8 }
  0x1e   : > { %253 = sbr.rel (%p250_p9) target bundleno = 1777 (0x6f1), region = 74 }
  0x23   : > { %s256_s16 = sand.u32 1, %s8160_s18   ;;  %p283_p10 = scmp.lt.s32.totalorder %s8172_s21, 1 }
  0x24   : > { %s7217_s17 = sshll.u32 %s256_s16, 5  ;;  %p7220_p11 = scmp.ne.s32.totalorder %s8168_s20, 0 }
  0x25   : > { %s17471_s21 = smov (!%p283_p10, %s8172_s21), 1  ;;  %s8288_s7 = scalar_lea.vmem [#allocation3], %s7217_s17 }
  0x26   : > { %s7384_s27 = sshll.u32 %s17471_s21, 4  ;;  %291 = sbr.rel (%p7220_p11) target bundleno = 204 (0xcc), region = 82 }
  0x27   : > { %s8286_s30 = scalar_lea.vmem %s16422_s5, %s7384_s27 }
  0x2b   : > { %vm292_vm0 = vcmask 7168   ;;  %v8186_v4 = vmov 0.0  }
  0x2c   : > { %293 = vst.msk [vmem:[#allocation2] sm:$0xff] %vm292_vm0, %v8186_v4 }
  0x2d   : > { %294 = vst.msk [vmem:[#allocation2 + $0x8] sm:$0xff] %vm292_vm0, %v8186_v4 }
  0x2e   : > { %295 = vst.msk [vmem:[#allocation2 + $0x10] sm:$0xff] %vm292_vm0, %v8186_v4 }
  0x2f   : > { %296 = vst.msk [vmem:[#allocation2 + $0x18] sm:$0xff] %vm292_vm0, %v8186_v4 }
  0x30   : > { %297 = vst.msk [vmem:[#allocation2 + $0x20] sm:$0xff] %vm292_vm0, %v8186_v4 }
  0x31   : > { %298 = vst.msk [vmem:[#allocation2 + $0x28] sm:$0xff] %vm292_vm0, %v8186_v4 }
  0x32   : > { %299 = vst.msk [vmem:[#allocation2 + $0x30] sm:$0xff] %vm292_vm0, %v8186_v4 }
  0x33   : > { %300 = vst.msk [vmem:[#allocation2 + $0x38] sm:$0xff] %vm292_vm0, %v8186_v4 }
  0x34   : > { %301 = vst.msk [vmem:[#allocation2 + $0x40] sm:$0xff] %vm292_vm0, %v8186_v4 }
  0x35   : > { %302 = vst.msk [vmem:[#allocation2 + $0x48] sm:$0xff] %vm292_vm0, %v8186_v4 }
  0x36   : > { %303 = vst.msk [vmem:[#allocation2 + $0x50] sm:$0xff] %vm292_vm0, %v8186_v4 }
  0x37   : > { %304 = vst.msk [vmem:[#allocation2 + $0x58] sm:$0xff] %vm292_vm0, %v8186_v4 }
  0x38   : > { %305 = vst.msk [vmem:[#allocation2 + $0x60] sm:$0xff] %vm292_vm0, %v8186_v4 }
  0x39   : > { %306 = vst.msk [vmem:[#allocation2 + $0x68] sm:$0xff] %vm292_vm0, %v8186_v4 }
  0x3a   : > { %307 = vst.msk [vmem:[#allocation2 + $0x70] sm:$0xff] %vm292_vm0, %v8186_v4 }
  0x3b   : > { %308 = vst.msk [vmem:[#allocation2 + $0x78] sm:$0xff] %vm292_vm0, %v8186_v4 }
  0x3c   : > { %309 = vst.msk [vmem:[#allocation2 + $0x80] sm:$0xff] %vm292_vm0, %v8186_v4 }
  0x3d   : > { %310 = vst.msk [vmem:[#allocation2 + $0x88] sm:$0xff] %vm292_vm0, %v8186_v4 }
  0x3e   : > { %311 = vst.msk [vmem:[#allocation2 + $0x90] sm:$0xff] %vm292_vm0, %v8186_v4 }
  0x3f   : > { %312 = vst.msk [vmem:[#allocation2 + $0x98] sm:$0xff] %vm292_vm0, %v8186_v4 }
  0x40   : > { %313 = vst.msk [vmem:[#allocation2 + $0xa0] sm:$0xff] %vm292_vm0, %v8186_v4 }
  0x41   : > { %314 = vst.msk [vmem:[#allocation2 + $0xa8] sm:$0xff] %vm292_vm0, %v8186_v4 }
  0x42   : > { %315 = vst.msk [vmem:[#allocation2 + $0xb0] sm:$0xff] %vm292_vm0, %v8186_v4 }
  0x43   : > { %316 = vst.msk [vmem:[#allocation2 + $0xb8] sm:$0xff] %vm292_vm0, %v8186_v4 }
  0x44   : > { %317 = vst.msk [vmem:[#allocation2 + $0xc0] sm:$0xff] %vm292_vm0, %v8186_v4 }
  0x45   : > { %318 = vst.msk [vmem:[#allocation2 + $0xc8] sm:$0xff] %vm292_vm0, %v8186_v4 }
  0x46   : > { %319 = vst.msk [vmem:[#allocation2 + $0xd0] sm:$0xff] %vm292_vm0, %v8186_v4 }
  0x47   : > { %320 = vst.msk [vmem:[#allocation2 + $0xd8] sm:$0xff] %vm292_vm0, %v8186_v4 }
  0x48   : > { %321 = vst.msk [vmem:[#allocation2 + $0xe0] sm:$0xff] %vm292_vm0, %v8186_v4 }
  0x49   : > { %322 = vst.msk [vmem:[#allocation2 + $0xe8] sm:$0xff] %vm292_vm0, %v8186_v4 }
  0x4a   : > { %323 = vst.msk [vmem:[#allocation2 + $0xf0] sm:$0xff] %vm292_vm0, %v8186_v4 }
  0x4b   : > { %324 = vst.msk [vmem:[#allocation2 + $0xf8] sm:$0xff] %vm292_vm0, %v8186_v4 }
  0x4c   : > { %325 = vst.msk [vmem:[#allocation2 + $0x100] sm:$0xff] %vm292_vm0, %v8186_v4 }
  0x4d   : > { %326 = vst.msk [vmem:[#allocation2 + $0x108] sm:$0xff] %vm292_vm0, %v8186_v4 }
  0x4e   : > { %327 = vst.msk [vmem:[#allocation2 + $0x110] sm:$0xff] %vm292_vm0, %v8186_v4 }
  0x4f   : > { %328 = vst.msk [vmem:[#allocation2 + $0x118] sm:$0xff] %vm292_vm0, %v8186_v4 }
  0x50   : > { %329 = vst.msk [vmem:[#allocation2 + $0x120] sm:$0xff] %vm292_vm0, %v8186_v4 }
  0x51   : > { %330 = vst.msk [vmem:[#allocation2 + $0x128] sm:$0xff] %vm292_vm0, %v8186_v4 }
  0x52   : > { %331 = vst.msk [vmem:[#allocation2 + $0x130] sm:$0xff] %vm292_vm0, %v8186_v4 }
  0x53   : > { %332 = vst.msk [vmem:[#allocation2 + $0x138] sm:$0xff] %vm292_vm0, %v8186_v4 }
  0x54   : > { %333 = vst.msk [vmem:[#allocation2 + $0x140] sm:$0xff] %vm292_vm0, %v8186_v4 }
  0x55   : > { %334 = vst.msk [vmem:[#allocation2 + $0x148] sm:$0xff] %vm292_vm0, %v8186_v4 }
  0x56   : > { %335 = vst.msk [vmem:[#allocation2 + $0x150] sm:$0xff] %vm292_vm0, %v8186_v4 }
  0x57   : > { %336 = vst.msk [vmem:[#allocation2 + $0x158] sm:$0xff] %vm292_vm0, %v8186_v4 }
  0x58   : > { %337 = vst.msk [vmem:[#allocation2 + $0x160] sm:$0xff] %vm292_vm0, %v8186_v4 }
  0x59   : > { %338 = vst.msk [vmem:[#allocation2 + $0x168] sm:$0xff] %vm292_vm0, %v8186_v4 }
  0x5a   : > { %339 = vst.msk [vmem:[#allocation2 + $0x170] sm:$0xff] %vm292_vm0, %v8186_v4 }
  0x5b   : > { %340 = vst.msk [vmem:[#allocation2 + $0x178] sm:$0xff] %vm292_vm0, %v8186_v4 }
  0x5c   : > { %341 = vst.msk [vmem:[#allocation2 + $0x180] sm:$0xff] %vm292_vm0, %v8186_v4 }
  0x5d   : > { %342 = vst.msk [vmem:[#allocation2 + $0x188] sm:$0xff] %vm292_vm0, %v8186_v4 }
  0x5e   : > { %343 = vst.msk [vmem:[#allocation2 + $0x190] sm:$0xff] %vm292_vm0, %v8186_v4 }
  0x5f   : > { %344 = vst.msk [vmem:[#allocation2 + $0x198] sm:$0xff] %vm292_vm0, %v8186_v4 }
  0x60   : > { %345 = vst.msk [vmem:[#allocation2 + $0x1a0] sm:$0xff] %vm292_vm0, %v8186_v4 }
  0x61   : > { %346 = vst.msk [vmem:[#allocation2 + $0x1a8] sm:$0xff] %vm292_vm0, %v8186_v4 }
  0x62   : > { %347 = vst.msk [vmem:[#allocation2 + $0x1b0] sm:$0xff] %vm292_vm0, %v8186_v4 }
  0x63   : > { %348 = vst.msk [vmem:[#allocation2 + $0x1b8] sm:$0xff] %vm292_vm0, %v8186_v4 }
  0x64   : > { %349 = vst.msk [vmem:[#allocation2 + $0x1c0] sm:$0xff] %vm292_vm0, %v8186_v4 }
  0x65   : > { %350 = vst.msk [vmem:[#allocation2 + $0x1c8] sm:$0xff] %vm292_vm0, %v8186_v4 }
  0x66   : > { %351 = vst.msk [vmem:[#allocation2 + $0x1d0] sm:$0xff] %vm292_vm0, %v8186_v4 }
  0x67   : > { %352 = vst.msk [vmem:[#allocation2 + $0x1d8] sm:$0xff] %vm292_vm0, %v8186_v4 }
  0x68   : > { %353 = vst.msk [vmem:[#allocation2 + $0x1e0] sm:$0xff] %vm292_vm0, %v8186_v4 }
  0x69   : > { %354 = vst.msk [vmem:[#allocation2 + $0x1e8] sm:$0xff] %vm292_vm0, %v8186_v4 }
  0x6a   : > { %355 = vst.msk [vmem:[#allocation2 + $0x1f0] sm:$0xff] %vm292_vm0, %v8186_v4 }
  0x6b   : > { %356 = vst.msk [vmem:[#allocation2 + $0x1f8] sm:$0xff] %vm292_vm0, %v8186_v4 }
  0x6c   : > { %357 = vst.msk [vmem:[#allocation2 + $0x200] sm:$0xff] %vm292_vm0, %v8186_v4 }
  0x6d   : > { %358 = vst.msk [vmem:[#allocation2 + $0x208] sm:$0xff] %vm292_vm0, %v8186_v4 }
  0x6e   : > { %359 = vst.msk [vmem:[#allocation2 + $0x210] sm:$0xff] %vm292_vm0, %v8186_v4 }
  0x6f   : > { %360 = vst.msk [vmem:[#allocation2 + $0x218] sm:$0xff] %vm292_vm0, %v8186_v4 }
  0x70   : > { %361 = vst.msk [vmem:[#allocation2 + $0x220] sm:$0xff] %vm292_vm0, %v8186_v4 }
  0x71   : > { %362 = vst.msk [vmem:[#allocation2 + $0x228] sm:$0xff] %vm292_vm0, %v8186_v4 }
  0x72   : > { %363 = vst.msk [vmem:[#allocation2 + $0x230] sm:$0xff] %vm292_vm0, %v8186_v4 }
  0x73   : > { %364 = vst.msk [vmem:[#allocation2 + $0x238] sm:$0xff] %vm292_vm0, %v8186_v4 }
  0x74   : > { %365 = vst.msk [vmem:[#allocation2 + $0x240] sm:$0xff] %vm292_vm0, %v8186_v4 }
  0x75   : > { %366 = vst.msk [vmem:[#allocation2 + $0x248] sm:$0xff] %vm292_vm0, %v8186_v4 }
  0x76   : > { %367 = vst.msk [vmem:[#allocation2 + $0x250] sm:$0xff] %vm292_vm0, %v8186_v4 }
  0x77   : > { %368 = vst.msk [vmem:[#allocation2 + $0x258] sm:$0xff] %vm292_vm0, %v8186_v4 }
  0x78   : > { %369 = vst.msk [vmem:[#allocation2 + $0x260] sm:$0xff] %vm292_vm0, %v8186_v4 }
  0x79   : > { %370 = vst.msk [vmem:[#allocation2 + $0x268] sm:$0xff] %vm292_vm0, %v8186_v4 }
  0x7a   : > { %371 = vst.msk [vmem:[#allocation2 + $0x270] sm:$0xff] %vm292_vm0, %v8186_v4 }
  0x7b   : > { %372 = vst.msk [vmem:[#allocation2 + $0x278] sm:$0xff] %vm292_vm0, %v8186_v4 }
  0x7c   : > { %373 = vst.msk [vmem:[#allocation2 + $0x280] sm:$0xff] %vm292_vm0, %v8186_v4 }
  0x7d   : > { %374 = vst.msk [vmem:[#allocation2 + $0x288] sm:$0xff] %vm292_vm0, %v8186_v4 }
  0x7e   : > { %375 = vst.msk [vmem:[#allocation2 + $0x290] sm:$0xff] %vm292_vm0, %v8186_v4 }
  0x7f   : > { %376 = vst.msk [vmem:[#allocation2 + $0x298] sm:$0xff] %vm292_vm0, %v8186_v4 }
  0x80   : > { %377 = vst.msk [vmem:[#allocation2 + $0x2a0] sm:$0xff] %vm292_vm0, %v8186_v4 }
  0x81   : > { %378 = vst.msk [vmem:[#allocation2 + $0x2a8] sm:$0xff] %vm292_vm0, %v8186_v4 }
  0x82   : > { %379 = vst.msk [vmem:[#allocation2 + $0x2b0] sm:$0xff] %vm292_vm0, %v8186_v4 }
  0x83   : > { %380 = vst.msk [vmem:[#allocation2 + $0x2b8] sm:$0xff] %vm292_vm0, %v8186_v4 }
  0x84   : > { %381 = vst.msk [vmem:[#allocation2 + $0x2c0] sm:$0xff] %vm292_vm0, %v8186_v4 }
  0x85   : > { %382 = vst.msk [vmem:[#allocation2 + $0x2c8] sm:$0xff] %vm292_vm0, %v8186_v4 }
  0x86   : > { %383 = vst.msk [vmem:[#allocation2 + $0x2d0] sm:$0xff] %vm292_vm0, %v8186_v4 }
  0x87   : > { %384 = vst.msk [vmem:[#allocation2 + $0x2d8] sm:$0xff] %vm292_vm0, %v8186_v4 }
  0x88   : > { %385 = vst.msk [vmem:[#allocation2 + $0x2e0] sm:$0xff] %vm292_vm0, %v8186_v4 }
  0x89   : > { %386 = vst.msk [vmem:[#allocation2 + $0x2e8] sm:$0xff] %vm292_vm0, %v8186_v4 }
  0x8a   : > { %387 = vst.msk [vmem:[#allocation2 + $0x2f0] sm:$0xff] %vm292_vm0, %v8186_v4 }
  0x8b   : > { %388 = vst.msk [vmem:[#allocation2 + $0x2f8] sm:$0xff] %vm292_vm0, %v8186_v4 }
  0x8c   : > { %389 = vst.msk [vmem:[#allocation2 + $0x300] sm:$0xff] %vm292_vm0, %v8186_v4 }
  0x8d   : > { %390 = vst.msk [vmem:[#allocation2 + $0x308] sm:$0xff] %vm292_vm0, %v8186_v4 }
  0x8e   : > { %391 = vst.msk [vmem:[#allocation2 + $0x310] sm:$0xff] %vm292_vm0, %v8186_v4 }
  0x8f   : > { %392 = vst.msk [vmem:[#allocation2 + $0x318] sm:$0xff] %vm292_vm0, %v8186_v4 }
  0x90   : > { %393 = vst.msk [vmem:[#allocation2 + $0x320] sm:$0xff] %vm292_vm0, %v8186_v4 }
  0x91   : > { %394 = vst.msk [vmem:[#allocation2 + $0x328] sm:$0xff] %vm292_vm0, %v8186_v4 }
  0x92   : > { %395 = vst.msk [vmem:[#allocation2 + $0x330] sm:$0xff] %vm292_vm0, %v8186_v4 }
  0x93   : > { %396 = vst.msk [vmem:[#allocation2 + $0x338] sm:$0xff] %vm292_vm0, %v8186_v4 }
  0x94   : > { %397 = vst.msk [vmem:[#allocation2 + $0x340] sm:$0xff] %vm292_vm0, %v8186_v4 }
  0x95   : > { %398 = vst.msk [vmem:[#allocation2 + $0x348] sm:$0xff] %vm292_vm0, %v8186_v4 }
  0x96   : > { %399 = vst.msk [vmem:[#allocation2 + $0x350] sm:$0xff] %vm292_vm0, %v8186_v4 }
  0x97   : > { %400 = vst.msk [vmem:[#allocation2 + $0x358] sm:$0xff] %vm292_vm0, %v8186_v4 }
  0x98   : > { %401 = vst.msk [vmem:[#allocation2 + $0x360] sm:$0xff] %vm292_vm0, %v8186_v4 }
  0x99   : > { %402 = vst.msk [vmem:[#allocation2 + $0x368] sm:$0xff] %vm292_vm0, %v8186_v4 }
  0x9a   : > { %403 = vst.msk [vmem:[#allocation2 + $0x370] sm:$0xff] %vm292_vm0, %v8186_v4 }
  0x9b   : > { %404 = vst.msk [vmem:[#allocation2 + $0x378] sm:$0xff] %vm292_vm0, %v8186_v4 }
  0x9c   : > { %405 = vst.msk [vmem:[#allocation2 + $0x380] sm:$0xff] %vm292_vm0, %v8186_v4 }
  0x9d   : > { %406 = vst.msk [vmem:[#allocation2 + $0x388] sm:$0xff] %vm292_vm0, %v8186_v4 }
  0x9e   : > { %407 = vst.msk [vmem:[#allocation2 + $0x390] sm:$0xff] %vm292_vm0, %v8186_v4 }
  0x9f   : > { %408 = vst.msk [vmem:[#allocation2 + $0x398] sm:$0xff] %vm292_vm0, %v8186_v4 }
  0xa0   : > { %409 = vst.msk [vmem:[#allocation2 + $0x3a0] sm:$0xff] %vm292_vm0, %v8186_v4 }
  0xa1   : > { %410 = vst.msk [vmem:[#allocation2 + $0x3a8] sm:$0xff] %vm292_vm0, %v8186_v4 }
  0xa2   : > { %411 = vst.msk [vmem:[#allocation2 + $0x3b0] sm:$0xff] %vm292_vm0, %v8186_v4 }
  0xa3   : > { %412 = vst.msk [vmem:[#allocation2 + $0x3b8] sm:$0xff] %vm292_vm0, %v8186_v4 }
  0xa4   : > { %413 = vst.msk [vmem:[#allocation2 + $0x3c0] sm:$0xff] %vm292_vm0, %v8186_v4 }
  0xa5   : > { %414 = vst.msk [vmem:[#allocation2 + $0x3c8] sm:$0xff] %vm292_vm0, %v8186_v4 }
  0xa6   : > { %415 = vst.msk [vmem:[#allocation2 + $0x3d0] sm:$0xff] %vm292_vm0, %v8186_v4 }
  0xa7   : > { %416 = vst.msk [vmem:[#allocation2 + $0x3d8] sm:$0xff] %vm292_vm0, %v8186_v4 }
  0xa8   : > { %417 = vst.msk [vmem:[#allocation2 + $0x3e0] sm:$0xff] %vm292_vm0, %v8186_v4 }
  0xa9   : > { %418 = vst.msk [vmem:[#allocation2 + $0x3e8] sm:$0xff] %vm292_vm0, %v8186_v4 }
  0xaa   : > { %419 = vst.msk [vmem:[#allocation2 + $0x3f0] sm:$0xff] %vm292_vm0, %v8186_v4 }
  0xab   : > { %420 = vst.msk [vmem:[#allocation2 + $0x3f8] sm:$0xff] %vm292_vm0, %v8186_v4 }
  0xac   : > { %421 = vst.msk [vmem:[#allocation2 + $0x400] sm:$0xff] %vm292_vm0, %v8186_v4 }
  0xad   : > { %422 = vst.msk [vmem:[#allocation2 + $0x408] sm:$0xff] %vm292_vm0, %v8186_v4 }
  0xae   : > { %423 = vst.msk [vmem:[#allocation2 + $0x410] sm:$0xff] %vm292_vm0, %v8186_v4 }
  0xaf   : > { %424 = vst.msk [vmem:[#allocation2 + $0x418] sm:$0xff] %vm292_vm0, %v8186_v4 }
  0xb0   : > { %425 = vst.msk [vmem:[#allocation2 + $0x420] sm:$0xff] %vm292_vm0, %v8186_v4 }
  0xb1   : > { %426 = vst.msk [vmem:[#allocation2 + $0x428] sm:$0xff] %vm292_vm0, %v8186_v4 }
  0xb2   : > { %427 = vst.msk [vmem:[#allocation2 + $0x430] sm:$0xff] %vm292_vm0, %v8186_v4 }
  0xb3   : > { %428 = vst.msk [vmem:[#allocation2 + $0x438] sm:$0xff] %vm292_vm0, %v8186_v4 }
  0xb4   : > { %429 = vst.msk [vmem:[#allocation2 + $0x440] sm:$0xff] %vm292_vm0, %v8186_v4 }
  0xb5   : > { %430 = vst.msk [vmem:[#allocation2 + $0x448] sm:$0xff] %vm292_vm0, %v8186_v4 }
  0xb6   : > { %431 = vst.msk [vmem:[#allocation2 + $0x450] sm:$0xff] %vm292_vm0, %v8186_v4 }
  0xb7   : > { %432 = vst.msk [vmem:[#allocation2 + $0x458] sm:$0xff] %vm292_vm0, %v8186_v4 }
  0xb8   : > { %433 = vst.msk [vmem:[#allocation2 + $0x460] sm:$0xff] %vm292_vm0, %v8186_v4 }
  0xb9   : > { %434 = vst.msk [vmem:[#allocation2 + $0x468] sm:$0xff] %vm292_vm0, %v8186_v4 }
  0xba   : > { %435 = vst.msk [vmem:[#allocation2 + $0x470] sm:$0xff] %vm292_vm0, %v8186_v4 }
  0xbb   : > { %436 = vst.msk [vmem:[#allocation2 + $0x478] sm:$0xff] %vm292_vm0, %v8186_v4 }
  0xbc   : > { %437 = vst.msk [vmem:[#allocation2 + $0x480] sm:$0xff] %vm292_vm0, %v8186_v4 }
  0xbd   : > { %438 = vst.msk [vmem:[#allocation2 + $0x488] sm:$0xff] %vm292_vm0, %v8186_v4 }
  0xbe   : > { %439 = vst.msk [vmem:[#allocation2 + $0x490] sm:$0xff] %vm292_vm0, %v8186_v4 }
  0xbf   : > { %440 = vst.msk [vmem:[#allocation2 + $0x498] sm:$0xff] %vm292_vm0, %v8186_v4 }
  0xc0   : > { %441 = vst.msk [vmem:[#allocation2 + $0x4a0] sm:$0xff] %vm292_vm0, %v8186_v4 }
  0xc1   : > { %442 = vst.msk [vmem:[#allocation2 + $0x4a8] sm:$0xff] %vm292_vm0, %v8186_v4 }
  0xc2   : > { %443 = vst.msk [vmem:[#allocation2 + $0x4b0] sm:$0xff] %vm292_vm0, %v8186_v4 }
  0xc3   : > { %444 = vst.msk [vmem:[#allocation2 + $0x4b8] sm:$0xff] %vm292_vm0, %v8186_v4 }
  0xc4   : > { %445 = vst.msk [vmem:[#allocation2 + $0x4c0] sm:$0xff] %vm292_vm0, %v8186_v4 }
  0xc5   : > { %446 = vst.msk [vmem:[#allocation2 + $0x4c8] sm:$0xff] %vm292_vm0, %v8186_v4 }
  0xc6   : > { %447 = vst.msk [vmem:[#allocation2 + $0x4d0] sm:$0xff] %vm292_vm0, %v8186_v4 }
  0xc7   : > { %448 = vst.msk [vmem:[#allocation2 + $0x4d8] sm:$0xff] %vm292_vm0, %v8186_v4 }
  0xc8   : > { %449 = vst.msk [vmem:[#allocation2 + $0x4e0] sm:$0xff] %vm292_vm0, %v8186_v4 }
  0xc9   : > { %450 = vst.msk [vmem:[#allocation2 + $0x4e8] sm:$0xff] %vm292_vm0, %v8186_v4 }
  0xca   : > { %451 = vst.msk [vmem:[#allocation2 + $0x4f0] sm:$0xff] %vm292_vm0, %v8186_v4 }
  0xcb   : > { %452 = vst.msk [vmem:[#allocation2 + $0x4f8] sm:$0xff] %vm292_vm0, %v8186_v4 }
  0xcc PF: > { %v456_v5 = vld [vmem:[%s8288_s7 + $0x18] sm:$0xff]  ;;  %v8187_v6 = vmov 0   ;;  %v621_v7 = vld [vmem:[%s16419_s2 + $0x20] sm:$0xff]  ;;  %v619_v8 = vld [vmem:[%s16419_s2 + $0x10] sm:$0xff]  ;;  %vm1577_vm1 = vcmask 261120   ;;  %p7381_p12 = scmp.ne.s32.totalorder %s8168_s20, 1 }
  0xcd   : > { %7489 = vset.pattern.permute.xlu2 %v8187_v6  ;;  %7488 = vset.pattern.permute.xlu1 %v8187_v6  ;;  %v617_v9 = vld [vmem:[%s16419_s2] sm:$0xff]  ;;  %v455_v10 = vld [vmem:[%s8288_s7 + $0x10] sm:$0xff]  ;;  %v454_v11 = vld [vmem:[%s8288_s7 + $0x8] sm:$0xff] }
  0xce   : > { %7487 = vset.pattern.permute.xlu0 %v8187_v6  ;;  %2070 = vmatpush.msra.mxu0 %v456_v5  ;;  %v453_v12 = vld [vmem:[%s8288_s7] sm:$0xff]  ;;  %v622_v16 = vld [vmem:[%s16419_s2 + $0x28] sm:$0xff]  ;;  %v620_v17 = vld [vmem:[%s16419_s2 + $0x18] sm:$0xff] }
  0xcf   : > { %7385 = vmatpush.msra.mxu1 %v456_v5  ;;  %7386 = vmatpush.msra.mxu2 %v456_v5  ;;  %v457_v13 = vld [vmem:[%s16418_s1] sm:$0xff]  ;;  %v618_v18 = vld [vmem:[%s16419_s2 + $0x8] sm:$0xff]  ;;  %v624_v23 = vld [vmem:[%s16419_s2 + $0x38] sm:$0xff] }
  0xd0   : > { %799 = vperm.xlu2 %7489, %v621_v7   ;;  %789 = vperm.xlu1 %7488, %v619_v8   ;;  %v497_v14 = vld [vmem:[%s16418_s1 + $0x140] sm:$0xff]  ;;  %v458_v19 = vld [vmem:[%s16418_s1 + $0x8] sm:$0xff]  ;;  %v623_v24 = vld [vmem:[%s16419_s2 + $0x30] sm:$0xff] }
  0xd1   : > { %779 = vperm.xlu0 %7487, %v617_v9   ;;  %2071 = vmatpush.msra.mxu0 %v455_v10  ;;  %v537_v15 = vld [vmem:[%s16418_s1 + $0x280] sm:$0xff]  ;;  %v498_v20 = vld [vmem:[%s16418_s1 + $0x148] sm:$0xff]  ;;  %v459_v25 = vld [vmem:[%s16418_s1 + $0x10] sm:$0xff] }
  0xd2   : > { %7388 = vmatpush.msra.mxu1 %v455_v10  ;;  %7389 = vmatpush.msra.mxu2 %v455_v10  ;;  %v538_v21 = vld [vmem:[%s16418_s1 + $0x288] sm:$0xff]  ;;  %v625_v22 = vld [vmem:[%s16419_s2 + $0x40] sm:$0xff]  ;;  %v499_v26 = vld [vmem:[%s16418_s1 + $0x150] sm:$0xff] }
  0xd3   : > { %2072 = vmatpush.msra.mxu0 %v454_v11  ;;  %7387 = vmatpush.msra.mxu3 %v456_v5  ;;  %v539_v27 = vld [vmem:[%s16418_s1 + $0x290] sm:$0xff]  ;;  %v628_v28 = vld [vmem:[%s16419_s2 + $0x58] sm:$0xff]  ;;  %v626_v30 = vld [vmem:[%s16419_s2 + $0x48] sm:$0xff] }
  0xd4   : > { %7391 = vmatpush.msra.mxu1 %v454_v11  ;;  %7392 = vmatpush.msra.mxu2 %v454_v11  ;;  %v627_v29 = vld [vmem:[%s16419_s2 + $0x50] sm:$0xff]  ;;  %v460_v31 = vld [vmem:[%s16418_s1 + $0x18] sm:$0xff]  ;;  %v630_v35 = vld [vmem:[%s16419_s2 + $0x68] sm:$0xff] }
  0xd5   : > { %2073 = vmatpush.msra.mxu0 %v453_v12  ;;  %7390 = vmatpush.msra.mxu3 %v455_v10  ;;  %v500_v32 = vld [vmem:[%s16418_s1 + $0x158] sm:$0xff]  ;;  %v631_v34 = vld [vmem:[%s16419_s2 + $0x70] sm:$0xff]  ;;  %v629_v36 = vld [vmem:[%s16419_s2 + $0x60] sm:$0xff] }
  0xd6   : > { %7394 = vmatpush.msra.mxu1 %v453_v12  ;;  %7395 = vmatpush.msra.mxu2 %v453_v12  ;;  %v540_v33 = vld [vmem:[%s16418_s1 + $0x298] sm:$0xff]  ;;  %v461_v37 = vld [vmem:[%s16418_s1 + $0x20] sm:$0xff]  ;;  %v634_v40 = vld [vmem:[%s16419_s2 + $0x88] sm:$0xff] }
  0xd7   : > { %7221 = vmatmul.msk.f32.vlgmr.msra.gmra.mxu0 %vm1577_vm1, %v457_v13  ;;  %7261 = vmatmul.msk.f32.vlgmr.msra.gmra.mxu1 %vm1577_vm1, %v497_v14  ;;  %v501_v38 = vld [vmem:[%s16418_s1 + $0x160] sm:$0xff]  ;;  %v632_v42 = vld [vmem:[%s16419_s2 + $0x78] sm:$0xff]  ;;  %v462_v44 = vld [vmem:[%s16418_s1 + $0x28] sm:$0xff] }
  0xd8   : > { %7301 = vmatmul.msk.f32.vlgmr.msra.gmra.mxu2 %vm1577_vm1, %v537_v15  ;;  %804 = vperm.xlu2 %7489, %v622_v16   ;;  %v541_v39 = vld [vmem:[%s16418_s1 + $0x2a0] sm:$0xff]  ;;  %v502_v45 = vld [vmem:[%s16418_s1 + $0x168] sm:$0xff]  ;;  %v636_v48 = vld [vmem:[%s16419_s2 + $0x98] sm:$0xff] }
  0xd9   : > { %794 = vperm.xlu1 %7488, %v620_v17   ;;  %784 = vperm.xlu0 %7487, %v618_v18   ;;  %v633_v41 = vld [vmem:[%s16419_s2 + $0x80] sm:$0xff]  ;;  %v542_v46 = vld [vmem:[%s16418_s1 + $0x2a8] sm:$0xff]  ;;  %v635_v49 = vld [vmem:[%s16419_s2 + $0x90] sm:$0xff] }
  0xda   : > { %7393 = vmatpush.msra.mxu3 %v454_v11  ;;  %v577_v43 = vld [vmem:[%s16418_s1 + $0x3c0] sm:$0xff]  ;;  %v578_v50 = vld [vmem:[%s16418_s1 + $0x3c8] sm:$0xff]  ;;  %v463_v51 = vld [vmem:[%s16418_s1 + $0x30] sm:$0xff] }
  0xdb   : > { %v637_v47 = vld [vmem:[%s16419_s2 + $0xa0] sm:$0xff]  ;;  %v503_v52 = vld [vmem:[%s16418_s1 + $0x170] sm:$0xff]  ;;  %v640_v54 = vld [vmem:[%s16419_s2 + $0xb8] sm:$0xff] }
  0xdc   : > { %7396 = vmatpush.msra.mxu3 %v453_v12  ;;  %v543_v53 = vld [vmem:[%s16418_s1 + $0x2b0] sm:$0xff]  ;;  %v638_v56 = vld [vmem:[%s16419_s2 + $0xa8] sm:$0xff]  ;;  %v464_v58 = vld [vmem:[%s16418_s1 + $0x38] sm:$0xff] }
  0xdd   : > { %7341 = vmatmul.msk.f32.vlgmr.msra.gmra.mxu3 %vm1577_vm1, %v577_v43  ;;  %v639_v55 = vld [vmem:[%s16419_s2 + $0xb0] sm:$0xff]  ;;  %v504_v59 = vld [vmem:[%s16418_s1 + $0x178] sm:$0xff]  ;;  %v642_v62 = vld [vmem:[%s16419_s2 + $0xc8] sm:$0xff] }
  0xde   : > { %v579_v57 = vld [vmem:[%s16418_s1 + $0x3d0] sm:$0xff]  ;;  %v544_v60 = vld [vmem:[%s16418_s1 + $0x2b8] sm:$0xff]  ;;  %v641_v63 = vld [vmem:[%s16419_s2 + $0xc0] sm:$0xff] }
  0xdf   : > { %7222 = vmatmul.msk.f32.gmra.mxu0 %vm1577_vm1, %v458_v19  ;;  %7262 = vmatmul.msk.f32.gmra.mxu1 %vm1577_vm1, %v498_v20  ;;  %v643_v61 = vld [vmem:[%s16419_s2 + $0xd0] sm:$0xff]  ;;  %v580_v0 = vld [vmem:[%s16418_s1 + $0x3d8] sm:$0xff]  ;;  %v465_v1 = vld [vmem:[%s16418_s1 + $0x40] sm:$0xff] }
  0xe0   : > { %7302 = vmatmul.msk.f32.gmra.mxu2 %vm1577_vm1, %v538_v21  ;;  %819 = vperm.xlu2 %7489, %v625_v22   ;;  %v505_v2 = vld [vmem:[%s16418_s1 + $0x180] sm:$0xff]  ;;  %v646_v4 = vld [vmem:[%s16419_s2 + $0xe8] sm:$0xff]  ;;  %v644_v6 = vld [vmem:[%s16419_s2 + $0xd8] sm:$0xff] }
  0xe1   : > { %814 = vperm.xlu1 %7488, %v624_v23   ;;  %809 = vperm.xlu0 %7487, %v623_v24   ;;  %v545_v3 = vld [vmem:[%s16418_s1 + $0x2c0] sm:$0xff]  ;;  %v466_v8 = vld [vmem:[%s16418_s1 + $0x48] sm:$0xff]  ;;  %v648_v12 = vld [vmem:[%s16419_s2 + $0xf8] sm:$0xff] }
  0xe2   : > { %v645_v5 = vld [vmem:[%s16419_s2 + $0xe0] sm:$0xff]  ;;  %v506_v9 = vld [vmem:[%s16418_s1 + $0x188] sm:$0xff]  ;;  %v647_v13 = vld [vmem:[%s16419_s2 + $0xf0] sm:$0xff] }
  0xe3   : > { %v581_v7 = vld [vmem:[%s16418_s1 + $0x3e0] sm:$0xff]  ;;  %v546_v10 = vld [vmem:[%s16418_s1 + $0x2c8] sm:$0xff]  ;;  %v467_v15 = vld [vmem:[%s16418_s1 + $0x50] sm:$0xff] }
  0xe4   : > { %v649_v11 = vld [vmem:[%s16419_s2 + $0x100] sm:$0xff]  ;;  %v582_v14 = vld [vmem:[%s16418_s1 + $0x3e8] sm:$0xff]  ;;  %v507_v16 = vld [vmem:[%s16418_s1 + $0x190] sm:$0xff] }
  0xe5   : > { %7342 = vmatmul.msk.f32.gmra.mxu3 %vm1577_vm1, %v578_v50  ;;  %v547_v17 = vld [vmem:[%s16418_s1 + $0x2d0] sm:$0xff]  ;;  %v652_v18 = vld [vmem:[%s16419_s2 + $0x118] sm:$0xff]  ;;  %v650_v20 = vld [vmem:[%s16419_s2 + $0x108] sm:$0xff] }
  0xe6   : > { %v651_v19 = vld [vmem:[%s16419_s2 + $0x110] sm:$0xff]  ;;  %v468_v22 = vld [vmem:[%s16418_s1 + $0x58] sm:$0xff] }
  0xe7   : > { %7223 = vmatmul.msk.f32.gmra.mxu0 %vm1577_vm1, %v459_v25  ;;  %7263 = vmatmul.msk.f32.gmra.mxu1 %vm1577_vm1, %v499_v26  ;;  %v583_v21 = vld [vmem:[%s16418_s1 + $0x3f0] sm:$0xff]  ;;  %v508_v23 = vld [vmem:[%s16418_s1 + $0x198] sm:$0xff]  ;;  %v654_v26 = vld [vmem:[%s16419_s2 + $0x128] sm:$0xff] }
  0xe8   : > { %7303 = vmatmul.msk.f32.gmra.mxu2 %vm1577_vm1, %v539_v27  ;;  %834 = vperm.xlu2 %7489, %v628_v28   ;;  %v548_v24 = vld [vmem:[%s16418_s1 + $0x2d8] sm:$0xff]  ;;  %v655_v25 = vld [vmem:[%s16419_s2 + $0x130] sm:$0xff]  ;;  %v653_v27 = vld [vmem:[%s16419_s2 + $0x120] sm:$0xff] }
  0xe9   : > { %829 = vperm.xlu1 %7488, %v627_v29   ;;  %824 = vperm.xlu0 %7487, %v626_v30   ;;  %v584_v28 = vld [vmem:[%s16418_s1 + $0x3f8] sm:$0xff]  ;;  %v469_v29 = vld [vmem:[%s16418_s1 + $0x60] sm:$0xff]  ;;  %v471_v43 = vld [vmem:[%s16418_s1 + $0x70] sm:$0xff] }
  0xea   : > { %v509_v30 = vld [vmem:[%s16418_s1 + $0x1a0] sm:$0xff]  ;;  %v472_v50 = vld [vmem:[%s16418_s1 + $0x78] sm:$0xff] }
  0xed   : > { %7343 = vmatmul.msk.f32.gmra.mxu3 %vm1577_vm1, %v579_v57  ;;  %v473_v57 = vld [vmem:[%s16418_s1 + $0x80] sm:$0xff] }
  0xef   : > { %7224 = vmatmul.msk.f32.gmra.mxu0 %vm1577_vm1, %v460_v31  ;;  %7264 = vmatmul.msk.f32.gmra.mxu1 %vm1577_vm1, %v500_v32  ;;  %v549_v31 = vld [vmem:[%s16418_s1 + $0x2e0] sm:$0xff]  ;;  %v658_v32 = vld [vmem:[%s16419_s2 + $0x148] sm:$0xff] }
  0xf0   : > { %7304 = vmatmul.msk.f32.gmra.mxu2 %vm1577_vm1, %v540_v33  ;;  %849 = vperm.xlu2 %7489, %v631_v34   ;;  %v657_v33 = vld [vmem:[%s16419_s2 + $0x140] sm:$0xff]  ;;  %v656_v34 = vld [vmem:[%s16419_s2 + $0x138] sm:$0xff] }
  0xf1   : > { %844 = vperm.xlu1 %7488, %v630_v35   ;;  %839 = vperm.xlu0 %7487, %v629_v36   ;;  %v585_v35 = vld [vmem:[%s16418_s1 + $0x400] sm:$0xff]  ;;  %v470_v36 = vld [vmem:[%s16418_s1 + $0x68] sm:$0xff] }
  0xf5   : > { %7344 = vmatmul.msk.f32.gmra.mxu3 %vm1577_vm1, %v580_v0  ;;  %v474_v0 = vld [vmem:[%s16418_s1 + $0x88] sm:$0xff] }
  0xf7   : > { %7225 = vmatmul.msk.f32.gmra.mxu0 %vm1577_vm1, %v461_v37  ;;  %7265 = vmatmul.msk.f32.gmra.mxu1 %vm1577_vm1, %v501_v38  ;;  %v510_v37 = vld [vmem:[%s16418_s1 + $0x1a8] sm:$0xff] }
  0xf8   : > { %7305 = vmatmul.msk.f32.gmra.mxu2 %vm1577_vm1, %v541_v39  ;;  %864 = vperm.xlu2 %7489, %v634_v40   ;;  %v550_v38 = vld [vmem:[%s16418_s1 + $0x2e8] sm:$0xff]  ;;  %v661_v39 = vld [vmem:[%s16419_s2 + $0x160] sm:$0xff]  ;;  %v660_v40 = vld [vmem:[%s16419_s2 + $0x158] sm:$0xff] }
  0xf9   : > { %859 = vperm.xlu1 %7488, %v633_v41   ;;  %854 = vperm.xlu0 %7487, %v632_v42   ;;  %v659_v41 = vld [vmem:[%s16419_s2 + $0x150] sm:$0xff]  ;;  %v586_v42 = vld [vmem:[%s16418_s1 + $0x408] sm:$0xff] }
  0xfd   : > { %7345 = vmatmul.msk.f32.gmra.mxu3 %vm1577_vm1, %v581_v7  ;;  %v475_v7 = vld [vmem:[%s16418_s1 + $0x90] sm:$0xff] }
  0xff   : > { %7226 = vmatmul.msk.f32.gmra.mxu0 %vm1577_vm1, %v462_v44  ;;  %7266 = vmatmul.msk.f32.gmra.mxu1 %vm1577_vm1, %v502_v45  ;;  %v511_v44 = vld [vmem:[%s16418_s1 + $0x1b0] sm:$0xff] }
 0x100   : > { %7306 = vmatmul.msk.f32.gmra.mxu2 %vm1577_vm1, %v542_v46  ;;  %879 = vperm.xlu2 %7489, %v637_v47   ;;  %v551_v45 = vld [vmem:[%s16418_s1 + $0x2f0] sm:$0xff]  ;;  %v664_v46 = vld [vmem:[%s16419_s2 + $0x178] sm:$0xff] }
 0x101   : > { %874 = vperm.xlu1 %7488, %v636_v48   ;;  %869 = vperm.xlu0 %7487, %v635_v49   ;;  %v663_v47 = vld [vmem:[%s16419_s2 + $0x170] sm:$0xff]  ;;  %v662_v48 = vld [vmem:[%s16419_s2 + $0x168] sm:$0xff] }
 0x102   : > { %v587_v49 = vld [vmem:[%s16418_s1 + $0x410] sm:$0xff] }
 0x105   : > { %7346 = vmatmul.msk.f32.gmra.mxu3 %vm1577_vm1, %v582_v14  ;;  %v476_v14 = vld [vmem:[%s16418_s1 + $0x98] sm:$0xff] }
 0x107   : > { %7227 = vmatmul.msk.f32.gmra.mxu0 %vm1577_vm1, %v463_v51  ;;  %7267 = vmatmul.msk.f32.gmra.mxu1 %vm1577_vm1, %v503_v52  ;;  %v512_v51 = vld [vmem:[%s16418_s1 + $0x1b8] sm:$0xff] }
 0x108   : > { %7307 = vmatmul.msk.f32.gmra.mxu2 %vm1577_vm1, %v543_v53  ;;  %894 = vperm.xlu2 %7489, %v640_v54   ;;  %v552_v52 = vld [vmem:[%s16418_s1 + $0x2f8] sm:$0xff]  ;;  %v667_v53 = vld [vmem:[%s16419_s2 + $0x190] sm:$0xff]  ;;  %v666_v54 = vld [vmem:[%s16419_s2 + $0x188] sm:$0xff] }
 0x109   : > { %889 = vperm.xlu1 %7488, %v639_v55   ;;  %884 = vperm.xlu0 %7487, %v638_v56   ;;  %v665_v55 = vld [vmem:[%s16419_s2 + $0x180] sm:$0xff]  ;;  %v588_v56 = vld [vmem:[%s16418_s1 + $0x418] sm:$0xff] }
 0x10d   : > { %7347 = vmatmul.msk.f32.gmra.mxu3 %vm1577_vm1, %v583_v21  ;;  %v477_v21 = vld [vmem:[%s16418_s1 + $0xa0] sm:$0xff] }
 0x10f   : > { %7228 = vmatmul.msk.f32.gmra.mxu0 %vm1577_vm1, %v464_v58  ;;  %7268 = vmatmul.msk.f32.gmra.mxu1 %vm1577_vm1, %v504_v59  ;;  %v513_v58 = vld [vmem:[%s16418_s1 + $0x1c0] sm:$0xff] }
 0x110   : > { %7308 = vmatmul.msk.f32.gmra.mxu2 %vm1577_vm1, %v544_v60  ;;  %909 = vperm.xlu2 %7489, %v643_v61   ;;  %v553_v59 = vld [vmem:[%s16418_s1 + $0x300] sm:$0xff]  ;;  %v670_v60 = vld [vmem:[%s16419_s2 + $0x1a8] sm:$0xff] }
 0x111   : > { %904 = vperm.xlu1 %7488, %v642_v62   ;;  %899 = vperm.xlu0 %7487, %v641_v63   ;;  %v669_v61 = vld [vmem:[%s16419_s2 + $0x1a0] sm:$0xff]  ;;  %v668_v62 = vld [vmem:[%s16419_s2 + $0x198] sm:$0xff] }
 0x112   : > { %v589_v63 = vld [vmem:[%s16418_s1 + $0x420] sm:$0xff] }
 0x115   : > { %7348 = vmatmul.msk.f32.gmra.mxu3 %vm1577_vm1, %v584_v28  ;;  %v478_v28 = vld [vmem:[%s16418_s1 + $0xa8] sm:$0xff] }
 0x117   : > { %7229 = vmatmul.msk.f32.gmra.mxu0 %vm1577_vm1, %v465_v1  ;;  %7269 = vmatmul.msk.f32.gmra.mxu1 %vm1577_vm1, %v505_v2  ;;  %v514_v1 = vld [vmem:[%s16418_s1 + $0x1c8] sm:$0xff] }
 0x118   : > { %7309 = vmatmul.msk.f32.gmra.mxu2 %vm1577_vm1, %v545_v3  ;;  %924 = vperm.xlu2 %7489, %v646_v4   ;;  %v554_v2 = vld [vmem:[%s16418_s1 + $0x308] sm:$0xff]  ;;  %v673_v3 = vld [vmem:[%s16419_s2 + $0x1c0] sm:$0xff]  ;;  %v672_v4 = vld [vmem:[%s16419_s2 + $0x1b8] sm:$0xff] }
 0x119   : > { %919 = vperm.xlu1 %7488, %v645_v5   ;;  %914 = vperm.xlu0 %7487, %v644_v6   ;;  %v671_v5 = vld [vmem:[%s16419_s2 + $0x1b0] sm:$0xff]  ;;  %v590_v6 = vld [vmem:[%s16418_s1 + $0x428] sm:$0xff] }
 0x11d   : > { %7349 = vmatmul.msk.f32.gmra.mxu3 %vm1577_vm1, %v585_v35  ;;  %v519_v35 = vld [vmem:[%s16418_s1 + $0x1f0] sm:$0xff] }
 0x11f   : > { %7230 = vmatmul.msk.f32.gmra.mxu0 %vm1577_vm1, %v466_v8  ;;  %7270 = vmatmul.msk.f32.gmra.mxu1 %vm1577_vm1, %v506_v9  ;;  %v515_v8 = vld [vmem:[%s16418_s1 + $0x1d0] sm:$0xff] }
 0x120   : > { %7310 = vmatmul.msk.f32.gmra.mxu2 %vm1577_vm1, %v546_v10  ;;  %939 = vperm.xlu2 %7489, %v649_v11   ;;  %v555_v9 = vld [vmem:[%s16418_s1 + $0x310] sm:$0xff]  ;;  %v676_v10 = vld [vmem:[%s16419_s2 + $0x1d8] sm:$0xff] }
 0x121   : > { %934 = vperm.xlu1 %7488, %v648_v12   ;;  %929 = vperm.xlu0 %7487, %v647_v13   ;;  %v675_v11 = vld [vmem:[%s16419_s2 + $0x1d0] sm:$0xff]  ;;  %v674_v12 = vld [vmem:[%s16419_s2 + $0x1c8] sm:$0xff] }
 0x122   : > { %v591_v13 = vld [vmem:[%s16418_s1 + $0x430] sm:$0xff] }
 0x125   : > { %7350 = vmatmul.msk.f32.gmra.mxu3 %vm1577_vm1, %v586_v42  ;;  %v520_v42 = vld [vmem:[%s16418_s1 + $0x1f8] sm:$0xff] }
 0x127   : > { %7231 = vmatmul.msk.f32.gmra.mxu0 %vm1577_vm1, %v467_v15  ;;  %7271 = vmatmul.msk.f32.gmra.mxu1 %vm1577_vm1, %v507_v16  ;;  %v516_v15 = vld [vmem:[%s16418_s1 + $0x1d8] sm:$0xff] }
 0x128   : > { %7311 = vmatmul.msk.f32.gmra.mxu2 %vm1577_vm1, %v547_v17  ;;  %954 = vperm.xlu2 %7489, %v652_v18   ;;  %v556_v16 = vld [vmem:[%s16418_s1 + $0x318] sm:$0xff]  ;;  %v679_v17 = vld [vmem:[%s16419_s2 + $0x1f0] sm:$0xff]  ;;  %v678_v18 = vld [vmem:[%s16419_s2 + $0x1e8] sm:$0xff] }
 0x129   : > { %949 = vperm.xlu1 %7488, %v651_v19   ;;  %944 = vperm.xlu0 %7487, %v650_v20   ;;  %v677_v19 = vld [vmem:[%s16419_s2 + $0x1e0] sm:$0xff]  ;;  %v592_v20 = vld [vmem:[%s16418_s1 + $0x438] sm:$0xff] }
 0x12d   : > { %7351 = vmatmul.msk.f32.gmra.mxu3 %vm1577_vm1, %v587_v49  ;;  %v689_v49 = vld [vmem:[%s16419_s2 + $0x240] sm:$0xff] }
 0x12f   : > { %7232 = vmatmul.msk.f32.gmra.mxu0 %vm1577_vm1, %v468_v22  ;;  %7272 = vmatmul.msk.f32.gmra.mxu1 %vm1577_vm1, %v508_v23  ;;  %v517_v22 = vld [vmem:[%s16418_s1 + $0x1e0] sm:$0xff] }
 0x130   : > { %7312 = vmatmul.msk.f32.gmra.mxu2 %vm1577_vm1, %v548_v24  ;;  %969 = vperm.xlu2 %7489, %v655_v25   ;;  %v557_v23 = vld [vmem:[%s16418_s1 + $0x320] sm:$0xff]  ;;  %v682_v24 = vld [vmem:[%s16419_s2 + $0x208] sm:$0xff] }
 0x131   : > { %964 = vperm.xlu1 %7488, %v654_v26   ;;  %959 = vperm.xlu0 %7487, %v653_v27   ;;  %v681_v25 = vld [vmem:[%s16419_s2 + $0x200] sm:$0xff]  ;;  %v680_v26 = vld [vmem:[%s16419_s2 + $0x1f8] sm:$0xff] }
 0x132   : > { %v593_v27 = vld [vmem:[%s16418_s1 + $0x440] sm:$0xff] }
 0x135   : > { %7352 = vmatmul.msk.f32.gmra.mxu3 %vm1577_vm1, %v588_v56  ;;  %v692_v56 = vld [vmem:[%s16419_s2 + $0x258] sm:$0xff] }
 0x137   : > { %7233 = vmatmul.msk.f32.gmra.mxu0 %vm1577_vm1, %v469_v29  ;;  %7273 = vmatmul.msk.f32.gmra.mxu1 %vm1577_vm1, %v509_v30  ;;  %v518_v29 = vld [vmem:[%s16418_s1 + $0x1e8] sm:$0xff] }
 0x138   : > { %7313 = vmatmul.msk.f32.gmra.mxu2 %vm1577_vm1, %v549_v31  ;;  %984 = vperm.xlu2 %7489, %v658_v32   ;;  %v558_v30 = vld [vmem:[%s16418_s1 + $0x328] sm:$0xff]  ;;  %v685_v31 = vld [vmem:[%s16419_s2 + $0x220] sm:$0xff]  ;;  %v684_v32 = vld [vmem:[%s16419_s2 + $0x218] sm:$0xff] }
 0x139   : > { %979 = vperm.xlu1 %7488, %v657_v33   ;;  %974 = vperm.xlu0 %7487, %v656_v34   ;;  %v683_v33 = vld [vmem:[%s16419_s2 + $0x210] sm:$0xff] }
 0x13a   : > { %v479_v34 = vld [vmem:[%s16418_s1 + $0xb0] sm:$0xff] }
 0x13d   : > { %7353 = vmatmul.msk.f32.gmra.mxu3 %vm1577_vm1, %v589_v63  ;;  %v562_v63 = vld [vmem:[%s16418_s1 + $0x348] sm:$0xff] }
 0x13f   : > { %7234 = vmatmul.msk.f32.gmra.mxu0 %vm1577_vm1, %v470_v36  ;;  %7274 = vmatmul.msk.f32.gmra.mxu1 %vm1577_vm1, %v510_v37  ;;  %v559_v36 = vld [vmem:[%s16418_s1 + $0x330] sm:$0xff]  ;;  %v688_v37 = vld [vmem:[%s16419_s2 + $0x238] sm:$0xff] }
 0x140   : > { %7314 = vmatmul.msk.f32.gmra.mxu2 %vm1577_vm1, %v550_v38  ;;  %999 = vperm.xlu2 %7489, %v661_v39   ;;  %v687_v38 = vld [vmem:[%s16419_s2 + $0x230] sm:$0xff]  ;;  %v686_v39 = vld [vmem:[%s16419_s2 + $0x228] sm:$0xff] }
 0x141   : > { %994 = vperm.xlu1 %7488, %v660_v40   ;;  %989 = vperm.xlu0 %7487, %v659_v41   ;;  %v594_v40 = vld [vmem:[%s16418_s1 + $0x448] sm:$0xff]  ;;  %v480_v41 = vld [vmem:[%s16418_s1 + $0xb8] sm:$0xff] }
 0x145   : > { %7354 = vmatmul.msk.f32.gmra.mxu3 %vm1577_vm1, %v590_v6  ;;  %v483_v6 = vld [vmem:[%s16418_s1 + $0xd0] sm:$0xff] }
 0x147   : > { %7235 = vmatmul.msk.f32.gmra.mxu0 %vm1577_vm1, %v471_v43  ;;  %7275 = vmatmul.msk.f32.gmra.mxu1 %vm1577_vm1, %v511_v44 }
 0x148   : > { %7315 = vmatmul.msk.f32.gmra.mxu2 %vm1577_vm1, %v551_v45  ;;  %1014 = vperm.xlu2 %7489, %v664_v46   ;;  %v560_v45 = vld [vmem:[%s16418_s1 + $0x338] sm:$0xff]  ;;  %v691_v46 = vld [vmem:[%s16419_s2 + $0x250] sm:$0xff] }
 0x149   : > { %1009 = vperm.xlu1 %7488, %v663_v47   ;;  %1004 = vperm.xlu0 %7487, %v662_v48   ;;  %v690_v48 = vld [vmem:[%s16419_s2 + $0x248] sm:$0xff] }
 0x14d   : > { %7355 = vmatmul.msk.f32.gmra.mxu3 %vm1577_vm1, %v591_v13 }
 0x14f   : > { %7236 = vmatmul.msk.f32.gmra.mxu0 %vm1577_vm1, %v472_v50  ;;  %7276 = vmatmul.msk.f32.gmra.mxu1 %vm1577_vm1, %v512_v51  ;;  %v595_v50 = vld [vmem:[%s16418_s1 + $0x450] sm:$0xff]  ;;  %v481_v51 = vld [vmem:[%s16418_s1 + $0xc0] sm:$0xff] }
 0x150   : > { %7316 = vmatmul.msk.f32.gmra.mxu2 %vm1577_vm1, %v552_v52  ;;  %1029 = vperm.xlu2 %7489, %v667_v53   ;;  %v521_v52 = vld [vmem:[%s16418_s1 + $0x200] sm:$0xff] }
 0x151   : > { %1024 = vperm.xlu1 %7488, %v666_v54   ;;  %1019 = vperm.xlu0 %7487, %v665_v55   ;;  %v561_v53 = vld [vmem:[%s16418_s1 + $0x340] sm:$0xff]  ;;  %v694_v54 = vld [vmem:[%s16419_s2 + $0x268] sm:$0xff] }
 0x152   : > { %v693_v55 = vld [vmem:[%s16419_s2 + $0x260] sm:$0xff] }
 0x154   : > { %v9185_v43 = vpop.f32.mrf.mxu0  ;;  %v9187_v44 = vpop.f32.mrf.mxu1 }
 0x155   : > { %7356 = vmatmul.msk.f32.gmra.mxu3 %vm1577_vm1, %v592_v20  ;;  %v9311_v20 = vpop.permute.xlu2 %799 }
 0x157   : > { %7237 = vmatmul.msk.f32.gmra.mxu0 %vm1577_vm1, %v473_v57  ;;  %7277 = vmatmul.msk.f32.gmra.mxu1 %vm1577_vm1, %v513_v58 }
 0x158   : > { %7317 = vmatmul.msk.f32.gmra.mxu2 %vm1577_vm1, %v553_v59  ;;  %1044 = vperm.xlu2 %7489, %v670_v60   ;;  %v482_v60 = vld [vmem:[%s16418_s1 + $0xc8] sm:$0xff] }
 0x159   : > { %1039 = vperm.xlu1 %7488, %v669_v61   ;;  %1034 = vperm.xlu0 %7487, %v668_v62   ;;  %v522_v61 = vld [vmem:[%s16418_s1 + $0x208] sm:$0xff]  ;;  %v596_v62 = vld [vmem:[%s16418_s1 + $0x458] sm:$0xff] }
 0x15b   : > { %v9195_v47 = vpop.f32.mrf.mxu2 }
 0x15c   : > { %16431 = vst [vmem:[#allocation4_spill] sm:$0xff] %v9195_v47  ;;  %v9228_v57 = vpop.f32.mrf.mxu0  ;;  %v9230_v58 = vpop.f32.mrf.mxu1 }
 0x15d   : > { %7357 = vmatmul.msk.f32.gmra.mxu3 %vm1577_vm1, %v593_v27  ;;  %v565_v27 = vld [vmem:[%s16418_s1 + $0x360] sm:$0xff] }
 0x15f   : > { %7238 = vmatmul.msk.f32.gmra.mxu0 %vm1577_vm1, %v474_v0  ;;  %7278 = vmatmul.msk.f32.gmra.mxu1 %vm1577_vm1, %v514_v1  ;;  %v697_v0 = vld [vmem:[%s16419_s2 + $0x280] sm:$0xff]  ;;  %v696_v1 = vld [vmem:[%s16419_s2 + $0x278] sm:$0xff] }
 0x160   : > { %7318 = vmatmul.msk.f32.gmra.mxu2 %vm1577_vm1, %v554_v2  ;;  %1059 = vperm.xlu2 %7489, %v673_v3   ;;  %v695_v2 = vld [vmem:[%s16419_s2 + $0x270] sm:$0xff] }
 0x161   : > { %1054 = vperm.xlu1 %7488, %v672_v4   ;;  %1049 = vperm.xlu0 %7487, %v671_v5  }
 0x163   : > { %v9234_v59 = vpop.f32.mrf.mxu2 }
 0x164   : > { %16432 = vst [vmem:[#allocation5_spill] sm:$0xff] %v9234_v59  ;;  %v9262_v3 = vpop.f32.mrf.mxu0  ;;  %v9264_v4 = vpop.f32.mrf.mxu1 }
 0x165   : > { %7358 = vmatmul.msk.f32.gmra.mxu3 %vm1577_vm1, %v594_v40 }
 0x167   : > { %7239 = vmatmul.msk.f32.gmra.mxu0 %vm1577_vm1, %v475_v7  ;;  %7279 = vmatmul.msk.f32.gmra.mxu1 %vm1577_vm1, %v515_v8  ;;  %v523_v7 = vld [vmem:[%s16418_s1 + $0x210] sm:$0xff] }
 0x168   : > { %7319 = vmatmul.msk.f32.gmra.mxu2 %vm1577_vm1, %v555_v9  ;;  %1074 = vperm.xlu2 %7489, %v676_v10   ;;  %v563_v8 = vld [vmem:[%s16418_s1 + $0x350] sm:$0xff]  ;;  %v700_v9 = vld [vmem:[%s16419_s2 + $0x298] sm:$0xff] }
 0x169   : > { %1069 = vperm.xlu1 %7488, %v675_v11   ;;  %1064 = vperm.xlu0 %7487, %v674_v12   ;;  %v699_v10 = vld [vmem:[%s16419_s2 + $0x290] sm:$0xff]  ;;  %v698_v11 = vld [vmem:[%s16419_s2 + $0x288] sm:$0xff] }
 0x16b   : > { %v9266_v5 = vpop.f32.mrf.mxu2 }
 0x16c   : > { %16433 = vst [vmem:[#allocation6_spill] sm:$0xff] %v9266_v5  ;;  %v9289_v12 = vpop.f32.mrf.mxu0  ;;  %v9291_v13 = vpop.f32.mrf.mxu1 }
 0x16d   : > { %7359 = vmatmul.msk.f32.gmra.mxu3 %vm1577_vm1, %v595_v50  ;;  %v567_v50 = vld [vmem:[%s16418_s1 + $0x370] sm:$0xff] }
 0x16f   : > { %7240 = vmatmul.msk.f32.gmra.mxu0 %vm1577_vm1, %v476_v14  ;;  %7280 = vmatmul.msk.f32.gmra.mxu1 %vm1577_vm1, %v516_v15  ;;  %v484_v15 = vld [vmem:[%s16418_s1 + $0xd8] sm:$0xff] }
 0x170   : > { %7320 = vmatmul.msk.f32.gmra.mxu2 %vm1577_vm1, %v556_v16  ;;  %1089 = vperm.xlu2 %7489, %v679_v17   ;;  %v524_v16 = vld [vmem:[%s16418_s1 + $0x218] sm:$0xff]  ;;  %v597_v17 = vld [vmem:[%s16418_s1 + $0x460] sm:$0xff] }
 0x171   : > { %1084 = vperm.xlu1 %7488, %v678_v18   ;;  %1079 = vperm.xlu0 %7487, %v677_v19   ;;  %v564_v18 = vld [vmem:[%s16418_s1 + $0x358] sm:$0xff]  ;;  %v703_v19 = vld [vmem:[%s16419_s2 + $0x2b0] sm:$0xff] }
 0x173   : > { %v9293_v14 = vpop.f32.mrf.mxu2 }
 0x174   : > { %16434 = vst [vmem:[#allocation7_spill] sm:$0xff] %v9293_v14 }
 0x175   : > { %7360 = vmatmul.msk.f32.gmra.mxu3 %vm1577_vm1, %v596_v62  ;;  %v9419_v62 = vpop.permute.xlu0 %779 }
 0x177   : > { %7241 = vmatmul.msk.f32.gmra.mxu0 %vm1577_vm1, %v477_v21  ;;  %7281 = vmatmul.msk.f32.gmra.mxu1 %vm1577_vm1, %v517_v22  ;;  %v702_v21 = vld [vmem:[%s16419_s2 + $0x2a8] sm:$0xff]  ;;  %v701_v22 = vld [vmem:[%s16419_s2 + $0x2a0] sm:$0xff] }
 0x178   : > { %7321 = vmatmul.msk.f32.gmra.mxu2 %vm1577_vm1, %v557_v23  ;;  %1104 = vperm.xlu2 %7489, %v682_v24   ;;  %v485_v23 = vld [vmem:[%s16418_s1 + $0xe0] sm:$0xff] }
 0x179   : > { %1099 = vperm.xlu1 %7488, %v681_v25   ;;  %1094 = vperm.xlu0 %7487, %v680_v26   ;;  %v525_v24 = vld [vmem:[%s16418_s1 + $0x220] sm:$0xff]  ;;  %v9328_v25 = vpop.f32.mrf.mxu0  ;;  %v9330_v26 = vpop.f32.mrf.mxu1 }
 0x17d   : > { %7361 = vmatmul.msk.f32.gmra.mxu3 %vm1577_vm1, %v597_v17  ;;  %v9456_v17 = vpop.permute.xlu0 %784 }
 0x17f   : > { %7242 = vmatmul.msk.f32.gmra.mxu0 %vm1577_vm1, %v478_v28  ;;  %7282 = vmatmul.msk.f32.gmra.mxu1 %vm1577_vm1, %v518_v29  ;;  %v706_v28 = vld [vmem:[%s16419_s2 + $0x2c8] sm:$0xff]  ;;  %v9338_v29 = vpop.f32.mrf.mxu2 }
 0x180   : > { %7322 = vmatmul.msk.f32.gmra.mxu2 %vm1577_vm1, %v558_v30  ;;  %1119 = vperm.xlu2 %7489, %v685_v31   ;;  %16435 = vst [vmem:[#allocation8_spill] sm:$0xff] %v9338_v29  ;;  %v705_v30 = vld [vmem:[%s16419_s2 + $0x2c0] sm:$0xff]  ;;  %v704_v31 = vld [vmem:[%s16419_s2 + $0x2b8] sm:$0xff] }
 0x181   : > { %1114 = vperm.xlu1 %7488, %v684_v32   ;;  %1109 = vperm.xlu0 %7487, %v683_v33   ;;  %v9348_v32 = vpop.permute.xlu2 %804  ;;  %v486_v33 = vld [vmem:[%s16418_s1 + $0xe8] sm:$0xff]  ;;  %v9373_v40 = vpop.f32.mrf.mxu0 }
 0x187   : > { %7243 = vmatmul.msk.f32.gmra.mxu0 %vm1577_vm1, %v479_v34  ;;  %7283 = vmatmul.msk.f32.gmra.mxu1 %vm1577_vm1, %v519_v35  ;;  %v526_v34 = vld [vmem:[%s16418_s1 + $0x228] sm:$0xff] }
 0x188   : > { %7323 = vmatmul.msk.f32.gmra.mxu2 %vm1577_vm1, %v559_v36  ;;  %1134 = vperm.xlu2 %7489, %v688_v37   ;;  %v566_v35 = vld [vmem:[%s16418_s1 + $0x368] sm:$0xff]  ;;  %v709_v37 = vld [vmem:[%s16419_s2 + $0x2e0] sm:$0xff] }
 0x189   : > { %1129 = vperm.xlu1 %7488, %v687_v38   ;;  %1124 = vperm.xlu0 %7487, %v686_v39   ;;  %v598_v36 = vld [vmem:[%s16418_s1 + $0x468] sm:$0xff]  ;;  %v708_v38 = vld [vmem:[%s16419_s2 + $0x2d8] sm:$0xff]  ;;  %v707_v39 = vld [vmem:[%s16419_s2 + $0x2d0] sm:$0xff] }
 0x18a   : > { %7362 = vmatmul.msk.f32.gmra.mxu3 %vm1577_vm1, %v598_v36  ;;  %v717_v36 = vld [vmem:[%s16419_s2 + $0x320] sm:$0xff] }
 0x18f   : > { %7244 = vmatmul.msk.f32.gmra.mxu0 %vm1577_vm1, %v480_v41  ;;  %7284 = vmatmul.msk.f32.gmra.mxu1 %vm1577_vm1, %v520_v42  ;;  %v9375_v41 = vpop.f32.mrf.mxu1  ;;  %v9379_v42 = vpop.f32.mrf.mxu2 }
 0x190   : > { %7324 = vmatmul.msk.f32.gmra.mxu2 %vm1577_vm1, %v560_v45  ;;  %1149 = vperm.xlu2 %7489, %v691_v46   ;;  %16436 = vst [vmem:[#allocation9_spill] sm:$0xff] %v9379_v42  ;;  %v9382_v45 = vpop.permute.xlu2 %819 }
 0x191   : > { %1144 = vperm.xlu1 %7488, %v690_v48   ;;  %1139 = vperm.xlu0 %7487, %v689_v49   ;;  %v487_v48 = vld [vmem:[%s16418_s1 + $0xf0] sm:$0xff] }
 0x192   : > { %v527_v49 = vld [vmem:[%s16418_s1 + $0x230] sm:$0xff] }
 0x197   : > { %7245 = vmatmul.msk.f32.gmra.mxu0 %vm1577_vm1, %v481_v51  ;;  %7285 = vmatmul.msk.f32.gmra.mxu1 %vm1577_vm1, %v521_v52  ;;  %v9395_v51 = vpop.f32.mrf.mxu0  ;;  %v9397_v52 = vpop.f32.mrf.mxu1 }
 0x198   : > { %7325 = vmatmul.msk.f32.gmra.mxu2 %vm1577_vm1, %v561_v53  ;;  %1164 = vperm.xlu2 %7489, %v694_v54   ;;  %v9384_v46 = vpop.permute.xlu2 %834  ;;  %v599_v53 = vld [vmem:[%s16418_s1 + $0x470] sm:$0xff]  ;;  %v9404_v54 = vpop.f32.mrf.mxu2 }
 0x199   : > { %1159 = vperm.xlu1 %7488, %v693_v55   ;;  %1154 = vperm.xlu0 %7487, %v692_v56   ;;  %16437 = vst [vmem:[#allocation10_spill] sm:$0xff] %v9404_v54  ;;  %v712_v55 = vld [vmem:[%s16419_s2 + $0x2f8] sm:$0xff]  ;;  %v711_v56 = vld [vmem:[%s16419_s2 + $0x2f0] sm:$0xff] }
 0x19a   : > { %7363 = vmatmul.msk.f32.gmra.mxu3 %vm1577_vm1, %v599_v53 }
 0x19f   : > { %7246 = vmatmul.msk.f32.gmra.mxu0 %vm1577_vm1, %v482_v60  ;;  %7286 = vmatmul.msk.f32.gmra.mxu1 %vm1577_vm1, %v522_v61  ;;  %v710_v60 = vld [vmem:[%s16419_s2 + $0x2e8] sm:$0xff]  ;;  %v9417_v61 = vpop.permute.xlu1 %789 }
 0x1a0   : > { %7326 = vmatmul.msk.f32.gmra.mxu2 %vm1577_vm1, %v562_v63  ;;  %1179 = vperm.xlu2 %7489, %v697_v0   ;;  %v9421_v63 = vpop.permute.xlu2 %849 }
 0x1a1   : > { %1174 = vperm.xlu1 %7488, %v696_v1   ;;  %1169 = vperm.xlu0 %7487, %v695_v2   ;;  %v488_v1 = vld [vmem:[%s16418_s1 + $0xf8] sm:$0xff] }
 0x1a2   : > { %v528_v2 = vld [vmem:[%s16418_s1 + $0x238] sm:$0xff] }
 0x1a7   : > { %7247 = vmatmul.msk.f32.gmra.mxu0 %vm1577_vm1, %v483_v6  ;;  %7287 = vmatmul.msk.f32.gmra.mxu1 %vm1577_vm1, %v523_v7  ;;  %v9423_v0 = vpop.permute.xlu1 %794  ;;  %v568_v6 = vld [vmem:[%s16418_s1 + $0x378] sm:$0xff]  ;;  %v9434_v7 = vpop.f32.mrf.mxu0 }
 0x1a8   : > { %7327 = vmatmul.msk.f32.gmra.mxu2 %vm1577_vm1, %v563_v8  ;;  %1194 = vperm.xlu2 %7489, %v700_v9   ;;  %v9436_v8 = vpop.f32.mrf.mxu1  ;;  %v600_v9 = vld [vmem:[%s16418_s1 + $0x478] sm:$0xff] }
 0x1a9   : > { %1189 = vperm.xlu1 %7488, %v699_v10   ;;  %1184 = vperm.xlu0 %7487, %v698_v11   ;;  %v9443_v10 = vpop.f32.mrf.mxu2  ;;  %v715_v11 = vld [vmem:[%s16419_s2 + $0x310] sm:$0xff] }
 0x1aa   : > { %16438 = vst [vmem:[#allocation11_spill] sm:$0xff] %v9443_v10  ;;  %7364 = vmatmul.msk.f32.gmra.mxu3 %vm1577_vm1, %v600_v9  ;;  %v721_v9 = vld [vmem:[%s16419_s2 + $0x340] sm:$0xff] }
 0x1af   : > { %7248 = vmatmul.msk.f32.gmra.mxu0 %vm1577_vm1, %v484_v15  ;;  %7288 = vmatmul.msk.f32.gmra.mxu1 %vm1577_vm1, %v524_v16  ;;  %v714_v15 = vld [vmem:[%s16419_s2 + $0x308] sm:$0xff]  ;;  %v713_v16 = vld [vmem:[%s16419_s2 + $0x300] sm:$0xff] }
 0x1b0   : > { %7328 = vmatmul.msk.f32.gmra.mxu2 %vm1577_vm1, %v564_v18  ;;  %1209 = vperm.xlu2 %7489, %v703_v19   ;;  %v9458_v18 = vpop.permute.xlu2 %864  ;;  %v9460_v19 = vpop.permute.xlu1 %814 }
 0x1b1   : > { %1204 = vperm.xlu1 %7488, %v702_v21   ;;  %1199 = vperm.xlu0 %7487, %v701_v22   ;;  %16439 = vst [vmem:[#allocation12_spill] sm:$0xff] %v9458_v18  ;;  %v9462_v21 = vpop.permute.xlu0 %809 }
 0x1b7   : > { %7249 = vmatmul.msk.f32.gmra.mxu0 %vm1577_vm1, %v485_v23  ;;  %7289 = vmatmul.msk.f32.gmra.mxu1 %vm1577_vm1, %v525_v24  ;;  %v489_v23 = vld [vmem:[%s16418_s1 + $0x100] sm:$0xff] }
 0x1b8   : > { %7329 = vmatmul.msk.f32.gmra.mxu2 %vm1577_vm1, %v565_v27  ;;  %1224 = vperm.xlu2 %7489, %v706_v28   ;;  %v9464_v22 = vpop.permute.xlu2 %879  ;;  %v529_v24 = vld [vmem:[%s16418_s1 + $0x240] sm:$0xff]  ;;  %v9475_v28 = vpop.f32.mrf.mxu0 }
 0x1b9   : > { %1219 = vperm.xlu1 %7488, %v705_v30   ;;  %1214 = vperm.xlu0 %7487, %v704_v31   ;;  %16440 = vst [vmem:[#allocation13_spill] sm:$0xff] %v9464_v22  ;;  %v569_v27 = vld [vmem:[%s16418_s1 + $0x380] sm:$0xff]  ;;  %v9477_v30 = vpop.f32.mrf.mxu1 }
 0x1ba   : > { %v601_v31 = vld [vmem:[%s16418_s1 + $0x480] sm:$0xff] }
 0x1bf   : > { %7250 = vmatmul.msk.f32.gmra.mxu0 %vm1577_vm1, %v486_v33  ;;  %7290 = vmatmul.msk.f32.gmra.mxu1 %vm1577_vm1, %v526_v34  ;;  %v9484_v33 = vpop.f32.mrf.mxu2  ;;  %v9486_v34 = vpop.f32.mrf.mxu3 }
 0x1c0   : > { %7330 = vmatmul.msk.f32.gmra.mxu2 %vm1577_vm1, %v566_v35  ;;  %1239 = vperm.xlu2 %7489, %v709_v37   ;;  %16441 = vst [vmem:[#allocation14_spill] sm:$0xff] %v9484_v33  ;;  %v718_v35 = vld [vmem:[%s16419_s2 + $0x328] sm:$0xff]  ;;  %v716_v37 = vld [vmem:[%s16419_s2 + $0x318] sm:$0xff] }
 0x1c1   : > { %1234 = vperm.xlu1 %7488, %v708_v38   ;;  %1229 = vperm.xlu0 %7487, %v707_v39   ;;  %16442 = vst [vmem:[#allocation15_spill] sm:$0xff] %v9486_v34  ;;  %v9499_v38 = vpop.permute.xlu1 %829  ;;  %v9501_v39 = vpop.permute.xlu0 %824 }
 0x1c2   : > { %7365 = vmatmul.msk.f32.gmra.mxu3 %vm1577_vm1, %v601_v31 }
 0x1c7   : > { %7251 = vmatmul.msk.f32.gmra.mxu0 %vm1577_vm1, %v487_v48  ;;  %7291 = vmatmul.msk.f32.gmra.mxu1 %vm1577_vm1, %v527_v49  ;;  %v9503_v48 = vpop.permute.xlu2 %894  ;;  %v9505_v49 = vpop.f32.mrf.mxu0 }
 0x1c8   : > { %7331 = vmatmul.msk.f32.gmra.mxu2 %vm1577_vm1, %v567_v50  ;;  %1254 = vperm.xlu2 %7489, %v712_v55   ;;  %16443 = vst [vmem:[#allocation16_spill] sm:$0xff] %v9503_v48  ;;  %v9507_v50 = vpop.f32.mrf.mxu1  ;;  %v9509_v53 = vpop.f32.mrf.mxu2 }
 0x1c9   : > { %1249 = vperm.xlu1 %7488, %v711_v56   ;;  %1244 = vperm.xlu0 %7487, %v710_v60   ;;  %16444 = vst [vmem:[#allocation17_spill] sm:$0xff] %v9509_v53  ;;  %v9511_v55 = vpop.f32.mrf.mxu3  ;;  %v490_v56 = vld [vmem:[%s16418_s1 + $0x108] sm:$0xff] }
 0x1ca   : > { %16445 = vst [vmem:[#allocation18_spill] sm:$0xff] %v9511_v55  ;;  %v530_v60 = vld [vmem:[%s16418_s1 + $0x248] sm:$0xff]  ;;  %v604_v55 = vld [vmem:[%s16418_s1 + $0x498] sm:$0xff] }
 0x1cf   : > { %7252 = vmatmul.msk.f32.gmra.mxu0 %vm1577_vm1, %v488_v1  ;;  %7292 = vmatmul.msk.f32.gmra.mxu1 %vm1577_vm1, %v528_v2  ;;  %v570_v1 = vld [vmem:[%s16418_s1 + $0x388] sm:$0xff] }
 0x1d0   : > { %7332 = vmatmul.msk.f32.gmra.mxu2 %vm1577_vm1, %v568_v6  ;;  %1269 = vperm.xlu2 %7489, %v715_v11   ;;  %v602_v2 = vld [vmem:[%s16418_s1 + $0x488] sm:$0xff]  ;;  %v9527_v6 = vpop.permute.xlu1 %844  ;;  %v720_v11 = vld [vmem:[%s16419_s2 + $0x338] sm:$0xff]  ;;  %v9548_v31 = vpop.f32.mrf.mxu2 }
 0x1d1   : > { %1264 = vperm.xlu1 %7488, %v714_v15   ;;  %1259 = vperm.xlu0 %7487, %v713_v16   ;;  %v719_v15 = vld [vmem:[%s16419_s2 + $0x330] sm:$0xff]  ;;  %v9540_v16 = vpop.permute.xlu0 %839  ;;  %16447 = vst [vmem:[#allocation20_spill] sm:$0xff] %v9548_v31  ;;  %v533_v31 = vld [vmem:[%s16418_s1 + $0x260] sm:$0xff] }
 0x1d2   : > { %7366 = vmatmul.msk.f32.gmra.mxu3 %vm1577_vm1, %v602_v2  ;;  %v723_v2 = vld [vmem:[%s16419_s2 + $0x350] sm:$0xff] }
 0x1d7   : > { %7253 = vmatmul.msk.f32.gmra.mxu0 %vm1577_vm1, %v489_v23  ;;  %7293 = vmatmul.msk.f32.gmra.mxu1 %vm1577_vm1, %v529_v24  ;;  %v9542_v23 = vpop.permute.xlu2 %909  ;;  %v9544_v24 = vpop.f32.mrf.mxu0 }
 0x1d8   : > { %7333 = vmatmul.msk.f32.gmra.mxu2 %vm1577_vm1, %v569_v27  ;;  %1284 = vperm.xlu2 %7489, %v718_v35   ;;  %16446 = vst [vmem:[#allocation19_spill] sm:$0xff] %v9542_v23  ;;  %v9546_v27 = vpop.f32.mrf.mxu1  ;;  %v9550_v35 = vpop.f32.mrf.mxu3 }
 0x1d9   : > { %1279 = vperm.xlu1 %7488, %v717_v36   ;;  %1274 = vperm.xlu0 %7487, %v716_v37   ;;  %16448 = vst [vmem:[#allocation21_spill] sm:$0xff] %v9550_v35  ;;  %v491_v36 = vld [vmem:[%s16418_s1 + $0x110] sm:$0xff] }
 0x1da   : > { %v531_v37 = vld [vmem:[%s16418_s1 + $0x250] sm:$0xff] }
 0x1db   : > { %v727_v35 = vld [vmem:[%s16419_s2 + $0x370] sm:$0xff] }
 0x1df   : > { %7254 = vmatmul.msk.f32.gmra.mxu0 %vm1577_vm1, %v490_v56  ;;  %7294 = vmatmul.msk.f32.gmra.mxu1 %vm1577_vm1, %v530_v60  ;;  %v571_v56 = vld [vmem:[%s16418_s1 + $0x390] sm:$0xff] }
 0x1e0   : > { %7334 = vmatmul.msk.f32.gmra.mxu2 %vm1577_vm1, %v570_v1  ;;  %1299 = vperm.xlu2 %7489, %v721_v9   ;;  %v603_v60 = vld [vmem:[%s16418_s1 + $0x490] sm:$0xff]  ;;  %v724_v1 = vld [vmem:[%s16419_s2 + $0x358] sm:$0xff]  ;;  %v722_v9 = vld [vmem:[%s16419_s2 + $0x348] sm:$0xff]  ;;  %v9585_v34 = vpop.f32.mrf.mxu1 }
 0x1e1   : > { %1294 = vperm.xlu1 %7488, %v720_v11   ;;  %1289 = vperm.xlu0 %7487, %v719_v15   ;;  %v9577_v11 = vpop.permute.xlu1 %859  ;;  %v9579_v15 = vpop.permute.xlu0 %854  ;;  %16452 = vst [vmem:[#allocation25_spill] sm:$0xff] %v9585_v34  ;;  %v608_v34 = vld [vmem:[%s16418_s1 + $0x4b8] sm:$0xff] }
 0x1e2   : > { %7367 = vmatmul.msk.f32.gmra.mxu3 %vm1577_vm1, %v603_v60  ;;  %16449 = vst [vmem:[#allocation22_spill] sm:$0xff] %v9577_v11  ;;  %v532_v60 = vld [vmem:[%s16418_s1 + $0x258] sm:$0xff] }
 0x1e3   : > { %16450 = vst [vmem:[#allocation23_spill] sm:$0xff] %v9579_v15 }
 0x1e7   : > { %7255 = vmatmul.msk.f32.gmra.mxu0 %vm1577_vm1, %v491_v36  ;;  %7295 = vmatmul.msk.f32.gmra.mxu1 %vm1577_vm1, %v531_v37  ;;  %v9581_v36 = vpop.permute.xlu2 %924  ;;  %v9583_v37 = vpop.f32.mrf.mxu0 }
 0x1e8   : > { %7335 = vmatmul.msk.f32.gmra.mxu2 %vm1577_vm1, %v571_v56  ;;  %1314 = vperm.xlu2 %7489, %v724_v1   ;;  %16451 = vst [vmem:[#allocation24_spill] sm:$0xff] %v9581_v36  ;;  %v492_v56 = vld [vmem:[%s16418_s1 + $0x118] sm:$0xff]  ;;  %v726_v36 = vld [vmem:[%s16419_s2 + $0x368] sm:$0xff]  ;;  %v9640_v10 = vpop.f32.mrf.mxu1 }
 0x1e9   : > { %1309 = vperm.xlu1 %7488, %v723_v2   ;;  %1304 = vperm.xlu0 %7487, %v722_v9   ;;  %v572_v1 = vld [vmem:[%s16418_s1 + $0x398] sm:$0xff]  ;;  %v9596_v2 = vpop.f32.mrf.mxu2  ;;  %v9598_v9 = vpop.f32.mrf.mxu3  ;;  %16458 = vst [vmem:[#allocation31_spill] sm:$0xff] %v9640_v10 }
 0x1ea   : > { %16453 = vst [vmem:[#allocation26_spill] sm:$0xff] %v9596_v2  ;;  %7368 = vmatmul.msk.f32.gmra.mxu3 %vm1577_vm1, %v604_v55  ;;  %v9626_v2 = vadd.f32 %v9185_v43, %v9419_v62  ;;  %v730_v43 = vld [vmem:[%s16419_s2 + $0x388] sm:$0xff]  ;;  %v729_v62 = vld [vmem:[%s16419_s2 + $0x380] sm:$0xff] }
 0x1eb   : > { %16454 = vst [vmem:[#allocation27_spill] sm:$0xff] %v9598_v9  ;;  %v725_v9 = vld [vmem:[%s16419_s2 + $0x360] sm:$0xff] }
 0x1ef   : > { %7256 = vmatmul.msk.f32.gmra.mxu0 %vm1577_vm1, %v492_v56  ;;  %7296 = vmatmul.msk.f32.gmra.mxu1 %vm1577_vm1, %v532_v60  ;;  %v9616_v56 = vpop.permute.xlu1 %874  ;;  %v493_v60 = vld [vmem:[%s16418_s1 + $0x120] sm:$0xff]  ;;  %v9630_v55 = vpop.permute.xlu2 %939 }
 0x1f0   : > { %7336 = vmatmul.msk.f32.gmra.mxu2 %vm1577_vm1, %v572_v1  ;;  %1329 = vperm.xlu2 %7489, %v727_v35   ;;  %16455 = vst [vmem:[#allocation28_spill] sm:$0xff] %v9616_v56  ;;  %v9628_v1 = vpop.permute.xlu0 %869  ;;  %v573_v35 = vld [vmem:[%s16418_s1 + $0x3a0] sm:$0xff] }
 0x1f1   : > { %1324 = vperm.xlu1 %7488, %v726_v36   ;;  %1319 = vperm.xlu0 %7487, %v725_v9   ;;  %16456 = vst [vmem:[#allocation29_spill] sm:$0xff] %v9628_v1  ;;  %v605_v36 = vld [vmem:[%s16418_s1 + $0x4a0] sm:$0xff]  ;;  %v9638_v9 = vpop.f32.mrf.mxu0  ;;  %v9653_v33 = vpop.f32.mrf.mxu2 }
 0x1f2   : > { %16457 = vst [vmem:[#allocation30_spill] sm:$0xff] %v9630_v55  ;;  %v728_v55 = vld [vmem:[%s16419_s2 + $0x378] sm:$0xff]  ;;  %v9655_v23 = vpop.f32.mrf.mxu3  ;;  %7369 = vmatmul.msk.f32.gmra.mxu3 %vm1577_vm1, %v605_v36 }
 0x1f3   : > { %16459 = vst [vmem:[#allocation32_spill] sm:$0xff] %v9653_v33 }
 0x1f4   : > { %16460 = vst [vmem:[#allocation33_spill] sm:$0xff] %v9655_v23  ;;  %v9669_v23 = vadd.f32 %v9262_v3, %v9417_v61  ;;  %v494_v3 = vld [vmem:[%s16418_s1 + $0x128] sm:$0xff] }
 0x1f7   : > { %7257 = vmatmul.msk.f32.gmra.mxu0 %vm1577_vm1, %v493_v60  ;;  %7297 = vmatmul.msk.f32.gmra.mxu1 %vm1577_vm1, %v533_v31  ;;  %v9661_v31 = vadd.f32 %v9228_v57, %v9456_v17  ;;  %v2555_v60 = vsub.f32 0.0, %v9626_v2  ;;  %v9665_v42 = vpop.permute.xlu1 %889  ;;  %v9673_v5 = vpop.permute.xlu2 %954  ;;  %v2557_v57 = vsub.f32 0.0, %v9669_v23  ;;  %v9678_v17 = vadd.f32 %v9289_v12, %v9423_v0  ;;  %v606_v0 = vld [vmem:[%s16418_s1 + $0x4a8] sm:$0xff] }
 0x1f8   : > { %7337 = vmatmul.msk.f32.gmra.mxu2 %vm1577_vm1, %v573_v35  ;;  %1344 = vperm.xlu2 %7489, %v730_v43   ;;  %16461 = vst [vmem:[#allocation34_spill] sm:$0xff] %v9665_v42  ;;  %v9671_v35 = vpop.permute.xlu0 %884  ;;  %v9693_v12 = vpop.f32.mrf.mxu1 }
 0x1f9   : > { %1339 = vperm.xlu1 %7488, %v729_v62   ;;  %1334 = vperm.xlu0 %7487, %v728_v55   ;;  %v2556_v29 = vsub.f32 0.0, %v9661_v31  ;;  %v2715_v59 = vmul.f32 1.442695, %v2555_v60  ;;  %16462 = vst [vmem:[#allocation35_spill] sm:$0xff] %v9671_v35  ;;  %v2719_v55 = vmul.f32 1.442695, %v2557_v57  ;;  %v9691_v62 = vpop.f32.mrf.mxu0 }
 0x1fa   : > { %16463 = vst [vmem:[#allocation36_spill] sm:$0xff] %v9673_v5  ;;  %v2558_v60 = vsub.f32 0.0, %v9678_v17  ;;  %v9703_v57 = vpop.f32.mrf.mxu3  ;;  %7370 = vmatmul.msk.f32.gmra.mxu3 %vm1577_vm1, %v606_v0  ;;  %v731_v5 = vld [vmem:[%s16419_s2 + $0x390] sm:$0xff] }
 0x1fb   : > { %v2717_v36 = vmul.f32 1.442695, %v2556_v29  ;;  %7490 = vpow2.f32 %v2715_v59  ;;  %v534_v29 = vld [vmem:[%s16418_s1 + $0x268] sm:$0xff]  ;;  %16466 = vst [vmem:[#allocation39_spill] sm:$0xff] %v9703_v57  ;;  %v9718_v57 = vadd.f32 %v9328_v25, %v9311_v20 }
 0x1fc   : > { %v574_v59 = vld [vmem:[%s16418_s1 + $0x3a8] sm:$0xff]  ;;  %v2721_v33 = vmul.f32 1.442695, %v2558_v60  ;;  %v495_v60 = vld [vmem:[%s16418_s1 + $0x130] sm:$0xff] }
 0x1fd   : > { %7492 = vpow2.f32 %v2717_v36  ;;  %v9701_v36 = vpop.f32.mrf.mxu2  ;;  %v2559_v48 = vsub.f32 0.0, %v9718_v57 }
 0x1fe   : > { %16465 = vst [vmem:[#allocation38_spill] sm:$0xff] %v9701_v36  ;;  %7494 = vpow2.f32 %v2719_v55  ;;  %v9731_v55 = vadd.f32 %v9373_v40, %v9348_v32  ;;  %v535_v32 = vld [vmem:[%s16418_s1 + $0x270] sm:$0xff] }
 0x1ff   : > { %v9680_v43 = vpop.permute.xlu1 %904  ;;  %7258 = vmatmul.msk.f32.gmra.mxu0 %vm1577_vm1, %v494_v3  ;;  %7298 = vmatmul.msk.f32.gmra.mxu1 %vm1577_vm1, %v534_v29  ;;  %v733_v3 = vld [vmem:[%s16419_s2 + $0x3a0] sm:$0xff]  ;;  %v732_v29 = vld [vmem:[%s16419_s2 + $0x398] sm:$0xff] }
 0x200   : > { %16464 = vst [vmem:[#allocation37_spill] sm:$0xff] %v9680_v43  ;;  %7338 = vmatmul.msk.f32.gmra.mxu2 %vm1577_vm1, %v574_v59  ;;  %v9720_v59 = vpop.permute.xlu0 %899  ;;  %1359 = vperm.xlu2 %7489, %v733_v3   ;;  %v9724_v43 = vpop.permute.xlu2 %969 }
 0x201   : > { %v7491_v61 = vpop.eup %7490  ;;  %16467 = vst [vmem:[#allocation40_spill] sm:$0xff] %v9720_v59  ;;  %1354 = vperm.xlu1 %7488, %v732_v29   ;;  %1349 = vperm.xlu0 %7487, %v731_v5   ;;  %v2560_v5 = vsub.f32 0.0, %v9731_v55  ;;  %v9750_v3 = vpop.f32.mrf.mxu0 }
 0x202   : > { %v9722_v36 = vadd.f32 1.0, %v7491_v61  ;;  %16468 = vst [vmem:[#allocation41_spill] sm:$0xff] %v9724_v43  ;;  %v2723_v61 = vmul.f32 1.442695, %v2559_v48  ;;  %v9752_v29 = vpop.f32.mrf.mxu1  ;;  %v575_v48 = vld [vmem:[%s16418_s1 + $0x3b0] sm:$0xff] }
 0x203   : > { %v7493_v0 = vpop.eup %7492  ;;  %16470 = vst [vmem:[#allocation43_spill] sm:$0xff] %v9750_v3 }
 0x204   : > { %v9726_v53 = vadd.f32 1.0, %v7493_v0  ;;  %7496 = vrcp.f32 %v9722_v36  ;;  %v7495_v20 = vpop.eup %7494  ;;  %16471 = vst [vmem:[#allocation44_spill] sm:$0xff] %v9752_v29  ;;  %vm3200_vm3 = vweird.f32 %v9722_v36 }
 0x205   : > { %7498 = vpow2.f32 %v2721_v33  ;;  %v9744_v40 = vadd.f32 1.0, %v7495_v20  ;;  %v9748_v33 = vadd.f32 %v9395_v51, %v9462_v21  ;;  %v9761_v20 = vpop.f32.mrf.mxu2  ;;  %v607_v51 = vld [vmem:[%s16418_s1 + $0x4b0] sm:$0xff]  ;;  %v736_v21 = vld [vmem:[%s16419_s2 + $0x3b8] sm:$0xff] }
 0x206   : > { %7500 = vrcp.f32 %v9726_v53  ;;  %16473 = vst [vmem:[#allocation46_spill] sm:$0xff] %v9761_v20  ;;  %v2725_v20 = vmul.f32 1.442695, %v2560_v5  ;;  %vm3215_vm7 = vweird.f32 %v9726_v53 }
 0x207   : > { %v9734_v25 = vpop.permute.xlu1 %919  ;;  %7259 = vmatmul.msk.f32.gmra.mxu0 %vm1577_vm1, %v495_v60  ;;  %7299 = vmatmul.msk.f32.gmra.mxu1 %vm1577_vm1, %v535_v32  ;;  %v735_v60 = vld [vmem:[%s16419_s2 + $0x3b0] sm:$0xff]  ;;  %7502 = vpow2.f32 %v2723_v61  ;;  %v2561_v59 = vsub.f32 0.0, %v9748_v33  ;;  %vm3230_vm11 = vweird.f32 %v9744_v40 }
 0x208   : > { %16469 = vst [vmem:[#allocation42_spill] sm:$0xff] %v9734_v25  ;;  %v9759_v0 = vpop.permute.xlu0 %914  ;;  %7339 = vmatmul.msk.f32.gmra.mxu2 %vm1577_vm1, %v575_v48  ;;  %v985_v43 = vpop.permute.xlu2 %984  ;;  %1374 = vperm.xlu2 %7489, %v736_v21   ;;  %v734_v48 = vld [vmem:[%s16419_s2 + $0x3a8] sm:$0xff]  ;;  %7504 = vrcp.f32 %v9744_v40 }
 0x209   : > { %16472 = vst [vmem:[#allocation45_spill] sm:$0xff] %v9759_v0  ;;  %v9775_v25 = vpop.f32.mrf.mxu3  ;;  %7371 = vmatmul.msk.f32.gmra.mxu3 %vm1577_vm1, %v607_v51  ;;  %1369 = vperm.xlu1 %7488, %v735_v60   ;;  %v9789_v51 = vadd.f32 %v9434_v7, %v9460_v19  ;;  %7506 = vpow2.f32 %v2725_v20  ;;  %v2727_v5 = vmul.f32 1.442695, %v2561_v59  ;;  %v9802_v7 = vadd.f32 %v9230_v58, %v985_v43 }
 0x20a   : > { %v9773_v32 = vpop.eup %7496  ;;  %16474 = vst [vmem:[#allocation47_spill] sm:$0xff] %v9775_v25  ;;  %1364 = vperm.xlu0 %7487, %v734_v48   ;;  %v9818_v43 = vadd.f32 %v9475_v28, %v9382_v45  ;;  %v9881_v15 = vpop.f32.mrf.mxu1 }
 0x20b   : > { %v7499_v0 = vpop.eup %7498  ;;  %v3196_v25 = vmul.f32 %v9773_v32, %v9722_v36  ;;  %v2562_v14 = vsub.f32 0.0, %v9789_v51  ;;  %v2596_v56 = vsub.f32 0.0, %v9802_v7  ;;  %vm3201_vm2 = vweird.f32 %v9773_v32 }
 0x20c   : > { %v9783_v54 = vpop.eup %7500  ;;  %v9791_v21 = vadd.f32 1.0, %v7499_v0  ;;  %vm9830_vm5 = vmor %vm3200_vm3, %vm3201_vm2 }
 0x20d   : > { %v3211_v61 = vmul.f32 %v9783_v54, %v9726_v53  ;;  %v7503_v48 = vpop.eup %7502  ;;  %v3197_v42 = vsub.f32 1.0, %v3196_v25  ;;  %v2729_v22 = vmul.f32 1.442695, %v2562_v14  ;;  %vm3216_vm4 = vweird.f32 %v9783_v54  ;;  %v9894_v3 = vpop.f32.mrf.mxu2 }
 0x20e   : > { %v9798_v35 = vpop.eup %7504  ;;  %7508 = vrcp.f32 %v9791_v21  ;;  %v9806_v20 = vadd.f32 1.0, %v7503_v48  ;;  %v3204_v48 = vand.u32 2147483647, %v9722_v36  ;;  %vm9872_vm8 = vmor %vm3215_vm7, %vm3216_vm4  ;;  %vm3245_vm14 = vweird.f32 %v9791_v21 }
 0x20f   : > { %v9795_v60 = vpop.permute.xlu1 %934  ;;  %v3212_v0 = vsub.f32 1.0, %v3211_v61  ;;  %7510 = vpow2.f32 %v2727_v5  ;;  %v7507_v47 = vpop.eup %7506  ;;  %v3226_v25 = vmul.f32 %v9798_v35, %v9744_v40  ;;  %vm3231_vm9 = vweird.f32 %v9798_v35 }
 0x210   : > { %16475 = vst [vmem:[#allocation48_spill] sm:$0xff] %v9795_v60  ;;  %v9804_v19 = vpop.permute.xlu0 %929  ;;  %v1000_v59 = vpop.permute.xlu2 %999  ;;  %v3198_v60 = vmul.f32 %v9773_v32, %v3197_v42  ;;  %7512 = vrcp.f32 %v9806_v20  ;;  %v9814_v58 = vadd.f32 1.0, %v7507_v47  ;;  %v2797_v47 = vmul.f32 1.442695, %v2596_v56  ;;  %vm9931_vm12 = vmor %vm3230_vm11, %vm3231_vm9 }
 0x211   : > { %16476 = vst [vmem:[#allocation49_spill] sm:$0xff] %v9804_v19  ;;  %v3213_v1 = vmul.f32 %v9783_v54, %v3212_v0  ;;  %v3227_v5 = vsub.f32 1.0, %v3226_v25  ;;  %7514 = vpow2.f32 %v2729_v22  ;;  %v3206_v0 = vand.u32 2147483648, %v9722_v36 }
 0x212   : > { %v3199_v42 = vadd.f32 %v9773_v32, %v3198_v60  ;;  %7516 = vrcp.f32 %v9814_v58  ;;  %v2563_v60 = vsub.f32 0.0, %v9818_v43  ;;  %vm9851_vm6 = vcmp.eq.f32.partialorder %v3204_v48, 8.507059e+37 }
 0x213   : > { %v9835_v28 = vadd.f32 %v9783_v54, %v3213_v1  ;;  %v3228_v56 = vmul.f32 %v9798_v35, %v3227_v5  ;;  %v3207_v11 = vor.u32 1.1754944e-38, %v3206_v0  ;;  %v9857_v29 = vadd.f32 %v9330_v26, %v1000_v59  ;;  %v536_v5 = vld [vmem:[%s16418_s1 + $0x278] sm:$0xff] }
 0x214   : > { %v9820_v61 = vpop.eup %7508  ;;  %v3203_v36 = vsel %vm9830_vm5, %v9773_v32, %v3199_v42  ;;  %v9859_v32 = vpop.f32.mrf.mxu3  ;;  %v496_v42 = vld [vmem:[%s16418_s1 + $0x138] sm:$0xff]  ;;  %v3219_v59 = vand.u32 2147483647, %v9726_v53  ;;  %v3221_v0 = vand.u32 2147483648, %v9726_v53  ;;  %7518 = vpow2.f32 %v2797_v47  ;;  %7300 = vmatmul.msk.f32.gmra.mxu1 %vm1577_vm1, %v536_v5  ;;  %7372 = vmatmul.msk.f32.gmra.mxu3 %vm1577_vm1, %v608_v34 }
 0x215   : > { %v7511_v14 = vpop.eup %7510  ;;  %v3241_v22 = vmul.f32 %v9820_v61, %v9791_v21  ;;  %16483 = vst [vmem:[#allocation52_spill] sm:$0xff] %v9859_v32  ;;  %v3234_v32 = vand.u32 2147483647, %v9744_v40  ;;  %v3208_v10 = vsel %vm9851_vm6, %v3207_v11, %v3203_v36  ;;  %v3218_v53 = vsel %vm9872_vm8, %v9783_v54, %v9835_v28  ;;  %v738_v11 = vld [vmem:[%s16419_s2 + $0x3c8] sm:$0xff]  ;;  %v737_v54 = vld [vmem:[%s16419_s2 + $0x3c0] sm:$0xff] }
 0x216   : > { %v9845_v25 = vadd.f32 1.0, %v7511_v14  ;;  %v9849_v18 = vpop.eup %7512  ;;  %v576_v14 = vld [vmem:[%s16418_s1 + $0x3b8] sm:$0xff]  ;;  %v3229_v28 = vadd.f32 %v9798_v35, %v3228_v56  ;;  %v9912_v34 = vadd.f32 %v9505_v49, %v9501_v39  ;;  %1384 = vperm.xlu1 %7488, %v738_v11   ;;  %v2599_v1 = vsub.f32 0.0, %v9857_v29  ;;  %1379 = vperm.xlu0 %7487, %v737_v54   ;;  %v609_v11 = vld [vmem:[%s16418_s1 + $0x4c0] sm:$0xff] }
 0x217   : > { %v9826_v19 = vpop.permute.xlu1 %949  ;;  %v7515_v48 = vpop.eup %7514  ;;  %v3242_v47 = vsub.f32 1.0, %v3241_v22  ;;  %7340 = vmatmul.msk.f32.gmra.mxu2 %vm1577_vm1, %v576_v14  ;;  %vm3220_vm10 = vcmp.eq.f32.partialorder %v3219_v59, 8.507059e+37  ;;  %v3222_v5 = vor.u32 1.1754944e-38, %v3221_v0  ;;  %v3236_v39 = vand.u32 2147483648, %v9744_v40 }
 0x218   : > { %16477 = vst [vmem:[#allocation50_spill] sm:$0xff] %v9826_v19  ;;  %v9847_v19 = vpop.permute.xlu0 %944  ;;  %v1015_v45 = vpop.permute.xlu2 %1014  ;;  %7520 = vrcp.f32 %v9845_v25  ;;  %v9918_v36 = vadd.f32 1.0, %v7515_v48  ;;  %v9927_v49 = vmul.f32 %v3208_v10, %v9626_v2  ;;  %vm9935_vm13 = vcmp.eq.f32.partialorder %v3234_v32, 8.507059e+37 }
 0x219   : > { %16480 = vst [vmem:[#allocation51_spill] sm:$0xff] %v9847_v19  ;;  %v9879_v19 = vpop.f32.mrf.mxu0  ;;  %7260 = vmatmul.msk.f32.gmra.mxu0 %vm1577_vm1, %v496_v42  ;;  %v739_v42 = vld [vmem:[%s16419_s2 + $0x3d0] sm:$0xff]  ;;  %v9914_v22 = vpop.eup %7516  ;;  %v9922_v56 = vadd.f32 %v9436_v8, %v1015_v45  ;;  %v3243_v8 = vmul.f32 %v9820_v61, %v3242_v47  ;;  %v3223_v40 = vsel %vm3220_vm10, %v3222_v5, %v3218_v53  ;;  %v2564_v59 = vsub.f32 0.0, %v9912_v34  ;;  %v742_v5 = vld [vmem:[%s16419_s2 + $0x3e8] sm:$0xff] }
 0x21a   : > { %16486 = vst [vmem:[#allocation53_spill] sm:$0xff] %v9879_v19  ;;  %v2731_v19 = vmul.f32 1.442695, %v2563_v60  ;;  %1389 = vperm.xlu2 %7489, %v739_v42   ;;  %v3256_v60 = vmul.f32 %v9849_v18, %v9806_v20  ;;  %v7519_v26 = vpop.eup %7518  ;;  %v3233_v10 = vsel %vm9931_vm12, %v9798_v35, %v3229_v28  ;;  %v3271_v2 = vmul.f32 %v9914_v22, %v9814_v58 }
 0x21b   : > { %16487 = vst [vmem:[#allocation54_spill] sm:$0xff] %v9927_v49  ;;  %v2803_v0 = vmul.f32 1.442695, %v2599_v1  ;;  %v2602_v47 = vsub.f32 0.0, %v9922_v56  ;;  %v3237_v42 = vor.u32 1.1754944e-38, %v3236_v39  ;;  %v3251_v35 = vand.u32 2147483648, %v9791_v21 }
 0x21c   : > { %7522 = vpow2.f32 %v2731_v19  ;;  %v3257_v32 = vsub.f32 1.0, %v3256_v60  ;;  %v3249_v53 = vand.u32 2147483647, %v9791_v21  ;;  %v3244_v54 = vadd.f32 %v9820_v61, %v3243_v8  ;;  %v9966_v1 = vpop.f32.mrf.mxu3  ;;  %7373 = vmatmul.msk.f32.gmra.mxu3 %vm1577_vm1, %v609_v11 }
 0x21d   : > { %7524 = vrcp.f32 %v9918_v36  ;;  %vm3246_vm15 = vweird.f32 %v9820_v61  ;;  %v9960_v28 = vadd.f32 1.0, %v7519_v26  ;;  %v9964_v60 = vadd.f32 %v9544_v24, %v9499_v38  ;;  %16493 = vst [vmem:[#allocation56_spill] sm:$0xff] %v9966_v1  ;;  %v741_v38 = vld [vmem:[%s16419_s2 + $0x3e0] sm:$0xff]  ;;  %v740_v24 = vld [vmem:[%s16419_s2 + $0x3d8] sm:$0xff] }
 0x21e   : > { %v9950_v19 = vpop.eup %7520  ;;  %v9973_v39 = vmul.f32 %v3223_v40, %v9661_v31  ;;  %v3238_v14 = vsel %vm9935_vm13, %v3237_v42, %v3233_v10  ;;  %v3272_v8 = vsub.f32 1.0, %v3271_v2  ;;  %v2733_v26 = vmul.f32 1.442695, %v2564_v59  ;;  %1399 = vperm.xlu1 %7488, %v741_v38   ;;  %1394 = vperm.xlu0 %7487, %v740_v24   ;;  %vm9992_vm0 = vmor %vm3245_vm14, %vm3246_vm15 }
 0x21f   : > { %v9940_v45 = vpop.permute.xlu1 %964  ;;  %v3258_v31 = vmul.f32 %v9849_v18, %v3257_v32  ;;  %v3286_v48 = vmul.f32 %v9950_v19, %v9845_v25  ;;  %7526 = vpow2.f32 %v2803_v0  ;;  %v2809_v40 = vmul.f32 1.442695, %v2602_v47 }
 0x220   : > { %16492 = vst [vmem:[#allocation55_spill] sm:$0xff] %v9940_v45  ;;  %v9977_v45 = vpop.permute.xlu0 %959  ;;  %vm9996_vm2 = vcmp.eq.f32.partialorder %v3249_v53, 8.507059e+37  ;;  %v3252_v59 = vor.u32 1.1754944e-38, %v3251_v35  ;;  %vm3260_vm3 = vweird.f32 %v9806_v20  ;;  %v3264_v32 = vand.u32 2147483647, %v9806_v20  ;;  %v1030_v38 = vpop.permute.xlu2 %1029 }
 0x221   : > { %16494 = vst [vmem:[#allocation57_spill] sm:$0xff] %v9973_v39  ;;  %v3248_v47 = vsel %vm9992_vm0, %v9820_v61, %v3244_v54  ;;  %v3266_v21 = vand.u32 2147483648, %v9806_v20  ;;  %7528 = vrcp.f32 %v9960_v28  ;;  %v2565_v42 = vsub.f32 0.0, %v9964_v60 }
 0x222   : > { %16495 = vst [vmem:[#allocation58_spill] sm:$0xff] %v9977_v45  ;;  %1404 = vperm.xlu2 %7489, %v742_v5   ;;  %v7523_v11 = vpop.eup %7522  ;;  %v10011_v53 = vmul.f32 %v3238_v14, %v9669_v23  ;;  %v3273_v35 = vmul.f32 %v9914_v22, %v3272_v8  ;;  %7530 = vpow2.f32 %v2733_v26  ;;  %v3259_v24 = vadd.f32 %v9849_v18, %v3258_v31 }
 0x223   : > { %v10002_v0 = vpop.eup %7524  ;;  %v10014_v5 = vadd.f32 1.0, %v7523_v11  ;;  %vm3261_vm4 = vweird.f32 %v9849_v18  ;;  %v3287_v61 = vsub.f32 1.0, %v3286_v48  ;;  %7532 = vpow2.f32 %v2809_v40 }
 0x224   : > { %16500 = vst [vmem:[#allocation59_spill] sm:$0xff] %v10011_v53  ;;  %v3253_v10 = vsel %vm9996_vm2, %v3252_v59, %v3248_v47  ;;  %v3279_v1 = vand.u32 2147483647, %v9814_v58  ;;  %v3281_v23 = vand.u32 2147483648, %v9814_v58  ;;  %v3301_v14 = vmul.f32 %v10002_v0, %v9918_v36  ;;  %vm10033_vm6 = vmor %vm3260_vm3, %vm3261_vm4 }
 0x225   : > { %v7527_v8 = vpop.eup %7526  ;;  %vm10024_vm5 = vcmp.eq.f32.partialorder %v3264_v32, 8.507059e+37  ;;  %v3267_v11 = vor.u32 1.1754944e-38, %v3266_v21  ;;  %v2735_v31 = vmul.f32 1.442695, %v2565_v42  ;;  %v10029_v48 = vadd.f32 %v9546_v27, %v1030_v38 }
 0x226   : > { %v3274_v2 = vadd.f32 %v9914_v22, %v3273_v35  ;;  %vm3276_vm7 = vweird.f32 %v9914_v22  ;;  %7534 = vrcp.f32 %v10014_v5  ;;  %v10046_v27 = vmul.f32 %v3253_v10, %v9678_v17 }
 0x227   : > { %v980_v54 = vpop.permute.xlu1 %979  ;;  %v10043_v32 = vpop.eup %7528  ;;  %v3263_v20 = vsel %vm10033_vm6, %v9849_v18, %v3259_v24  ;;  %vm3275_vm8 = vweird.f32 %v9814_v58  ;;  %v3288_v47 = vmul.f32 %v9950_v19, %v3287_v61  ;;  %vm10053_vm9 = vcmp.eq.f32.partialorder %v3279_v1, 8.507059e+37 }
 0x228   : > { %v10041_v59 = vadd.f32 %v9187_v44, %v980_v54  ;;  %16505 = vst [vmem:[#allocation60_spill] sm:$0xff] %v10046_v27  ;;  %v7531_v21 = vpop.eup %7530  ;;  %v3282_v44 = vor.u32 1.1754944e-38, %v3281_v23  ;;  %v3302_v35 = vsub.f32 1.0, %v3301_v14  ;;  %v10057_v38 = vadd.f32 1.0, %v7527_v8  ;;  %v10059_v54 = vpop.permute.xlu0 %974  ;;  %vm10063_vm10 = vmor %vm3275_vm8, %vm3276_vm7  ;;  %v16690_v27 = vld [vmem:[#allocation10_spill] sm:$0xff] }
 0x229   : > { %16508 = vst [vmem:[#allocation61_spill] sm:$0xff] %v10059_v54  ;;  %v7533_v17 = vpop.eup %7532  ;;  %v3294_v58 = vand.u32 2147483647, %v9845_v25  ;;  %v3296_v1 = vand.u32 2147483648, %v9845_v25  ;;  %7536 = vpow2.f32 %v2735_v31  ;;  %v2605_v24 = vsub.f32 0.0, %v10029_v48 }
 0x22a   : > { %v3268_v61 = vsel %vm10024_vm5, %v3267_v11, %v3263_v20  ;;  %v3278_v10 = vsel %vm10063_vm10, %v9914_v22, %v3274_v2  ;;  %vm3290_vm11 = vweird.f32 %v9845_v25  ;;  %v2595_v23 = vsub.f32 0.0, %v10041_v59 }
 0x22b   : > { %v3289_v14 = vadd.f32 %v9950_v19, %v3288_v47  ;;  %vm3291_vm12 = vweird.f32 %v9950_v19  ;;  %v10079_v8 = vadd.f32 1.0, %v7531_v21  ;;  %v10083_v31 = vadd.f32 %v9583_v37, %v9384_v46 }
 0x22c   : > { %v10085_v26 = vpop.eup %7534  ;;  %v3303_v11 = vmul.f32 %v10002_v0, %v3302_v35  ;;  %v3811_v22 = vmul.f32 %v10043_v32, %v9960_v28  ;;  %7538 = vrcp.f32 %v10057_v38  ;;  %v10091_v40 = vadd.f32 1.0, %v7533_v17  ;;  %vm10104_vm14 = vmor %vm3290_vm11, %vm3291_vm12 }
 0x22d   : > { %v10094_v2 = vmul.f32 %v3268_v61, %v9718_v57  ;;  %vm10096_vm13 = vcmp.eq.f32.partialorder %v3294_v58, 8.507059e+37  ;;  %v3297_v46 = vor.u32 1.1754944e-38, %v3296_v1  ;;  %v2815_v37 = vmul.f32 1.442695, %v2605_v24 }
 0x22e   : > { %v3283_v47 = vsel %vm10053_vm9, %v3282_v44, %v3278_v10  ;;  %v3309_v35 = vand.u32 2147483647, %v9918_v36  ;;  %v3311_v57 = vand.u32 2147483648, %v9918_v36  ;;  %v2795_v17 = vmul.f32 1.442695, %v2595_v23 }
 0x22f   : > { %16511 = vst [vmem:[#allocation62_spill] sm:$0xff] %v10094_v2  ;;  %v7537_v18 = vpop.eup %7536  ;;  %v3293_v58 = vsel %vm10104_vm14, %v9950_v19, %v3289_v14  ;;  %v3316_v42 = vmul.f32 %v10085_v26, %v10014_v5  ;;  %7540 = vrcp.f32 %v10079_v8  ;;  %v2566_v25 = vsub.f32 0.0, %v10083_v31  ;;  %v995_v61 = vpop.permute.xlu1 %994 }
 0x230   : > { %v3304_v44 = vadd.f32 %v10002_v0, %v3303_v11  ;;  %vm3306_vm15 = vweird.f32 %v10002_v0  ;;  %v3812_v1 = vsub.f32 1.0, %v3811_v22  ;;  %7542 = vrcp.f32 %v10091_v40  ;;  %v990_v22 = vpop.permute.xlu0 %989 }
 0x231   : > { %v10121_v24 = vmul.f32 %v3283_v47, %v9731_v55  ;;  %vm3305_vm0 = vweird.f32 %v9918_v36  ;;  %v3821_v19 = vand.u32 2147483648, %v9960_v28  ;;  %7544 = vpow2.f32 %v2815_v37 }
 0x232   : > { %v10125_v10 = vpop.eup %7538  ;;  %v3298_v23 = vsel %vm10096_vm13, %v3297_v46, %v3293_v58  ;;  %v3819_v14 = vand.u32 2147483647, %v9960_v28  ;;  %v10130_v11 = vadd.f32 1.0, %v7537_v18  ;;  %7546 = vpow2.f32 %v2795_v17  ;;  %vm10132_vm2 = vmor %vm3305_vm0, %vm3306_vm15 }
 0x233   : > { %16516 = vst [vmem:[#allocation63_spill] sm:$0xff] %v10121_v24  ;;  %vm10136_vm3 = vcmp.eq.f32.partialorder %v3309_v35, 8.507059e+37  ;;  %v3312_v37 = vor.u32 1.1754944e-38, %v3311_v57  ;;  %v3317_v47 = vsub.f32 1.0, %v3316_v42  ;;  %v2737_v21 = vmul.f32 1.442695, %v2566_v25  ;;  %v10161_v25 = vpop.f32.mrf.mxu3 }
 0x234   : > { %v3308_v20 = vsel %vm10132_vm2, %v10002_v0, %v3304_v44  ;;  %v3813_v46 = vmul.f32 %v10043_v32, %v3812_v1  ;;  %vm3815_vm4 = vweird.f32 %v9960_v28  ;;  %v10146_v17 = vadd.f32 %v9291_v13, %v995_v61  ;;  %v610_v35 = vld [vmem:[%s16418_s1 + $0x4c8] sm:$0xff]  ;;  %16522 = vst [vmem:[#allocation65_spill] sm:$0xff] %v10161_v25  ;;  %v745_v13 = vld [vmem:[%s16419_s2 + $0x400] sm:$0xff]  ;;  %v743_v44 = vld [vmem:[%s16419_s2 + $0x3f0] sm:$0xff] }
 0x235   : > { %v10151_v18 = vpop.eup %7540  ;;  %v10154_v57 = vmul.f32 %v3298_v23, %v9748_v33  ;;  %v3822_v58 = vor.u32 1.1754944e-38, %v3821_v19  ;;  %v3856_v0 = vmul.f32 %v10125_v10, %v10057_v38  ;;  %v10159_v42 = vadd.f32 %v9264_v4, %v990_v22  ;;  %7374 = vmatmul.msk.f32.gmra.mxu3 %vm1577_vm1, %v610_v35  ;;  %v744_v33 = vld [vmem:[%s16419_s2 + $0x3f8] sm:$0xff]  ;;  %1419 = vperm.xlu2 %7489, %v745_v13  }
 0x236   : > { %v10173_v1 = vpop.eup %7542  ;;  %vm10175_vm5 = vcmp.eq.f32.partialorder %v3819_v14, 8.507059e+37  ;;  %vm3320_vm6 = vweird.f32 %v10014_v5  ;;  %v3324_v19 = vand.u32 2147483647, %v10014_v5  ;;  %v3326_v61 = vand.u32 2147483648, %v10014_v5  ;;  %1414 = vperm.xlu1 %7488, %v744_v33   ;;  %1409 = vperm.xlu0 %7487, %v743_v44  }
 0x237   : > { %16521 = vst [vmem:[#allocation64_spill] sm:$0xff] %v10154_v57  ;;  %7548 = vrcp.f32 %v10130_v11  ;;  %v7545_v23 = vpop.eup %7544  ;;  %v3313_v22 = vsel %vm10136_vm3, %v3312_v37, %v3308_v20  ;;  %vm3816_vm7 = vweird.f32 %v10043_v32  ;;  %v3318_v14 = vmul.f32 %v10085_v26, %v3317_v47 }
 0x238   : > { %7550 = vpow2.f32 %v2737_v21  ;;  %v7547_v55 = vpop.eup %7546  ;;  %v3814_v35 = vadd.f32 %v10043_v32, %v3813_v46  ;;  %v3866_v25 = vand.u32 2147483648, %v10057_v38  ;;  %v3331_v54 = vmul.f32 %v10151_v18, %v10079_v8  ;;  %vm10213_vm10 = vmor %vm3815_vm4, %vm3816_vm7 }
 0x239   : > { %v2598_v13 = vsub.f32 0.0, %v10146_v17  ;;  %v3857_v33 = vsub.f32 1.0, %v3856_v0  ;;  %v3901_v36 = vmul.f32 %v10173_v1, %v10091_v40  ;;  %v2597_v37 = vsub.f32 0.0, %v10159_v42 }
 0x23a   : > { %v10197_v47 = vadd.f32 %v9638_v9, %v9540_v16  ;;  %v10200_v21 = vmul.f32 %v3313_v22, %v9789_v51  ;;  %vm3321_vm8 = vweird.f32 %v10085_v26  ;;  %vm10203_vm9 = vcmp.eq.f32.partialorder %v3324_v19, 8.507059e+37  ;;  %v1010_v19 = vpop.permute.xlu1 %1009 }
 0x23b   : > { %v3327_v46 = vor.u32 1.1754944e-38, %v3326_v61  ;;  %v10207_v0 = vadd.f32 1.0, %v7545_v23  ;;  %v3319_v16 = vadd.f32 %v10085_v26, %v3318_v14  ;;  %vm3860_vm11 = vweird.f32 %v10057_v38  ;;  %vm10233_vm12 = vmor %vm3320_vm6, %vm3321_vm8 }
 0x23c   : > { %16525 = vst [vmem:[#allocation66_spill] sm:$0xff] %v10200_v21  ;;  %v3864_v9 = vand.u32 2147483647, %v10057_v38  ;;  %v10220_v51 = vadd.f32 1.0, %v7547_v55  ;;  %v3818_v23 = vsel %vm10213_vm10, %v10043_v32, %v3814_v35  ;;  %v3867_v28 = vor.u32 1.1754944e-38, %v3866_v25 }
 0x23d   : > { %v10222_v61 = vpop.eup %7548  ;;  %v3332_v22 = vsub.f32 1.0, %v3331_v54  ;;  %v2801_v45 = vmul.f32 1.442695, %v2598_v13  ;;  %v3858_v53 = vmul.f32 %v10125_v10, %v3857_v33  ;;  %v3902_v14 = vsub.f32 1.0, %v3901_v36 }
 0x23e   : > { %v7551_v57 = vpop.eup %7550  ;;  %v2799_v21 = vmul.f32 1.442695, %v2597_v37  ;;  %v2567_v24 = vsub.f32 0.0, %v10197_v47  ;;  %vm3335_vm13 = vweird.f32 %v10079_v8  ;;  %v3339_v32 = vand.u32 2147483647, %v10079_v8 }
 0x23f   : > { %7552 = vrcp.f32 %v10207_v0  ;;  %v10241_v54 = vadd.f32 %v9397_v52, %v1010_v19  ;;  %v3823_v25 = vsel %vm10175_vm5, %v3822_v58, %v3818_v23  ;;  %v3323_v5 = vsel %vm10233_vm12, %v10085_v26, %v3319_v16  ;;  %v1005_v16 = vpop.permute.xlu0 %1004 }
 0x240   : > { %vm3861_vm14 = vweird.f32 %v10125_v10  ;;  %vm10249_vm15 = vcmp.eq.f32.partialorder %v3864_v9, 8.507059e+37  ;;  %7554 = vrcp.f32 %v10220_v51  ;;  %v3333_v13 = vmul.f32 %v10151_v18, %v3332_v22 }
 0x241   : > { %v3346_v52 = vmul.f32 %v10222_v61, %v10130_v11  ;;  %v10257_v33 = vadd.f32 1.0, %v7551_v57  ;;  %7556 = vpow2.f32 %v2801_v45  ;;  %v3859_v58 = vadd.f32 %v10125_v10, %v3858_v53  ;;  %vm10278_vm3 = vmor %vm3860_vm11, %vm3861_vm14  ;;  %v747_v57 = vld [vmem:[%s16419_s2 + $0x410] sm:$0xff] }
 0x242   : > { %v3903_v26 = vmul.f32 %v10173_v1, %v3902_v14  ;;  %7558 = vpow2.f32 %v2799_v21  ;;  %v2739_v4 = vmul.f32 1.442695, %v2567_v24  ;;  %v3341_v36 = vand.u32 2147483648, %v10079_v8  ;;  %1429 = vperm.xlu1 %7488, %v747_v57  }
 0x243   : > { %vm3905_vm0 = vweird.f32 %v10091_v40  ;;  %v3909_v37 = vand.u32 2147483647, %v10091_v40  ;;  %v2601_v44 = vsub.f32 0.0, %v10241_v54  ;;  %v10266_v9 = vmul.f32 %v3823_v25, %v9802_v7 }
 0x244   : > { %v3328_v45 = vsel %vm10203_vm9, %v3327_v46, %v3323_v5  ;;  %vm3336_vm2 = vweird.f32 %v10151_v18  ;;  %v3911_v53 = vand.u32 2147483648, %v10091_v40  ;;  %v3334_v7 = vadd.f32 %v10151_v18, %v3333_v13 }
 0x245   : > { %16534 = vst [vmem:[#allocation67_spill] sm:$0xff] %v10266_v9  ;;  %v10272_v24 = vpop.eup %7552  ;;  %vm3906_vm4 = vweird.f32 %v10173_v1  ;;  %v3347_v21 = vsub.f32 1.0, %v3346_v52  ;;  %7560 = vrcp.f32 %v10257_v33  ;;  %v3863_v46 = vsel %vm10278_vm3, %v10125_v10, %v3859_v58  ;;  %vm10309_vm7 = vmor %vm3335_vm13, %vm3336_vm2 }
 0x246   : > { %v10285_v20 = vpop.eup %7554  ;;  %v3904_v19 = vadd.f32 %v10173_v1, %v3903_v26  ;;  %7562 = vpow2.f32 %v2739_v4  ;;  %v10292_v38 = vadd.f32 %v9375_v41, %v1005_v16  ;;  %vm10294_vm5 = vcmp.eq.f32.partialorder %v3339_v32, 8.507059e+37  ;;  %vm10324_vm8 = vmor %vm3905_vm0, %vm3906_vm4  ;;  %v1025_v41 = vpop.permute.xlu1 %1024 }
 0x247   : > { %v7557_v23 = vpop.eup %7556  ;;  %v3342_v14 = vor.u32 1.1754944e-38, %v3341_v36  ;;  %vm10298_vm6 = vcmp.eq.f32.partialorder %v3909_v37, 8.507059e+37  ;;  %v2807_v25 = vmul.f32 1.442695, %v2601_v44  ;;  %v10303_v10 = vmul.f32 %v3328_v45, %v9818_v43  ;;  %v1045_v36 = vpop.permute.xlu2 %1044  ;;  %v611_v37 = vld [vmem:[%s16418_s1 + $0x4d0] sm:$0xff] }
 0x248   : > { %v7559_v5 = vpop.eup %7558  ;;  %v3912_v32 = vor.u32 1.1754944e-38, %v3911_v53  ;;  %v3354_v13 = vand.u32 2147483647, %v10130_v11  ;;  %v3356_v52 = vand.u32 2147483648, %v10130_v11  ;;  %v3868_v58 = vsel %vm10249_vm15, %v3867_v28, %v3863_v46  ;;  %v10351_v45 = vpop.f32.mrf.mxu3  ;;  %7375 = vmatmul.msk.f32.gmra.mxu3 %vm1577_vm1, %v611_v37  ;;  %v748_v53 = vld [vmem:[%s16419_s2 + $0x418] sm:$0xff] }
 0x249   : > { %16541 = vst [vmem:[#allocation68_spill] sm:$0xff] %v10303_v10  ;;  %v3338_v43 = vsel %vm10309_vm7, %v10151_v18, %v3334_v7  ;;  %v3348_v26 = vmul.f32 %v10222_v61, %v3347_v21  ;;  %v3946_v4 = vmul.f32 %v10272_v24, %v10207_v0  ;;  %v3908_v28 = vsel %vm10324_vm8, %v10173_v1, %v3904_v19  ;;  %v746_v7 = vld [vmem:[%s16419_s2 + $0x408] sm:$0xff] }
 0x24a   : > { %v3796_v18 = vmul.f32 %v10285_v20, %v10220_v51  ;;  %v10336_v35 = vadd.f32 1.0, %v7557_v23  ;;  %v2600_v40 = vsub.f32 0.0, %v10292_v38  ;;  %vm3350_vm9 = vweird.f32 %v10130_v11  ;;  %16546 = vst [vmem:[#allocation69_spill] sm:$0xff] %v10351_v45  ;;  %1434 = vperm.xlu2 %7489, %v748_v53   ;;  %1424 = vperm.xlu0 %7487, %v746_v7  }
 0x24b   : > { %v10342_v44 = vpop.eup %7560  ;;  %v10345_v16 = vadd.f32 1.0, %v7559_v5  ;;  %7564 = vpow2.f32 %v2807_v25  ;;  %v10349_v1 = vadd.f32 %v9691_v62, %v9527_v6  ;;  %v10364_v6 = vmul.f32 %v3868_v58, %v9857_v29 }
 0x24c   : > { %v7563_v21 = vpop.eup %7562  ;;  %v3343_v62 = vsel %vm10294_vm5, %v3342_v14, %v3338_v43  ;;  %vm3351_vm10 = vweird.f32 %v10222_v61  ;;  %vm10369_vm11 = vcmp.eq.f32.partialorder %v3354_v13, 8.507059e+37  ;;  %v3357_v19 = vor.u32 1.1754944e-38, %v3356_v52 }
 0x24d   : > { %16547 = vst [vmem:[#allocation70_spill] sm:$0xff] %v10364_v6  ;;  %v3913_v23 = vsel %vm10298_vm6, %v3912_v32, %v3908_v28  ;;  %v3349_v25 = vadd.f32 %v10222_v61, %v3348_v26  ;;  %v3947_v5 = vsub.f32 1.0, %v3946_v4  ;;  %v3956_v29 = vand.u32 2147483648, %v10207_v0  ;;  %vm10402_vm13 = vmor %vm3350_vm9, %vm3351_vm10  ;;  %v1020_v28 = vpop.permute.xlu0 %1019 }
 0x24e   : > { %v3797_v22 = vsub.f32 1.0, %v3796_v18  ;;  %7566 = vrcp.f32 %v10336_v35  ;;  %v2805_v14 = vmul.f32 1.442695, %v2600_v40  ;;  %v10379_v13 = vadd.f32 %v9693_v12, %v1045_v36 }
 0x24f   : > { %v3361_v52 = vmul.f32 %v10342_v44, %v10257_v33  ;;  %7568 = vrcp.f32 %v10345_v16  ;;  %v10384_v55 = vadd.f32 1.0, %v7563_v21  ;;  %v2568_v32 = vsub.f32 0.0, %v10349_v1  ;;  %v10414_v40 = vpop.permute.xlu2 %1059 }
 0x250   : > { %v10388_v58 = vmul.f32 %v3343_v62, %v9912_v34  ;;  %vm3950_vm12 = vweird.f32 %v10207_v0  ;;  %v3954_v43 = vand.u32 2147483647, %v10207_v0  ;;  %v10393_v8 = vadd.f32 %v9507_v50, %v1025_v41 }
 0x251   : > { %v7565_v12 = vpop.eup %7564  ;;  %v10396_v26 = vmul.f32 %v3913_v23, %v9922_v56  ;;  %v3957_v34 = vor.u32 1.1754944e-38, %v3956_v29  ;;  %vm3800_vm14 = vweird.f32 %v10220_v51  ;;  %v3804_v36 = vand.u32 2147483647, %v10220_v51 }
 0x252   : > { %16550 = vst [vmem:[#allocation71_spill] sm:$0xff] %v10388_v58  ;;  %v3353_v50 = vsel %vm10402_vm13, %v10222_v61, %v3349_v25  ;;  %v3948_v56 = vmul.f32 %v10272_v24, %v3947_v5  ;;  %v3798_v18 = vmul.f32 %v10285_v20, %v3797_v22  ;;  %7570 = vpow2.f32 %v2805_v14 }
 0x253   : > { %16551 = vst [vmem:[#allocation72_spill] sm:$0xff] %v10396_v26  ;;  %v3362_v11 = vsub.f32 1.0, %v3361_v52  ;;  %7572 = vrcp.f32 %v10384_v55  ;;  %v2741_v37 = vmul.f32 1.442695, %v2568_v32  ;;  %v2608_v53 = vsub.f32 0.0, %v10379_v13 }
 0x254   : > { %v10417_v57 = vpop.eup %7566  ;;  %vm10419_vm15 = vcmp.eq.f32.partialorder %v3954_v43, 8.507059e+37  ;;  %v3806_v61 = vand.u32 2147483648, %v10220_v51  ;;  %v10424_v21 = vadd.f32 1.0, %v7565_v12  ;;  %v2604_v62 = vsub.f32 0.0, %v10393_v8 }
 0x255   : > { %v10428_v23 = vadd.f32 %v9477_v30, %v1020_v28  ;;  %v10430_v25 = vpop.eup %7568  ;;  %v3358_v5 = vsel %vm10369_vm11, %v3357_v19, %v3353_v50  ;;  %vm3951_vm0 = vweird.f32 %v10272_v24  ;;  %vm10435_vm2 = vcmp.eq.f32.partialorder %v3804_v36, 8.507059e+37 }
 0x256   : > { %v3369_v41 = vand.u32 2147483647, %v10257_v33  ;;  %v3949_v22 = vadd.f32 %v10272_v24, %v3948_v56  ;;  %v3799_v14 = vadd.f32 %v10285_v20, %v3798_v18  ;;  %vm3801_vm3 = vweird.f32 %v10285_v20  ;;  %vm10449_vm4 = vmor %vm3950_vm12, %vm3951_vm0  ;;  %v16563_v18 = vld [vmem:[#allocation43_spill] sm:$0xff] }
 0x257   : > { %v3371_v30 = vand.u32 2147483648, %v10257_v33  ;;  %v3363_v52 = vmul.f32 %v10342_v44, %v3362_v11  ;;  %v3841_v46 = vmul.f32 %v10417_v57, %v10336_v35  ;;  %7574 = vpow2.f32 %v2741_v37  ;;  %vm10464_vm5 = vmor %vm3800_vm14, %vm3801_vm3 }
 0x258   : > { %v2821_v19 = vmul.f32 1.442695, %v2608_v53  ;;  %v7571_v32 = vpop.eup %7570  ;;  %v3826_v12 = vmul.f32 %v10430_v25, %v10345_v16  ;;  %7576 = vrcp.f32 %v10424_v21  ;;  %v2813_v4 = vmul.f32 1.442695, %v2604_v62 }
 0x259   : > { %v2603_v36 = vsub.f32 0.0, %v10428_v23  ;;  %v10457_v28 = vpop.eup %7572  ;;  %v10460_v50 = vmul.f32 %v3358_v5, %v9964_v60  ;;  %v3807_v56 = vor.u32 1.1754944e-38, %v3806_v61  ;;  %vm3365_vm6 = vweird.f32 %v10257_v33  ;;  %v1040_v5 = vpop.permute.xlu1 %1039 }
 0x25a   : > { %v10471_v11 = vadd.f32 %v16563_v18, %v9421_v63  ;;  %v3953_v37 = vsel %vm10449_vm4, %v10272_v24, %v3949_v22  ;;  %v3803_v60 = vsel %vm10464_vm5, %v10285_v20, %v3799_v14  ;;  %vm3366_vm7 = vweird.f32 %v10342_v44  ;;  %v1035_v33 = vpop.permute.xlu0 %1034 }
 0x25b   : > { %16560 = vst [vmem:[#allocation73_spill] sm:$0xff] %v10460_v50  ;;  %vm10480_vm8 = vcmp.eq.f32.partialorder %v3369_v41, 8.507059e+37  ;;  %v3372_v53 = vor.u32 1.1754944e-38, %v3371_v30  ;;  %v3364_v61 = vadd.f32 %v10342_v44, %v3363_v52  ;;  %v3842_v62 = vsub.f32 1.0, %v3841_v46  ;;  %v10493_v30 = vpop.permute.xlu2 %1074  ;;  %vm10504_vm10 = vmor %vm3365_vm6, %vm3366_vm7 }
 0x25c   : > { %v10485_v63 = vadd.f32 1.0, %v7571_v32  ;;  %7578 = vpow2.f32 %v2821_v19  ;;  %v3827_v43 = vsub.f32 1.0, %v3826_v12  ;;  %v3376_v24 = vmul.f32 %v10457_v28, %v10384_v55  ;;  %v16568_v12 = vld [vmem:[#allocation31_spill] sm:$0xff] }
 0x25d   : > { %7580 = vpow2.f32 %v2813_v4  ;;  %v2811_v20 = vmul.f32 1.442695, %v2603_v36  ;;  %v7575_v22 = vpop.eup %7574  ;;  %v3958_v41 = vsel %vm10419_vm15, %v3957_v34, %v3953_v37  ;;  %vm3845_vm9 = vweird.f32 %v10336_v35 }
 0x25e   : > { %v3851_v14 = vand.u32 2147483648, %v10336_v35  ;;  %v2569_v52 = vsub.f32 0.0, %v10471_v11  ;;  %v10496_v46 = vpop.eup %7576  ;;  %v3808_v19 = vsel %vm10435_vm2, %v3807_v56, %v3803_v60  ;;  %v3849_v34 = vand.u32 2147483647, %v10336_v35 }
 0x25f   : > { %v3834_v32 = vand.u32 2147483647, %v10345_v16  ;;  %v10511_v4 = vadd.f32 %v16568_v12, %v1040_v5  ;;  %v3368_v29 = vsel %vm10504_vm10, %v10342_v44, %v3364_v61  ;;  %v3843_v36 = vmul.f32 %v10417_v57, %v3842_v62 }
 0x260   : > { %v3836_v0 = vand.u32 2147483648, %v10345_v16  ;;  %7582 = vrcp.f32 %v10485_v63  ;;  %v3828_v56 = vmul.f32 %v10430_v25, %v3827_v43  ;;  %v3377_v18 = vsub.f32 1.0, %v3376_v24  ;;  %v10636_v43 = vpop.f32.mrf.mxu1 }
 0x261   : > { %v10520_v37 = vadd.f32 1.0, %v7575_v22  ;;  %7584 = vpow2.f32 %v2811_v20  ;;  %v10523_v5 = vmul.f32 %v3958_v41, %v10029_v48  ;;  %v3852_v12 = vor.u32 1.1754944e-38, %v3851_v14  ;;  %v16573_v20 = vld [vmem:[#allocation25_spill] sm:$0xff] }
 0x262   : > { %v7579_v60 = vpop.eup %7578  ;;  %v3886_v44 = vmul.f32 %v10496_v46, %v10424_v21  ;;  %v2743_v61 = vmul.f32 1.442695, %v2569_v52  ;;  %v10528_v7 = vmul.f32 %v3808_v19, %v10041_v59  ;;  %vm3846_vm11 = vweird.f32 %v10417_v57 }
 0x263   : > { %16569 = vst [vmem:[#allocation43_spill] sm:$0xff] %v10523_v5  ;;  %v7581_v62 = vpop.eup %7580  ;;  %vm10531_vm12 = vcmp.eq.f32.partialorder %v3849_v34, 8.507059e+37  ;;  %v2607_v24 = vsub.f32 0.0, %v10511_v4  ;;  %v10537_v48 = vadd.f32 %v16573_v20, %v1035_v33  ;;  %v3373_v22 = vsel %vm10480_vm8, %v3372_v53, %v3368_v29  ;;  %vm10556_vm15 = vmor %vm3845_vm9, %vm3846_vm11  ;;  %v10595_v45 = vpop.permute.xlu2 %1089 }
 0x264   : > { %16570 = vst [vmem:[#allocation31_spill] sm:$0xff] %v10528_v7  ;;  %v3844_v41 = vadd.f32 %v10417_v57, %v3843_v36  ;;  %vm3831_vm13 = vweird.f32 %v10430_v25  ;;  %vm10543_vm14 = vcmp.eq.f32.partialorder %v3834_v32, 8.507059e+37  ;;  %v3837_v14 = vor.u32 1.1754944e-38, %v3836_v0  ;;  %v612_v36 = vld [vmem:[%s16418_s1 + $0x4d8] sm:$0xff] }
 0x265   : > { %v3829_v52 = vadd.f32 %v10430_v25, %v3828_v56  ;;  %v3378_v19 = vmul.f32 %v10457_v28, %v3377_v18  ;;  %7586 = vrcp.f32 %v10520_v37  ;;  %v10550_v34 = vadd.f32 1.0, %v7579_v60  ;;  %v10569_v18 = vpop.f32.mrf.mxu3  ;;  %7376 = vmatmul.msk.f32.gmra.mxu3 %vm1577_vm1, %v612_v36  ;;  %v751_v60 = vld [vmem:[%s16419_s2 + $0x430] sm:$0xff] }
 0x266   : > { %v10552_v33 = vpop.eup %7582  ;;  %v3384_v53 = vand.u32 2147483647, %v10384_v55  ;;  %v3887_v32 = vsub.f32 1.0, %v3886_v44  ;;  %v10561_v29 = vadd.f32 1.0, %v7581_v62  ;;  %7588 = vpow2.f32 %v2743_v61  ;;  %16578 = vst [vmem:[#allocation25_spill] sm:$0xff] %v10569_v18  ;;  %v750_v44 = vld [vmem:[%s16419_s2 + $0x428] sm:$0xff]  ;;  %1449 = vperm.xlu2 %7489, %v751_v60  }
 0x267   : > { %v7585_v0 = vpop.eup %7584  ;;  %vm3830_vm0 = vweird.f32 %v10345_v16  ;;  %vm3380_vm2 = vweird.f32 %v10384_v55  ;;  %v2819_v35 = vmul.f32 1.442695, %v2607_v24  ;;  %v2606_v56 = vsub.f32 0.0, %v10537_v48  ;;  %v749_v16 = vld [vmem:[%s16419_s2 + $0x420] sm:$0xff]  ;;  %1444 = vperm.xlu1 %7488, %v750_v44   ;;  %v2123_v24 = vpop.f32.mrf.mxu0 }
 0x268   : > { %v10582_v61 = vmul.f32 %v3373_v22, %v10083_v31  ;;  %v3848_v62 = vsel %vm10556_vm15, %v10417_v57, %v3844_v41  ;;  %vm10589_vm3 = vmor %vm3830_vm0, %vm3831_vm13  ;;  %v3386_v20 = vand.u32 2147483648, %v10384_v55  ;;  %v3894_v36 = vand.u32 2147483647, %v10424_v21  ;;  %1439 = vperm.xlu0 %7487, %v749_v16  }
 0x269   : > { %v3833_v31 = vsel %vm10589_vm3, %v10430_v25, %v3829_v52  ;;  %v3379_v57 = vadd.f32 %v10457_v28, %v3378_v19  ;;  %vm3381_vm4 = vweird.f32 %v10457_v28  ;;  %7590 = vrcp.f32 %v10550_v34 }
 0x26a   : > { %16579 = vst [vmem:[#allocation74_spill] sm:$0xff] %v10582_v61  ;;  %v3888_v22 = vmul.f32 %v10496_v46, %v3887_v32  ;;  %v3871_v41 = vmul.f32 %v10552_v33, %v10485_v63  ;;  %7592 = vrcp.f32 %v10561_v29  ;;  %v10607_v51 = vadd.f32 1.0, %v7585_v0  ;;  %vm10620_vm6 = vmor %vm3380_vm2, %vm3381_vm4 }
 0x26b   : > { %v10609_v60 = vpop.eup %7586  ;;  %vm10611_vm5 = vcmp.eq.f32.partialorder %v3384_v53, 8.507059e+37  ;;  %v3896_v52 = vand.u32 2147483648, %v10424_v21  ;;  %7594 = vpow2.f32 %v2819_v35  ;;  %v2817_v19 = vmul.f32 1.442695, %v2606_v56 }
 0x26c   : > { %v7589_v44 = vpop.eup %7588  ;;  %v3853_v32 = vsel %vm10531_vm12, %v3852_v12, %v3848_v62  ;;  %v3387_v0 = vor.u32 1.1754944e-38, %v3386_v20  ;;  %vm3890_vm7 = vweird.f32 %v10424_v21  ;;  %vm10625_vm8 = vcmp.eq.f32.partialorder %v3894_v36, 8.507059e+37 }
 0x26d   : > { %v3838_v35 = vsel %vm10543_vm14, %v3837_v14, %v3833_v31  ;;  %v3383_v12 = vsel %vm10620_vm6, %v10457_v28, %v3379_v57  ;;  %vm3891_vm9 = vweird.f32 %v10496_v46  ;;  %v3881_v55 = vand.u32 2147483648, %v10485_v63  ;;  %v16588_v28 = vld [vmem:[#allocation23_spill] sm:$0xff]  ;;  %v16589_v31 = vld [vmem:[#allocation53_spill] sm:$0xff] }
 0x26e   : > { %v3889_v56 = vadd.f32 %v10496_v46, %v3888_v22  ;;  %v3872_v62 = vsub.f32 1.0, %v3871_v41  ;;  %v3391_v20 = vmul.f32 %v10609_v60, %v10520_v37  ;;  %7596 = vrcp.f32 %v10607_v51  ;;  %vm10666_vm11 = vmor %vm3890_vm7, %vm3891_vm9 }
 0x26f   : > { %v10642_v59 = vpop.eup %7590  ;;  %v3897_v14 = vor.u32 1.1754944e-38, %v3896_v52  ;;  %v10644_v36 = vadd.f32 1.0, %v7589_v44  ;;  %7598 = vpow2.f32 %v2817_v19  ;;  %v10648_v57 = vadd.f32 %v16589_v31, %v16588_v28  ;;  %v1055_v52 = vpop.permute.xlu1 %1054 }
 0x270   : > { %v10650_v16 = vpop.eup %7592  ;;  %v10653_v22 = vmul.f32 %v3853_v32, %v10146_v17  ;;  %v10656_v41 = vmul.f32 %v3838_v35, %v10159_v42  ;;  %vm3875_vm10 = vweird.f32 %v10485_v63  ;;  %v3879_v18 = vand.u32 2147483647, %v10485_v63  ;;  %v1050_v35 = vpop.permute.xlu0 %1049 }
 0x271   : > { %v7595_v44 = vpop.eup %7594  ;;  %v3388_v19 = vsel %vm10611_vm5, %v3387_v0, %v3383_v12  ;;  %v10670_v17 = vor.u32 1.1754944e-38, %v3881_v55  ;;  %v3399_v42 = vand.u32 2147483647, %v10520_v37  ;;  %v3401_v32 = vand.u32 2147483648, %v10520_v37  ;;  %v10680_v31 = vpop.permute.xlu2 %1104 }
 0x272   : > { %16590 = vst [vmem:[#allocation23_spill] sm:$0xff] %v10653_v22  ;;  %v3893_v25 = vsel %vm10666_vm11, %v10496_v46, %v3889_v56  ;;  %v3873_v0 = vmul.f32 %v10552_v33, %v3872_v62  ;;  %v3392_v12 = vsub.f32 1.0, %v3391_v20  ;;  %v3991_v21 = vmul.f32 %v10642_v59, %v10550_v34  ;;  %v16595_v20 = vld [vmem:[#allocation44_spill] sm:$0xff] }
 0x273   : > { %16591 = vst [vmem:[#allocation53_spill] sm:$0xff] %v10656_v41  ;;  %v3931_v55 = vmul.f32 %v10650_v16, %v10561_v29  ;;  %7600 = vrcp.f32 %v10644_v36  ;;  %v2570_v5 = vsub.f32 0.0, %v10648_v57  ;;  %v10687_v41 = vadd.f32 %v9881_v15, %v1055_v52 }
 0x274   : > { %v10689_v28 = vpop.eup %7596  ;;  %v10692_v46 = vmul.f32 %v3388_v19, %v10197_v47  ;;  %v4001_v56 = vand.u32 2147483648, %v10550_v34  ;;  %v10695_v62 = vadd.f32 1.0, %v7595_v44  ;;  %v10698_v26 = vadd.f32 %v16595_v20, %v1050_v35  ;;  %v16598_v20 = vld [vmem:[#allocation22_spill] sm:$0xff] }
 0x275   : > { %v7599_v6 = vpop.eup %7598  ;;  %v3898_v22 = vsel %vm10625_vm8, %v3897_v14, %v3893_v25  ;;  %vm3876_vm12 = vweird.f32 %v10552_v33  ;;  %vm10703_vm13 = vcmp.eq.f32.partialorder %v3879_v18, 8.507059e+37  ;;  %vm3395_vm14 = vweird.f32 %v10520_v37  ;;  %v2126_v14 = vpop.f32.mrf.mxu0 }
 0x276   : > { %16594 = vst [vmem:[#allocation75_spill] sm:$0xff] %v10692_v46  ;;  %v10708_v47 = vor.u32 1.1754944e-38, %v3401_v32  ;;  %v3999_v52 = vand.u32 2147483647, %v10550_v34  ;;  %v3874_v44 = vadd.f32 %v10552_v33, %v3873_v0  ;;  %v3393_v19 = vmul.f32 %v10609_v60, %v3392_v12  ;;  %v10719_v32 = vpop.f32.mrf.mxu1  ;;  %vm10736_vm15 = vmor %vm3875_vm10, %vm3876_vm12 }
 0x277   : > { %v3992_v35 = vsub.f32 1.0, %v3991_v21  ;;  %v10714_v53 = vadd.f32 %v2123_v24, %v16598_v20  ;;  %v3932_v25 = vsub.f32 1.0, %v3931_v55  ;;  %v3916_v18 = vmul.f32 %v10689_v28, %v10607_v51 }
 0x278   : > { %v2745_v9 = vmul.f32 1.442695, %v2570_v5  ;;  %v2610_v7 = vsub.f32 0.0, %v10687_v41  ;;  %v10721_v46 = vor.u32 1.1754944e-38, %v4001_v56  ;;  %7602 = vrcp.f32 %v10695_v62 }
 0x279   : > { %v10724_v0 = vadd.f32 1.0, %v7599_v6  ;;  %v2609_v12 = vsub.f32 0.0, %v10698_v26  ;;  %v10727_v24 = vpop.eup %7600  ;;  %v10730_v21 = vmul.f32 %v3898_v22, %v10241_v54  ;;  %vm3396_vm0 = vweird.f32 %v10609_v60 }
 0x27a   : > { %vm3995_vm2 = vweird.f32 %v10550_v34  ;;  %v3939_v6 = vand.u32 2147483647, %v10561_v29  ;;  %v10745_v55 = vadd.f32 %v10636_v43, %v10414_v40  ;;  %v3878_v54 = vsel %vm10736_vm15, %v10552_v33, %v3874_v44  ;;  %v613_v40 = vld [vmem:[%s16418_s1 + $0x4e0] sm:$0xff]  ;;  %v10762_v44 = vpop.f32.mrf.mxu3  ;;  %vm10795_vm6 = vmor %vm3395_vm14, %vm3396_vm0 }
 0x27b   : > { %16599 = vst [vmem:[#allocation44_spill] sm:$0xff] %v10730_v21  ;;  %v3394_v63 = vadd.f32 %v10609_v60, %v3393_v19  ;;  %vm10751_vm3 = vcmp.eq.f32.partialorder %v3399_v42, 8.507059e+37  ;;  %v3993_v56 = vmul.f32 %v10642_v59, %v3992_v35  ;;  %vm3935_vm4 = vweird.f32 %v10561_v29  ;;  %7377 = vmatmul.msk.f32.gmra.mxu3 %vm1577_vm1, %v613_v40  ;;  %v754_v42 = vld [vmem:[%s16419_s2 + $0x448] sm:$0xff]  ;;  %v753_v19 = vld [vmem:[%s16419_s2 + $0x440] sm:$0xff]  ;;  %v752_v35 = vld [vmem:[%s16419_s2 + $0x438] sm:$0xff] }
 0x27c   : > { %v2571_v20 = vsub.f32 0.0, %v10714_v53  ;;  %v3933_v43 = vmul.f32 %v10650_v16, %v3932_v25  ;;  %v3917_v5 = vsub.f32 1.0, %v3916_v18  ;;  %7604 = vpow2.f32 %v2745_v9  ;;  %16604 = vst [vmem:[#allocation22_spill] sm:$0xff] %v10762_v44  ;;  %v10777_v25 = vpop.permute.xlu2 %1119  ;;  %v16605_v18 = vld [vmem:[#allocation12_spill] sm:$0xff]  ;;  %1464 = vperm.xlu2 %7489, %v754_v42   ;;  %1459 = vperm.xlu1 %7488, %v753_v19  }
 0x27d   : > { %v2825_v33 = vmul.f32 1.442695, %v2610_v7  ;;  %v3406_v9 = vmul.f32 %v10727_v24, %v10644_v36  ;;  %7606 = vrcp.f32 %v10724_v0  ;;  %v2823_v7 = vmul.f32 1.442695, %v2609_v12  ;;  %1454 = vperm.xlu0 %7487, %v752_v35   ;;  %v10816_v50 = vpop.f32.mrf.mxu0 }
 0x27e   : > { %v10780_v40 = vadd.f32 %v2126_v14, %v16605_v18  ;;  %vm3996_vm5 = vweird.f32 %v10642_v59  ;;  %v3941_v44 = vand.u32 2147483648, %v10561_v29  ;;  %v3924_v21 = vand.u32 2147483647, %v10607_v51  ;;  %v10786_v61 = vpop.eup %7602 }
 0x27f   : > { %v2611_v58 = vsub.f32 0.0, %v10745_v55  ;;  %v3883_v12 = vsel %vm10703_vm13, %v10670_v17, %v3878_v54  ;;  %vm10799_vm7 = vcmp.eq.f32.partialorder %v3999_v52, 8.507059e+37  ;;  %vm3936_vm8 = vweird.f32 %v10650_v16  ;;  %vm10832_vm11 = vmor %vm3995_vm2, %vm3996_vm5 }
 0x280   : > { %vm10804_vm9 = vcmp.eq.f32.partialorder %v3939_v6, 8.507059e+37  ;;  %v3926_v17 = vand.u32 2147483648, %v10607_v51  ;;  %v2747_v15 = vmul.f32 1.442695, %v2571_v20  ;;  %v3398_v37 = vsel %vm10795_vm6, %v10609_v60, %v3394_v63  ;;  %v10821_v20 = vpop.f32.mrf.mxu1  ;;  %vm10850_vm13 = vmor %vm3935_vm4, %vm3936_vm8 }
 0x281   : > { %v3994_v54 = vadd.f32 %v10642_v59, %v3993_v56  ;;  %v3918_v52 = vmul.f32 %v10689_v28, %v3917_v5  ;;  %7608 = vpow2.f32 %v2825_v33  ;;  %v3934_v35 = vadd.f32 %v10650_v16, %v3933_v43  ;;  %v1065_v56 = vpop.permute.xlu0 %1064 }
 0x282   : > { %v3407_v18 = vsub.f32 1.0, %v3406_v9  ;;  %7610 = vpow2.f32 %v2823_v7  ;;  %v2572_v6 = vsub.f32 0.0, %v10780_v40  ;;  %v7605_v10 = vpop.eup %7604  ;;  %v3942_v2 = vor.u32 1.1754944e-38, %v3941_v44 }
 0x283   : > { %vm3920_vm10 = vweird.f32 %v10607_v51  ;;  %v3976_v60 = vmul.f32 %v10786_v61, %v10695_v62  ;;  %v2827_v63 = vmul.f32 1.442695, %v2611_v58  ;;  %v10823_v5 = vpop.eup %7606  ;;  %v10826_v43 = vmul.f32 %v3883_v12, %v10292_v38 }
 0x284   : > { %vm10836_vm12 = vcmp.eq.f32.partialorder %v3924_v21, 8.507059e+37  ;;  %v3927_v58 = vor.u32 1.1754944e-38, %v3926_v17  ;;  %7612 = vpow2.f32 %v2747_v15  ;;  %v3403_v9 = vsel %vm10751_vm3, %v10708_v47, %v3398_v37 }
 0x285   : > { %16612 = vst [vmem:[#allocation12_spill] sm:$0xff] %v10826_v43  ;;  %v3998_v38 = vsel %vm10832_vm11, %v10642_v59, %v3994_v54  ;;  %v3919_v21 = vadd.f32 %v10689_v28, %v3918_v52  ;;  %vm3921_vm14 = vweird.f32 %v10689_v28  ;;  %v3938_v47 = vsel %vm10850_vm13, %v10650_v16, %v3934_v35  ;;  %v10879_v52 = vpop.permute.xlu2 %1134  ;;  %v10890_v35 = vpop.permute.xlu1 %1069 }
 0x286   : > { %v3408_v22 = vmul.f32 %v10727_v24, %v3407_v18  ;;  %v2749_v7 = vmul.f32 1.442695, %v2572_v6  ;;  %v10861_v59 = vadd.f32 %v10719_v32, %v1065_v56  ;;  %v3977_v29 = vsub.f32 1.0, %v3976_v60  ;;  %vm10872_vm15 = vmor %vm3920_vm10, %vm3921_vm14  ;;  %16622 = vst [vmem:[#allocation77_spill] sm:$0xff] %v10879_v52 }
 0x287   : > { %v7609_v12 = vpop.eup %7608  ;;  %v3961_v14 = vmul.f32 %v10823_v5, %v10724_v0  ;;  %v10865_v17 = vadd.f32 1.0, %v7605_v10  ;;  %7614 = vpow2.f32 %v2827_v63  ;;  %v10868_v37 = vmul.f32 %v3403_v9, %v10349_v1  ;;  %v10910_v9 = vpop.f32.mrf.mxu0 }
 0x288   : > { %v7611_v15 = vpop.eup %7610  ;;  %vm3410_vm0 = vweird.f32 %v10644_v36  ;;  %v3414_v32 = vand.u32 2147483647, %v10644_v36  ;;  %v3416_v54 = vand.u32 2147483648, %v10644_v36  ;;  %v4003_v10 = vsel %vm10799_vm7, %v10721_v46, %v3998_v38 }
 0x289   : > { %16619 = vst [vmem:[#allocation76_spill] sm:$0xff] %v10868_v37  ;;  %v3943_v1 = vsel %vm10804_vm9, %v3942_v2, %v3938_v47  ;;  %v3923_v51 = vsel %vm10872_vm15, %v10689_v28, %v3919_v21  ;;  %vm3411_vm2 = vweird.f32 %v10727_v24  ;;  %v3409_v6 = vadd.f32 %v10727_v24, %v3408_v22  ;;  %v10918_v22 = vpop.f32.mrf.mxu1 }
 0x28a   : > { %v7613_v18 = vpop.eup %7612  ;;  %v10893_v60 = vadd.f32 1.0, %v7609_v12  ;;  %7616 = vpow2.f32 %v2749_v7  ;;  %v2612_v42 = vsub.f32 0.0, %v10861_v59  ;;  %v3978_v46 = vmul.f32 %v10786_v61, %v3977_v29  ;;  %vm10924_vm4 = vmor %vm3410_vm0, %vm3411_vm2 }
 0x28b   : > { %v3962_v19 = vsub.f32 1.0, %v3961_v14  ;;  %7618 = vrcp.f32 %v10865_v17  ;;  %v10898_v2 = vadd.f32 1.0, %v7611_v15  ;;  %v10901_v28 = vmul.f32 %v4003_v10, %v10379_v13 }
 0x28c   : > { %v10904_v63 = vmul.f32 %v3943_v1, %v10393_v8  ;;  %vm10906_vm3 = vcmp.eq.f32.partialorder %v3414_v32, 8.507059e+37  ;;  %v3417_v33 = vor.u32 1.1754944e-38, %v3416_v54  ;;  %v3928_v34 = vsel %vm10836_vm12, %v3927_v58, %v3923_v51  ;;  %v16634_v51 = vld [vmem:[#allocation29_spill] sm:$0xff] }
 0x28d   : > { %16623 = vst [vmem:[#allocation78_spill] sm:$0xff] %v10901_v28  ;;  %v7615_v38 = vpop.eup %7614  ;;  %v3984_v21 = vand.u32 2147483647, %v10695_v62  ;;  %v3986_v47 = vand.u32 2147483648, %v10695_v62  ;;  %v10916_v13 = vadd.f32 1.0, %v7613_v18  ;;  %vm3980_vm5 = vweird.f32 %v10695_v62 }
 0x28e   : > { %16624 = vst [vmem:[#allocation79_spill] sm:$0xff] %v10904_v63  ;;  %vm3981_vm6 = vweird.f32 %v10786_v61  ;;  %7620 = vrcp.f32 %v10893_v60  ;;  %v2829_v44 = vmul.f32 1.442695, %v2612_v42  ;;  %v3413_v58 = vsel %vm10924_vm4, %v10727_v24, %v3409_v6  ;;  %v10967_v6 = vpop.permute.xlu2 %1149  ;;  %v755_v24 = vld [vmem:[%s16419_s2 + $0x450] sm:$0xff] }
 0x28f   : > { %v3979_v7 = vadd.f32 %v10786_v61, %v3978_v46  ;;  %v3963_v12 = vmul.f32 %v10823_v5, %v3962_v19  ;;  %7622 = vrcp.f32 %v10898_v2  ;;  %v10938_v29 = vmul.f32 %v3928_v34, %v10428_v23  ;;  %vm10958_vm8 = vmor %vm3980_vm5, %vm3981_vm6  ;;  %16635 = vst [vmem:[#allocation29_spill] sm:$0xff] %v10967_v6  ;;  %v10976_v19 = vpop.permute.xlu1 %1084  ;;  %1469 = vperm.xlu0 %7487, %v755_v24   ;;  %v16644_v24 = vld [vmem:[#allocation13_spill] sm:$0xff] }
 0x290   : > { %v7617_v36 = vpop.eup %7616  ;;  %v3969_v14 = vand.u32 2147483647, %v10724_v0  ;;  %v3971_v15 = vand.u32 2147483648, %v10724_v0  ;;  %v10942_v16 = vadd.f32 1.0, %v7615_v38  ;;  %vm10946_vm7 = vcmp.eq.f32.partialorder %v3984_v21, 8.507059e+37 }
 0x291   : > { %16629 = vst [vmem:[#allocation80_spill] sm:$0xff] %v10938_v29  ;;  %v10944_v32 = vpop.eup %7618  ;;  %v3987_v54 = vor.u32 1.1754944e-38, %v3986_v47  ;;  %v3431_v10 = vand.u32 2147483648, %v10865_v17  ;;  %7624 = vrcp.f32 %v10916_v13  ;;  %v3418_v23 = vsel %vm10906_vm3, %v3417_v33, %v3413_v58  ;;  %v10999_v58 = vpop.f32.mrf.mxu3 }
 0x292   : > { %vm3965_vm9 = vweird.f32 %v10724_v0  ;;  %7626 = vpow2.f32 %v2829_v44  ;;  %v10965_v18 = vadd.f32 %v10816_v50, %v16634_v51  ;;  %v3983_v42 = vsel %vm10958_vm8, %v10786_v61, %v3979_v7  ;;  %v614_v61 = vld [vmem:[%s16418_s1 + $0x4e8] sm:$0xff]  ;;  %16639 = vst [vmem:[#allocation82_spill] sm:$0xff] %v10999_v58  ;;  %v757_v7 = vld [vmem:[%s16419_s2 + $0x460] sm:$0xff]  ;;  %v2255_v51 = vpop.f32.mrf.mxu1 }
 0x293   : > { %v3964_v46 = vadd.f32 %v10823_v5, %v3963_v12  ;;  %vm3966_vm10 = vweird.f32 %v10823_v5  ;;  %v10974_v62 = vadd.f32 1.0, %v7617_v36  ;;  %vm10980_vm11 = vcmp.eq.f32.partialorder %v3969_v14, 8.507059e+37  ;;  %7378 = vmatmul.msk.f32.gmra.mxu3 %vm1577_vm1, %v614_v61  ;;  %v756_v12 = vld [vmem:[%s16419_s2 + $0x458] sm:$0xff]  ;;  %1479 = vperm.xlu2 %7489, %v757_v7  }
 0x294   : > { %v10978_v56 = vpop.eup %7620  ;;  %v3972_v50 = vor.u32 1.1754944e-38, %v3971_v15  ;;  %v3421_v38 = vmul.f32 %v10944_v32, %v10865_v17  ;;  %7628 = vrcp.f32 %v10942_v16  ;;  %v10993_v21 = vmul.f32 %v3418_v23, %v10471_v11  ;;  %vm11014_vm12 = vmor %vm3965_vm9, %vm3966_vm10  ;;  %v2135_v23 = vpop.f32.mrf.mxu0  ;;  %1474 = vperm.xlu1 %7488, %v756_v12  }
 0x295   : > { %v10990_v34 = vpop.eup %7622  ;;  %v3429_v47 = vand.u32 2147483647, %v10865_v17  ;;  %v10996_v8 = vor.u32 1.1754944e-38, %v3431_v10  ;;  %v4031_v44 = vand.u32 2147483648, %v10893_v60  ;;  %v3988_v11 = vsel %vm10946_vm7, %v3987_v54, %v3983_v42 }
 0x296   : > { %16638 = vst [vmem:[#allocation81_spill] sm:$0xff] %v10993_v21  ;;  %v4029_v14 = vand.u32 2147483647, %v10893_v60  ;;  %v2573_v15 = vsub.f32 0.0, %v10965_v18  ;;  %v11022_v10 = vadd.f32 %v10821_v20, %v10890_v35  ;;  %v3968_v54 = vsel %vm11014_vm12, %v10823_v5, %v3964_v46  ;;  %v16642_v20 = vld [vmem:[#allocation28_spill] sm:$0xff] }
 0x297   : > { %v11027_v0 = vpop.eup %7624  ;;  %v4021_v1 = vmul.f32 %v10978_v56, %v10893_v60  ;;  %7630 = vrcp.f32 %v10974_v62  ;;  %v11037_v35 = vadd.f32 %v10910_v9, %v16642_v20  ;;  %v3422_v61 = vsub.f32 1.0, %v3421_v38  ;;  %v1080_v20 = vpop.permute.xlu0 %1079 }
 0x298   : > { %v7627_v42 = vpop.eup %7626  ;;  %v4006_v7 = vmul.f32 %v10990_v34, %v10898_v2  ;;  %v4014_v12 = vand.u32 2147483647, %v10898_v2  ;;  %v11044_v5 = vadd.f32 %v10918_v22, %v10493_v30  ;;  %v11047_v46 = vmul.f32 %v3988_v11, %v10511_v4 }
 0x299   : > { %v11049_v36 = vor.u32 1.1754944e-38, %v4031_v44  ;;  %v4016_v9 = vand.u32 2147483648, %v10898_v2  ;;  %v11053_v58 = vadd.f32 %v2135_v23, %v16644_v24  ;;  %v3973_v29 = vsel %vm10980_vm11, %v3972_v50, %v3968_v54 }
 0x29a   : > { %16643 = vst [vmem:[#allocation28_spill] sm:$0xff] %v11047_v46  ;;  %v11055_v38 = vpop.eup %7628  ;;  %vm3425_vm13 = vweird.f32 %v10865_v17  ;;  %v2751_v30 = vmul.f32 1.442695, %v2573_v15  ;;  %v2613_v22 = vsub.f32 0.0, %v11022_v10  ;;  %v11061_v4 = vadd.f32 %v2255_v51, %v1080_v20  ;;  %v11071_v15 = vpop.permute.xlu2 %1164 }
 0x29b   : > { %v4022_v44 = vsub.f32 1.0, %v4021_v1  ;;  %v3436_v11 = vmul.f32 %v11027_v0, %v10916_v13  ;;  %v11065_v28 = vadd.f32 1.0, %v7627_v42  ;;  %v2574_v23 = vsub.f32 0.0, %v11037_v35  ;;  %16645 = vst [vmem:[#allocation13_spill] sm:$0xff] %v11071_v15 }
 0x29c   : > { %v3423_v24 = vmul.f32 %v10944_v32, %v3422_v61  ;;  %vm3426_vm14 = vweird.f32 %v10944_v32  ;;  %v4007_v33 = vsub.f32 1.0, %v4006_v7  ;;  %v2614_v50 = vsub.f32 0.0, %v11044_v5  ;;  %v11083_v61 = vpop.permute.xlu1 %1099 }
 0x29d   : > { %v11073_v54 = vpop.eup %7630  ;;  %v11076_v1 = vmul.f32 %v3973_v29, %v10537_v48  ;;  %vm4025_vm15 = vweird.f32 %v10893_v60  ;;  %v11079_v51 = vor.u32 1.1754944e-38, %v4016_v9  ;;  %v4036_v42 = vmul.f32 %v11055_v38, %v10942_v16  ;;  %vm11115_vm8 = vmor %vm3425_vm13, %vm3426_vm14 }
 0x29e   : > { %v2575_v7 = vsub.f32 0.0, %v11053_v58  ;;  %vm11086_vm0 = vcmp.eq.f32.partialorder %v3429_v47, 8.507059e+37  ;;  %vm4010_vm2 = vweird.f32 %v10898_v2  ;;  %v3446_v48 = vand.u32 2147483648, %v10916_v13 }
 0x29f   : > { %16646 = vst [vmem:[#allocation83_spill] sm:$0xff] %v11076_v1  ;;  %7632 = vpow2.f32 %v2751_v30  ;;  %v2831_v29 = vmul.f32 1.442695, %v2613_v22  ;;  %v2615_v9 = vsub.f32 0.0, %v11061_v4  ;;  %v4023_v1 = vmul.f32 %v10978_v56, %v4022_v44  ;;  %v11127_v17 = vpop.permute.xlu0 %1094 }
 0x2a0   : > { %v3437_v15 = vsub.f32 1.0, %v3436_v11  ;;  %7634 = vrcp.f32 %v11065_v28  ;;  %v2753_v43 = vmul.f32 1.442695, %v2574_v23  ;;  %v3424_v46 = vadd.f32 %v10944_v32, %v3423_v24 }
 0x2a1   : > { %v4008_v47 = vmul.f32 %v10990_v34, %v4007_v33  ;;  %v3451_v6 = vmul.f32 %v11073_v54, %v10974_v62  ;;  %v2833_v63 = vmul.f32 1.442695, %v2614_v50  ;;  %vm4026_vm3 = vweird.f32 %v10978_v56 }
 0x2a2   : > { %vm11100_vm4 = vcmp.eq.f32.partialorder %v4029_v14, 8.507059e+37  ;;  %vm3440_vm5 = vweird.f32 %v10916_v13  ;;  %v4037_v22 = vsub.f32 1.0, %v4036_v42  ;;  %v2755_v44 = vmul.f32 1.442695, %v2575_v7  ;;  %vm11138_vm10 = vmor %vm4025_vm15, %vm4026_vm3 }
 0x2a3   : > { %vm4011_vm6 = vweird.f32 %v10990_v34  ;;  %vm11106_vm7 = vcmp.eq.f32.partialorder %v4014_v12, 8.507059e+37  ;;  %v3444_v23 = vand.u32 2147483647, %v10916_v13  ;;  %7636 = vpow2.f32 %v2831_v29 }
 0x2a4   : > { %v2835_v24 = vmul.f32 1.442695, %v2615_v9  ;;  %v4024_v33 = vadd.f32 %v10978_v56, %v4023_v1  ;;  %v3438_v50 = vmul.f32 %v11027_v0, %v3437_v15  ;;  %v11121_v12 = vor.u32 1.1754944e-38, %v3446_v48  ;;  %vm11159_vm13 = vmor %vm4010_vm2, %vm4011_vm6 }
 0x2a5   : > { %7638 = vpow2.f32 %v2753_v43  ;;  %v7633_v42 = vpop.eup %7632  ;;  %v3428_v7 = vsel %vm11115_vm8, %v10944_v32, %v3424_v46  ;;  %v4009_v29 = vadd.f32 %v10990_v34, %v4008_v47  ;;  %v3452_v9 = vsub.f32 1.0, %v3451_v6  ;;  %v1180_v46 = vpop.permute.xlu2 %1179 }
 0x2a6   : > { %7640 = vpow2.f32 %v2833_v63  ;;  %v11129_v52 = vpop.eup %7634  ;;  %v4038_v1 = vmul.f32 %v11055_v38, %v4037_v22  ;;  %vm4040_vm9 = vweird.f32 %v10942_v16  ;;  %v4044_v15 = vand.u32 2147483647, %v10942_v16 }
 0x2a7   : > { %7642 = vpow2.f32 %v2755_v44  ;;  %vm11142_vm11 = vcmp.eq.f32.partialorder %v3444_v23, 8.507059e+37  ;;  %v4046_v63 = vand.u32 2147483648, %v10942_v16  ;;  %vm3455_vm12 = vweird.f32 %v10974_v62  ;;  %v11165_v44 = vpop.permute.xlu1 %1114  ;;  %v16669_v16 = vld [vmem:[#allocation35_spill] sm:$0xff] }
 0x2a8   : > { %v3459_v6 = vand.u32 2147483647, %v10974_v62  ;;  %7644 = vpow2.f32 %v2835_v24  ;;  %v3433_v60 = vsel %vm11086_vm0, %v10996_v8, %v3428_v7  ;;  %v4028_v48 = vsel %vm11138_vm10, %v10978_v56, %v4024_v33 }
 0x2a9   : > { %v3439_v22 = vadd.f32 %v11027_v0, %v3438_v50  ;;  %vm3441_vm14 = vweird.f32 %v11027_v0  ;;  %v7637_v20 = vpop.eup %7636  ;;  %v4013_v8 = vsel %vm11159_vm13, %v10990_v34, %v4009_v29  ;;  %v3453_v56 = vmul.f32 %v11073_v54, %v3452_v9  ;;  %v16663_v50 = vld [vmem:[#allocation4_spill] sm:$0xff]  ;;  %v2138_v34 = vpop.f32.mrf.mxu0 }
 0x2aa   : > { %v4051_v2 = vmul.f32 %v11129_v52, %v11065_v28  ;;  %v11173_v23 = vadd.f32 1.0, %v7633_v42  ;;  %v4039_v14 = vadd.f32 %v11055_v38, %v4038_v1  ;;  %vm4041_vm15 = vweird.f32 %v11055_v38  ;;  %vm11194_vm2 = vmor %vm3440_vm5, %vm3441_vm14  ;;  %v11274_v1 = vpop.f32.mrf.mxu3 }
 0x2ab   : > { %v7639_v24 = vpop.eup %7638  ;;  %vm11177_vm0 = vcmp.eq.f32.partialorder %v4044_v15, 8.507059e+37  ;;  %v11182_v7 = vadd.f32 %v16663_v50, %v1180_v46  ;;  %v11185_v9 = vmul.f32 %v3433_v60, %v10648_v57  ;;  %v4033_v42 = vsel %vm11100_vm4, %v11049_v36, %v4028_v48  ;;  %vm11212_vm4 = vmor %vm4040_vm9, %vm4041_vm15  ;;  %16677 = vst [vmem:[#allocation86_spill] sm:$0xff] %v11274_v1 }
 0x2ac   : > { %v7641_v29 = vpop.eup %7640  ;;  %v4047_v15 = vor.u32 1.1754944e-38, %v4046_v63  ;;  %v3461_v43 = vand.u32 2147483648, %v10974_v62  ;;  %v4018_v57 = vsel %vm11106_vm7, %v11079_v51, %v4013_v8  ;;  %v3443_v36 = vsel %vm11194_vm2, %v11027_v0, %v3439_v22  ;;  %v615_v62 = vld [vmem:[%s16418_s1 + $0x4f0] sm:$0xff] }
 0x2ad   : > { %16664 = vst [vmem:[#allocation4_spill] sm:$0xff] %v11185_v9  ;;  %v7643_v46 = vpop.eup %7642  ;;  %vm3456_vm3 = vweird.f32 %v11073_v54  ;;  %v11206_v30 = vadd.f32 1.0, %v7637_v20  ;;  %v3454_v11 = vadd.f32 %v11073_v54, %v3453_v56  ;;  %v4052_v51 = vsub.f32 1.0, %v4051_v2  ;;  %v11236_v2 = vpop.permute.xlu0 %1109  ;;  %7379 = vmatmul.msk.f32.gmra.mxu3 %vm1577_vm1, %v615_v62 }
 0x2ae   : > { %v7645_v13 = vpop.eup %7644  ;;  %7646 = vrcp.f32 %v11173_v23  ;;  %v11218_v60 = vadd.f32 1.0, %v7639_v24  ;;  %v4043_v0 = vsel %vm11212_vm4, %v11055_v38, %v4039_v14  ;;  %v11223_v48 = vadd.f32 1.0, %v7641_v29  ;;  %v2258_v38 = vpop.f32.mrf.mxu1  ;;  %vm11250_vm6 = vmor %vm3455_vm12, %vm3456_vm3 }
 0x2af   : > { %v2635_v47 = vsub.f32 0.0, %v11182_v7  ;;  %v11227_v22 = vadd.f32 %v2138_v34, %v16669_v16  ;;  %v11230_v20 = vmul.f32 %v4033_v42, %v10687_v41  ;;  %vm11232_vm5 = vcmp.eq.f32.partialorder %v3459_v6, 8.507059e+37  ;;  %v11268_v29 = vpop.permute.xlu1 %1129 }
 0x2b0   : > { %v3462_v56 = vor.u32 1.1754944e-38, %v3461_v43  ;;  %v11238_v24 = vadd.f32 1.0, %v7643_v46  ;;  %v11241_v14 = vmul.f32 %v4018_v57, %v10698_v26  ;;  %v3448_v50 = vsel %vm11142_vm11, %v11121_v12, %v3443_v36  ;;  %16676 = vst [vmem:[#allocation85_spill] sm:$0xff] %v11268_v29  ;;  %v759_v36 = vld [vmem:[%s16419_s2 + $0x470] sm:$0xff] }
 0x2b1   : > { %16670 = vst [vmem:[#allocation35_spill] sm:$0xff] %v11230_v20  ;;  %7648 = vrcp.f32 %v11206_v30  ;;  %v11255_v6 = vadd.f32 1.0, %v7645_v13  ;;  %v4048_v26 = vsel %vm11177_vm0, %v4047_v15, %v4043_v0  ;;  %v3458_v32 = vsel %vm11250_vm6, %v11073_v54, %v3454_v11  ;;  %v760_v54 = vld [vmem:[%s16419_s2 + $0x478] sm:$0xff]  ;;  %v758_v13 = vld [vmem:[%s16419_s2 + $0x468] sm:$0xff]  ;;  %v2141_v11 = vpop.f32.mrf.mxu0  ;;  %1489 = vperm.xlu1 %7488, %v759_v36   ;;  %v16684_v36 = vld [vmem:[#allocation34_spill] sm:$0xff] }
 0x2b2   : > { %16673 = vst [vmem:[#allocation84_spill] sm:$0xff] %v11241_v14  ;;  %v4053_v12 = vmul.f32 %v11129_v52, %v4052_v51  ;;  %7650 = vrcp.f32 %v11218_v60  ;;  %v2875_v34 = vmul.f32 1.442695, %v2635_v47  ;;  %v2576_v33 = vsub.f32 0.0, %v11227_v22  ;;  %1494 = vperm.xlu2 %7489, %v760_v54   ;;  %1484 = vperm.xlu0 %7487, %v758_v13  }
 0x2b3   : > { %7652 = vrcp.f32 %v11223_v48  ;;  %v11272_v42 = vadd.f32 %v2258_v38, %v10976_v19  ;;  %v11283_v43 = vmul.f32 %v3448_v50, %v10714_v53  ;;  %v4059_v46 = vand.u32 2147483647, %v11065_v28  ;;  %v1195_v19 = vpop.permute.xlu2 %1194 }
 0x2b4   : > { %v11280_v15 = vpop.eup %7646  ;;  %v4061_v57 = vand.u32 2147483648, %v11065_v28  ;;  %7654 = vrcp.f32 %v11238_v24  ;;  %v11295_v63 = vmul.f32 %v4048_v26, %v10745_v55  ;;  %v3463_v53 = vsel %vm11232_vm5, %v3462_v56, %v3458_v32  ;;  %v16683_v32 = vld [vmem:[#allocation7_spill] sm:$0xff] }
 0x2b5   : > { %16678 = vst [vmem:[#allocation87_spill] sm:$0xff] %v11283_v43  ;;  %vm4055_vm7 = vweird.f32 %v11065_v28  ;;  %7656 = vrcp.f32 %v11255_v6  ;;  %v4054_v51 = vadd.f32 %v11129_v52, %v4053_v12  ;;  %vm4056_vm8 = vweird.f32 %v11129_v52 }
 0x2b6   : > { %16679 = vst [vmem:[#allocation88_spill] sm:$0xff] %v11295_v63  ;;  %v3476_v0 = vand.u32 2147483648, %v11173_v23  ;;  %v4076_v47 = vand.u32 2147483648, %v11206_v30  ;;  %v3466_v16 = vmul.f32 %v11280_v15, %v11173_v23  ;;  %7658 = vpow2.f32 %v2875_v34  ;;  %vm11336_vm10 = vmor %vm4055_vm7, %vm4056_vm8 }
 0x2b7   : > { %v11305_v55 = vpop.eup %7648  ;;  %v2757_v8 = vmul.f32 1.442695, %v2576_v33  ;;  %v2616_v56 = vsub.f32 0.0, %v11272_v42  ;;  %v11313_v50 = vmul.f32 %v3463_v53, %v10780_v40  ;;  %vm11315_vm9 = vcmp.eq.f32.partialorder %v4059_v46, 8.507059e+37 }
 0x2b8   : > { %v11310_v38 = vpop.eup %7650  ;;  %v4062_v26 = vor.u32 1.1754944e-38, %v4061_v57  ;;  %v11320_v12 = vadd.f32 %v16683_v32, %v1195_v19  ;;  %v3474_v34 = vand.u32 2147483647, %v11173_v23  ;;  %v4074_v33 = vand.u32 2147483647, %v11206_v30  ;;  %v11347_v32 = vpop.permute.xlu0 %1124 }
 0x2b9   : > { %16680 = vst [vmem:[#allocation89_spill] sm:$0xff] %v11313_v50  ;;  %v11322_v62 = vpop.eup %7652  ;;  %v3491_v54 = vand.u32 2147483648, %v11218_v60  ;;  %v11328_v13 = vadd.f32 %v2141_v11, %v16684_v36  ;;  %v11340_v57 = vor.u32 1.1754944e-38, %v3476_v0  ;;  %v4066_v19 = vmul.f32 %v11305_v55, %v11206_v30  ;;  %v2261_v36 = vpop.f32.mrf.mxu1 }
 0x2ba   : > { %v11330_v40 = vpop.eup %7654  ;;  %v11344_v53 = vor.u32 1.1754944e-38, %v4076_v47  ;;  %16687 = vst [vmem:[#allocation7_spill] sm:$0xff] %v11347_v32  ;;  %v4058_v28 = vsel %vm11336_vm10, %v11129_v52, %v4054_v51  ;;  %v3467_v14 = vsub.f32 1.0, %v3466_v16  ;;  %7660 = vpow2.f32 %v2757_v8  ;;  %v11366_v51 = vpop.permute.xlu1 %1144 }
 0x2bb   : > { %v11349_v1 = vpop.eup %7656  ;;  %v2837_v0 = vmul.f32 1.442695, %v2616_v56  ;;  %v3481_v63 = vmul.f32 %v11310_v38, %v11218_v60  ;;  %v4081_v47 = vmul.f32 %v11322_v62, %v11223_v48  ;;  %v4089_v11 = vand.u32 2147483647, %v11223_v48  ;;  %16688 = vst [vmem:[#allocation34_spill] sm:$0xff] %v11366_v51  ;;  %v1210_v21 = vpop.permute.xlu2 %1209 }
 0x2bc   : > { %v4091_v20 = vand.u32 2147483648, %v11223_v48  ;;  %v7659_v9 = vpop.eup %7658  ;;  %vm3470_vm11 = vweird.f32 %v11173_v23  ;;  %vm3471_vm12 = vweird.f32 %v11280_v15  ;;  %v11362_v46 = vor.u32 1.1754944e-38, %v3491_v54 }
 0x2bd   : > { %v3496_v52 = vmul.f32 %v11330_v40, %v11238_v24  ;;  %v11369_v16 = vadd.f32 %v2261_v36, %v10595_v45  ;;  %v4063_v8 = vsel %vm11315_vm9, %v4062_v26, %v4058_v28  ;;  %v4067_v56 = vsub.f32 1.0, %v4066_v19  ;;  %v2144_v36 = vpop.f32.mrf.mxu0  ;;  %vm11422_vm7 = vmor %vm3470_vm11, %vm3471_vm12 }
 0x2be   : > { %v4096_v50 = vmul.f32 %v11349_v1, %v11255_v6  ;;  %v2638_v43 = vsub.f32 0.0, %v11320_v12  ;;  %v3468_v54 = vmul.f32 %v11280_v15, %v3467_v14  ;;  %vm4070_vm13 = vweird.f32 %v11206_v30  ;;  %v763_v30 = vld [vmem:[%s16419_s2 + $0x490] sm:$0xff] }
 0x2bf   : > { %vm4071_vm14 = vweird.f32 %v11305_v55  ;;  %7662 = vpow2.f32 %v2837_v0  ;;  %v2577_v45 = vsub.f32 0.0, %v11328_v13  ;;  %v3482_v51 = vsub.f32 1.0, %v3481_v63  ;;  %1509 = vperm.xlu2 %7489, %v763_v30  }
 0x2c0   : > { %v4082_v41 = vsub.f32 1.0, %v4081_v47  ;;  %v11380_v26 = vor.u32 1.1754944e-38, %v4091_v20  ;;  %v11382_v19 = vadd.f32 1.0, %v7659_v9  ;;  %v7661_v28 = vpop.eup %7660  ;;  %v11385_v37 = vmul.f32 %v4063_v8, %v10861_v59  ;;  %v16693_v59 = vld [vmem:[#allocation16_spill] sm:$0xff]  ;;  %vm11450_vm10 = vmor %vm4070_vm13, %vm4071_vm14 }
 0x2c1   : > { %vm3485_vm15 = vweird.f32 %v11218_v60  ;;  %v3497_v14 = vsub.f32 1.0, %v3496_v52  ;;  %v2617_v29 = vsub.f32 0.0, %v11369_v16  ;;  %v11390_v0 = vadd.f32 %v16690_v27, %v1210_v21 }
 0x2c2   : > { %16689 = vst [vmem:[#allocation90_spill] sm:$0xff] %v11385_v37  ;;  %vm11392_vm0 = vcmp.eq.f32.partialorder %v3474_v34, 8.507059e+37  ;;  %v4068_v20 = vmul.f32 %v11305_v55, %v4067_v56  ;;  %vm4085_vm2 = vweird.f32 %v11223_v48  ;;  %v4097_v9 = vsub.f32 1.0, %v4096_v50  ;;  %v11413_v50 = vpop.permute.xlu0 %1139  ;;  %v11444_v37 = vpop.permute.xlu1 %1159 }
 0x2c3   : > { %v2881_v63 = vmul.f32 1.442695, %v2638_v43  ;;  %v11399_v47 = vadd.f32 %v2144_v36, %v16693_v59  ;;  %v3469_v52 = vadd.f32 %v11280_v15, %v3468_v54  ;;  %vm3486_vm3 = vweird.f32 %v11310_v38  ;;  %16696 = vst [vmem:[#allocation10_spill] sm:$0xff] %v11413_v50 }
 0x2c4   : > { %vm4086_vm4 = vweird.f32 %v11322_v62  ;;  %v2759_v27 = vmul.f32 1.442695, %v2577_v45  ;;  %vm11404_vm5 = vcmp.eq.f32.partialorder %v4074_v33, 8.507059e+37  ;;  %v3483_v34 = vmul.f32 %v11310_v38, %v3482_v51  ;;  %16704 = vst [vmem:[#allocation16_spill] sm:$0xff] %v11444_v37  ;;  %vm11479_vm12 = vmor %vm3485_vm15, %vm3486_vm3  ;;  %v2264_v37 = vpop.f32.mrf.mxu1 }
 0x2c5   : > { %v4083_v8 = vmul.f32 %v11322_v62, %v4082_v41  ;;  %7664 = vrcp.f32 %v11382_v19  ;;  %v11411_v43 = vadd.f32 1.0, %v7661_v28  ;;  %v7663_v56 = vpop.eup %7662  ;;  %v3498_v54 = vmul.f32 %v11330_v40, %v3497_v14  ;;  %vm11492_vm14 = vmor %vm4085_vm2, %vm4086_vm4 }
 0x2c6   : > { %vm3500_vm6 = vweird.f32 %v11238_v24  ;;  %v2839_v45 = vmul.f32 1.442695, %v2617_v29  ;;  %v2641_v33 = vsub.f32 0.0, %v11390_v0  ;;  %v4069_v36 = vadd.f32 %v11305_v55, %v4068_v20 }
 0x2c7   : > { %v16699_v41 = vand.u32 2147483647, %v11218_v60  ;;  %vm11433_vm9 = vcmp.eq.f32.partialorder %v4089_v11, 8.507059e+37  ;;  %v4098_v14 = vmul.f32 %v11349_v1, %v4097_v9  ;;  %7666 = vpow2.f32 %v2881_v63 }
 0x2c8   : > { %v2578_v23 = vsub.f32 0.0, %v11399_v47  ;;  %v3473_v59 = vsel %vm11422_vm7, %v11280_v15, %v3469_v52  ;;  %v3504_v20 = vand.u32 2147483647, %v11238_v24  ;;  %7668 = vpow2.f32 %v2759_v27 }
 0x2c9   : > { %vm11429_vm8 = vcmp.eq.f32.partialorder %v16699_v41, 8.507059e+37  ;;  %v3506_v41 = vand.u32 2147483648, %v11238_v24  ;;  %v3484_v9 = vadd.f32 %v11310_v38, %v3483_v34  ;;  %v4084_v63 = vadd.f32 %v11322_v62, %v4083_v8  ;;  %v762_v34 = vld [vmem:[%s16419_s2 + $0x488] sm:$0xff]  ;;  %v761_v8 = vld [vmem:[%s16419_s2 + $0x480] sm:$0xff] }
 0x2ca   : > { %7670 = vrcp.f32 %v11411_v43  ;;  %v11457_v15 = vadd.f32 1.0, %v7663_v56  ;;  %v3499_v52 = vadd.f32 %v11330_v40, %v3498_v54  ;;  %vm3501_vm11 = vweird.f32 %v11330_v40  ;;  %1504 = vperm.xlu1 %7488, %v762_v34   ;;  %1499 = vperm.xlu0 %7487, %v761_v8   ;;  %v11540_v21 = vpop.permute.xlu0 %1154  ;;  %v16727_v24 = vld [vmem:[#allocation40_spill] sm:$0xff] }
 0x2cb   : > { %7672 = vpow2.f32 %v2839_v45  ;;  %v2887_v27 = vmul.f32 1.442695, %v2641_v33  ;;  %v11470_v56 = vpop.eup %7664  ;;  %v4073_v54 = vsel %vm11450_vm10, %v11305_v55, %v4069_v36  ;;  %v4099_v33 = vadd.f32 %v11349_v1, %v4098_v14  ;;  %16718 = vst [vmem:[#allocation92_spill] sm:$0xff] %v11540_v21 }
 0x2cc   : > { %vm4101_vm13 = vweird.f32 %v11349_v1  ;;  %v2761_v51 = vmul.f32 1.442695, %v2578_v23  ;;  %v3478_v11 = vsel %vm11392_vm0, %v11340_v57, %v3473_v59  ;;  %vm11496_vm15 = vcmp.eq.f32.partialorder %v3504_v20, 8.507059e+37  ;;  %vm11512_vm0 = vmor %vm3500_vm6, %vm3501_vm11 }
 0x2cd   : > { %vm4100_vm3 = vweird.f32 %v11255_v6  ;;  %v4106_v36 = vand.u32 2147483648, %v11255_v6  ;;  %v7667_v49 = vpop.eup %7666  ;;  %v3488_v57 = vsel %vm11479_vm12, %v11310_v38, %v3484_v9  ;;  %v4088_v48 = vsel %vm11492_vm14, %v11322_v62, %v4084_v63  ;;  %v1225_v63 = vpop.permute.xlu2 %1224 }
 0x2ce   : > { %v4104_v23 = vand.u32 2147483647, %v11255_v6  ;;  %7674 = vrcp.f32 %v11457_v15  ;;  %v7669_v59 = vpop.eup %7668  ;;  %v4078_v38 = vsel %vm11404_vm5, %v11344_v53, %v4073_v54  ;;  %v3503_v62 = vsel %vm11512_vm0, %v11330_v40, %v3499_v52  ;;  %vm11526_vm2 = vmor %vm4100_vm3, %vm4101_vm13 }
 0x2cf   : > { %v4396_v6 = vmul.f32 %v11470_v56, %v11382_v19  ;;  %7676 = vpow2.f32 %v2887_v27  ;;  %v11535_v9 = vmul.f32 %v3478_v11, %v10965_v18  ;;  %v3507_v53 = vor.u32 1.1754944e-38, %v3506_v41 }
 0x2d0   : > { %v11532_v20 = vpop.eup %7670  ;;  %v4103_v40 = vsel %vm11526_vm2, %v11349_v1, %v4099_v33  ;;  %7678 = vpow2.f32 %v2761_v51  ;;  %v3493_v30 = vsel %vm11429_vm8, %v11362_v46, %v3488_v57  ;;  %v4093_v27 = vsel %vm11433_vm9, %v11380_v26, %v4088_v48  ;;  %v11560_v26 = vpop.permute.xlu1 %1174 }
 0x2d1   : > { %16717 = vst [vmem:[#allocation91_spill] sm:$0xff] %v11535_v9  ;;  %v7673_v52 = vpop.eup %7672  ;;  %v4107_v18 = vor.u32 1.1754944e-38, %v4106_v36  ;;  %v11548_v34 = vadd.f32 1.0, %v7667_v49  ;;  %v11551_v41 = vmul.f32 %v4078_v38, %v11022_v10  ;;  %v3508_v1 = vsel %vm11496_vm15, %v3507_v53, %v3503_v62  ;;  %v11594_v38 = vpop.f32.mrf.mxu2 }
 0x2d2   : > { %vm4105_vm4 = vcmp.eq.f32.partialorder %v4104_v23, 8.507059e+37  ;;  %v4406_v8 = vand.u32 2147483648, %v11382_v19  ;;  %v4397_v45 = vsub.f32 1.0, %v4396_v6  ;;  %v3511_v46 = vmul.f32 %v11532_v20, %v11411_v43  ;;  %16720 = vst [vmem:[#allocation94_spill] sm:$0xff] %v11560_v26  ;;  %v16736_v26 = vld [vmem:[#allocation6_spill] sm:$0xff] }
 0x2d3   : > { %16719 = vst [vmem:[#allocation93_spill] sm:$0xff] %v11551_v41  ;;  %v4108_v54 = vsel %vm4105_vm4, %v4107_v18, %v4103_v40  ;;  %v11558_v28 = vadd.f32 1.0, %v7669_v59  ;;  %v11565_v10 = vmul.f32 %v3493_v30, %v11037_v35  ;;  %v11568_v33 = vmul.f32 %v4093_v27, %v11044_v5  ;;  %v2147_v35 = vpop.f32.mrf.mxu0 }
 0x2d4   : > { %v11562_v29 = vpop.eup %7674  ;;  %v11570_v51 = vadd.f32 1.0, %v7673_v52  ;;  %v11573_v11 = vadd.f32 %v2264_v37, %v11127_v17  ;;  %v11576_v55 = vmul.f32 %v3508_v1, %v11053_v58  ;;  %vm4400_vm5 = vweird.f32 %v11382_v19  ;;  %v16725_v37 = vld [vmem:[#allocation17_spill] sm:$0xff]  ;;  %v2267_v58 = vpop.f32.mrf.mxu1 }
 0x2d5   : > { %16721 = vst [vmem:[#allocation95_spill] sm:$0xff] %v11565_v10  ;;  %v7677_v60 = vpop.eup %7676  ;;  %v3521_v36 = vand.u32 2147483648, %v11411_v43  ;;  %7680 = vrcp.f32 %v11548_v34  ;;  %v11582_v5 = vmul.f32 %v4108_v54, %v11061_v4  ;;  %v4404_v57 = vand.u32 2147483647, %v11382_v19  ;;  %v1240_v54 = vpop.permute.xlu2 %1239 }
 0x2d6   : > { %16722 = vst [vmem:[#allocation96_spill] sm:$0xff] %v11568_v33  ;;  %v7679_v49 = vpop.eup %7678  ;;  %v11585_v48 = vor.u32 1.1754944e-38, %v4406_v8  ;;  %v11588_v17 = vadd.f32 %v16725_v37, %v1225_v63  ;;  %v4398_v14 = vmul.f32 %v11470_v56, %v4397_v45  ;;  %v3512_v23 = vsub.f32 1.0, %v3511_v46  ;;  %v11620_v8 = vpop.permute.xlu0 %1169 }
 0x2d7   : > { %16723 = vst [vmem:[#allocation97_spill] sm:$0xff] %v11576_v55  ;;  %v4111_v59 = vmul.f32 %v11562_v29, %v11457_v15  ;;  %7682 = vrcp.f32 %v11558_v28  ;;  %v11597_v4 = vadd.f32 1.0, %v7677_v60  ;;  %v2618_v62 = vsub.f32 0.0, %v11573_v11 }
 0x2d8   : > { %16724 = vst [vmem:[#allocation98_spill] sm:$0xff] %v11582_v5  ;;  %7684 = vrcp.f32 %v11570_v51  ;;  %v11601_v6 = vadd.f32 %v2147_v35, %v16727_v24  ;;  %vm3515_vm6 = vweird.f32 %v11411_v43  ;;  %v3519_v53 = vand.u32 2147483647, %v11411_v43 }
 0x2d9   : > { %16726 = vst [vmem:[#allocation17_spill] sm:$0xff] %v11594_v38  ;;  %v11605_v40 = vor.u32 1.1754944e-38, %v3521_v36  ;;  %v11607_v63 = vadd.f32 1.0, %v7679_v49  ;;  %v11610_v52 = vadd.f32 %v2267_v58, %v11083_v61  ;;  %vm4401_vm7 = vweird.f32 %v11470_v56 }
 0x2da   : > { %vm11613_vm8 = vcmp.eq.f32.partialorder %v4404_v57, 8.507059e+37  ;;  %v4119_v27 = vand.u32 2147483647, %v11457_v15  ;;  %v4121_v18 = vand.u32 2147483648, %v11457_v15  ;;  %v4451_v1 = vand.u32 2147483648, %v11548_v34  ;;  %16730 = vst [vmem:[#allocation40_spill] sm:$0xff] %v11620_v8  ;;  %vm11644_vm10 = vmor %vm4400_vm5, %vm4401_vm7 }
 0x2db   : > { %v11622_v45 = vpop.eup %7680  ;;  %v4399_v61 = vadd.f32 %v11470_v56, %v4398_v14  ;;  %v3513_v46 = vmul.f32 %v11532_v20, %v3512_v23  ;;  %v4112_v60 = vsub.f32 1.0, %v4111_v59  ;;  %v2644_v36 = vsub.f32 0.0, %v11588_v17  ;;  %v16731_v14 = vld [vmem:[#allocation32_spill] sm:$0xff]  ;;  %v1190_v59 = vpop.permute.xlu1 %1189 }
 0x2dc   : > { %7686 = vrcp.f32 %v11597_v4  ;;  %v2841_v49 = vmul.f32 1.442695, %v2618_v62  ;;  %v2579_v57 = vsub.f32 0.0, %v11601_v6  ;;  %vm3516_vm9 = vweird.f32 %v11532_v20 }
 0x2dd   : > { %v11630_v37 = vpop.eup %7682  ;;  %7688 = vrcp.f32 %v11607_v63  ;;  %v2619_v58 = vsub.f32 0.0, %v11610_v52  ;;  %v11636_v23 = vadd.f32 %v16731_v14, %v1240_v54  ;;  %vm11648_vm11 = vcmp.eq.f32.partialorder %v3519_v53, 8.507059e+37  ;;  %vm11690_vm13 = vmor %vm3515_vm6, %vm3516_vm9 }
 0x2de   : > { %v11638_v24 = vpop.eup %7684  ;;  %v11652_v5 = vor.u32 1.1754944e-38, %v4121_v18  ;;  %v4441_v54 = vmul.f32 %v11622_v45, %v11548_v34  ;;  %v11656_v14 = vor.u32 1.1754944e-38, %v4451_v1  ;;  %v3536_v8 = vand.u32 2147483648, %v11558_v28  ;;  %v1185_v10 = vpop.permute.xlu0 %1184 }
 0x2df   : > { %v4403_v19 = vsel %vm11644_vm10, %v11470_v56, %v4399_v61  ;;  %v3514_v33 = vadd.f32 %v11532_v20, %v3513_v46  ;;  %v4113_v53 = vmul.f32 %v11562_v29, %v4112_v60  ;;  %v2893_v21 = vmul.f32 1.442695, %v2644_v36  ;;  %v766_v61 = vld [vmem:[%s16419_s2 + $0x4a8] sm:$0xff]  ;;  %v765_v46 = vld [vmem:[%s16419_s2 + $0x4a0] sm:$0xff]  ;;  %v11684_v36 = vpop.f32.mrf.mxu2 }
 0x2e0   : > { %v3526_v18 = vmul.f32 %v11630_v37, %v11558_v28  ;;  %7690 = vpow2.f32 %v2841_v49  ;;  %v2763_v41 = vmul.f32 1.442695, %v2579_v57  ;;  %v11667_v50 = vadd.f32 %v16736_v26, %v1190_v59  ;;  %v764_v26 = vld [vmem:[%s16419_s2 + $0x498] sm:$0xff]  ;;  %16737 = vst [vmem:[#allocation32_spill] sm:$0xff] %v11684_v36  ;;  %1524 = vperm.xlu2 %7489, %v766_v61   ;;  %1519 = vperm.xlu1 %7488, %v765_v46   ;;  %v16791_v36 = vld [vmem:[#allocation14_spill] sm:$0xff] }
 0x2e1   : > { %vm4115_vm12 = vweird.f32 %v11457_v15  ;;  %v4126_v1 = vmul.f32 %v11638_v24, %v11570_v51  ;;  %v2843_v62 = vmul.f32 1.442695, %v2619_v58  ;;  %v2647_v56 = vsub.f32 0.0, %v11636_v23  ;;  %1514 = vperm.xlu0 %7487, %v764_v26  }
 0x2e2   : > { %v11682_v60 = vpop.eup %7686  ;;  %vm4116_vm14 = vweird.f32 %v11562_v29  ;;  %vm11695_vm15 = vcmp.eq.f32.partialorder %v4119_v27, 8.507059e+37  ;;  %v4442_v58 = vsub.f32 1.0, %v4441_v54  ;;  %vm4446_vm3 = vweird.f32 %v11622_v45 }
 0x2e3   : > { %v3534_v59 = vand.u32 2147483647, %v11558_v28  ;;  %v11701_v9 = vpop.eup %7688  ;;  %v4408_v43 = vsel %vm11613_vm8, %v11585_v48, %v4403_v19  ;;  %v3518_v27 = vsel %vm11690_vm13, %v11532_v20, %v3514_v33  ;;  %v11709_v55 = vor.u32 1.1754944e-38, %v3536_v8  ;;  %vm11731_vm4 = vmor %vm4115_vm12, %vm4116_vm14 }
 0x2e4   : > { %7692 = vpow2.f32 %v2893_v21  ;;  %v4114_v54 = vadd.f32 %v11562_v29, %v4113_v53  ;;  %vm4445_vm0 = vweird.f32 %v11548_v34  ;;  %v3527_v61 = vsub.f32 1.0, %v3526_v18  ;;  %v16745_v18 = vld [vmem:[#allocation5_spill] sm:$0xff] }
 0x2e5   : > { %7694 = vpow2.f32 %v2763_v41  ;;  %v2637_v46 = vsub.f32 0.0, %v11667_v50  ;;  %v4127_v38 = vsub.f32 1.0, %v4126_v1  ;;  %v4486_v48 = vmul.f32 %v11682_v60, %v11597_v4 }
 0x2e6   : > { %7696 = vpow2.f32 %v2843_v62  ;;  %v2899_v30 = vmul.f32 1.442695, %v2647_v56  ;;  %v7691_v20 = vpop.eup %7690  ;;  %v11717_v33 = vmul.f32 %v4408_v43, %v11182_v7  ;;  %v4443_v21 = vmul.f32 %v11622_v45, %v4442_v58  ;;  %v2150_v62 = vpop.f32.mrf.mxu0 }
 0x2e7   : > { %vm3530_vm2 = vweird.f32 %v11558_v28  ;;  %v4136_v8 = vand.u32 2147483648, %v11570_v51  ;;  %v3541_v41 = vmul.f32 %v11701_v9, %v11607_v63  ;;  %v3523_v19 = vsel %vm11648_vm11, %v11605_v40, %v3518_v27  ;;  %v2270_v7 = vpop.f32.mrf.mxu1  ;;  %vm11786_vm11 = vmor %vm4445_vm0, %vm4446_vm3 }
 0x2e8   : > { %16742 = vst [vmem:[#allocation6_spill] sm:$0xff] %v11717_v33  ;;  %vm4130_vm5 = vweird.f32 %v11570_v51  ;;  %v4134_v53 = vand.u32 2147483647, %v11570_v51  ;;  %v11738_v1 = vadd.f32 %v16745_v18, %v1185_v10  ;;  %v4118_v35 = vsel %vm11731_vm4, %v11562_v29, %v4114_v54 }
 0x2e9   : > { %v3528_v40 = vmul.f32 %v11630_v37, %v3527_v61  ;;  %vm3531_vm6 = vweird.f32 %v11630_v37  ;;  %v2879_v15 = vmul.f32 1.442695, %v2637_v46  ;;  %v4128_v26 = vmul.f32 %v11638_v24, %v4127_v38 }
 0x2ea   : > { %v7693_v56 = vpop.eup %7692  ;;  %v4487_v49 = vsub.f32 1.0, %v4486_v48  ;;  %v11746_v58 = vadd.f32 1.0, %v7691_v20  ;;  %7698 = vpow2.f32 %v2899_v30  ;;  %v11749_v10 = vmul.f32 %v3523_v19, %v11227_v22  ;;  %v16750_v20 = vld [vmem:[#allocation37_spill] sm:$0xff]  ;;  %vm11816_vm13 = vmor %vm3530_vm2, %vm3531_vm6 }
 0x2eb   : > { %v7695_v43 = vpop.eup %7694  ;;  %v4444_v27 = vadd.f32 %v11622_v45, %v4443_v21  ;;  %v11752_v29 = vor.u32 1.1754944e-38, %v4136_v8  ;;  %v3542_v54 = vsub.f32 1.0, %v3541_v41  ;;  %v4123_v46 = vsel %vm11695_vm15, %v11652_v5, %v4118_v35  ;;  %v11768_v8 = vpop.f32.mrf.mxu2 }
 0x2ec   : > { %16746 = vst [vmem:[#allocation5_spill] sm:$0xff] %v11749_v10  ;;  %v7697_v61 = vpop.eup %7696  ;;  %v16747_v38 = vand.u32 2147483647, %v11548_v34  ;;  %v2636_v22 = vsub.f32 0.0, %v11738_v1  ;;  %v11766_v21 = vadd.f32 %v2150_v62, %v16750_v20  ;;  %v3529_v41 = vadd.f32 %v11630_v37, %v3528_v40  ;;  %v1255_v40 = vpop.permute.xlu2 %1254 }
 0x2ed   : > { %vm11771_vm8 = vcmp.eq.f32.partialorder %v3534_v59, 8.507059e+37  ;;  %vm4131_vm9 = vweird.f32 %v11638_v24  ;;  %vm11776_vm10 = vcmp.eq.f32.partialorder %v4134_v53, 8.507059e+37  ;;  %v11780_v19 = vadd.f32 1.0, %v7693_v56  ;;  %v769_v56 = vld [vmem:[%s16419_s2 + $0x4c0] sm:$0xff] }
 0x2ee   : > { %vm11759_vm7 = vcmp.eq.f32.partialorder %v16747_v38, 8.507059e+37  ;;  %7700 = vpow2.f32 %v2879_v15  ;;  %v4129_v59 = vadd.f32 %v11638_v24, %v4128_v26  ;;  %v4488_v35 = vmul.f32 %v11682_v60, %v4487_v49  ;;  %v768_v26 = vld [vmem:[%s16419_s2 + $0x4b8] sm:$0xff]  ;;  %v767_v49 = vld [vmem:[%s16419_s2 + $0x4b0] sm:$0xff]  ;;  %1539 = vperm.xlu2 %7489, %v769_v56   ;;  %vm11834_vm14 = vmor %vm4130_vm5, %vm4131_vm9 }
 0x2ef   : > { %7702 = vrcp.f32 %v11746_v58  ;;  %v11793_v53 = vadd.f32 1.0, %v7695_v43  ;;  %vm4490_vm12 = vweird.f32 %v11597_v4  ;;  %v4496_v15 = vand.u32 2147483648, %v11597_v4  ;;  %1534 = vperm.xlu1 %7488, %v768_v26   ;;  %1529 = vperm.xlu0 %7487, %v767_v49  }
 0x2f0   : > { %v3543_v62 = vmul.f32 %v11701_v9, %v3542_v54  ;;  %v11798_v34 = vadd.f32 1.0, %v7697_v61  ;;  %v7699_v43 = vpop.eup %7698  ;;  %v4448_v38 = vsel %vm11786_vm11, %v11622_v45, %v4444_v27  ;;  %v2877_v61 = vmul.f32 1.442695, %v2636_v22 }
 0x2f1   : > { %v2580_v20 = vsub.f32 0.0, %v11766_v21  ;;  %v11822_v30 = vadd.f32 %v2270_v7, %v10680_v31  ;;  %v11825_v33 = vmul.f32 %v4123_v46, %v11272_v42  ;;  %v3533_v45 = vsel %vm11816_vm13, %v11630_v37, %v3529_v41 }
 0x2f2   : > { %7704 = vrcp.f32 %v11780_v19  ;;  %v11840_v31 = vadd.f32 %v9894_v3, %v1255_v40  ;;  %v4133_v42 = vsel %vm11834_vm14, %v11638_v24, %v4129_v59  ;;  %v4489_v37 = vadd.f32 %v11682_v60, %v4488_v35 }
 0x2f3   : > { %16759 = vst [vmem:[#allocation37_spill] sm:$0xff] %v11825_v33  ;;  %vm4491_vm15 = vweird.f32 %v11682_v60  ;;  %7706 = vrcp.f32 %v11793_v53  ;;  %v3544_v27 = vadd.f32 %v11701_v9, %v3543_v62  ;;  %vm3546_vm3 = vweird.f32 %v11701_v9  ;;  %v11886_v26 = vpop.f32.mrf.mxu2 }
 0x2f4   : > { %v7701_v51 = vpop.eup %7700  ;;  %7708 = vrcp.f32 %v11798_v34  ;;  %v11851_v3 = vadd.f32 1.0, %v7699_v43  ;;  %v3551_v22 = vand.u32 2147483648, %v11607_v63  ;;  %v2765_v24 = vmul.f32 1.442695, %v2580_v20  ;;  %vm11862_vm0 = vmor %vm4490_vm12, %vm4491_vm15  ;;  %16766 = vst [vmem:[#allocation99_spill] sm:$0xff] %v11886_v26 }
 0x2f5   : > { %v11853_v46 = vpop.eup %7702  ;;  %7710 = vpow2.f32 %v2877_v61  ;;  %v2620_v41 = vsub.f32 0.0, %v11822_v30  ;;  %v4453_v7 = vsel %vm11759_vm7, %v11656_v14, %v4448_v38  ;;  %vm3545_vm2 = vweird.f32 %v11607_v63 }
 0x2f6   : > { %v3549_v59 = vand.u32 2147483647, %v11607_v63  ;;  %v2650_v35 = vsub.f32 0.0, %v11840_v31  ;;  %v3538_v40 = vsel %vm11771_vm8, %v11709_v55, %v3533_v45  ;;  %v4138_v14 = vsel %vm11776_vm10, %v11752_v29, %v4133_v42  ;;  %vm11880_vm4 = vmor %vm3545_vm2, %vm3546_vm3 }
 0x2f7   : > { %v4493_v48 = vsel %vm11862_vm0, %v11682_v60, %v4489_v37  ;;  %v4497_v62 = vor.u32 1.1754944e-38, %v4496_v15  ;;  %v3548_v55 = vsel %vm11880_vm4, %v11701_v9, %v3544_v27  ;;  %v4141_v29 = vmul.f32 %v11853_v46, %v11746_v58 }
 0x2f8   : > { %v11884_v63 = vpop.eup %7704  ;;  %7712 = vrcp.f32 %v11851_v3  ;;  %v11894_v60 = vadd.f32 1.0, %v7701_v51  ;;  %v16767_v5 = vand.u32 2147483647, %v11597_v4  ;;  %v3552_v15 = vor.u32 1.1754944e-38, %v3551_v22 }
 0x2f9   : > { %v11896_v57 = vpop.eup %7706  ;;  %7714 = vpow2.f32 %v2765_v24  ;;  %v2845_v49 = vmul.f32 1.442695, %v2620_v41  ;;  %v11903_v38 = vmul.f32 %v4453_v7, %v11320_v12  ;;  %vm3550_vm6 = vcmp.eq.f32.partialorder %v3549_v59, 8.507059e+37 }
 0x2fa   : > { %vm4495_vm5 = vcmp.eq.f32.partialorder %v16767_v5, 8.507059e+37  ;;  %v11900_v43 = vpop.eup %7708  ;;  %v2905_v54 = vmul.f32 1.442695, %v2650_v35  ;;  %v11906_v20 = vmul.f32 %v3538_v40, %v11328_v13  ;;  %v11909_v45 = vmul.f32 %v4138_v14, %v11369_v16  ;;  %v1200_v5 = vpop.permute.xlu0 %1199 }
 0x2fb   : > { %16768 = vst [vmem:[#allocation100_spill] sm:$0xff] %v11903_v38  ;;  %v4498_v9 = vsel %vm4495_vm5, %v4497_v62, %v4493_v48  ;;  %v7711_v61 = vpop.eup %7710  ;;  %v3553_v4 = vsel %vm3550_vm6, %v3552_v15, %v3548_v55  ;;  %v4151_v28 = vand.u32 2147483648, %v11746_v58  ;;  %v4142_v42 = vsub.f32 1.0, %v4141_v29  ;;  %v2153_v15 = vpop.f32.mrf.mxu0  ;;  %v16777_v38 = vld [vmem:[#allocation8_spill] sm:$0xff] }
 0x2fc   : > { %16769 = vst [vmem:[#allocation101_spill] sm:$0xff] %v11906_v20  ;;  %v4531_v37 = vmul.f32 %v11884_v63, %v11780_v19  ;;  %v4541_v12 = vand.u32 2147483648, %v11780_v19  ;;  %7716 = vrcp.f32 %v11894_v60  ;;  %v11917_v51 = vmul.f32 %v4498_v9, %v11390_v0  ;;  %v1205_v0 = vpop.permute.xlu1 %1204  ;;  %v11946_v9 = vpop.f32.mrf.mxu2 }
 0x2fd   : > { %16770 = vst [vmem:[#allocation102_spill] sm:$0xff] %v11909_v45  ;;  %v3556_v13 = vmul.f32 %v11896_v57, %v11793_v53  ;;  %v4156_v16 = vmul.f32 %v11900_v43, %v11798_v34  ;;  %7718 = vpow2.f32 %v2845_v49  ;;  %vm4145_vm7 = vweird.f32 %v11746_v58 }
 0x2fe   : > { %16771 = vst [vmem:[#allocation103_spill] sm:$0xff] %v11917_v51  ;;  %v11923_v27 = vpop.eup %7712  ;;  %v4149_v22 = vand.u32 2147483647, %v11746_v58  ;;  %v3566_v24 = vand.u32 2147483648, %v11793_v53  ;;  %v11928_v41 = vadd.f32 1.0, %v7711_v61  ;;  %7720 = vpow2.f32 %v2905_v54 }
 0x2ff   : > { %v7715_v7 = vpop.eup %7714  ;;  %v11931_v18 = vmul.f32 %v3553_v4, %v11399_v47  ;;  %v11933_v59 = vor.u32 1.1754944e-38, %v4151_v28  ;;  %v4539_v35 = vand.u32 2147483647, %v11780_v19  ;;  %v4166_v40 = vand.u32 2147483648, %v11798_v34  ;;  %16773 = vst [vmem:[#allocation105_spill] sm:$0xff] %v11946_v9 }
 0x300   : > { %v4143_v14 = vmul.f32 %v11853_v46, %v4142_v42  ;;  %v4532_v48 = vsub.f32 1.0, %v4531_v37  ;;  %v11938_v62 = vor.u32 1.1754944e-38, %v4541_v12  ;;  %v3564_v56 = vand.u32 2147483647, %v11793_v53 }
 0x301   : > { %16772 = vst [vmem:[#allocation104_spill] sm:$0xff] %v11931_v18  ;;  %vm4146_vm8 = vweird.f32 %v11853_v46  ;;  %vm4535_vm9 = vweird.f32 %v11780_v19  ;;  %v3557_v55 = vsub.f32 1.0, %v3556_v13  ;;  %v4157_v47 = vsub.f32 1.0, %v4156_v16  ;;  %v16776_v13 = vld [vmem:[#allocation9_spill] sm:$0xff]  ;;  %v2273_v18 = vpop.f32.mrf.mxu1 }
 0x302   : > { %v4164_v29 = vand.u32 2147483647, %v11798_v34  ;;  %v11944_v49 = vpop.eup %7716  ;;  %v11948_v54 = vor.u32 1.1754944e-38, %v3566_v24  ;;  %v4576_v61 = vmul.f32 %v11923_v27, %v11851_v3  ;;  %7722 = vrcp.f32 %v11928_v41  ;;  %vm11989_vm15 = vmor %vm4145_vm7, %vm4146_vm8 }
 0x303   : > { %v11953_v4 = vadd.f32 1.0, %v7715_v7  ;;  %v7719_v28 = vpop.eup %7718  ;;  %vm11955_vm10 = vcmp.eq.f32.partialorder %v4149_v22, 8.507059e+37  ;;  %vm4536_vm11 = vweird.f32 %v11884_v63  ;;  %vm3560_vm12 = vweird.f32 %v11793_v53 }
 0x304   : > { %v11961_v37 = vor.u32 1.1754944e-38, %v4166_v40  ;;  %v4586_v12 = vand.u32 2147483648, %v11851_v3  ;;  %v11965_v16 = vadd.f32 %v16776_v13, %v1205_v0  ;;  %v7721_v24 = vpop.eup %7720  ;;  %v4144_v7 = vadd.f32 %v11853_v46, %v4143_v14  ;;  %v16778_v0 = vld [vmem:[#allocation19_spill] sm:$0xff]  ;;  %v1220_v20 = vpop.permute.xlu1 %1219  ;;  %vm12030_vm6 = vmor %vm4535_vm9, %vm4536_vm11 }
 0x305   : > { %v4533_v51 = vmul.f32 %v11884_v63, %v4532_v48  ;;  %vm4160_vm13 = vweird.f32 %v11798_v34  ;;  %v4584_v22 = vand.u32 2147483647, %v11851_v3  ;;  %v11972_v45 = vadd.f32 %v16777_v38, %v1200_v5 }
 0x306   : > { %v3558_v40 = vmul.f32 %v11896_v57, %v3557_v55  ;;  %vm3561_vm14 = vweird.f32 %v11896_v57  ;;  %v4158_v33 = vmul.f32 %v11900_v43, %v4157_v47  ;;  %v11978_v13 = vadd.f32 %v2153_v15, %v16778_v0 }
 0x307   : > { %v4577_v10 = vsub.f32 1.0, %v4576_v61  ;;  %v4426_v14 = vmul.f32 %v11944_v49, %v11894_v60  ;;  %7724 = vrcp.f32 %v11953_v4  ;;  %v11983_v48 = vadd.f32 1.0, %v7719_v28  ;;  %v1270_v61 = vpop.permute.xlu2 %1269 }
 0x308   : > { %16779 = vst [vmem:[#allocation9_spill] sm:$0xff] %v11978_v13  ;;  %vm11993_vm3 = vcmp.eq.f32.partialorder %v4539_v35, 8.507059e+37  ;;  %vm4161_vm0 = vweird.f32 %v11900_v43  ;;  %v11998_v47 = vor.u32 1.1754944e-38, %v4586_v12  ;;  %v12000_v5 = vadd.f32 1.0, %v7721_v24  ;;  %v12003_v28 = vpop.eup %7722 }
 0x309   : > { %v2640_v15 = vsub.f32 0.0, %v11965_v16  ;;  %v4148_v58 = vsel %vm11989_vm15, %v11853_v46, %v4144_v7  ;;  %v4534_v35 = vadd.f32 %v11884_v63, %v4533_v51  ;;  %vm12009_vm2 = vcmp.eq.f32.partialorder %v3564_v56, 8.507059e+37  ;;  %vm12089_vm8 = vmor %vm4160_vm13, %vm4161_vm0 }
 0x30a   : > { %vm4580_vm4 = vweird.f32 %v11851_v3  ;;  %v4434_v12 = vand.u32 2147483647, %v11894_v60  ;;  %v2639_v24 = vsub.f32 0.0, %v11972_v45  ;;  %v3559_v26 = vadd.f32 %v11896_v57, %v3558_v40 }
 0x30b   : > { %v4159_v9 = vadd.f32 %v11900_v43, %v4158_v33  ;;  %vm12018_vm5 = vcmp.eq.f32.partialorder %v4164_v29, 8.507059e+37  ;;  %v2581_v46 = vsub.f32 0.0, %v11978_v13  ;;  %v12024_v51 = vadd.f32 %v2273_v18, %v11236_v2  ;;  %v616_v2 = vld [vmem:[%s16418_s1 + $0x4f8] sm:$0xff]  ;;  %v12042_v18 = vpop.f32.mrf.mxu3 }
 0x30c   : > { %v4578_v7 = vmul.f32 %v11923_v27, %v4577_v10  ;;  %v4427_v33 = vsub.f32 1.0, %v4426_v14  ;;  %7726 = vrcp.f32 %v11983_v48  ;;  %v12037_v29 = vadd.f32 %v11768_v8, %v1270_v61  ;;  %16790 = vst [vmem:[#allocation8_spill] sm:$0xff] %v12042_v18  ;;  %v12050_v14 = vpop.f32.mrf.mxu0  ;;  %7380 = vmatmul.msk.f32.gmra.mxu3 %vm1577_vm1, %v616_v2  ;;  %v772_v8 = vld [vmem:[%s16419_s2 + $0x4d8] sm:$0xff]  ;;  %v771_v61 = vld [vmem:[%s16419_s2 + $0x4d0] sm:$0xff]  ;;  %v770_v18 = vld [vmem:[%s16419_s2 + $0x4c8] sm:$0xff] }
 0x30d   : > { %v4411_v19 = vmul.f32 %v12003_v28, %v11928_v41  ;;  %7728 = vrcp.f32 %v12000_v5  ;;  %v2885_v40 = vmul.f32 1.442695, %v2640_v15  ;;  %v12048_v10 = vadd.f32 %v16791_v36, %v1220_v20  ;;  %v12062_v15 = vpop.eup %7724  ;;  %v12064_v36 = vpop.f32.mrf.mxu2  ;;  %vm12076_vm1 = vmor %vm3560_vm12, %vm3561_vm14  ;;  %1554 = vperm.xlu2 %7489, %v772_v8   ;;  %1549 = vperm.xlu1 %7488, %v771_v61  }
 0x30e   : > { %v4153_v20 = vsel %vm11955_vm10, %v11933_v59, %v4148_v58  ;;  %v4538_v2 = vsel %vm12030_vm6, %v11884_v63, %v4534_v35  ;;  %vm4430_vm7 = vweird.f32 %v11894_v60  ;;  %v4436_v32 = vand.u32 2147483648, %v11894_v60  ;;  %1544 = vperm.xlu0 %7487, %v770_v18  }
 0x30f   : > { %v2883_v13 = vmul.f32 1.442695, %v2639_v24  ;;  %v3563_v59 = vsel %vm12076_vm1, %v11896_v57, %v3559_v26  ;;  %vm4581_vm9 = vweird.f32 %v11923_v27  ;;  %vm12094_vm10 = vcmp.eq.f32.partialorder %v4584_v22, 8.507059e+37 }
 0x310   : > { %v2767_v42 = vmul.f32 1.442695, %v2581_v46  ;;  %v2621_v58 = vsub.f32 0.0, %v12024_v51  ;;  %v4163_v39 = vsel %vm12089_vm8, %v11900_v43, %v4159_v9  ;;  %v4579_v34 = vadd.f32 %v11923_v27, %v4578_v7  ;;  %vm12125_vm11 = vmor %vm4580_vm4, %vm4581_vm9 }
 0x311   : > { %v4428_v26 = vmul.f32 %v11944_v49, %v4427_v33  ;;  %v2653_v57 = vsub.f32 0.0, %v12037_v29  ;;  %v4412_v35 = vsub.f32 1.0, %v4411_v19  ;;  %v3571_v22 = vmul.f32 %v12062_v15, %v11953_v4 }
 0x312   : > { %7730 = vpow2.f32 %v2885_v40  ;;  %v2643_v24 = vsub.f32 0.0, %v12048_v10  ;;  %v12108_v46 = vpop.eup %7726  ;;  %v12111_v56 = vmul.f32 %v4153_v20, %v11573_v11  ;;  %v4543_v43 = vsel %vm11993_vm3, %v11938_v62, %v4538_v2 }
 0x313   : > { %v4437_v9 = vor.u32 1.1754944e-38, %v4436_v32  ;;  %7732 = vpow2.f32 %v2883_v13  ;;  %v12116_v7 = vpop.eup %7728  ;;  %v3568_v33 = vsel %vm12009_vm2, %v11948_v54, %v3563_v59  ;;  %vm4431_vm12 = vweird.f32 %v11944_v49 }
 0x314   : > { %16798 = vst [vmem:[#allocation19_spill] sm:$0xff] %v12111_v56  ;;  %vm12130_vm13 = vcmp.eq.f32.partialorder %v4434_v12, 8.507059e+37  ;;  %7734 = vpow2.f32 %v2767_v42  ;;  %v2847_v32 = vmul.f32 1.442695, %v2621_v58  ;;  %v4168_v62 = vsel %vm12018_vm5, %v11961_v37, %v4163_v39  ;;  %vm12160_vm15 = vmor %vm4430_vm7, %vm4431_vm12  ;;  %v12166_v20 = vpop.f32.mrf.mxu0 }
 0x315   : > { %v4583_v3 = vsel %vm12125_vm11, %v11923_v27, %v4579_v34  ;;  %v4429_v54 = vadd.f32 %v11944_v49, %v4428_v26  ;;  %v2911_v13 = vmul.f32 1.442695, %v2653_v57  ;;  %v4413_v55 = vmul.f32 %v12003_v28, %v4412_v35  ;;  %v12168_v59 = vpop.f32.mrf.mxu2  ;;  %v1215_v34 = vpop.permute.xlu0 %1214 }
 0x316   : > { %v3572_v0 = vsub.f32 1.0, %v3571_v22  ;;  %v4171_v12 = vmul.f32 %v12108_v46, %v11983_v48  ;;  %v2891_v19 = vmul.f32 1.442695, %v2643_v24  ;;  %v12145_v40 = vmul.f32 %v4543_v43, %v11588_v17  ;;  %16808 = vst [vmem:[#allocation108_spill] sm:$0xff] %v12168_v59 }
 0x317   : > { %v12148_v38 = vmul.f32 %v3568_v33, %v11601_v6  ;;  %vm4415_vm14 = vweird.f32 %v11928_v41  ;;  %v4621_v27 = vmul.f32 %v12116_v7, %v12000_v5  ;;  %v12154_v8 = vmul.f32 %v4168_v62, %v11610_v52 }
 0x318   : > { %16803 = vst [vmem:[#allocation14_spill] sm:$0xff] %v12145_v40  ;;  %v7731_v37 = vpop.eup %7730  ;;  %v4419_v17 = vand.u32 2147483647, %v11928_v41  ;;  %v4421_v6 = vand.u32 2147483648, %v11928_v41  ;;  %7736 = vpow2.f32 %v2847_v32  ;;  %v4588_v52 = vsel %vm12094_vm10, %v11998_v47, %v4583_v3  ;;  %v16814_v32 = vld [vmem:[#allocation11_spill] sm:$0xff] }
 0x319   : > { %16804 = vst [vmem:[#allocation106_spill] sm:$0xff] %v12148_v38  ;;  %v7733_v2 = vpop.eup %7732  ;;  %v4433_v60 = vsel %vm12160_vm15, %v11944_v49, %v4429_v54  ;;  %vm4416_vm3 = vweird.f32 %v12003_v28  ;;  %7738 = vpow2.f32 %v2911_v13  ;;  %v4414_v42 = vadd.f32 %v12003_v28, %v4413_v55 }
 0x31a   : > { %16805 = vst [vmem:[#allocation107_spill] sm:$0xff] %v12154_v8  ;;  %v7735_v53 = vpop.eup %7734  ;;  %v3573_v58 = vmul.f32 %v12062_v15, %v3572_v0  ;;  %v4172_v39 = vsub.f32 1.0, %v4171_v12  ;;  %7740 = vpow2.f32 %v2891_v19  ;;  %v3579_v26 = vand.u32 2147483647, %v11953_v4  ;;  %vm12199_vm4 = vmor %vm4415_vm14, %vm4416_vm3 }
 0x31b   : > { %v3581_v63 = vand.u32 2147483648, %v11953_v4  ;;  %v4622_v47 = vsub.f32 1.0, %v4621_v27  ;;  %v12181_v57 = vadd.f32 1.0, %v7731_v37  ;;  %vm12183_vm0 = vcmp.eq.f32.partialorder %v4419_v17, 8.507059e+37 }
 0x31c   : > { %v4422_v35 = vor.u32 1.1754944e-38, %v4421_v6  ;;  %vm3575_vm2 = vweird.f32 %v11953_v4  ;;  %v12188_v22 = vadd.f32 1.0, %v7733_v2  ;;  %v12191_v24 = vmul.f32 %v4588_v52, %v11636_v23  ;;  %v12245_v4 = vpop.f32.mrf.mxu0 }
 0x31d   : > { %v4438_v43 = vsel %vm12130_vm13, %v4437_v9, %v4433_v60  ;;  %v12203_v18 = vadd.f32 1.0, %v7735_v53  ;;  %v12206_v62 = vadd.f32 %v16814_v32, %v1215_v34  ;;  %v4418_v23 = vsel %vm12199_vm4, %v12003_v28, %v4414_v42  ;;  %v12247_v52 = vpop.f32.mrf.mxu2  ;;  %v2276_v34 = vpop.f32.mrf.mxu1 }
 0x31e   : > { %16811 = vst [vmem:[#allocation109_spill] sm:$0xff] %v12191_v24  ;;  %v7737_v3 = vpop.eup %7736  ;;  %v3574_v9 = vadd.f32 %v12062_v15, %v3573_v58  ;;  %vm3576_vm5 = vweird.f32 %v12062_v15  ;;  %v4173_v41 = vmul.f32 %v12108_v46, %v4172_v39  ;;  %vm12214_vm6 = vcmp.eq.f32.partialorder %v3579_v26, 8.507059e+37  ;;  %v775_v26 = vld [vmem:[%s16419_s2 + $0x4f0] sm:$0xff] }
 0x31f   : > { %v7739_v11 = vpop.eup %7738  ;;  %v3582_v13 = vor.u32 1.1754944e-38, %v3581_v63  ;;  %v4623_v55 = vmul.f32 %v12116_v7, %v4622_v47  ;;  %7742 = vrcp.f32 %v12181_v57  ;;  %v12221_v12 = vmul.f32 %v4438_v43, %v11667_v50  ;;  %vm12230_vm1 = vmor %vm3575_vm2, %vm3576_vm5  ;;  %16820 = vst [vmem:[#allocation110_spill] sm:$0xff] %v12247_v52  ;;  %v774_v63 = vld [vmem:[%s16419_s2 + $0x4e8] sm:$0xff]  ;;  %1569 = vperm.xlu2 %7489, %v775_v26   ;;  %v16883_v52 = vld [vmem:[#allocation60_spill] sm:$0xff] }
 0x320   : > { %v7741_v0 = vpop.eup %7740  ;;  %v4179_v28 = vand.u32 2147483647, %v11983_v48  ;;  %v4181_v19 = vand.u32 2147483648, %v11983_v48  ;;  %7744 = vrcp.f32 %v12188_v22  ;;  %v4423_v27 = vsel %vm12183_vm0, %v4422_v35, %v4418_v23  ;;  %1564 = vperm.xlu1 %7488, %v774_v63   ;;  %v1230_v63 = vpop.permute.xlu0 %1229 }
 0x321   : > { %16817 = vst [vmem:[#allocation11_spill] sm:$0xff] %v12221_v12  ;;  %7746 = vrcp.f32 %v12203_v18  ;;  %v12235_v61 = vadd.f32 1.0, %v7737_v3  ;;  %v2642_v50 = vsub.f32 0.0, %v12206_v62  ;;  %v3578_v17 = vsel %vm12230_vm1, %v12062_v15, %v3574_v9 }
 0x322   : > { %v4174_v6 = vadd.f32 %v12108_v46, %v4173_v41  ;;  %vm4176_vm7 = vweird.f32 %v12108_v46  ;;  %v12243_v2 = vadd.f32 1.0, %v7739_v11  ;;  %v4624_v60 = vadd.f32 %v12116_v7, %v4623_v55  ;;  %v1285_v55 = vpop.permute.xlu2 %1284 }
 0x323   : > { %vm4626_vm8 = vweird.f32 %v12116_v7  ;;  %v4629_v53 = vand.u32 2147483647, %v12000_v5  ;;  %v12252_v42 = vadd.f32 1.0, %v7741_v0  ;;  %vm4175_vm9 = vweird.f32 %v11983_v48  ;;  %v773_v48 = vld [vmem:[%s16419_s2 + $0x4e0] sm:$0xff] }
 0x324   : > { %vm12255_vm10 = vcmp.eq.f32.partialorder %v4179_v28, 8.507059e+37  ;;  %v4182_v58 = vor.u32 1.1754944e-38, %v4181_v19  ;;  %v4631_v39 = vand.u32 2147483648, %v12000_v5  ;;  %v3583_v49 = vsel %vm12214_vm6, %v3582_v13, %v3578_v17  ;;  %vm12275_vm11 = vmor %vm4175_vm9, %vm4176_vm7  ;;  %1559 = vperm.xlu0 %7487, %v773_v48   ;;  %v12340_v48 = vpop.f32.mrf.mxu0 }
 0x325   : > { %v12269_v47 = vpop.eup %7742  ;;  %vm4625_vm12 = vweird.f32 %v12000_v5  ;;  %7748 = vrcp.f32 %v12235_v61  ;;  %v2889_v43 = vmul.f32 1.442695, %v2642_v50  ;;  %v12284_v32 = vmul.f32 %v4423_v27, %v11738_v1  ;;  %v16828_v5 = vld [vmem:[#allocation45_spill] sm:$0xff]  ;;  %v12344_v35 = vpop.f32.mrf.mxu2 }
 0x326   : > { %v12281_v33 = vpop.eup %7744  ;;  %v4178_v3 = vsel %vm12275_vm11, %v12108_v46, %v4174_v6  ;;  %vm12291_vm13 = vmor %vm4625_vm12, %vm4626_vm8  ;;  %7750 = vrcp.f32 %v12243_v2  ;;  %v12298_v9 = vadd.f32 %v12050_v14, %v16828_v5  ;;  %vm4630_vm14 = vcmp.eq.f32.partialorder %v4629_v53, 8.507059e+37  ;;  %v1235_v53 = vpop.permute.xlu1 %1234 }
 0x327   : > { %16825 = vst [vmem:[#allocation111_spill] sm:$0xff] %v12284_v32  ;;  %v12300_v41 = vpop.eup %7746  ;;  %v4628_v1 = vsel %vm12291_vm13, %v12116_v7, %v4624_v60  ;;  %v4481_v46 = vand.u32 2147483648, %v12181_v57  ;;  %7752 = vrcp.f32 %v12252_v42  ;;  %v12308_v11 = vmul.f32 %v3583_v49, %v11766_v21 }
 0x328   : > { %v4632_v54 = vor.u32 1.1754944e-38, %v4631_v39  ;;  %v4471_v14 = vmul.f32 %v12269_v47, %v12181_v57  ;;  %v12313_v13 = vadd.f32 %v2276_v34, %v11165_v44  ;;  %v4183_v0 = vsel %vm12255_vm10, %v4182_v58, %v4178_v3 }
 0x329   : > { %16829 = vst [vmem:[#allocation45_spill] sm:$0xff] %v12308_v11  ;;  %v4456_v7 = vmul.f32 %v12281_v33, %v12188_v22  ;;  %v4466_v28 = vand.u32 2147483648, %v12188_v22  ;;  %7754 = vpow2.f32 %v2889_v43  ;;  %v3586_v21 = vmul.f32 %v12300_v41, %v12203_v18 }
 0x32a   : > { %v4633_v19 = vsel %vm4630_vm14, %v4632_v54, %v4628_v1  ;;  %v3596_v27 = vand.u32 2147483648, %v12203_v18  ;;  %v2582_v37 = vsub.f32 0.0, %v12298_v9  ;;  %v4479_v50 = vand.u32 2147483647, %v12181_v57  ;;  %v16832_v1 = vld [vmem:[#allocation26_spill] sm:$0xff]  ;;  %v2279_v54 = vpop.f32.mrf.mxu1 }
 0x32b   : > { %v12324_v44 = vpop.eup %7748  ;;  %v12327_v17 = vor.u32 1.1754944e-38, %v4481_v46  ;;  %v4464_v6 = vand.u32 2147483647, %v12188_v22  ;;  %v12331_v60 = vadd.f32 %v12064_v36, %v1285_v55  ;;  %v12336_v58 = vmul.f32 %v4183_v0, %v11822_v30 }
 0x32c   : > { %v12333_v15 = vpop.eup %7750  ;;  %v4472_v39 = vsub.f32 1.0, %v4471_v14  ;;  %v3594_v34 = vand.u32 2147483647, %v12203_v18  ;;  %v2622_v26 = vsub.f32 0.0, %v12313_v13  ;;  %v12347_v36 = vmul.f32 %v4633_v19, %v11840_v31 }
 0x32d   : > { %16830 = vst [vmem:[#allocation112_spill] sm:$0xff] %v12336_v58  ;;  %v12342_v49 = vpop.eup %7752  ;;  %vm4476_vm15 = vweird.f32 %v12269_v47  ;;  %v4457_v43 = vsub.f32 1.0, %v4456_v7  ;;  %v12350_v30 = vor.u32 1.1754944e-38, %v4466_v28  ;;  %vm4475_vm3 = vweird.f32 %v12181_v57  ;;  %v16833_v7 = vld [vmem:[#allocation20_spill] sm:$0xff] }
 0x32e   : > { %16831 = vst [vmem:[#allocation113_spill] sm:$0xff] %v12347_v36  ;;  %v3587_v3 = vsub.f32 1.0, %v3586_v21  ;;  %v12353_v23 = vor.u32 1.1754944e-38, %v3596_v27  ;;  %v2769_v5 = vmul.f32 1.442695, %v2582_v37  ;;  %v12356_v46 = vadd.f32 %v16832_v1, %v1235_v53  ;;  %v16834_v37 = vld [vmem:[#allocation42_spill] sm:$0xff]  ;;  %vm12416_vm10 = vmor %vm4475_vm3, %vm4476_vm15 }
 0x32f   : > { %v7755_v14 = vpop.eup %7754  ;;  %vm4460_vm0 = vweird.f32 %v12188_v22  ;;  %v4186_v31 = vmul.f32 %v12324_v44, %v12235_v61  ;;  %v4666_v55 = vmul.f32 %v12333_v15, %v12243_v2  ;;  %v2656_v0 = vsub.f32 0.0, %v12331_v60  ;;  %v1250_v22 = vpop.permute.xlu1 %1249 }
 0x330   : > { %v12365_v28 = vadd.f32 %v16833_v7, %v1230_v63  ;;  %v4473_v19 = vmul.f32 %v12269_v47, %v4472_v39  ;;  %vm3590_vm2 = vweird.f32 %v12203_v18  ;;  %v4516_v21 = vmul.f32 %v12342_v49, %v12252_v42 }
 0x331   : > { %v2849_v27 = vmul.f32 1.442695, %v2622_v26  ;;  %v12373_v53 = vadd.f32 %v12166_v20, %v16834_v37  ;;  %v4458_v1 = vmul.f32 %v12281_v33, %v4457_v43  ;;  %vm4461_vm4 = vweird.f32 %v12281_v33 }
 0x332   : > { %v4194_v36 = vand.u32 2147483647, %v12235_v61  ;;  %v12379_v63 = vadd.f32 %v2279_v54, %v10777_v25  ;;  %v3588_v39 = vmul.f32 %v12300_v41, %v3587_v3  ;;  %v12382_v7 = vadd.f32 1.0, %v7755_v14  ;;  %vm12426_vm11 = vmor %vm4460_vm0, %vm4461_vm4 }
 0x333   : > { %7756 = vpow2.f32 %v2769_v5  ;;  %v2646_v26 = vsub.f32 0.0, %v12356_v46  ;;  %v4187_v24 = vsub.f32 1.0, %v4186_v31  ;;  %v4667_v40 = vsub.f32 1.0, %v4666_v55 }
 0x334   : > { %v2917_v20 = vmul.f32 1.442695, %v2656_v0  ;;  %v2645_v37 = vsub.f32 0.0, %v12365_v28  ;;  %vm4190_vm5 = vweird.f32 %v12235_v61  ;;  %v4196_v43 = vand.u32 2147483648, %v12235_v61  ;;  %v12408_v0 = vpop.f32.mrf.mxu0 }
 0x335   : > { %v4517_v32 = vsub.f32 1.0, %v4516_v21  ;;  %7758 = vpow2.f32 %v2849_v27  ;;  %v2583_v25 = vsub.f32 0.0, %v12373_v53  ;;  %v4474_v3 = vadd.f32 %v12269_v47, %v4473_v19  ;;  %v12410_v19 = vpop.f32.mrf.mxu2 }
 0x336   : > { %vm12390_vm6 = vcmp.eq.f32.partialorder %v4479_v50, 8.507059e+37  ;;  %vm12394_vm1 = vcmp.eq.f32.partialorder %v4464_v6, 8.507059e+37  ;;  %vm3591_vm7 = vweird.f32 %v12300_v41  ;;  %vm12399_vm8 = vcmp.eq.f32.partialorder %v3594_v34, 8.507059e+37  ;;  %16841 = vst [vmem:[#allocation26_spill] sm:$0xff] %v12410_v19 }
 0x337   : > { %vm4670_vm9 = vweird.f32 %v12243_v2  ;;  %v2623_v31 = vsub.f32 0.0, %v12379_v63  ;;  %v4459_v55 = vadd.f32 %v12281_v33, %v4458_v1  ;;  %v3589_v50 = vadd.f32 %v12300_v41, %v3588_v39  ;;  %vm12439_vm12 = vmor %vm3590_vm2, %vm3591_vm7 }
 0x338   : > { %7760 = vrcp.f32 %v12382_v7  ;;  %v2897_v6 = vmul.f32 1.442695, %v2646_v26  ;;  %v4188_v21 = vmul.f32 %v12324_v44, %v4187_v24  ;;  %v4668_v27 = vmul.f32 %v12333_v15, %v4667_v40 }
 0x339   : > { %7762 = vpow2.f32 %v2917_v20  ;;  %v2895_v1 = vmul.f32 1.442695, %v2645_v37  ;;  %v7757_v39 = vpop.eup %7756  ;;  %v4197_v57 = vor.u32 1.1754944e-38, %v4196_v43  ;;  %v4674_v12 = vand.u32 2147483647, %v12243_v2 }
 0x33a   : > { %v4518_v56 = vmul.f32 %v12342_v49, %v4517_v32  ;;  %v2771_v58 = vmul.f32 1.442695, %v2583_v25  ;;  %v4478_v40 = vsel %vm12416_vm10, %v12269_v47, %v4474_v3  ;;  %vm4191_vm13 = vweird.f32 %v12324_v44 }
 0x33b   : > { %vm12444_vm14 = vcmp.eq.f32.partialorder %v4194_v36, 8.507059e+37  ;;  %v4676_v32 = vand.u32 2147483648, %v12243_v2  ;;  %v2851_v20 = vmul.f32 1.442695, %v2623_v31  ;;  %v7759_v37 = vpop.eup %7758  ;;  %v4463_v47 = vsel %vm12426_vm11, %v12281_v33, %v4459_v55  ;;  %vm12469_vm2 = vmor %vm4190_vm5, %vm4191_vm13 }
 0x33c   : > { %v3593_v18 = vsel %vm12439_vm12, %v12300_v41, %v3589_v50  ;;  %vm4671_vm15 = vweird.f32 %v12333_v15  ;;  %7764 = vpow2.f32 %v2897_v6  ;;  %v4189_v36 = vadd.f32 %v12324_v44, %v4188_v21  ;;  %v12526_v14 = vpop.f32.mrf.mxu0 }
 0x33d   : > { %v4669_v43 = vadd.f32 %v12333_v15, %v4668_v27  ;;  %v12458_v25 = vadd.f32 1.0, %v7757_v39  ;;  %7766 = vpow2.f32 %v2895_v1  ;;  %v4519_v31 = vadd.f32 %v12342_v49, %v4518_v56  ;;  %v1300_v56 = vpop.permute.xlu2 %1299  ;;  %vm12490_vm4 = vmor %vm4670_vm9, %vm4671_vm15  ;;  %v12531_v26 = vpop.f32.mrf.mxu2 }
 0x33e   : > { %v12460_v3 = vpop.eup %7760  ;;  %vm4520_vm3 = vweird.f32 %v12252_v42  ;;  %vm4521_vm0 = vweird.f32 %v12342_v49  ;;  %7768 = vpow2.f32 %v2771_v58  ;;  %v4524_v55 = vand.u32 2147483647, %v12252_v42  ;;  %16859 = vst [vmem:[#allocation42_spill] sm:$0xff] %v12531_v26 }
 0x33f   : > { %v7763_v33 = vpop.eup %7762  ;;  %v4526_v50 = vand.u32 2147483648, %v12252_v42  ;;  %v12475_v6 = vadd.f32 1.0, %v7759_v37  ;;  %7770 = vpow2.f32 %v2851_v20  ;;  %v4483_v58 = vsel %vm12390_vm6, %v12327_v17, %v4478_v40  ;;  %v776_v17 = vld [vmem:[%s16419_s2 + $0x4f8] sm:$0xff]  ;;  %vm12511_vm6 = vmor %vm4520_vm3, %vm4521_vm0  ;;  %v16861_v20 = vld [vmem:[#allocation9_spill] sm:$0xff] }
 0x340   : > { %v4468_v61 = vsel %vm12394_vm1, %v12350_v30, %v4463_v47  ;;  %v3598_v34 = vsel %vm12399_vm8, %v12353_v23, %v3593_v18  ;;  %vm12494_vm5 = vcmp.eq.f32.partialorder %v4674_v12, 8.507059e+37  ;;  %v4193_v30 = vsel %vm12469_vm2, %v12324_v44, %v4189_v36  ;;  %1574 = vperm.xlu0 %7487, %v776_v17   ;;  %v1245_v47 = vpop.permute.xlu0 %1244 }
 0x341   : > { %v4673_v2 = vsel %vm12490_vm4, %v12333_v15, %v4669_v43  ;;  %v4501_v23 = vmul.f32 %v12460_v3, %v12382_v7  ;;  %7772 = vrcp.f32 %v12458_v25  ;;  %v4677_v44 = vor.u32 1.1754944e-38, %v4676_v32 }
 0x342   : > { %v7765_v54 = vpop.eup %7764  ;;  %v4523_v15 = vsel %vm12511_vm6, %v12342_v49, %v4519_v31  ;;  %v12521_v5 = vadd.f32 1.0, %v7763_v33  ;;  %v12524_v42 = vadd.f32 %v12344_v35, %v1300_v56  ;;  %v12529_v39 = vmul.f32 %v4483_v58, %v11965_v16 }
 0x343   : > { %v7767_v1 = vpop.eup %7766  ;;  %vm4525_vm1 = vcmp.eq.f32.partialorder %v4524_v55, 8.507059e+37  ;;  %v4527_v40 = vor.u32 1.1754944e-38, %v4526_v50  ;;  %7774 = vrcp.f32 %v12475_v6  ;;  %v12535_v49 = vmul.f32 %v4468_v61, %v11972_v45  ;;  %v16863_v55 = vld [vmem:[#allocation46_spill] sm:$0xff] }
 0x344   : > { %16858 = vst [vmem:[#allocation20_spill] sm:$0xff] %v12529_v39  ;;  %v7769_v32 = vpop.eup %7768  ;;  %v12538_v35 = vmul.f32 %v3598_v34, %v16861_v20  ;;  %v4198_v37 = vsel %vm12444_vm14, %v4197_v57, %v4193_v30  ;;  %v4678_v16 = vsel %vm12494_vm5, %v4677_v44, %v4673_v2  ;;  %v4502_v43 = vsub.f32 1.0, %v4501_v23  ;;  %v16865_v61 = vld [vmem:[#allocation38_spill] sm:$0xff] }
 0x345   : > { %16860 = vst [vmem:[#allocation114_spill] sm:$0xff] %v12535_v49  ;;  %v7771_v18 = vpop.eup %7770  ;;  %v4528_v36 = vsel %vm4525_vm1, %v4527_v40, %v4523_v15  ;;  %v4511_v31 = vand.u32 2147483648, %v12382_v7  ;;  %v12545_v33 = vadd.f32 1.0, %v7765_v54  ;;  %7776 = vrcp.f32 %v12521_v5  ;;  %v2282_v54 = vpop.f32.mrf.mxu1 }
 0x346   : > { %16862 = vst [vmem:[#allocation9_spill] sm:$0xff] %v12538_v35  ;;  %v12548_v45 = vadd.f32 1.0, %v7767_v1  ;;  %v2659_v41 = vsub.f32 0.0, %v12524_v42  ;;  %v12552_v24 = vadd.f32 %v16863_v55, %v1250_v22  ;;  %v12557_v50 = vmul.f32 %v4198_v37, %v12024_v51  ;;  %v16870_v37 = vld [vmem:[#allocation24_spill] sm:$0xff]  ;;  %v1315_v49 = vpop.permute.xlu2 %1314 }
 0x347   : > { %v12554_v57 = vpop.eup %7772  ;;  %v4509_v56 = vand.u32 2147483647, %v12382_v7  ;;  %v12560_v58 = vadd.f32 1.0, %v7769_v32  ;;  %v12563_v34 = vadd.f32 %v16865_v61, %v1245_v47  ;;  %v12566_v21 = vmul.f32 %v4678_v16, %v12037_v29  ;;  %v12601_v47 = vpop.f32.mrf.mxu0 }
 0x348   : > { %16864 = vst [vmem:[#allocation46_spill] sm:$0xff] %v12557_v50  ;;  %v12569_v27 = vmul.f32 %v4528_v36, %v12048_v10  ;;  %vm4505_vm7 = vweird.f32 %v12382_v7  ;;  %v12572_v17 = vadd.f32 1.0, %v7771_v18  ;;  %v4503_v51 = vmul.f32 %v12460_v3, %v4502_v43  ;;  %v2396_v43 = vpop.f32.mrf.mxu2  ;;  %v16875_v50 = vld [vmem:[#allocation54_spill] sm:$0xff] }
 0x349   : > { %16866 = vst [vmem:[#allocation38_spill] sm:$0xff] %v12566_v21  ;;  %v12574_v30 = vpop.eup %7774  ;;  %v4512_v2 = vor.u32 1.1754944e-38, %v4511_v31  ;;  %v3611_v12 = vand.u32 2147483648, %v12458_v25  ;;  %7778 = vrcp.f32 %v12545_v33  ;;  %v3601_v29 = vmul.f32 %v12554_v57, %v12458_v25  ;;  %v16871_v31 = vld [vmem:[#allocation7_spill] sm:$0xff] }
 0x34a   : > { %16867 = vst [vmem:[#allocation115_spill] sm:$0xff] %v12569_v27  ;;  %7780 = vrcp.f32 %v12548_v45  ;;  %v2923_v10 = vmul.f32 1.442695, %v2659_v41  ;;  %v2649_v23 = vsub.f32 0.0, %v12552_v24  ;;  %vm12583_vm8 = vcmp.eq.f32.partialorder %v4509_v56, 8.507059e+37  ;;  %5915 = vadd.xlane.f32.xlu1 %v16875_v50 }
 0x34b   : > { %v3609_v15 = vand.u32 2147483647, %v12458_v25  ;;  %v4211_v1 = vand.u32 2147483648, %v12475_v6  ;;  %7782 = vrcp.f32 %v12560_v58  ;;  %v2648_v40 = vsub.f32 0.0, %v12563_v34  ;;  %v12591_v22 = vpop.eup %7776 }
 0x34c   : > { %v4201_v32 = vmul.f32 %v12574_v30, %v12475_v6  ;;  %v4721_v20 = vand.u32 2147483648, %v12521_v5  ;;  %7784 = vrcp.f32 %v12572_v17  ;;  %v12599_v16 = vadd.f32 %v12245_v4, %v16870_v37 }
 0x34d   : > { %v4504_v18 = vadd.f32 %v12460_v3, %v4503_v51  ;;  %vm4506_vm9 = vweird.f32 %v12460_v3  ;;  %v12605_v36 = vor.u32 1.1754944e-38, %v3611_v12  ;;  %v12608_v41 = vadd.f32 %v2282_v54, %v16871_v31 }
 0x34e   : > { %v3602_v55 = vsub.f32 1.0, %v3601_v29  ;;  %v4209_v56 = vand.u32 2147483647, %v12475_v6  ;;  %7786 = vpow2.f32 %v2923_v10  ;;  %v2903_v61 = vmul.f32 1.442695, %v2649_v23  ;;  %vm12624_vm10 = vmor %vm4505_vm7, %vm4506_vm9 }
 0x34f   : > { %v12611_v21 = vpop.eup %7778  ;;  %v12613_v4 = vor.u32 1.1754944e-38, %v4211_v1  ;;  %v4711_v51 = vmul.f32 %v12591_v22, %v12521_v5  ;;  %v2901_v12 = vmul.f32 1.442695, %v2648_v40  ;;  %vm3605_vm11 = vweird.f32 %v12458_v25  ;;  %v16874_v1 = vld [vmem:[#allocation57_spill] sm:$0xff] }
 0x350   : > { %v12618_v27 = vpop.eup %7780  ;;  %vm3606_vm12 = vweird.f32 %v12554_v57  ;;  %v4202_v10 = vsub.f32 1.0, %v4201_v32  ;;  %v12630_v23 = vor.u32 1.1754944e-38, %v4721_v20  ;;  %v2584_v54 = vsub.f32 0.0, %v12599_v16  ;;  %5917 = vadd.xlane.f32.xlu2 %v16874_v1  ;;  %v12681_v35 = vpop.f32.mrf.mxu2 }
 0x351   : > { %v12634_v40 = vpop.eup %7782  ;;  %v4508_v7 = vsel %vm12624_vm10, %v12460_v3, %v4504_v18  ;;  %v4571_v37 = vand.u32 2147483648, %v12545_v33  ;;  %v2624_v39 = vsub.f32 0.0, %v12608_v41  ;;  %v3603_v20 = vmul.f32 %v12554_v57, %v3602_v55  ;;  %vm12695_vm5 = vmor %vm3605_vm11, %vm3606_vm12  ;;  %v16899_v55 = vld [vmem:[#allocation17_spill] sm:$0xff] }
 0x352   : > { %v12643_v32 = vpop.eup %7784  ;;  %vm4205_vm13 = vweird.f32 %v12475_v6  ;;  %v4561_v1 = vmul.f32 %v12611_v21, %v12545_v33  ;;  %7788 = vpow2.f32 %v2903_v61  ;;  %v12649_v29 = vadd.f32 %v2396_v43, %v1315_v49  ;;  %v16910_v6 = vld [vmem:[#allocation48_spill] sm:$0xff] }
 0x353   : > { %v4712_v3 = vsub.f32 1.0, %v4711_v51  ;;  %v4546_v18 = vmul.f32 %v12618_v27, %v12548_v45  ;;  %v4554_v31 = vand.u32 2147483647, %v12548_v45  ;;  %7790 = vpow2.f32 %v2901_v12 }
 0x354   : > { %16876 = vst [vmem:[#allocation24_spill] sm:$0xff] %v12649_v29  ;;  %v7787_v50 = vpop.eup %7786  ;;  %v4513_v8 = vsel %vm12583_vm8, %v4512_v2, %v4508_v7  ;;  %vm12656_vm14 = vcmp.eq.f32.partialorder %v3609_v15, 8.507059e+37  ;;  %v4203_v19 = vmul.f32 %v12574_v30, %v4202_v10  ;;  %v3616_v49 = vmul.f32 %v12634_v40, %v12560_v58  ;;  %v1265_v15 = vpop.permute.xlu1 %1264 }
 0x355   : > { %v2773_v43 = vmul.f32 1.442695, %v2584_v54  ;;  %vm4206_vm15 = vweird.f32 %v12574_v30  ;;  %vm4715_vm3 = vweird.f32 %v12521_v5  ;;  %vm4716_vm0 = vweird.f32 %v12591_v22  ;;  %v12675_v7 = vpop.f32.mrf.mxu0 }
 0x356   : > { %v4216_v44 = vmul.f32 %v12643_v32, %v12572_v17  ;;  %v2853_v2 = vmul.f32 1.442695, %v2624_v39  ;;  %v3604_v61 = vadd.f32 %v12554_v57, %v3603_v20  ;;  %vm12669_vm2 = vcmp.eq.f32.partialorder %v4209_v56, 8.507059e+37  ;;  %vm12720_vm8 = vmor %vm4205_vm13, %vm4206_vm15 }
 0x357   : > { %v4562_v12 = vsub.f32 1.0, %v4561_v1  ;;  %v4556_v10 = vand.u32 2147483648, %v12548_v45  ;;  %v2662_v54 = vsub.f32 0.0, %v12649_v29  ;;  %v12678_v26 = vmul.f32 %v4513_v8, %v12206_v62  ;;  %v16882_v29 = vld [vmem:[#allocation32_spill] sm:$0xff]  ;;  %vm12756_vm13 = vmor %vm4715_vm3, %vm4716_vm0 }
 0x358   : > { %v4713_v38 = vmul.f32 %v12591_v22, %v4712_v3  ;;  %v4547_v39 = vsub.f32 1.0, %v4546_v18  ;;  %v12683_v20 = vadd.f32 1.0, %v7787_v50  ;;  %v7789_v56 = vpop.eup %7788  ;;  %v4204_v11 = vadd.f32 %v12574_v30, %v4203_v19  ;;  %5921 = vadd.xlane.f32.xlu2 %v16883_v52 }
 0x359   : > { %16881 = vst [vmem:[#allocation7_spill] sm:$0xff] %v12678_v26  ;;  %vm4565_vm4 = vweird.f32 %v12545_v33  ;;  %v3617_v1 = vsub.f32 1.0, %v3616_v49  ;;  %7792 = vpow2.f32 %v2773_v43  ;;  %v12688_v59 = vadd.f32 %v16882_v29, %v1265_v15  ;;  %v7791_v8 = vpop.eup %7790  ;;  %v16886_v29 = vld [vmem:[#allocation62_spill] sm:$0xff]  ;;  %v1260_v15 = vpop.permute.xlu0 %1259  ;;  %v16946_v26 = vld [vmem:[#allocation71_spill] sm:$0xff] }
 0x35a   : > { %vm4566_vm6 = vweird.f32 %v12611_v21  ;;  %v12700_v19 = vor.u32 1.1754944e-38, %v4571_v37  ;;  %vm4550_vm1 = vweird.f32 %v12548_v45  ;;  %v4217_v3 = vsub.f32 1.0, %v4216_v44  ;;  %5923 = vadd.xlane.f32.xlu1 %v16886_v29 }
 0x35b   : > { %7794 = vpow2.f32 %v2853_v2  ;;  %v3608_v52 = vsel %vm12695_vm5, %v12554_v57, %v3604_v61  ;;  %v16887_v25 = vand.u32 2147483647, %v12521_v5  ;;  %v4563_v50 = vmul.f32 %v12611_v21, %v4562_v12  ;;  %vm12785_vm15 = vmor %vm4565_vm4, %vm4566_vm6 }
 0x35c   : > { %v12714_v37 = vor.u32 1.1754944e-38, %v4556_v10  ;;  %v2929_v49 = vmul.f32 1.442695, %v2662_v54  ;;  %v4714_v57 = vadd.f32 %v12591_v22, %v4713_v38  ;;  %v4548_v44 = vmul.f32 %v12618_v27, %v4547_v39 }
 0x35d   : > { %vm12709_vm7 = vcmp.eq.f32.partialorder %v16887_v25, 8.507059e+37  ;;  %7796 = vrcp.f32 %v12683_v20  ;;  %v12727_v2 = vadd.f32 1.0, %v7789_v56  ;;  %v4208_v61 = vsel %vm12720_vm8, %v12574_v30, %v4204_v11 }
 0x35e   : > { %v16892_v12 = vand.u32 2147483647, %v12545_v33  ;;  %v3618_v10 = vmul.f32 %v12634_v40, %v3617_v1  ;;  %v12739_v38 = vadd.f32 1.0, %v7791_v8  ;;  %v2652_v54 = vsub.f32 0.0, %v12688_v59 }
 0x35f   : > { %v3613_v39 = vsel %vm12656_vm14, %v12605_v36, %v3608_v52  ;;  %vm4551_vm10 = vweird.f32 %v12618_v27  ;;  %vm12746_vm11 = vcmp.eq.f32.partialorder %v4554_v31, 8.507059e+37  ;;  %vm3620_vm12 = vweird.f32 %v12560_v58  ;;  %v7793_v56 = vpop.eup %7792 }
 0x360   : > { %vm12734_vm9 = vcmp.eq.f32.partialorder %v16892_v12, 8.507059e+37  ;;  %v4218_v30 = vmul.f32 %v12643_v32, %v4217_v3  ;;  %v4564_v36 = vadd.f32 %v12611_v21, %v4563_v50  ;;  %v3624_v31 = vand.u32 2147483647, %v12560_v58  ;;  %v12776_v50 = vpop.f32.mrf.mxu0  ;;  %vm12804_vm0 = vmor %vm4550_vm1, %vm4551_vm10 }
 0x361   : > { %7798 = vpow2.f32 %v2929_v49  ;;  %v12763_v8 = vadd.f32 %v16899_v55, %v1260_v15  ;;  %v7795_v62 = vpop.eup %7794  ;;  %v4213_v3 = vsel %vm12669_vm2, %v12613_v4, %v4208_v61  ;;  %v4718_v5 = vsel %vm12756_vm13, %v12591_v22, %v4714_v57  ;;  %v16900_v49 = vld [vmem:[#allocation63_spill] sm:$0xff]  ;;  %v16903_v15 = vld [vmem:[#allocation66_spill] sm:$0xff] }
 0x362   : > { %v4549_v29 = vadd.f32 %v12618_v27, %v4548_v44  ;;  %7800 = vrcp.f32 %v12727_v2  ;;  %v3619_v52 = vadd.f32 %v12634_v40, %v3618_v10  ;;  %vm3621_vm14 = vweird.f32 %v12634_v40  ;;  %5925 = vadd.xlane.f32.xlu2 %v16900_v49  ;;  %v12794_v44 = vpop.f32.mrf.mxu2  ;;  %5929 = vadd.xlane.f32.xlu1 %v16903_v15  ;;  %v16912_v49 = vld [vmem:[#allocation68_spill] sm:$0xff] }
 0x363   : > { %7802 = vrcp.f32 %v12739_v38  ;;  %v2909_v25 = vmul.f32 1.442695, %v2652_v54  ;;  %v12779_v4 = vpop.eup %7796  ;;  %v3626_v51 = vand.u32 2147483648, %v12560_v58  ;;  %v4219_v43 = vadd.f32 %v12643_v32, %v4218_v30  ;;  %vm12822_vm2 = vmor %vm3620_vm12, %vm3621_vm14 }
 0x364   : > { %vm4221_vm3 = vweird.f32 %v12643_v32  ;;  %v12792_v57 = vadd.f32 1.0, %v7793_v56  ;;  %v4568_v33 = vsel %vm12785_vm15, %v12611_v21, %v4564_v36  ;;  %v4226_v12 = vand.u32 2147483648, %v12572_v17 }
 0x365   : > { %v12809_v10 = vadd.f32 1.0, %v7795_v62  ;;  %v2651_v54 = vsub.f32 0.0, %v12763_v8  ;;  %v4723_v30 = vsel %vm12709_vm7, %v12630_v23, %v4718_v5  ;;  %v4553_v21 = vsel %vm12804_vm0, %v12618_v27, %v4549_v29  ;;  %v16920_v27 = vld [vmem:[#allocation85_spill] sm:$0xff] }
 0x366   : > { %vm4220_vm4 = vweird.f32 %v12572_v17  ;;  %v4224_v56 = vand.u32 2147483647, %v12572_v17  ;;  %v3623_v23 = vsel %vm12822_vm2, %v12634_v40, %v3619_v52  ;;  %vm3625_vm5 = vcmp.eq.f32.partialorder %v3624_v31, 8.507059e+37 }
 0x367   : > { %v7799_v1 = vpop.eup %7798  ;;  %vm12833_vm6 = vmor %vm4220_vm4, %vm4221_vm3  ;;  %v4756_v58 = vmul.f32 %v12779_v4, %v12683_v20  ;;  %7804 = vpow2.f32 %v2909_v25  ;;  %v4573_v17 = vsel %vm12734_vm9, %v12700_v19, %v4568_v33  ;;  %v3627_v36 = vor.u32 1.1754944e-38, %v3626_v51 }
 0x368   : > { %v12839_v18 = vpop.eup %7800  ;;  %v4223_v40 = vsel %vm12833_vm6, %v12643_v32, %v4219_v43  ;;  %7806 = vrcp.f32 %v12792_v57  ;;  %v4558_v55 = vsel %vm12746_vm11, %v12714_v37, %v4553_v21  ;;  %v4227_v62 = vor.u32 1.1754944e-38, %v4226_v12  ;;  %v12885_v33 = vpop.f32.mrf.mxu0 }
 0x369   : > { %v12848_v31 = vpop.eup %7802  ;;  %7808 = vrcp.f32 %v12809_v10  ;;  %v2907_v5 = vmul.f32 1.442695, %v2651_v54  ;;  %v3628_v29 = vsel %vm3625_vm5, %v3627_v36, %v3623_v23  ;;  %vm4225_vm1 = vcmp.eq.f32.partialorder %v4224_v56, 8.507059e+37 }
 0x36a   : > { %v4766_v19 = vand.u32 2147483648, %v12683_v20  ;;  %v12857_v52 = vadd.f32 %v12408_v0, %v16910_v6  ;;  %v12860_v32 = vmul.f32 %v3613_v39, %v12298_v9  ;;  %v12863_v25 = vmul.f32 %v4213_v3, %v12313_v13  ;;  %5931 = vadd.xlane.f32.xlu2 %v16912_v49  ;;  %v2285_v9 = vpop.f32.mrf.mxu1  ;;  %v16914_v39 = vld [vmem:[#allocation73_spill] sm:$0xff] }
 0x36b   : > { %v4228_v11 = vsel %vm4225_vm1, %v4227_v62, %v4223_v40  ;;  %v4757_v37 = vsub.f32 1.0, %v4756_v58  ;;  %v12867_v22 = vmul.f32 %v4723_v30, %v12331_v60  ;;  %v4606_v51 = vmul.f32 %v12839_v18, %v12727_v2  ;;  %5935 = vadd.xlane.f32.xlu1 %v16914_v39  ;;  %v2405_v30 = vpop.f32.mrf.mxu2  ;;  %v16921_v40 = vld [vmem:[#allocation30_spill] sm:$0xff] }
 0x36c   : > { %16911 = vst [vmem:[#allocation57_spill] sm:$0xff] %v12863_v25  ;;  %v4591_v0 = vmul.f32 %v12848_v31, %v12739_v38  ;;  %v12873_v43 = vadd.f32 1.0, %v7799_v1  ;;  %v12877_v3 = vmul.f32 %v4573_v17, %v12356_v46  ;;  %v12880_v15 = vmul.f32 %v4558_v55, %v12365_v28  ;;  %v1330_v28 = vpop.permute.xlu2 %1329  ;;  %v16925_v39 = vld [vmem:[#allocation74_spill] sm:$0xff] }
 0x36d   : > { %16913 = vst [vmem:[#allocation54_spill] sm:$0xff] %v12867_v22  ;;  %v7805_v13 = vpop.eup %7804  ;;  %v12883_v60 = vmul.f32 %v3628_v29, %v12373_v53  ;;  %7810 = vpow2.f32 %v2907_v5  ;;  %v12890_v12 = vmul.f32 %v4228_v11, %v12379_v63  ;;  %vm4760_vm7 = vweird.f32 %v12683_v20  ;;  %v16918_v53 = vld [vmem:[#allocation59_spill] sm:$0xff]  ;;  %v16919_v63 = vld [vmem:[#allocation49_spill] sm:$0xff] }
 0x36e   : > { %16915 = vst [vmem:[#allocation32_spill] sm:$0xff] %v12877_v3  ;;  %v12887_v61 = vpop.eup %7806  ;;  %v4764_v54 = vand.u32 2147483647, %v12683_v20  ;;  %v12894_v46 = vor.u32 1.1754944e-38, %v4766_v19  ;;  %v2586_v21 = vsub.f32 0.0, %v12857_v52  ;;  %5919 = vadd.xlane.f32.xlu0 %v16918_v53  ;;  %v4758_v56 = vmul.f32 %v12779_v4, %v4757_v37  ;;  %v16924_v37 = vld [vmem:[#allocation50_spill] sm:$0xff] }
 0x36f   : > { %16916 = vst [vmem:[#allocation60_spill] sm:$0xff] %v12880_v15  ;;  %v12898_v45 = vpop.eup %7808  ;;  %v4616_v1 = vand.u32 2147483648, %v12727_v2  ;;  %v12904_v23 = vadd.f32 %v12340_v48, %v16919_v63  ;;  %v12907_v58 = vadd.f32 %v2285_v9, %v16920_v27  ;;  %v4607_v17 = vsub.f32 1.0, %v4606_v51 }
 0x370   : > { %16917 = vst [vmem:[#allocation62_spill] sm:$0xff] %v12890_v12  ;;  %v4592_v36 = vsub.f32 1.0, %v4591_v0  ;;  %7812 = vrcp.f32 %v12873_v43  ;;  %v12912_v55 = vadd.f32 %v12526_v14, %v16921_v40  ;;  %v4601_v62 = vand.u32 2147483648, %v12739_v38  ;;  %v2186_v20 = vpop.f32.mrf.mxu0 }
 0x371   : > { %v3631_v5 = vmul.f32 %v12887_v61, %v12792_v57  ;;  %v12917_v29 = vadd.f32 1.0, %v7805_v13  ;;  %v12919_v48 = vadd.f32 %v2405_v30, %v1330_v28  ;;  %vm12921_vm8 = vcmp.eq.f32.partialorder %v4764_v54, 8.507059e+37  ;;  %v16926_v28 = vld [vmem:[#allocation76_spill] sm:$0xff] }
 0x372   : > { %vm4610_vm9 = vweird.f32 %v12727_v2  ;;  %v4614_v6 = vand.u32 2147483647, %v12727_v2  ;;  %v4231_v14 = vmul.f32 %v12898_v45, %v12809_v10  ;;  %v2777_v11 = vmul.f32 1.442695, %v2586_v21  ;;  %5937 = vadd.xlane.f32.xlu2 %v16925_v39 }
 0x373   : > { %v12931_v49 = vadd.f32 %v12675_v7, %v16924_v37  ;;  %v7811_v51 = vpop.eup %7810  ;;  %vm4761_vm10 = vweird.f32 %v12779_v4  ;;  %v12934_v0 = vor.u32 1.1754944e-38, %v4616_v1  ;;  %vm4595_vm11 = vweird.f32 %v12739_v38  ;;  %5941 = vadd.xlane.f32.xlu1 %v16926_v28 }
 0x374   : > { %v4599_v9 = vand.u32 2147483647, %v12739_v38  ;;  %v4759_v13 = vadd.f32 %v12779_v4, %v4758_v56  ;;  %v4608_v54 = vmul.f32 %v12839_v18, %v4607_v17  ;;  %v4593_v30 = vmul.f32 %v12848_v31, %v4592_v36  ;;  %v16927_v17 = vld [vmem:[#allocation64_spill] sm:$0xff]  ;;  %vm12958_vm12 = vmor %vm4760_vm7, %vm4761_vm10 }
 0x375   : > { %v2587_v7 = vsub.f32 0.0, %v12912_v55  ;;  %v12944_v21 = vor.u32 1.1754944e-38, %v4601_v62  ;;  %v3632_v53 = vsub.f32 1.0, %v3631_v5  ;;  %v3639_v1 = vand.u32 2147483647, %v12792_v57  ;;  %v16934_v36 = vld [vmem:[#allocation36_spill] sm:$0xff] }
 0x376   : > { %7814 = vrcp.f32 %v12917_v29  ;;  %v12948_v63 = vpop.eup %7812  ;;  %v4232_v27 = vsub.f32 1.0, %v4231_v14  ;;  %v12950_v40 = vadd.f32 1.0, %v7811_v51  ;;  %v2589_v56 = vsub.f32 0.0, %v12931_v49  ;;  %5927 = vadd.xlane.f32.xlu0 %v16927_v17 }
 0x377   : > { %7816 = vpow2.f32 %v2777_v11  ;;  %vm4611_vm13 = vweird.f32 %v12839_v18  ;;  %vm12963_vm14 = vcmp.eq.f32.partialorder %v4614_v6, 8.507059e+37  ;;  %vm4596_vm15 = vweird.f32 %v12848_v31  ;;  %v12971_v11 = vpop.permute.xlu0 %1274 }
 0x378   : > { %vm3635_vm3 = vweird.f32 %v12792_v57  ;;  %v3641_v5 = vand.u32 2147483648, %v12792_v57  ;;  %v4239_v14 = vand.u32 2147483647, %v12809_v10  ;;  %v4763_v37 = vsel %vm12958_vm12, %v12779_v4, %v4759_v13  ;;  %vm13005_vm4 = vmor %vm4610_vm9, %vm4611_vm13 }
 0x379   : > { %v4609_v6 = vadd.f32 %v12839_v18, %v4608_v54  ;;  %v4594_v51 = vadd.f32 %v12848_v31, %v4593_v30  ;;  %vm12978_vm0 = vcmp.eq.f32.partialorder %v4599_v9, 8.507059e+37  ;;  %vm4235_vm2 = vweird.f32 %v12809_v10  ;;  %v16935_v54 = vld [vmem:[#allocation55_spill] sm:$0xff]  ;;  %vm13023_vm6 = vmor %vm4595_vm11, %vm4596_vm15 }
 0x37a   : > { %v2779_v28 = vmul.f32 1.442695, %v2587_v7  ;;  %v3633_v17 = vmul.f32 %v12887_v61, %v3632_v53  ;;  %v4801_v22 = vmul.f32 %v12948_v63, %v12873_v43  ;;  %v2585_v15 = vsub.f32 0.0, %v12904_v23 }
 0x37b   : > { %v12989_v4 = vadd.f32 %v12776_v50, %v16934_v36  ;;  %v4233_v13 = vmul.f32 %v12898_v45, %v4232_v27  ;;  %7818 = vrcp.f32 %v12950_v40  ;;  %v2783_v9 = vmul.f32 1.442695, %v2589_v56 }
 0x37c   : > { %v12994_v30 = vadd.f32 %v2186_v20, %v16935_v54  ;;  %v12996_v7 = vpop.eup %7814  ;;  %v4768_v53 = vsel %vm12921_vm8, %v12894_v46, %v4763_v37  ;;  %vm13009_vm5 = vcmp.eq.f32.partialorder %v3639_v1, 8.507059e+37  ;;  %v3642_v56 = vor.u32 1.1754944e-38, %v3641_v5  ;;  %v16940_v54 = vld [vmem:[#allocation81_spill] sm:$0xff]  ;;  %v16945_v5 = vld [vmem:[#allocation87_spill] sm:$0xff] }
 0x37d   : > { %v4241_v20 = vand.u32 2147483648, %v12809_v10  ;;  %v4811_v36 = vand.u32 2147483648, %v12873_v43  ;;  %5943 = vadd.xlane.f32.xlu2 %v16940_v54  ;;  %v7817_v46 = vpop.eup %7816  ;;  %v4613_v2 = vsel %vm13005_vm4, %v12839_v18, %v4609_v6  ;;  %vm3636_vm1 = vweird.f32 %v12887_v61  ;;  %5947 = vadd.xlane.f32.xlu1 %v16945_v5 }
 0x37e   : > { %vm4236_vm7 = vweird.f32 %v12898_v45  ;;  %vm13029_vm8 = vcmp.eq.f32.partialorder %v4239_v14, 8.507059e+37  ;;  %7820 = vpow2.f32 %v2779_v28  ;;  %v4598_v18 = vsel %vm13023_vm6, %v12848_v31, %v4594_v51  ;;  %5933 = vadd.xlane.f32.xlu0 %v16946_v26  ;;  %vm13059_vm9 = vmor %vm3635_vm3, %vm3636_vm1 }
 0x37f   : > { %v3634_v38 = vadd.f32 %v12887_v61, %v3633_v17  ;;  %v2775_v37 = vmul.f32 1.442695, %v2585_v15  ;;  %v2590_v6 = vsub.f32 0.0, %v12989_v4  ;;  %v4234_v50 = vadd.f32 %v12898_v45, %v4233_v13  ;;  %vm13077_vm11 = vmor %vm4235_vm2, %vm4236_vm7 }
 0x380   : > { %v4802_v54 = vsub.f32 1.0, %v4801_v22  ;;  %7822 = vpow2.f32 %v2783_v9  ;;  %v2592_v14 = vsub.f32 0.0, %v12994_v30  ;;  %v13043_v28 = vmul.f32 %v4768_v53, %v12524_v42  ;;  %v1280_v9 = vpop.permute.xlu1 %1279  ;;  %v13081_v53 = vpop.permute.xlu0 %1289  ;;  %v16958_v42 = vld [vmem:[#allocation75_spill] sm:$0xff] }
 0x381   : > { %v4809_v5 = vand.u32 2147483647, %v12873_v43  ;;  %v4651_v31 = vmul.f32 %v12996_v7, %v12917_v29  ;;  %v13048_v51 = vadd.f32 1.0, %v7817_v46  ;;  %v13050_v15 = vpop.eup %7818  ;;  %v4618_v22 = vsel %vm12963_vm14, %v12934_v0, %v4613_v2 }
 0x382   : > { %16947 = vst [vmem:[#allocation17_spill] sm:$0xff] %v13043_v28  ;;  %v4242_v26 = vor.u32 1.1754944e-38, %v4241_v20  ;;  %vm4805_vm10 = vweird.f32 %v12873_v43  ;;  %v13064_v17 = vor.u32 1.1754944e-38, %v4811_v36  ;;  %v2625_v13 = vsub.f32 0.0, %v12907_v58 }
 0x383   : > { %v4603_v0 = vsel %vm12978_vm0, %v12944_v21, %v4598_v18  ;;  %v3638_v57 = vsel %vm13059_vm9, %v12887_v61, %v3634_v38  ;;  %7824 = vpow2.f32 %v2775_v37  ;;  %v2785_v20 = vmul.f32 1.442695, %v2590_v6  ;;  %v2189_v18 = vpop.f32.mrf.mxu0  ;;  %v16953_v38 = vld [vmem:[#allocation89_spill] sm:$0xff] }
 0x384   : > { %v7821_v36 = vpop.eup %7820  ;;  %v4238_v21 = vsel %vm13077_vm11, %v12898_v45, %v4234_v50  ;;  %v4803_v39 = vmul.f32 %v12948_v63, %v4802_v54  ;;  %v4661_v61 = vand.u32 2147483648, %v12917_v29  ;;  %v2789_v46 = vmul.f32 1.442695, %v2592_v14  ;;  %v16956_v54 = vld [vmem:[#allocation95_spill] sm:$0xff] }
 0x385   : > { %v13089_v10 = vmul.f32 %v4618_v22, %v12552_v24  ;;  %v4652_v2 = vsub.f32 1.0, %v4651_v31  ;;  %v4636_v19 = vmul.f32 %v13050_v15, %v12950_v40  ;;  %7826 = vrcp.f32 %v13048_v51  ;;  %5949 = vadd.xlane.f32.xlu2 %v16953_v38  ;;  %v16955_v24 = vld [vmem:[#allocation51_spill] sm:$0xff]  ;;  %5953 = vadd.xlane.f32.xlu1 %v16956_v54 }
 0x386   : > { %v7823_v37 = vpop.eup %7822  ;;  %v13096_v45 = vmul.f32 %v4603_v0, %v12563_v34  ;;  %v3643_v6 = vsel %vm13009_vm5, %v3642_v56, %v3638_v57  ;;  %vm4806_vm12 = vweird.f32 %v12948_v63  ;;  %v13103_v50 = vadd.f32 %v12601_v47, %v16955_v24  ;;  %v16957_v47 = vld [vmem:[#allocation41_spill] sm:$0xff]  ;;  %5939 = vadd.xlane.f32.xlu0 %v16958_v42 }
 0x387   : > { %16952 = vst [vmem:[#allocation63_spill] sm:$0xff] %v13089_v10  ;;  %v4243_v14 = vsel %vm13029_vm8, %v4242_v26, %v4238_v21  ;;  %vm4655_vm13 = vweird.f32 %v12917_v29  ;;  %v4659_v31 = vand.u32 2147483647, %v12917_v29  ;;  %v13110_v34 = vadd.f32 1.0, %v7821_v36  ;;  %vm13139_vm14 = vmor %vm4805_vm10, %vm4806_vm12 }
 0x388   : > { %16954 = vst [vmem:[#allocation66_spill] sm:$0xff] %v13096_v45  ;;  %7828 = vpow2.f32 %v2785_v20  ;;  %v13113_v27 = vadd.f32 %v12948_v63, %v4803_v39  ;;  %v13115_v56 = vor.u32 1.1754944e-38, %v4661_v61  ;;  %v13118_v22 = vadd.f32 %v2189_v18, %v16957_v47  ;;  %v1295_v38 = vpop.permute.xlu1 %1294 }
 0x389   : > { %7830 = vpow2.f32 %v2789_v46  ;;  %v7825_v1 = vpop.eup %7824  ;;  %v13122_v26 = vmul.f32 %v3643_v6, %v12599_v16  ;;  %v4653_v0 = vmul.f32 %v12996_v7, %v4652_v2  ;;  %v4637_v57 = vsub.f32 1.0, %v4636_v19  ;;  %v16964_v19 = vld [vmem:[#allocation105_spill] sm:$0xff]  ;;  %v16969_v16 = vld [vmem:[#allocation58_spill] sm:$0xff] }
 0x38a   : > { %v13125_v62 = vadd.f32 1.0, %v7823_v37  ;;  %v13128_v20 = vmul.f32 %v4243_v14, %v12608_v41  ;;  %v4644_v36 = vand.u32 2147483647, %v12950_v40  ;;  %v2588_v39 = vsub.f32 0.0, %v13103_v50  ;;  %v2288_v14 = vpop.f32.mrf.mxu1 }
 0x38b   : > { %v13133_v61 = vpop.eup %7826  ;;  %vm13143_vm15 = vcmp.eq.f32.partialorder %v4809_v5, 8.507059e+37  ;;  %v2855_v41 = vmul.f32 1.442695, %v2625_v13  ;;  %v2665_v2 = vsub.f32 0.0, %v12919_v48  ;;  %v13149_v18 = vadd.f32 %v16964_v19, %v1280_v9  ;;  %v16970_v19 = vld [vmem:[#allocation101_spill] sm:$0xff] }
 0x38c   : > { %16959 = vst [vmem:[#allocation48_spill] sm:$0xff] %v13128_v20  ;;  %7832 = vrcp.f32 %v13110_v34  ;;  %v4808_v43 = vsel %vm13139_vm14, %v12948_v63, %v13113_v27  ;;  %vm4656_vm3 = vweird.f32 %v12996_v7  ;;  %vm13157_vm0 = vcmp.eq.f32.partialorder %v4659_v31, 8.507059e+37  ;;  %v16967_v63 = vld [vmem:[#allocation99_spill] sm:$0xff]  ;;  %v13171_v31 = vpop.permute.xlu0 %1304  ;;  %v16968_v27 = vld [vmem:[#allocation97_spill] sm:$0xff] }
 0x38d   : > { %vm4640_vm2 = vweird.f32 %v12950_v40  ;;  %v13162_v13 = vadd.f32 1.0, %v7825_v1  ;;  %v2593_v9 = vsub.f32 0.0, %v13118_v22  ;;  %v4654_v6 = vadd.f32 %v12996_v7, %v4653_v0  ;;  %5955 = vadd.xlane.f32.xlu2 %v16968_v27  ;;  %5959 = vadd.xlane.f32.xlu1 %v16970_v19  ;;  %vm13188_vm5 = vmor %vm4655_vm13, %vm4656_vm3 }
 0x38e   : > { %v7829_v37 = vpop.eup %7828  ;;  %v4638_v24 = vmul.f32 %v13050_v15, %v4637_v57  ;;  %v13169_v54 = vadd.f32 %v16967_v63, %v12971_v11  ;;  %7834 = vrcp.f32 %v13125_v62  ;;  %v3661_v42 = vmul.f32 %v13133_v61, %v13048_v51 }
 0x38f   : > { %v7831_v47 = vpop.eup %7830  ;;  %v2781_v1 = vmul.f32 1.442695, %v2588_v39  ;;  %v13179_v0 = vadd.f32 %v12885_v33, %v16969_v16  ;;  %v2791_v57 = vmul.f32 1.442695, %v2593_v9  ;;  %vm4641_vm4 = vweird.f32 %v13050_v15  ;;  %v16973_v33 = vld [vmem:[#allocation77_spill] sm:$0xff]  ;;  %v16974_v9 = vld [vmem:[#allocation110_spill] sm:$0xff] }
 0x390   : > { %7836 = vpow2.f32 %v2855_v41  ;;  %v2935_v11 = vmul.f32 1.442695, %v2665_v2  ;;  %v2655_v63 = vsub.f32 0.0, %v13149_v18  ;;  %v13194_v39 = vadd.f32 %v2288_v14, %v16973_v33  ;;  %v16976_v2 = vld [vmem:[#allocation4_spill] sm:$0xff]  ;;  %vm13236_vm1 = vmor %vm4640_vm2, %vm4641_vm4 }
 0x391   : > { %7838 = vrcp.f32 %v13162_v13  ;;  %v13197_v16 = vadd.f32 %v16974_v9, %v1295_v38  ;;  %v13199_v41 = vadd.f32 1.0, %v7829_v37  ;;  %5945 = vadd.xlane.f32.xlu0 %v16976_v2  ;;  %v4658_v29 = vsel %vm13188_vm5, %v12996_v7, %v4654_v6  ;;  %v16979_v7 = vld [vmem:[#allocation108_spill] sm:$0xff]  ;;  %v16983_v2 = vld [vmem:[#allocation45_spill] sm:$0xff] }
 0x392   : > { %v13202_v19 = vpop.eup %7832  ;;  %v2654_v21 = vsub.f32 0.0, %v13169_v54  ;;  %v13208_v28 = vadd.f32 1.0, %v7831_v47  ;;  %7840 = vpow2.f32 %v2791_v57  ;;  %v4639_v14 = vadd.f32 %v13050_v15, %v4638_v24 }
 0x393   : > { %16975 = vst [vmem:[#allocation68_spill] sm:$0xff] %v13197_v16  ;;  %v3662_v33 = vsub.f32 1.0, %v3661_v42  ;;  %7842 = vpow2.f32 %v2781_v1  ;;  %v2591_v38 = vsub.f32 0.0, %v13179_v0  ;;  %vm13214_vm6 = vcmp.eq.f32.partialorder %v4644_v36, 8.507059e+37 }
 0x394   : > { %v13212_v37 = vpop.eup %7834  ;;  %7844 = vpow2.f32 %v2935_v11  ;;  %v2915_v27 = vmul.f32 1.442695, %v2655_v63  ;;  %v13220_v6 = vadd.f32 %v16979_v7, %v13081_v53  ;;  %v4813_v24 = vsel %vm13143_vm15, %v13064_v17, %v4808_v43  ;;  %v16982_v43 = vld [vmem:[#allocation104_spill] sm:$0xff]  ;;  %v13249_v11 = vpop.permute.xlu1 %1309 }
 0x395   : > { %v2626_v47 = vsub.f32 0.0, %v13194_v39  ;;  %v3676_v42 = vmul.f32 %v13202_v19, %v13110_v34  ;;  %7846 = vrcp.f32 %v13199_v41  ;;  %v4663_v1 = vsel %vm13157_vm0, %v13115_v56, %v4658_v29  ;;  %5961 = vadd.xlane.f32.xlu2 %v16982_v43  ;;  %5965 = vadd.xlane.f32.xlu1 %v16983_v2  ;;  %v16984_v7 = vld [vmem:[#allocation24_spill] sm:$0xff]  ;;  %v16987_v2 = vld [vmem:[#allocation91_spill] sm:$0xff] }
 0x396   : > { %v7837_v36 = vpop.eup %7836  ;;  %v2913_v17 = vmul.f32 1.442695, %v2654_v21  ;;  %v2658_v46 = vsub.f32 0.0, %v13197_v16  ;;  %7848 = vrcp.f32 %v13208_v28  ;;  %v4643_v56 = vsel %vm13236_vm1, %v13050_v15, %v4639_v14  ;;  %v13260_v14 = vpop.permute.xlu0 %1319 }
 0x397   : > { %v13243_v57 = vpop.eup %7838  ;;  %v3663_v5 = vmul.f32 %v13133_v61, %v3662_v33  ;;  %v3706_v63 = vmul.f32 %v13212_v37, %v13125_v62  ;;  %v2787_v21 = vmul.f32 1.442695, %v2591_v38  ;;  %v13255_v45 = vmul.f32 %v4813_v24, %v16984_v7 }
 0x398   : > { %v7841_v29 = vpop.eup %7840  ;;  %v16986_v43 = vand.u32 2147483648, %v12950_v40  ;;  %7850 = vpow2.f32 %v2915_v27  ;;  %v13262_v53 = vadd.f32 1.0, %v7837_v36  ;;  %v13264_v3 = vmul.f32 1.442695, %v2626_v47 }
 0x399   : > { %16985 = vst [vmem:[#allocation73_spill] sm:$0xff] %v13255_v45  ;;  %v7843_v33 = vpop.eup %7842  ;;  %v3677_v38 = vsub.f32 1.0, %v3676_v42  ;;  %v13266_v20 = vadd.f32 1.0, %v7841_v29  ;;  %5951 = vadd.xlane.f32.xlu0 %v16987_v2  ;;  %v13272_v40 = vmul.f32 %v4663_v1, %v12688_v59  ;;  %7852 = vpow2.f32 %v2913_v17 }
 0x39a   : > { %v4647_v10 = vor.u32 1.1754944e-38, %v16986_v43  ;;  %v13269_v24 = vpop.eup %7844  ;;  %v13276_v7 = vmul.f32 1.442695, %v2658_v46  ;;  %v3664_v47 = vadd.f32 %v13133_v61, %v3663_v5  ;;  %vm3666_vm7 = vweird.f32 %v13133_v61  ;;  %v16992_v43 = vld [vmem:[#allocation9_spill] sm:$0xff] }
 0x39b   : > { %16988 = vst [vmem:[#allocation59_spill] sm:$0xff] %v13272_v40  ;;  %v13278_v36 = vpop.eup %7846  ;;  %v3707_v42 = vsub.f32 1.0, %v3706_v63  ;;  %7854 = vpow2.f32 %v2787_v21  ;;  %v3646_v59 = vmul.f32 %v13243_v57, %v13162_v13  ;;  %v3656_v1 = vand.u32 2147483648, %v13162_v13 }
 0x39c   : > { %v4648_v27 = vsel %vm13214_vm6, %v4647_v10, %v4643_v56  ;;  %v13282_v29 = vpop.eup %7848  ;;  %v3671_v10 = vand.u32 2147483648, %v13048_v51  ;;  %v13288_v9 = vadd.f32 1.0, %v7843_v33  ;;  %vm3665_vm8 = vweird.f32 %v13048_v51 }
 0x39d   : > { %v3669_v17 = vand.u32 2147483647, %v13048_v51  ;;  %v3678_v46 = vmul.f32 %v13202_v19, %v3677_v38  ;;  %7856 = vrcp.f32 %v13266_v20  ;;  %v13295_v5 = vmul.f32 %v4648_v27, %v12763_v8  ;;  %vm13301_vm9 = vmor %vm3665_vm8, %vm3666_vm7  ;;  %5967 = vadd.xlane.f32.xlu2 %v16992_v43  ;;  %5971 = vadd.xlane.f32.xlu1 %v12883_v60  ;;  %v16993_v60 = vld [vmem:[#allocation5_spill] sm:$0xff] }
 0x39e   : > { %v7851_v56 = vpop.eup %7850  ;;  %7858 = vrcp.f32 %v13262_v53  ;;  %v3721_v51 = vmul.f32 %v13278_v36, %v13199_v41  ;;  %v3668_v8 = vsel %vm13301_vm9, %v13133_v61, %v3664_v47  ;;  %v3708_v38 = vmul.f32 %v13212_v37, %v3707_v42  ;;  %v13324_v47 = vpop.permute.xlu1 %1324 }
 0x39f   : > { %16989 = vst [vmem:[#allocation49_spill] sm:$0xff] %v13295_v5  ;;  %v3751_v2 = vmul.f32 %v13282_v29, %v13208_v28  ;;  %v13316_v27 = vpop.eup %7852  ;;  %v3647_v15 = vsub.f32 1.0, %v3646_v59  ;;  %v3672_v45 = vor.u32 1.1754944e-38, %v3671_v10  ;;  %7860 = vrcp.f32 %v13288_v9  ;;  %v2192_v42 = vpop.f32.mrf.mxu0 }
 0x3a0   : > { %v13320_v33 = vor.u32 1.1754944e-38, %v3656_v1  ;;  %vm3670_vm10 = vcmp.eq.f32.partialorder %v3669_v17, 8.507059e+37  ;;  %v3679_v61 = vadd.f32 %v13202_v19, %v3678_v46  ;;  %vm3681_vm11 = vweird.f32 %v13202_v19  ;;  %v13329_v10 = vpop.permute.xlu0 %1334 }
 0x3a1   : > { %v7855_v43 = vpop.eup %7854  ;;  %5957 = vadd.xlane.f32.xlu0 %v16993_v60  ;;  %v3673_v21 = vsel %vm3670_vm10, %v3672_v45, %v3668_v8  ;;  %vm3680_vm12 = vweird.f32 %v13110_v34  ;;  %v3686_v59 = vand.u32 2147483648, %v13110_v34  ;;  %16994 = vst [vmem:[#allocation85_spill] sm:$0xff] %v13329_v10  ;;  %v3722_v63 = vsub.f32 1.0, %v3721_v51  ;;  %v13345_v51 = vpop.f32.mrf.mxu1 }
 0x3a2   : > { %v3684_v17 = vand.u32 2147483647, %v13110_v34  ;;  %v3709_v46 = vadd.f32 %v13212_v37, %v3708_v38  ;;  %vm3711_vm13 = vweird.f32 %v13212_v37  ;;  %v3752_v5 = vsub.f32 1.0, %v3751_v2  ;;  %vm13341_vm14 = vmor %vm3680_vm12, %vm3681_vm11  ;;  %v16997_v38 = vld [vmem:[#allocation61_spill] sm:$0xff] }
 0x3a3   : > { %v13331_v1 = vpop.eup %7856  ;;  %v3648_v45 = vmul.f32 %v13243_v57, %v3647_v15  ;;  %v3716_v60 = vand.u32 2147483648, %v13125_v62  ;;  %v13348_v34 = vadd.f32 1.0, %v7855_v43  ;;  %v13351_v12 = vadd.f32 %v2192_v42, %v16997_v38 }
 0x3a4   : > { %v13336_v40 = vpop.eup %7858  ;;  %v5626_v2 = vmul.f32 %v3673_v21, %v12857_v52  ;;  %v3683_v15 = vsel %vm13341_vm14, %v13202_v19, %v3679_v61  ;;  %vm3710_vm15 = vweird.f32 %v13125_v62  ;;  %v3714_v25 = vand.u32 2147483647, %v13125_v62 }
 0x3a5   : > { %v13359_v10 = vpop.eup %7860  ;;  %vm3650_vm3 = vweird.f32 %v13162_v13  ;;  %v13363_v43 = vadd.f32 1.0, %v13269_v24  ;;  %v3687_v16 = vor.u32 1.1754944e-38, %v3686_v59  ;;  %vm13367_vm0 = vmor %vm3710_vm15, %vm3711_vm13  ;;  %v3723_v19 = vmul.f32 %v13278_v36, %v3722_v63  ;;  %5973 = vadd.xlane.f32.xlu2 %v13122_v26 }
 0x3a6   : > { %v3766_v61 = vmul.f32 %v13331_v1, %v13266_v20  ;;  %v13375_v62 = vadd.f32 1.0, %v7851_v56  ;;  %vm3685_vm2 = vcmp.eq.f32.partialorder %v3684_v17, 8.507059e+37  ;;  %v3713_v24 = vsel %vm13367_vm0, %v13212_v37, %v3709_v46  ;;  %5977 = vadd.xlane.f32.xlu1 %v5626_v2  ;;  %v17000_v56 = vld [vmem:[#allocation106_spill] sm:$0xff]  ;;  %v13399_v38 = vpop.permute.xlu1 %1339 }
 0x3a7   : > { %v3753_v42 = vmul.f32 %v13282_v29, %v3752_v5  ;;  %v3688_v21 = vsel %vm3685_vm2, %v3687_v16, %v3683_v15  ;;  %v3717_v59 = vor.u32 1.1754944e-38, %v3716_v60  ;;  %7862 = vrcp.f32 %v13348_v34 }
 0x3a8   : > { %v2594_v63 = vsub.f32 0.0, %v13351_v12  ;;  %v3649_v8 = vadd.f32 %v13243_v57, %v3648_v45  ;;  %vm3651_vm4 = vweird.f32 %v13243_v57  ;;  %v3691_v26 = vmul.f32 %v13359_v10, %v13288_v9  ;;  %v13396_v45 = vpop.permute.xlu2 %1344  ;;  %v13406_v52 = vpop.permute.xlu0 %1349 }
 0x3a9   : > { %vm3715_vm5 = vcmp.eq.f32.partialorder %v3714_v25, 8.507059e+37  ;;  %5963 = vadd.xlane.f32.xlu0 %v17000_v56  ;;  %v17001_v37 = vand.u32 2147483647, %v13162_v13  ;;  %v3724_v17 = vadd.f32 %v13278_v36, %v3723_v19  ;;  %vm3726_vm1 = vweird.f32 %v13278_v36  ;;  %17004 = vst [vmem:[#allocation30_spill] sm:$0xff] %v13406_v52  ;;  %vm13441_vm12 = vmor %vm3650_vm3, %vm3651_vm4 }
 0x3aa   : > { %v3718_v16 = vsel %vm3715_vm5, %v3717_v59, %v3713_v24  ;;  %v3767_v46 = vsub.f32 1.0, %v3766_v61  ;;  %v5627_v60 = vmul.f32 %v3688_v21, %v12912_v55  ;;  %v3731_v25 = vand.u32 2147483648, %v13199_v41 }
 0x3ab   : > { %vm13390_vm6 = vcmp.eq.f32.partialorder %v17001_v37, 8.507059e+37  ;;  %v3754_v2 = vadd.f32 %v13282_v29, %v3753_v42  ;;  %vm3756_vm7 = vweird.f32 %v13282_v29  ;;  %vm3725_vm8 = vweird.f32 %v13199_v41 }
 0x3ac   : > { %v3729_v15 = vand.u32 2147483647, %v13199_v41  ;;  %v3761_v19 = vand.u32 2147483648, %v13208_v28  ;;  %v2793_v61 = vmul.f32 1.442695, %v2594_v63  ;;  %v3692_v24 = vsub.f32 1.0, %v3691_v26  ;;  %vm13412_vm9 = vmor %vm3725_vm8, %vm3726_vm1  ;;  %v13425_v63 = vpop.f32.mrf.mxu1 }
 0x3ad   : > { %v5629_v55 = vmul.f32 %v3718_v16, %v12931_v49  ;;  %vm3755_vm10 = vweird.f32 %v13208_v28  ;;  %v3759_v42 = vand.u32 2147483647, %v13208_v28  ;;  %v13418_v59 = vpop.eup %7862  ;;  %v17007_v41 = vand.u32 2147483648, %v13262_v53  ;;  %5979 = vadd.xlane.f32.xlu2 %v5627_v60  ;;  %v13454_v60 = vpop.f32.mrf.mxu2 }
 0x3ae   : > { %7864 = vrcp.f32 %v13363_v43  ;;  %v3728_v49 = vsel %vm13412_vm9, %v13278_v36, %v3724_v17  ;;  %vm13432_vm11 = vmor %vm3755_vm10, %vm3756_vm7  ;;  %v3768_v28 = vmul.f32 %v13331_v1, %v3767_v46  ;;  %v17012_v36 = vsub.f32 0.0, %v13220_v6 }
 0x3af   : > { %v13422_v56 = vor.u32 1.1754944e-38, %v17007_v41  ;;  %7866 = vrcp.f32 %v13375_v62  ;;  %v3732_v17 = vor.u32 1.1754944e-38, %v3731_v25  ;;  %v3758_v21 = vsel %vm13432_vm11, %v13282_v29, %v3754_v2  ;;  %5983 = vadd.xlane.f32.xlu1 %v5629_v55 }
 0x3b0   : > { %v2919_v16 = vmul.f32 1.442695, %v17012_v36  ;;  %v3653_v46 = vsel %vm13441_vm12, %v13243_v57, %v3649_v8  ;;  %vm3730_vm13 = vcmp.eq.f32.partialorder %v3729_v15, 8.507059e+37  ;;  %v3762_v13 = vor.u32 1.1754944e-38, %v3761_v19  ;;  %v13494_v26 = vpop.permute.xlu0 %1364  ;;  %v17028_v8 = vld [vmem:[#allocation34_spill] sm:$0xff] }
 0x3b1   : > { %7868 = vpow2.f32 %v2793_v61  ;;  %v3693_v41 = vmul.f32 %v13359_v10, %v3692_v24  ;;  %v3733_v52 = vsel %vm3730_vm13, %v3732_v17, %v3728_v49  ;;  %v3736_v25 = vmul.f32 %v13418_v59, %v13348_v34  ;;  %5969 = vadd.xlane.f32.xlu0 %v12860_v32  ;;  %v13476_v24 = vpop.permute.xlu2 %1359  ;;  %17016 = vst [vmem:[#allocation74_spill] sm:$0xff] %v13494_v26  ;;  %v17017_v17 = vld [vmem:[#allocation10_spill] sm:$0xff] }
 0x3b2   : > { %vm3760_vm14 = vcmp.eq.f32.partialorder %v3759_v42, 8.507059e+37  ;;  %7870 = vpow2.f32 %v13264_v3  ;;  %v3769_v2 = vadd.f32 %v13331_v1, %v3768_v28  ;;  %vm3771_vm15 = vweird.f32 %v13331_v1  ;;  %17013 = vst [vmem:[#allocation50_spill] sm:$0xff] %v13476_v24 }
 0x3b3   : > { %v3763_v29 = vsel %vm3760_vm14, %v3762_v13, %v3758_v21  ;;  %v3658_v57 = vsel %vm13390_vm6, %v13320_v33, %v3653_v46  ;;  %7872 = vpow2.f32 %v13276_v7  ;;  %v3776_v15 = vand.u32 2147483648, %v13266_v20  ;;  %v13480_v7 = vpop.permute.xlu1 %1354 }
 0x3b4   : > { %v13469_v19 = vpop.eup %7864  ;;  %7874 = vpow2.f32 %v2919_v16  ;;  %v5630_v32 = vmul.f32 %v3733_v52, %v12989_v4  ;;  %vm3770_vm3 = vweird.f32 %v13266_v20  ;;  %v3774_v3 = vand.u32 2147483647, %v13266_v20 }
 0x3b5   : > { %v13474_v61 = vpop.eup %7866  ;;  %v3694_v33 = vadd.f32 %v13359_v10, %v3693_v41  ;;  %vm3696_vm0 = vweird.f32 %v13359_v10  ;;  %v3737_v5 = vsub.f32 1.0, %v3736_v25  ;;  %v5632_v55 = vmul.f32 %v3763_v29, %v12994_v30  ;;  %vm13485_vm2 = vmor %vm3770_vm3, %vm3771_vm15 }
 0x3b6   : > { %v5625_v52 = vmul.f32 %v3658_v57, %v12904_v23  ;;  %v13491_v42 = vadd.f32 1.0, %v13316_v27  ;;  %v3701_v49 = vand.u32 2147483648, %v13288_v9  ;;  %v3773_v30 = vsel %vm13485_vm2, %v13331_v1, %v3769_v2  ;;  %5985 = vadd.xlane.f32.xlu2 %v5630_v32  ;;  %v17020_v57 = vld [vmem:[#allocation42_spill] sm:$0xff] }
 0x3b7   : > { %v7869_v20 = vpop.eup %7868  ;;  %vm3695_vm4 = vweird.f32 %v13288_v9  ;;  %v3699_v28 = vand.u32 2147483647, %v13288_v9  ;;  %v3777_v37 = vor.u32 1.1754944e-38, %v3776_v15  ;;  %5989 = vadd.xlane.f32.xlu1 %v5632_v55  ;;  %v4856_v27 = vand.u32 2147483648, %v13363_v43  ;;  %v13515_v9 = vpop.f32.mrf.mxu1 }
 0x3b8   : > { %v13501_v36 = vadd.f32 1.0, %v7869_v20  ;;  %v7871_v23 = vpop.eup %7870  ;;  %v13507_v21 = vadd.f32 %v13345_v51, %v17017_v17  ;;  %vm13511_vm5 = vmor %vm3695_vm4, %vm3696_vm0  ;;  %vm3775_vm6 = vcmp.eq.f32.partialorder %v3774_v3, 8.507059e+37  ;;  %v3738_v41 = vmul.f32 %v13418_v59, %v3737_v5 }
 0x3b9   : > { %v7873_v46 = vpop.eup %7872  ;;  %v3698_v13 = vsel %vm13511_vm5, %v13359_v10, %v3694_v33  ;;  %v3778_v25 = vsel %vm3775_vm6, %v3777_v37, %v3773_v30  ;;  %5975 = vadd.xlane.f32.xlu0 %v5625_v52  ;;  %v4246_v29 = vmul.f32 %v13336_v40, %v13262_v53  ;;  %v4706_v2 = vand.u32 2147483648, %v13375_v62  ;;  %v13534_v33 = vpop.f32.mrf.mxu2  ;;  %v17021_v52 = vld [vmem:[#allocation26_spill] sm:$0xff] }
 0x3ba   : > { %7876 = vrcp.f32 %v13501_v36  ;;  %v7875_v51 = vpop.eup %7874  ;;  %v13527_v15 = vadd.f32 %v17020_v57, %v13249_v11  ;;  %v3702_v32 = vor.u32 1.1754944e-38, %v3701_v49  ;;  %v4846_v10 = vmul.f32 %v13469_v19, %v13363_v43 }
 0x3bb   : > { %v4696_v3 = vmul.f32 %v13474_v61, %v13375_v62  ;;  %7878 = vrcp.f32 %v13491_v42  ;;  %vm3700_vm1 = vcmp.eq.f32.partialorder %v3699_v28, 8.507059e+37  ;;  %v13536_v5 = vadd.f32 1.0, %v7871_v23 }
 0x3bc   : > { %v13538_v55 = vadd.f32 1.0, %v7873_v46  ;;  %v3703_v4 = vsel %vm3700_vm1, %v3702_v32, %v3698_v13  ;;  %v5633_v11 = vmul.f32 %v3778_v25, %v13118_v22  ;;  %v2627_v20 = vsub.f32 0.0, %v13507_v21 }
 0x3bd   : > { %v13544_v49 = vadd.f32 %v17021_v52, %v13171_v31  ;;  %v3739_v30 = vadd.f32 %v13418_v59, %v3738_v41  ;;  %vm3741_vm7 = vweird.f32 %v13418_v59  ;;  %v13548_v37 = vor.u32 1.1754944e-38, %v4856_v27  ;;  %v13557_v31 = vpop.permute.xlu2 %1374  ;;  %v13561_v27 = vpop.permute.xlu1 %1369  ;;  %v17024_v41 = vld [vmem:[#allocation31_spill] sm:$0xff] }
 0x3be   : > { %v13550_v28 = vadd.f32 1.0, %v7875_v51  ;;  %v2661_v23 = vsub.f32 0.0, %v13527_v15  ;;  %v3746_v17 = vand.u32 2147483648, %v13348_v34  ;;  %5991 = vadd.xlane.f32.xlu2 %v5633_v11  ;;  %v4247_v1 = vsub.f32 1.0, %v4246_v29  ;;  %17022 = vst [vmem:[#allocation76_spill] sm:$0xff] %v13557_v31  ;;  %v13572_v29 = vpop.permute.xlu0 %1379 }
 0x3bf   : > { %v5628_v46 = vmul.f32 %v3703_v4, %v13103_v50  ;;  %vm3740_vm8 = vweird.f32 %v13348_v34  ;;  %v3744_v13 = vand.u32 2147483647, %v13348_v34  ;;  %17023 = vst [vmem:[#allocation64_spill] sm:$0xff] %v13561_v27  ;;  %5995 = vadd.xlane.f32.xlu1 %v17024_v41  ;;  %vm4251_vm9 = vweird.f32 %v13336_v40  ;;  %v13585_v11 = vpop.f32.mrf.mxu1 }
 0x3c0   : > { %v13554_v22 = vpop.eup %7876  ;;  %v4847_v25 = vsub.f32 1.0, %v4846_v10  ;;  %v4697_v51 = vsub.f32 1.0, %v4696_v3  ;;  %7880 = vrcp.f32 %v13536_v5  ;;  %vm13568_vm10 = vmor %vm3740_vm8, %vm3741_vm7  ;;  %17027 = vst [vmem:[#allocation36_spill] sm:$0xff] %v13572_v29  ;;  %v2859_v32 = vmul.f32 1.442695, %v2627_v20 }
 0x3c1   : > { %v3781_v34 = vmul.f32 %v13554_v22, %v13501_v36  ;;  %v13576_v57 = vpop.eup %7878  ;;  %7882 = vrcp.f32 %v13538_v55  ;;  %v2660_v10 = vsub.f32 0.0, %v13544_v49  ;;  %v3743_v3 = vsel %vm13568_vm10, %v13418_v59, %v3739_v30  ;;  %5981 = vadd.xlane.f32.xlu0 %v5628_v46 }
 0x3c2   : > { %vm4250_vm11 = vweird.f32 %v13262_v53  ;;  %7884 = vrcp.f32 %v13550_v28  ;;  %v2927_v4 = vmul.f32 1.442695, %v2661_v23  ;;  %v3747_v52 = vor.u32 1.1754944e-38, %v3746_v17 }
 0x3c3   : > { %v3782_v41 = vsub.f32 1.0, %v3781_v34  ;;  %v4248_v16 = vmul.f32 %v13336_v40, %v4247_v1  ;;  %vm4850_vm12 = vweird.f32 %v13363_v43  ;;  %v13589_v20 = vor.u32 1.1754944e-38, %v4706_v2  ;;  %v2414_v1 = vpop.f32.mrf.mxu2  ;;  %vm13666_vm7 = vmor %vm4250_vm11, %vm4251_vm9 }
 0x3c4   : > { %v13593_v50 = vadd.f32 %v13425_v63, %v17028_v8  ;;  %vm3745_vm13 = vcmp.eq.f32.partialorder %v3744_v13, 8.507059e+37  ;;  %v4848_v59 = vmul.f32 %v13469_v19, %v4847_v25  ;;  %vm4851_vm14 = vweird.f32 %v13469_v19  ;;  %v17029_v25 = vld [vmem:[#allocation67_spill] sm:$0xff] }
 0x3c5   : > { %vm4700_vm15 = vweird.f32 %v13375_v62  ;;  %v3748_v30 = vsel %vm3745_vm13, %v3747_v52, %v3743_v3  ;;  %v3783_v23 = vmul.f32 %v13554_v22, %v3782_v41  ;;  %v4681_v17 = vmul.f32 %v13576_v57, %v13491_v42  ;;  %v13648_v27 = vpop.permute.xlu2 %1389  ;;  %vm13678_vm13 = vmor %vm4850_vm12, %vm4851_vm14 }
 0x3c6   : > { %7886 = vpow2.f32 %v2859_v32  ;;  %v2925_v2 = vmul.f32 1.442695, %v2660_v10  ;;  %vm3786_vm3 = vweird.f32 %v13554_v22  ;;  %v13602_v63 = vpop.eup %7880  ;;  %v4698_v8 = vmul.f32 %v13474_v61, %v4697_v51  ;;  %5997 = vadd.xlane.f32.xlu2 %v17029_v25 }
 0x3c7   : > { %7888 = vpow2.f32 %v2927_v4  ;;  %v3784_v46 = vadd.f32 %v13554_v22, %v3783_v23  ;;  %v3791_v13 = vand.u32 2147483648, %v13501_v36  ;;  %v13608_v34 = vpop.eup %7882  ;;  %v17030_v3 = vand.u32 2147483647, %v13262_v53  ;;  %v17033_v4 = vld [vmem:[#allocation23_spill] sm:$0xff]  ;;  %v13689_v24 = vpop.f32.mrf.mxu1  ;;  %v17051_v53 = vld [vmem:[#allocation44_spill] sm:$0xff] }
 0x3c8   : > { %v2628_v10 = vsub.f32 0.0, %v13593_v50  ;;  %v5631_v52 = vmul.f32 %v3748_v30, %v13179_v0  ;;  %vm3785_vm2 = vweird.f32 %v13501_v36  ;;  %v3789_v51 = vand.u32 2147483647, %v13501_v36  ;;  %6001 = vadd.xlane.f32.xlu1 %v17033_v4  ;;  %v13621_v41 = vpop.eup %7884 }
 0x3c9   : > { %vm13612_vm0 = vcmp.eq.f32.partialorder %v17030_v3, 8.507059e+37  ;;  %v4249_v23 = vadd.f32 %v13336_v40, %v4248_v16  ;;  %v17034_v25 = vand.u32 2147483647, %v13363_v43  ;;  %vm4701_vm5 = vweird.f32 %v13474_v61  ;;  %vm13643_vm1 = vmor %vm3785_vm2, %vm3786_vm3 }
 0x3ca   : > { %v17037_v0 = vand.u32 2147483647, %v13375_v62  ;;  %v4691_v36 = vand.u32 2147483648, %v13491_v42  ;;  %v13639_v4 = vadd.f32 %v2414_v1, %v13396_v45  ;;  %v4682_v31 = vsub.f32 1.0, %v4681_v17  ;;  %5987 = vadd.xlane.f32.xlu0 %v5631_v52  ;;  %vm13701_vm9 = vmor %vm4700_vm15, %vm4701_vm5 }
 0x3cb   : > { %vm13626_vm4 = vcmp.eq.f32.partialorder %v17034_v25, 8.507059e+37  ;;  %v4849_v25 = vadd.f32 %v13469_v19, %v4848_v59  ;;  %7890 = vpow2.f32 %v2925_v2  ;;  %v3788_v29 = vsel %vm13643_vm1, %v13554_v22, %v3784_v46  ;;  %v13660_v59 = vpop.permute.xlu0 %1394 }
 0x3cc   : > { %vm13633_vm6 = vcmp.eq.f32.partialorder %v17037_v0, 8.507059e+37  ;;  %v13650_v0 = vpop.permute.xlu1 %1384  ;;  %v4699_v45 = vadd.f32 %v13474_v61, %v4698_v8  ;;  %v4261_v1 = vmul.f32 %v13602_v63, %v13536_v5  ;;  %v4741_v26 = vmul.f32 %v13608_v34, %v13538_v55  ;;  %17043 = vst [vmem:[#allocation81_spill] sm:$0xff] %v13660_v59  ;;  %v7887_v2 = vpop.eup %7886 }
 0x3cd   : > { %17042 = vst [vmem:[#allocation55_spill] sm:$0xff] %v13650_v0  ;;  %v3792_v17 = vor.u32 1.1754944e-38, %v3791_v13  ;;  %vm4685_vm8 = vweird.f32 %v13491_v42  ;;  %v4689_v22 = vand.u32 2147483647, %v13491_v42  ;;  %v4726_v8 = vmul.f32 %v13621_v41, %v13550_v28  ;;  %v7889_v52 = vpop.eup %7888  ;;  %v13752_v3 = vpop.permute.xlu2 %1404 }
 0x3ce   : > { %v2861_v46 = vmul.f32 1.442695, %v2628_v10  ;;  %vm3790_vm10 = vcmp.eq.f32.partialorder %v3789_v51, 8.507059e+37  ;;  %v13682_v13 = vor.u32 1.1754944e-38, %v4691_v36  ;;  %v2668_v59 = vsub.f32 0.0, %v13639_v4 }
 0x3cf   : > { %v13687_v0 = vadd.f32 %v12794_v44, %v13324_v47  ;;  %v3793_v10 = vsel %vm3790_vm10, %v3792_v17, %v3788_v29  ;;  %v4253_v51 = vsel %vm13666_vm7, %v13336_v40, %v4249_v23  ;;  %v4853_v43 = vsel %vm13678_vm13, %v13469_v19, %v4849_v25  ;;  %v17050_v25 = vld [vmem:[#allocation70_spill] sm:$0xff] }
 0x3d0   : > { %v4683_v44 = vmul.f32 %v13576_v57, %v4682_v31  ;;  %v13708_v47 = vadd.f32 %v12681_v35, %v13260_v14  ;;  %v4703_v40 = vsel %vm13701_vm9, %v13474_v61, %v4699_v45  ;;  %v4262_v29 = vsub.f32 1.0, %v4261_v1  ;;  %6003 = vadd.xlane.f32.xlu2 %v17050_v25  ;;  %6007 = vadd.xlane.f32.xlu1 %v17051_v53 }
 0x3d1   : > { %v4742_v19 = vsub.f32 1.0, %v4741_v26  ;;  %v13713_v23 = vadd.f32 1.0, %v7887_v2  ;;  %v7891_v62 = vpop.eup %7890  ;;  %v4727_v17 = vsub.f32 1.0, %v4726_v8  ;;  %v13716_v16 = vadd.f32 1.0, %v7889_v52 }
 0x3d2   : > { %7892 = vpow2.f32 %v2861_v46  ;;  %v5634_v31 = vmul.f32 %v3793_v10, %v13351_v12  ;;  %v13723_v35 = vsel %vm13612_vm0, %v13422_v56, %v4253_v51  ;;  %vm4686_vm11 = vweird.f32 %v13576_v57 }
 0x3d3   : > { %vm13726_vm12 = vcmp.eq.f32.partialorder %v4689_v22, 8.507059e+37  ;;  %v2941_v61 = vmul.f32 1.442695, %v2668_v59  ;;  %v2664_v26 = vsub.f32 0.0, %v13687_v0  ;;  %v13734_v12 = vsel %vm13626_vm4, %v13548_v37, %v4853_v43  ;;  %vm13760_vm15 = vmor %vm4685_vm8, %vm4686_vm11  ;;  %v13766_v10 = vpop.permute.xlu0 %1409 }
 0x3d4   : > { %v13739_v32 = vsel %vm13633_vm6, %v13589_v20, %v4703_v40  ;;  %v4684_v56 = vadd.f32 %v13576_v57, %v4683_v44  ;;  %v2663_v45 = vsub.f32 0.0, %v13708_v47  ;;  %5993 = vadd.xlane.f32.xlu0 %v5634_v31  ;;  %v4263_v1 = vmul.f32 %v13602_v63, %v4262_v29  ;;  %v13754_v30 = vpop.permute.xlu1 %1399  ;;  %v13777_v29 = vpop.f32.mrf.mxu1  ;;  %v17073_v31 = vld [vmem:[#allocation43_spill] sm:$0xff] }
 0x3d5   : > { %v4743_v59 = vmul.f32 %v13608_v34, %v4742_v19  ;;  %7894 = vrcp.f32 %v13713_v23  ;;  %v13746_v2 = vadd.f32 1.0, %v7891_v62  ;;  %vm4265_vm14 = vweird.f32 %v13536_v5  ;;  %v17056_v19 = vld [vmem:[#allocation72_spill] sm:$0xff]  ;;  %v17057_v62 = vld [vmem:[#allocation79_spill] sm:$0xff] }
 0x3d6   : > { %v4269_v37 = vand.u32 2147483647, %v13536_v5  ;;  %v4728_v20 = vmul.f32 %v13621_v41, %v4727_v17  ;;  %7896 = vrcp.f32 %v13716_v16  ;;  %v4271_v8 = vand.u32 2147483648, %v13536_v5 }
 0x3d7   : > { %v4749_v46 = vand.u32 2147483647, %v13538_v55  ;;  %7898 = vpow2.f32 %v2941_v61  ;;  %v2933_v52 = vmul.f32 1.442695, %v2664_v26  ;;  %v4688_v43 = vsel %vm13760_vm15, %v13576_v57, %v4684_v56 }
 0x3d8   : > { %v7893_v51 = vpop.eup %7892  ;;  %vm4266_vm3 = vweird.f32 %v13602_v63  ;;  %v4751_v42 = vand.u32 2147483648, %v13538_v55  ;;  %v2931_v36 = vmul.f32 1.442695, %v2663_v45  ;;  %v4264_v44 = vadd.f32 %v13602_v63, %v4263_v1  ;;  %6009 = vadd.xlane.f32.xlu2 %v17056_v19  ;;  %6013 = vadd.xlane.f32.xlu1 %v17057_v62  ;;  %v17064_v1 = vld [vmem:[#allocation53_spill] sm:$0xff] }
 0x3d9   : > { %v4744_v40 = vadd.f32 %v13608_v34, %v4743_v59  ;;  %vm4746_vm0 = vweird.f32 %v13608_v34  ;;  %7900 = vrcp.f32 %v13746_v2  ;;  %vm4745_vm2 = vweird.f32 %v13538_v55  ;;  %vm13791_vm5 = vmor %vm4265_vm14, %vm4266_vm3 }
 0x3da   : > { %v4729_v57 = vadd.f32 %v13621_v41, %v4728_v20  ;;  %vm4731_vm4 = vweird.f32 %v13621_v41  ;;  %v4734_v25 = vand.u32 2147483647, %v13550_v28  ;;  %vm13795_vm6 = vcmp.eq.f32.partialorder %v4269_v37, 8.507059e+37  ;;  %vm13809_vm1 = vmor %vm4745_vm2, %vm4746_vm0 }
 0x3db   : > { %v13785_v17 = vpop.eup %7894  ;;  %v4736_v53 = vand.u32 2147483648, %v13550_v28  ;;  %v13800_v61 = vadd.f32 1.0, %v7893_v51  ;;  %7902 = vpow2.f32 %v2933_v52  ;;  %v4693_v56 = vsel %vm13726_vm12, %v13682_v13, %v4688_v43 }
 0x3dc   : > { %v13802_v26 = vpop.eup %7896  ;;  %v4272_v5 = vor.u32 1.1754944e-38, %v4271_v8  ;;  %vm4730_vm7 = vweird.f32 %v13550_v28  ;;  %7904 = vpow2.f32 %v2931_v36  ;;  %5999 = vadd.xlane.f32.xlu0 %v17064_v1  ;;  %v4268_v37 = vsel %vm13791_vm5, %v13602_v63, %v4264_v44  ;;  %v13859_v19 = vpop.permute.xlu1 %1414 }
 0x3dd   : > { %v7899_v59 = vpop.eup %7898  ;;  %v4748_v13 = vsel %vm13809_vm1, %v13608_v34, %v4744_v40  ;;  %vm4750_vm8 = vcmp.eq.f32.partialorder %v4749_v46, 8.507059e+37  ;;  %v4752_v14 = vor.u32 1.1754944e-38, %v4751_v42  ;;  %vm13823_vm10 = vmor %vm4730_vm7, %vm4731_vm4  ;;  %vm13830_vm13 = vcmp.eq.f32.partialorder %v4734_v25, 8.507059e+37  ;;  %v17069_v34 = vld [vmem:[#allocation29_spill] sm:$0xff]  ;;  %v13857_v40 = vpop.permute.xlu2 %1419 }
 0x3de   : > { %v4733_v28 = vsel %vm13823_vm10, %v13621_v41, %v4729_v57  ;;  %v4276_v63 = vmul.f32 %v13785_v17, %v13713_v23  ;;  %v13838_v8 = vadd.f32 %v13515_v9, %v17069_v34  ;;  %v4737_v52 = vor.u32 1.1754944e-38, %v4736_v53  ;;  %v17070_v41 = vld [vmem:[#allocation21_spill] sm:$0xff] }
 0x3df   : > { %v13840_v46 = vpop.eup %7900  ;;  %v4786_v51 = vmul.f32 %v13802_v26, %v13716_v16  ;;  %7906 = vrcp.f32 %v13800_v61  ;;  %v13847_v43 = vadd.f32 %v17070_v41, %v13648_v27  ;;  %v4273_v42 = vsel %vm13795_vm6, %v4272_v5, %v4268_v37 }
 0x3e0   : > { %v4753_v36 = vsel %vm4750_vm8, %v4752_v14, %v4748_v13  ;;  %v13851_v44 = vadd.f32 1.0, %v7899_v59  ;;  %v13855_v9 = vadd.f32 %v13534_v33, %v13399_v38  ;;  %v13863_v25 = vmul.f32 %v13723_v35, %v12907_v58  ;;  %v13875_v33 = vpop.permute.xlu0 %1424  ;;  %6015 = vadd.xlane.f32.xlu2 %v17073_v31  ;;  %v13892_v59 = vpop.f32.mrf.mxu1  ;;  %v17079_v13 = vld [vmem:[#allocation12_spill] sm:$0xff] }
 0x3e1   : > { %v7903_v57 = vpop.eup %7902  ;;  %v13867_v27 = vmul.f32 %v13734_v12, %v12919_v48  ;;  %v13871_v62 = vmul.f32 %v13739_v32, %v13149_v18  ;;  %v4738_v38 = vsel %vm13830_vm13, %v4737_v52, %v4733_v28  ;;  %v13879_v53 = vmul.f32 %v4693_v56, %v13169_v54  ;;  %v17075_v12 = vld [vmem:[#allocation28_spill] sm:$0xff]  ;;  %v13911_v52 = vpop.f32.mrf.mxu3 }
 0x3e2   : > { %v7905_v55 = vpop.eup %7904  ;;  %v4277_v58 = vsub.f32 1.0, %v4276_v63  ;;  %v4771_v48 = vmul.f32 %v13840_v46, %v13746_v2  ;;  %v2629_v35 = vsub.f32 0.0, %v13838_v8  ;;  %6019 = vadd.xlane.f32.xlu1 %v17075_v12  ;;  %v13886_v18 = vmul.f32 %v4273_v42, %v13194_v39  ;;  %v17076_v32 = vld [vmem:[#allocation68_spill] sm:$0xff]  ;;  %17080 = vst [vmem:[#allocation41_spill] sm:$0xff] %v13911_v52 }
 0x3e3   : > { %17071 = vst [vmem:[#allocation87_spill] sm:$0xff] %v13867_v27  ;;  %v13889_v5 = vmul.f32 %v4753_v36, %v17076_v32  ;;  %v4787_v45 = vsub.f32 1.0, %v4786_v51  ;;  %v2677_v1 = vsub.f32 0.0, %v13847_v43  ;;  %v13895_v54 = vmul.f32 %v4738_v38, %v13220_v6  ;;  %v17081_v38 = vld [vmem:[#allocation16_spill] sm:$0xff] }
 0x3e4   : > { %17072 = vst [vmem:[#allocation71_spill] sm:$0xff] %v13871_v62  ;;  %7908 = vrcp.f32 %v13851_v44  ;;  %v13898_v56 = vadd.f32 1.0, %v7903_v57  ;;  %v2667_v37 = vsub.f32 0.0, %v13855_v9  ;;  %6005 = vadd.xlane.f32.xlu0 %v17079_v13  ;;  %v4284_v14 = vand.u32 2147483647, %v13713_v23 }
 0x3e5   : > { %17074 = vst [vmem:[#allocation89_spill] sm:$0xff] %v13879_v53  ;;  %v13902_v39 = vpop.eup %7906  ;;  %v4286_v20 = vand.u32 2147483648, %v13713_v23  ;;  %v4794_v28 = vand.u32 2147483647, %v13716_v16  ;;  %v13907_v22 = vadd.f32 1.0, %v7905_v55  ;;  %v4278_v6 = vmul.f32 %v13785_v17, %v4277_v58 }
 0x3e6   : > { %17077 = vst [vmem:[#allocation51_spill] sm:$0xff] %v13889_v5  ;;  %vm4280_vm9 = vweird.f32 %v13713_v23  ;;  %v4772_v63 = vsub.f32 1.0, %v4771_v48  ;;  %v2863_v34 = vmul.f32 1.442695, %v2629_v35  ;;  %v4788_v51 = vmul.f32 %v13802_v26, %v4787_v45  ;;  %v17086_v35 = vld [vmem:[#allocation78_spill] sm:$0xff]  ;;  %v13938_v45 = vpop.permute.xlu2 %1434 }
 0x3e7   : > { %17078 = vst [vmem:[#allocation95_spill] sm:$0xff] %v13895_v54  ;;  %vm4790_vm11 = vweird.f32 %v13716_v16  ;;  %v4796_v41 = vand.u32 2147483648, %v13716_v16  ;;  %v2959_v42 = vmul.f32 1.442695, %v2677_v1  ;;  %v4291_v36 = vmul.f32 %v13902_v39, %v13800_v61  ;;  %v13940_v1 = vpop.permute.xlu1 %1429 }
 0x3e8   : > { %7910 = vrcp.f32 %v13898_v56  ;;  %v2939_v57 = vmul.f32 1.442695, %v2667_v37  ;;  %v13921_v31 = vadd.f32 %v13689_v24, %v17081_v38  ;;  %vm13923_vm12 = vcmp.eq.f32.partialorder %v4284_v14, 8.507059e+37  ;;  %6021 = vadd.xlane.f32.xlu2 %v17086_v35  ;;  %v17087_v37 = vld [vmem:[#allocation35_spill] sm:$0xff] }
 0x3e9   : > { %v4287_v58 = vor.u32 1.1754944e-38, %v4286_v20  ;;  %vm13927_vm14 = vcmp.eq.f32.partialorder %v4794_v28, 8.507059e+37  ;;  %7912 = vrcp.f32 %v13907_v22  ;;  %v4279_v32 = vadd.f32 %v13785_v17, %v4278_v6  ;;  %v13946_v20 = vpop.permute.xlu0 %1439 }
 0x3ea   : > { %v13933_v12 = vpop.eup %7908  ;;  %vm4281_vm15 = vweird.f32 %v13785_v17  ;;  %v4773_v24 = vmul.f32 %v13840_v46, %v4772_v63  ;;  %7914 = vpow2.f32 %v2863_v34  ;;  %6025 = vadd.xlane.f32.xlu1 %v17087_v37  ;;  %v4789_v13 = vadd.f32 %v13802_v26, %v4788_v51  ;;  %17088 = vst [vmem:[#allocation75_spill] sm:$0xff] %v13946_v20  ;;  %v17089_v34 = vld [vmem:[#allocation80_spill] sm:$0xff]  ;;  %v17097_v51 = vld [vmem:[#allocation13_spill] sm:$0xff]  ;;  %v17098_v20 = vld [vmem:[#allocation94_spill] sm:$0xff] }
 0x3eb   : > { %vm4791_vm3 = vweird.f32 %v13802_v26  ;;  %v4779_v14 = vand.u32 2147483647, %v13746_v2  ;;  %7916 = vpow2.f32 %v2959_v42  ;;  %v4781_v28 = vand.u32 2147483648, %v13746_v2  ;;  %vm13955_vm0 = vmor %vm4280_vm9, %vm4281_vm15 }
 0x3ec   : > { %v4292_v6 = vsub.f32 1.0, %v4291_v36  ;;  %7918 = vpow2.f32 %v2939_v57  ;;  %v2631_v63 = vsub.f32 0.0, %v13921_v31  ;;  %6011 = vadd.xlane.f32.xlu0 %v17089_v34  ;;  %v4797_v38 = vor.u32 1.1754944e-38, %v4796_v41  ;;  %v2312_v36 = vpop.f32.mrf.mxu1  ;;  %vm13972_vm5 = vmor %vm4790_vm11, %vm4791_vm3  ;;  %v17094_v34 = vld [vmem:[#allocation85_spill] sm:$0xff] }
 0x3ed   : > { %vm4775_vm2 = vweird.f32 %v13746_v2  ;;  %vm4776_vm4 = vweird.f32 %v13840_v46  ;;  %v4891_v42 = vmul.f32 %v13933_v12, %v13851_v44  ;;  %v4283_v35 = vsel %vm13955_vm0, %v13785_v17, %v4279_v32 }
 0x3ee   : > { %v13963_v57 = vpop.eup %7910  ;;  %v4774_v41 = vadd.f32 %v13840_v46, %v4773_v24  ;;  %v4301_v37 = vand.u32 2147483648, %v13800_v61  ;;  %v13980_v27 = vadd.f32 %v13454_v60, %v17094_v34  ;;  %v4793_v17 = vsel %vm13972_vm5, %v13802_v26, %v4789_v13  ;;  %v14000_v26 = vpop.f32.mrf.mxu3  ;;  %vm14008_vm1 = vmor %vm4775_vm2, %vm4776_vm4 }
 0x3ef   : > { %v13982_v54 = vpop.eup %7912  ;;  %vm13987_vm6 = vcmp.eq.f32.partialorder %v4779_v14, 8.507059e+37  ;;  %v4299_v32 = vand.u32 2147483647, %v13800_v61  ;;  %v13994_v24 = vadd.f32 %v13777_v29, %v17097_v51  ;;  %v4782_v53 = vor.u32 1.1754944e-38, %v4781_v28  ;;  %v17101_v28 = vld [vmem:[#allocation88_spill] sm:$0xff]  ;;  %v17106_v51 = vld [vmem:[#allocation83_spill] sm:$0xff] }
 0x3f0   : > { %v7915_v52 = vpop.eup %7914  ;;  %v4293_v60 = vmul.f32 %v13902_v39, %v4292_v6  ;;  %v2867_v34 = vmul.f32 1.442695, %v2631_v63  ;;  %v13998_v5 = vadd.f32 %v2312_v36, %v17098_v20  ;;  %v4288_v13 = vsel %vm13923_vm12, %v4287_v58, %v4283_v35  ;;  %6027 = vadd.xlane.f32.xlu2 %v17101_v28  ;;  %v17102_v36 = vld [vmem:[#allocation93_spill] sm:$0xff] }
 0x3f1   : > { %v7917_v23 = vpop.eup %7916  ;;  %vm4295_vm7 = vweird.f32 %v13800_v61  ;;  %v4892_v14 = vsub.f32 1.0, %v4891_v42  ;;  %v4831_v20 = vmul.f32 %v13963_v57, %v13898_v56  ;;  %v4798_v55 = vsel %vm13927_vm14, %v4797_v38, %v4793_v17 }
 0x3f2   : > { %v7919_v6 = vpop.eup %7918  ;;  %v4778_v2 = vsel %vm14008_vm1, %v13840_v46, %v4774_v41  ;;  %v4302_v58 = vor.u32 1.1754944e-38, %v4301_v37  ;;  %v2666_v63 = vsub.f32 0.0, %v13980_v27  ;;  %6031 = vadd.xlane.f32.xlu1 %v17102_v36  ;;  %vm4296_vm8 = vweird.f32 %v13902_v39  ;;  %v14036_v37 = vpop.permute.xlu2 %1449 }
 0x3f3   : > { %vm14024_vm10 = vcmp.eq.f32.partialorder %v4299_v32, 8.507059e+37  ;;  %v4816_v35 = vmul.f32 %v13982_v54, %v13907_v22  ;;  %v14030_v48 = vadd.f32 1.0, %v7915_v52  ;;  %v2632_v38 = vsub.f32 0.0, %v13994_v24  ;;  %v14039_v32 = vpop.permute.xlu1 %1444  ;;  %v14046_v36 = vpop.f32.mrf.mxu2  ;;  %vm14065_vm13 = vmor %vm4295_vm7, %vm4296_vm8 }
 0x3f4   : > { %v4294_v46 = vadd.f32 %v13902_v39, %v4293_v60  ;;  %v14034_v41 = vadd.f32 1.0, %v7917_v23  ;;  %7920 = vpow2.f32 %v2867_v34  ;;  %v2634_v17 = vsub.f32 0.0, %v13998_v5  ;;  %17105 = vst [vmem:[#allocation105_spill] sm:$0xff] %v14039_v32  ;;  %6017 = vadd.xlane.f32.xlu0 %v17106_v51  ;;  %v14050_v23 = vpop.permute.xlu0 %1454  ;;  %v17109_v51 = vld [vmem:[#allocation92_spill] sm:$0xff] }
 0x3f5   : > { %v14043_v29 = vmul.f32 %v4288_v13, %v13507_v21  ;;  %v4893_v52 = vmul.f32 %v13933_v12, %v4892_v14  ;;  %v4832_v28 = vsub.f32 1.0, %v4831_v20  ;;  %v14048_v60 = vadd.f32 1.0, %v7919_v6  ;;  %17107 = vst [vmem:[#allocation99_spill] sm:$0xff] %v14050_v23 }
 0x3f6   : > { %v14053_v34 = vmul.f32 %v4798_v55, %v13527_v15  ;;  %v4783_v32 = vsel %vm13987_vm6, %v4782_v53, %v4778_v2  ;;  %v2937_v62 = vmul.f32 1.442695, %v2666_v63  ;;  %v14059_v21 = vadd.f32 %v13585_v11, %v17109_v51  ;;  %v17112_v55 = vld [vmem:[#allocation96_spill] sm:$0xff] }
 0x3f7   : > { %v4899_v14 = vand.u32 2147483647, %v13851_v44  ;;  %v4817_v15 = vsub.f32 1.0, %v4816_v35  ;;  %7922 = vrcp.f32 %v14030_v48  ;;  %v2869_v16 = vmul.f32 1.442695, %v2632_v38  ;;  %v17113_v35 = vld [vmem:[#allocation37_spill] sm:$0xff]  ;;  %v14085_v38 = vpop.f32.mrf.mxu3 }
 0x3f8   : > { %17108 = vst [vmem:[#allocation97_spill] sm:$0xff] %v14053_v34  ;;  %v4298_v53 = vsel %vm14065_vm13, %v13902_v39, %v4294_v46  ;;  %v4901_v11 = vand.u32 2147483648, %v13851_v44  ;;  %7924 = vrcp.f32 %v14034_v41  ;;  %v2873_v20 = vmul.f32 1.442695, %v2634_v17  ;;  %6033 = vadd.xlane.f32.xlu2 %v17112_v55 }
 0x3f9   : > { %v4894_v61 = vadd.f32 %v13933_v12, %v4893_v52  ;;  %vm4896_vm9 = vweird.f32 %v13933_v12  ;;  %v4833_v6 = vmul.f32 %v13963_v57, %v4832_v28  ;;  %7926 = vrcp.f32 %v14048_v60  ;;  %17114 = vst [vmem:[#allocation58_spill] sm:$0xff] %v14085_v38  ;;  %v17128_v28 = vld [vmem:[#allocation102_spill] sm:$0xff] }
 0x3fa   : > { %v7921_v2 = vpop.eup %7920  ;;  %vm4895_vm11 = vweird.f32 %v13851_v44  ;;  %v4839_v39 = vand.u32 2147483647, %v13898_v56  ;;  %7928 = vpow2.f32 %v2937_v62  ;;  %v2630_v63 = vsub.f32 0.0, %v14059_v21  ;;  %6037 = vadd.xlane.f32.xlu1 %v17113_v35 }
 0x3fb   : > { %v14088_v46 = vmul.f32 %v4783_v32, %v13544_v49  ;;  %v4841_v17 = vand.u32 2147483648, %v13898_v56  ;;  %v4818_v52 = vmul.f32 %v13982_v54, %v4817_v15  ;;  %7930 = vpow2.f32 %v2869_v16  ;;  %vm14096_vm12 = vmor %vm4895_vm11, %vm4896_vm9  ;;  %v17120_v32 = vld [vmem:[#allocation84_spill] sm:$0xff] }
 0x3fc   : > { %v4303_v44 = vsel %vm14024_vm10, %v4302_v58, %v4298_v53  ;;  %vm14100_vm14 = vcmp.eq.f32.partialorder %v4899_v14, 8.507059e+37  ;;  %v4902_v49 = vor.u32 1.1754944e-38, %v4901_v11  ;;  %7932 = vpow2.f32 %v2873_v20  ;;  %6023 = vadd.xlane.f32.xlu0 %v17120_v32  ;;  %v14122_v11 = vpop.permute.xlu2 %1464 }
 0x3fd   : > { %17115 = vst [vmem:[#allocation101_spill] sm:$0xff] %v14088_v46  ;;  %v14105_v51 = vpop.eup %7922  ;;  %v4898_v58 = vsel %vm14096_vm12, %v13933_v12, %v4894_v61  ;;  %v4834_v42 = vadd.f32 %v13963_v57, %v4833_v6  ;;  %vm4836_vm15 = vweird.f32 %v13963_v57  ;;  %v14112_v13 = vadd.f32 1.0, %v7921_v2  ;;  %v14124_v12 = vpop.permute.xlu1 %1459 }
 0x3fe   : > { %v14114_v14 = vpop.eup %7924  ;;  %vm4835_vm3 = vweird.f32 %v13898_v56  ;;  %vm14117_vm0 = vcmp.eq.f32.partialorder %v4839_v39, 8.507059e+37  ;;  %v4824_v16 = vand.u32 2147483647, %v13907_v22  ;;  %v2865_v53 = vmul.f32 1.442695, %v2630_v63  ;;  %17123 = vst [vmem:[#allocation77_spill] sm:$0xff] %v14124_v12  ;;  %v2420_v2 = vpop.f32.mrf.mxu2 }
 0x3ff   : > { %v14126_v20 = vpop.eup %7926  ;;  %v4842_v61 = vor.u32 1.1754944e-38, %v4841_v17  ;;  %v4819_v6 = vadd.f32 %v13982_v54, %v4818_v52  ;;  %vm4821_vm2 = vweird.f32 %v13982_v54  ;;  %v4826_v55 = vand.u32 2147483648, %v13907_v22  ;;  %v14131_v39 = vpop.permute.xlu0 %1469  ;;  %vm14142_vm4 = vmor %vm4835_vm3, %vm4836_vm15  ;;  %v17127_v52 = vld [vmem:[#allocation39_spill] sm:$0xff]  ;;  %v17156_v12 = vld [vmem:[#allocation50_spill] sm:$0xff] }
 0x400   : > { %17124 = vst [vmem:[#allocation110_spill] sm:$0xff] %v14131_v39  ;;  %v7929_v35 = vpop.eup %7928  ;;  %v14134_v62 = vmul.f32 %v4303_v44, %v13593_v50  ;;  %v4903_v63 = vsel %vm14100_vm14, %v4902_v49, %v4898_v58  ;;  %vm4820_vm5 = vweird.f32 %v13907_v22  ;;  %v14149_v32 = vadd.f32 %v17127_v52, %v13752_v3  ;;  %6039 = vadd.xlane.f32.xlu2 %v17128_v28  ;;  %v17133_v58 = vld [vmem:[#allocation40_spill] sm:$0xff]  ;;  %v17134_v17 = vld [vmem:[#allocation107_spill] sm:$0xff] }
 0x401   : > { %v7931_v38 = vpop.eup %7930  ;;  %v4838_v50 = vsel %vm14142_vm4, %v13963_v57, %v4834_v42  ;;  %v4306_v44 = vmul.f32 %v14105_v51, %v14030_v48  ;;  %v5026_v56 = vmul.f32 %v14114_v14, %v14034_v41  ;;  %7934 = vrcp.f32 %v14112_v13  ;;  %vm14162_vm6 = vmor %vm4820_vm5, %vm4821_vm2 }
 0x402   : > { %v7933_v22 = vpop.eup %7932  ;;  %vm14166_vm1 = vcmp.eq.f32.partialorder %v4824_v16, 8.507059e+37  ;;  %v4876_v57 = vmul.f32 %v14126_v20, %v14048_v60  ;;  %7936 = vpow2.f32 %v2865_v53  ;;  %v14174_v42 = vadd.f32 %v13892_v59, %v17133_v58  ;;  %6043 = vadd.xlane.f32.xlu1 %v17134_v17  ;;  %v17136_v17 = vld [vmem:[#allocation90_spill] sm:$0xff] }
 0x403   : > { %v14178_v52 = vmul.f32 %v4903_v63, %v13639_v4  ;;  %v4823_v16 = vsel %vm14162_vm6, %v13982_v54, %v4819_v6  ;;  %v4827_v28 = vor.u32 1.1754944e-38, %v4826_v55  ;;  %v14183_v39 = vadd.f32 1.0, %v7929_v35  ;;  %v14192_v4 = vpop.f32.mrf.mxu3 }
 0x404   : > { %v4843_v46 = vsel %vm14117_vm0, %v4842_v61, %v4838_v50  ;;  %v4316_v53 = vand.u32 2147483648, %v14030_v48  ;;  %v2680_v59 = vsub.f32 0.0, %v14149_v32  ;;  %v14189_v58 = vadd.f32 1.0, %v7931_v38  ;;  %6029 = vadd.xlane.f32.xlu0 %v17136_v17  ;;  %17137 = vst [vmem:[#allocation108_spill] sm:$0xff] %v14192_v4  ;;  %v17143_v17 = vld [vmem:[#allocation112_spill] sm:$0xff] }
 0x405   : > { %17135 = vst [vmem:[#allocation4_spill] sm:$0xff] %v14178_v52  ;;  %v4307_v63 = vsub.f32 1.0, %v4306_v44  ;;  %v4314_v3 = vand.u32 2147483647, %v14030_v48  ;;  %v5027_v54 = vsub.f32 1.0, %v5026_v56  ;;  %v14195_v6 = vadd.f32 1.0, %v7933_v22 }
 0x406   : > { %v4828_v15 = vsel %vm14166_vm1, %v4827_v28, %v4823_v16  ;;  %vm4310_vm7 = vweird.f32 %v14030_v48  ;;  %v4877_v61 = vsub.f32 1.0, %v4876_v57  ;;  %v14201_v55 = vadd.f32 %v2420_v2, %v13480_v7  ;;  %v17139_v56 = vld [vmem:[#allocation30_spill] sm:$0xff]  ;;  %v14219_v2 = vpop.permute.xlu2 %1479  ;;  %v2423_v28 = vpop.f32.mrf.mxu2 }
 0x407   : > { %v2633_v38 = vsub.f32 0.0, %v14174_v42  ;;  %v14204_v35 = vpop.eup %7934  ;;  %v14207_v50 = vmul.f32 %v4843_v46, %v13687_v0  ;;  %v5034_v44 = vand.u32 2147483647, %v14034_v41  ;;  %7938 = vrcp.f32 %v14183_v39  ;;  %v14221_v0 = vpop.permute.xlu1 %1474 }
 0x408   : > { %v14213_v22 = vadd.f32 %v14046_v36, %v17139_v56  ;;  %v7937_v49 = vpop.eup %7936  ;;  %v14215_v57 = vor.u32 1.1754944e-38, %v4316_v53  ;;  %vm5030_vm8 = vweird.f32 %v14034_v41  ;;  %v2965_v7 = vmul.f32 1.442695, %v2680_v59  ;;  %17140 = vst [vmem:[#allocation45_spill] sm:$0xff] %v14221_v0  ;;  %v14229_v53 = vpop.permute.xlu0 %1484  ;;  %6045 = vadd.xlane.f32.xlu2 %v17143_v17 }
 0x409   : > { %17138 = vst [vmem:[#allocation104_spill] sm:$0xff] %v14207_v50  ;;  %7940 = vrcp.f32 %v14189_v58  ;;  %v14224_v46 = vmul.f32 %v4828_v15, %v13708_v47  ;;  %v4308_v16 = vmul.f32 %v14105_v51, %v4307_v63  ;;  %v5028_v36 = vmul.f32 %v14114_v14, %v5027_v54  ;;  %v17144_v15 = vld [vmem:[#allocation57_spill] sm:$0xff]  ;;  %v17165_v63 = vld [vmem:[#allocation74_spill] sm:$0xff] }
 0x40a   : > { %7942 = vrcp.f32 %v14195_v6  ;;  %17142 = vst [vmem:[#allocation91_spill] sm:$0xff] %v14229_v53  ;;  %v4878_v59 = vmul.f32 %v14126_v20, %v4877_v61  ;;  %v2670_v56 = vsub.f32 0.0, %v14201_v55  ;;  %v4336_v4 = vmul.f32 %v14204_v35, %v14112_v13  ;;  %6049 = vadd.xlane.f32.xlu1 %v17144_v15 }
 0x40b   : > { %17141 = vst [vmem:[#allocation24_spill] sm:$0xff] %v14224_v46  ;;  %v2871_v47 = vmul.f32 1.442695, %v2633_v38  ;;  %vm14237_vm10 = vcmp.eq.f32.partialorder %v4314_v3, 8.507059e+37  ;;  %vm14241_vm13 = vcmp.eq.f32.partialorder %v5034_v44, 8.507059e+37  ;;  %v5036_v17 = vand.u32 2147483648, %v14034_v41 }
 0x40c   : > { %v14246_v53 = vadd.f32 1.0, %v7937_v49  ;;  %v2669_v61 = vsub.f32 0.0, %v14213_v22  ;;  %vm4311_vm9 = vweird.f32 %v14105_v51  ;;  %vm4880_vm11 = vweird.f32 %v14048_v60  ;;  %v17149_v3 = vld [vmem:[#allocation98_spill] sm:$0xff] }
 0x40d   : > { %v4884_v38 = vand.u32 2147483647, %v14048_v60  ;;  %7944 = vpow2.f32 %v2965_v7  ;;  %6035 = vadd.xlane.f32.xlu0 %v17149_v3  ;;  %v14253_v15 = vpop.eup %7938  ;;  %v4309_v44 = vadd.f32 %v14105_v51, %v4308_v16  ;;  %v5029_v46 = vadd.f32 %v14114_v14, %v5028_v36  ;;  %v14264_v3 = vpop.f32.mrf.mxu3  ;;  %vm14270_vm15 = vmor %vm4310_vm7, %vm4311_vm9 }
 0x40e   : > { %vm5031_vm12 = vweird.f32 %v14114_v14  ;;  %vm4881_vm14 = vweird.f32 %v14126_v20  ;;  %v4879_v0 = vadd.f32 %v14126_v20, %v4878_v59  ;;  %v2945_v52 = vmul.f32 1.442695, %v2670_v56  ;;  %v14319_v16 = vpop.permute.xlu2 %1494 }
 0x40f   : > { %v14259_v49 = vpop.eup %7940  ;;  %v4337_v23 = vsub.f32 1.0, %v4336_v4  ;;  %7946 = vpow2.f32 %v2871_v47  ;;  %v4886_v36 = vand.u32 2147483648, %v14048_v60  ;;  %v4871_v50 = vand.u32 2147483648, %v14183_v39  ;;  %vm14279_vm3 = vmor %vm5030_vm8, %vm5031_vm12  ;;  %17161 = vst [vmem:[#allocation9_spill] sm:$0xff] %v14319_v16 }
 0x410   : > { %v14262_v7 = vpop.eup %7942  ;;  %7948 = vrcp.f32 %v14246_v53  ;;  %v2943_v4 = vmul.f32 1.442695, %v2669_v61  ;;  %v5037_v56 = vor.u32 1.1754944e-38, %v5036_v17  ;;  %vm14283_vm0 = vcmp.eq.f32.partialorder %v4884_v38, 8.507059e+37  ;;  %vm14302_vm2 = vmor %vm4880_vm11, %vm4881_vm14  ;;  %v17159_v38 = vld [vmem:[#allocation56_spill] sm:$0xff]  ;;  %v2426_v17 = vpop.f32.mrf.mxu2 }
 0x411   : > { %v4861_v47 = vmul.f32 %v14253_v15, %v14183_v39  ;;  %v14290_v34 = vadd.f32 %v2423_v28, %v17156_v12  ;;  %v4313_v61 = vsel %vm14270_vm15, %v14105_v51, %v4309_v44  ;;  %v5033_v41 = vsel %vm14279_vm3, %v14114_v14, %v5029_v46  ;;  %v17160_v51 = vld [vmem:[#allocation62_spill] sm:$0xff] }
 0x412   : > { %v14308_v12 = vadd.f32 %v17159_v38, %v13857_v40  ;;  %v4351_v28 = vmul.f32 %v14259_v49, %v14189_v58  ;;  %6051 = vadd.xlane.f32.xlu2 %v17160_v51  ;;  %v4883_v14 = vsel %vm14302_vm2, %v14126_v20, %v4879_v0  ;;  %7950 = vpow2.f32 %v2945_v52  ;;  %v14321_v40 = vpop.permute.xlu1 %1489  ;;  %6055 = vadd.xlane.f32.xlu1 %v13863_v25  ;;  %v14327_v20 = vpop.permute.xlu0 %1499 }
 0x413   : > { %v7945_v44 = vpop.eup %7944  ;;  %v4338_v60 = vmul.f32 %v14204_v35, %v4337_v23  ;;  %v4381_v46 = vmul.f32 %v14262_v7, %v14195_v6  ;;  %17162 = vst [vmem:[#allocation5_spill] sm:$0xff] %v14321_v40  ;;  %v4887_v59 = vor.u32 1.1754944e-38, %v4886_v36  ;;  %v14325_v51 = vor.u32 1.1754944e-38, %v4871_v50  ;;  %v17164_v36 = vld [vmem:[#allocation19_spill] sm:$0xff] }
 0x414   : > { %7952 = vpow2.f32 %v2943_v4  ;;  %17163 = vst [vmem:[#allocation61_spill] sm:$0xff] %v14327_v20  ;;  %v4318_v23 = vsel %vm14237_vm10, %v14215_v57, %v4313_v61  ;;  %v5038_v0 = vsel %vm14241_vm13, %v5037_v56, %v5033_v41  ;;  %v4862_v40 = vsub.f32 1.0, %v4861_v47 }
 0x415   : > { %v7947_v52 = vpop.eup %7946  ;;  %v2671_v25 = vsub.f32 0.0, %v14290_v34  ;;  %6041 = vadd.xlane.f32.xlu0 %v17164_v36  ;;  %v4888_v50 = vsel %vm14283_vm0, %v4887_v59, %v4883_v14  ;;  %v14340_v4 = vadd.f32 1.0, %v7945_v44  ;;  %v2683_v20 = vsub.f32 0.0, %v14308_v12  ;;  %v14361_v59 = vpop.f32.mrf.mxu3 }
 0x416   : > { %v14336_v38 = vpop.eup %7948  ;;  %v4352_v16 = vsub.f32 1.0, %v4351_v28  ;;  %v4339_v57 = vadd.f32 %v14204_v35, %v4338_v60  ;;  %vm4341_vm4 = vweird.f32 %v14204_v35  ;;  %v14346_v54 = vadd.f32 %v2426_v17, %v17165_v63  ;;  %17167 = vst [vmem:[#allocation10_spill] sm:$0xff] %v14361_v59  ;;  %v17186_v59 = vld [vmem:[#allocation15_spill] sm:$0xff] }
 0x417   : > { %v4382_v56 = vsub.f32 1.0, %v4381_v46  ;;  %v5669_v47 = vmul.f32 %v4318_v23, %v13838_v8  ;;  %v14350_v61 = vmul.f32 %v5038_v0, %v13847_v43  ;;  %v4346_v48 = vand.u32 2147483648, %v14112_v13 }
 0x418   : > { %v14353_v41 = vadd.f32 1.0, %v7947_v52  ;;  %v7951_v44 = vpop.eup %7950  ;;  %v14357_v28 = vmul.f32 %v14336_v38, %v14246_v53  ;;  %vm4340_vm5 = vweird.f32 %v14112_v13  ;;  %v4344_v14 = vand.u32 2147483647, %v14112_v13 }
 0x419   : > { %17166 = vst [vmem:[#allocation106_spill] sm:$0xff] %v14350_v61  ;;  %v2947_v60 = vmul.f32 1.442695, %v2671_v25  ;;  %v14364_v8 = vmul.f32 %v4888_v50, %v13855_v9  ;;  %v4863_v43 = vmul.f32 %v14253_v15, %v4862_v40  ;;  %vm14369_vm6 = vmor %vm4340_vm5, %vm4341_vm4  ;;  %v2971_v52 = vmul.f32 1.442695, %v2683_v20  ;;  %v17185_v61 = vld [vmem:[#allocation36_spill] sm:$0xff] }
 0x41a   : > { %v7953_v46 = vpop.eup %7952  ;;  %v4353_v23 = vmul.f32 %v14259_v49, %v4352_v16  ;;  %6057 = vadd.xlane.f32.xlu2 %v13886_v18  ;;  %vm4866_vm1 = vweird.f32 %v14253_v15  ;;  %7954 = vrcp.f32 %v14340_v4  ;;  %v4343_v9 = vsel %vm14369_vm6, %v14204_v35, %v4339_v57  ;;  %6061 = vadd.xlane.f32.xlu1 %v14134_v62  ;;  %v14391_v35 = vpop.permute.xlu2 %1509  ;;  %v17172_v62 = vld [vmem:[#allocation46_spill] sm:$0xff] }
 0x41b   : > { %17168 = vst [vmem:[#allocation42_spill] sm:$0xff] %v14364_v8  ;;  %v2672_v13 = vsub.f32 0.0, %v14346_v54  ;;  %v4383_v40 = vmul.f32 %v14262_v7, %v4382_v56  ;;  %v14384_v0 = vadd.f32 1.0, %v7951_v44  ;;  %v4347_v16 = vor.u32 1.1754944e-38, %v4346_v48  ;;  %v14393_v36 = vpop.permute.xlu1 %1504  ;;  %v14398_v63 = vpop.permute.xlu0 %1514 }
 0x41c   : > { %7956 = vrcp.f32 %v14353_v41  ;;  %vm4865_vm7 = vweird.f32 %v14183_v39  ;;  %v4322_v18 = vsub.f32 1.0, %v14357_v28  ;;  %v14389_v25 = vadd.f32 1.0, %v7953_v46  ;;  %17171 = vst [vmem:[#allocation26_spill] sm:$0xff] %v14393_v36 }
 0x41d   : > { %vm4345_vm8 = vcmp.eq.f32.partialorder %v4344_v14, 8.507059e+37  ;;  %7958 = vpow2.f32 %v2947_v60  ;;  %6047 = vadd.xlane.f32.xlu0 %v17172_v62  ;;  %v4354_v57 = vadd.f32 %v14259_v49, %v4353_v23  ;;  %vm4356_vm10 = vweird.f32 %v14259_v49  ;;  %17173 = vst [vmem:[#allocation31_spill] sm:$0xff] %v14398_v63  ;;  %v17174_v14 = vld [vmem:[#allocation25_spill] sm:$0xff]  ;;  %v17181_v62 = vld [vmem:[#allocation18_spill] sm:$0xff]  ;;  %v14447_v23 = vpop.f32.mrf.mxu3  ;;  %vm14462_vm2 = vmor %vm4865_vm7, %vm4866_vm1 }
 0x41e   : > { %v4348_v50 = vsel %vm4345_vm8, %v4347_v16, %v4343_v9  ;;  %7960 = vpow2.f32 %v2971_v52  ;;  %v4361_v56 = vand.u32 2147483648, %v14189_v58  ;;  %v2949_v48 = vmul.f32 1.442695, %v2672_v13  ;;  %v17180_v16 = vld [vmem:[#allocation55_spill] sm:$0xff]  ;;  %17184 = vst [vmem:[#allocation34_spill] sm:$0xff] %v14447_v23 }
 0x41f   : > { %v4384_v44 = vadd.f32 %v14262_v7, %v4383_v40  ;;  %vm4386_vm13 = vweird.f32 %v14262_v7  ;;  %vm4355_vm9 = vweird.f32 %v14189_v58  ;;  %v4359_v28 = vand.u32 2147483647, %v14189_v58 }
 0x420   : > { %v14407_v60 = vadd.f32 %v17174_v14, %v13938_v45  ;;  %v4391_v46 = vand.u32 2147483648, %v14195_v6  ;;  %v14410_v17 = vpop.eup %7954  ;;  %7962 = vrcp.f32 %v14384_v0  ;;  %v5671_v52 = vmul.f32 %v4348_v50, %v13921_v31  ;;  %vm14414_vm11 = vmor %vm4355_vm9, %vm4356_vm10 }
 0x421   : > { %vm4385_vm12 = vweird.f32 %v14195_v6  ;;  %v4389_v58 = vand.u32 2147483647, %v14195_v6  ;;  %v17177_v45 = vand.u32 2147483647, %v14183_v39  ;;  %v4331_v40 = vand.u32 2147483648, %v14246_v53 }
 0x422   : > { %v14420_v9 = vpop.eup %7956  ;;  %7964 = vrcp.f32 %v14389_v25  ;;  %v4358_v31 = vsel %vm14414_vm11, %v14259_v49, %v4354_v57  ;;  %v14435_v50 = vadd.f32 %v17181_v62, %v17180_v16  ;;  %vm14439_vm15 = vmor %vm4385_vm12, %vm4386_vm13  ;;  %6063 = vadd.xlane.f32.xlu2 %v5669_v47  ;;  %v4362_v20 = vor.u32 1.1754944e-38, %v4361_v56  ;;  %6067 = vadd.xlane.f32.xlu1 %v5671_v52 }
 0x423   : > { %vm14424_vm14 = vcmp.eq.f32.partialorder %v17177_v45, 8.507059e+37  ;;  %v7959_v14 = vpop.eup %7958  ;;  %v4864_v45 = vadd.f32 %v14253_v15, %v4863_v43  ;;  %7966 = vpow2.f32 %v2949_v48  ;;  %v4388_v49 = vsel %vm14439_vm15, %v14262_v7, %v4384_v44  ;;  %v17187_v7 = vld [vmem:[#allocation48_spill] sm:$0xff] }
 0x424   : > { %v7961_v57 = vpop.eup %7960  ;;  %v4323_v16 = vmul.f32 %v14336_v38, %v4322_v18  ;;  %vm4360_vm3 = vcmp.eq.f32.partialorder %v4359_v28, 8.507059e+37  ;;  %v2686_v62 = vsub.f32 0.0, %v14407_v60  ;;  %v4392_v63 = vor.u32 1.1754944e-38, %v4391_v46 }
 0x425   : > { %v4363_v47 = vsel %vm4360_vm3, %v4362_v20, %v4358_v31  ;;  %v14453_v43 = vadd.f32 %v17186_v59, %v17185_v61  ;;  %v4366_v56 = vmul.f32 %v14420_v9, %v14353_v41  ;;  %vm4390_vm0 = vcmp.eq.f32.partialorder %v4389_v58, 8.507059e+37  ;;  %6053 = vadd.xlane.f32.xlu0 %v17187_v7  ;;  %v14485_v58 = vpop.permute.xlu2 %1524  ;;  %v14487_v31 = vpop.permute.xlu1 %1519 }
 0x426   : > { %v5071_v20 = vmul.f32 %v14410_v17, %v14340_v4  ;;  %v14468_v48 = vadd.f32 1.0, %v7959_v14  ;;  %v2676_v61 = vsub.f32 0.0, %v14435_v50  ;;  %v4393_v59 = vsel %vm4390_vm0, %v4392_v63, %v4388_v49  ;;  %v14471_v44 = vpop.eup %7962  ;;  %17193 = vst [vmem:[#allocation67_spill] sm:$0xff] %v14485_v58  ;;  %v17216_v58 = vld [vmem:[#allocation81_spill] sm:$0xff] }
 0x427   : > { %v4868_v28 = vsel %vm14462_vm2, %v14253_v15, %v4864_v45  ;;  %vm4325_vm4 = vweird.f32 %v14246_v53  ;;  %v17190_v39 = vand.u32 2147483647, %v14246_v53  ;;  %v14483_v52 = vadd.f32 1.0, %v7961_v57  ;;  %17194 = vst [vmem:[#allocation23_spill] sm:$0xff] %v14487_v31  ;;  %v14494_v45 = vpop.permute.xlu0 %1529 }
 0x428   : > { %v14489_v63 = vpop.eup %7964  ;;  %v4324_v6 = vadd.f32 %v14336_v38, %v4323_v16  ;;  %vm4326_vm6 = vweird.f32 %v14336_v38  ;;  %v5672_v15 = vmul.f32 %v4363_v47, %v13994_v24  ;;  %v2977_v14 = vmul.f32 1.442695, %v2686_v62  ;;  %17195 = vst [vmem:[#allocation70_spill] sm:$0xff] %v14494_v45 }
 0x429   : > { %vm14479_vm5 = vcmp.eq.f32.partialorder %v17190_v39, 8.507059e+37  ;;  %v7967_v49 = vpop.eup %7966  ;;  %v4332_v7 = vor.u32 1.1754944e-38, %v4331_v40  ;;  %v2675_v57 = vsub.f32 0.0, %v14453_v43  ;;  %v4367_v18 = vsub.f32 1.0, %v4366_v56  ;;  %vm14508_vm1 = vmor %vm4325_vm4, %vm4326_vm6 }
 0x42a   : > { %v5674_v39 = vmul.f32 %v4393_v59, %v13998_v5  ;;  %v5072_v36 = vsub.f32 1.0, %v5071_v20  ;;  %v4921_v31 = vmul.f32 %v14471_v44, %v14384_v0  ;;  %7968 = vrcp.f32 %v14468_v48  ;;  %6069 = vadd.xlane.f32.xlu2 %v5672_v15  ;;  %v14526_v59 = vpop.f32.mrf.mxu3 }
 0x42b   : > { %v2957_v16 = vmul.f32 1.442695, %v2676_v61  ;;  %v4873_v24 = vsel %vm14424_vm14, %v14325_v51, %v4868_v28  ;;  %v5081_v5 = vand.u32 2147483648, %v14340_v4  ;;  %v4906_v62 = vmul.f32 %v14489_v63, %v14389_v25  ;;  %v2429_v61 = vpop.f32.mrf.mxu2 }
 0x42c   : > { %7970 = vrcp.f32 %v14483_v52  ;;  %6073 = vadd.xlane.f32.xlu1 %v5674_v39  ;;  %v4328_v51 = vsel %vm14508_vm1, %v14336_v38, %v4324_v6  ;;  %v4931_v13 = vand.u32 2147483648, %v14384_v0  ;;  %v14520_v47 = vadd.f32 1.0, %v7967_v49 }
 0x42d   : > { %7972 = vpow2.f32 %v2977_v14  ;;  %vm5075_vm7 = vweird.f32 %v14340_v4  ;;  %v5079_v53 = vand.u32 2147483647, %v14340_v4  ;;  %v2955_v56 = vmul.f32 1.442695, %v2675_v57  ;;  %6059 = vadd.xlane.f32.xlu0 %v14043_v29 }
 0x42e   : > { %v4368_v20 = vmul.f32 %v14420_v9, %v4367_v18  ;;  %v14529_v28 = vmul.f32 %v4873_v24, %v13980_v27  ;;  %v5073_v38 = vmul.f32 %v14410_v17, %v5072_v36  ;;  %v4922_v6 = vsub.f32 1.0, %v4921_v31  ;;  %v17199_v27 = vld [vmem:[#allocation64_spill] sm:$0xff]  ;;  %v14557_v24 = vpop.permute.xlu1 %1534 }
 0x42f   : > { %7974 = vpow2.f32 %v2957_v16  ;;  %v4333_v15 = vsel %vm14479_vm5, %v4332_v7, %v4328_v51  ;;  %v14534_v14 = vor.u32 1.1754944e-38, %v5081_v5  ;;  %v4929_v49 = vand.u32 2147483647, %v14384_v0  ;;  %v17200_v7 = vld [vmem:[#allocation86_spill] sm:$0xff]  ;;  %v14555_v16 = vpop.permute.xlu2 %1539  ;;  %17202 = vst [vmem:[#allocation79_spill] sm:$0xff] %v14557_v24  ;;  %v17214_v24 = vld [vmem:[#allocation33_spill] sm:$0xff] }
 0x430   : > { %17198 = vst [vmem:[#allocation44_spill] sm:$0xff] %v14529_v28  ;;  %v4907_v57 = vsub.f32 1.0, %v4906_v62  ;;  %v14537_v18 = vpop.eup %7968  ;;  %vm5076_vm8 = vweird.f32 %v14410_v17  ;;  %v14540_v29 = vor.u32 1.1754944e-38, %v4931_v13  ;;  %7976 = vrcp.f32 %v14520_v47 }
 0x431   : > { %v14544_v36 = vadd.f32 %v2429_v61, %v17199_v27  ;;  %vm4925_vm10 = vweird.f32 %v14384_v0  ;;  %7978 = vpow2.f32 %v2955_v56  ;;  %v4369_v46 = vadd.f32 %v14420_v9, %v4368_v20  ;;  %17201 = vst [vmem:[#allocation72_spill] sm:$0xff] %v14555_v16  ;;  %v14563_v56 = vpop.permute.xlu0 %1544  ;;  %v17204_v20 = vld [vmem:[#allocation6_spill] sm:$0xff]  ;;  %vm14591_vm15 = vmor %vm5075_vm7, %vm5076_vm8 }
 0x432   : > { %v14546_v31 = vpop.eup %7970  ;;  %vm4371_vm13 = vweird.f32 %v14420_v9  ;;  %v14553_v39 = vadd.f32 %v17200_v7, %v14036_v37  ;;  %v5670_v5 = vmul.f32 %v4333_v15, %v14059_v21  ;;  %v5074_v62 = vadd.f32 %v14410_v17, %v5073_v38  ;;  %17203 = vst [vmem:[#allocation53_spill] sm:$0xff] %v14563_v56  ;;  %6075 = vadd.xlane.f32.xlu2 %v17204_v20  ;;  %v17207_v38 = vld [vmem:[#allocation11_spill] sm:$0xff] }
 0x433   : > { %v7973_v40 = vpop.eup %7972  ;;  %v4923_v51 = vmul.f32 %v14471_v44, %v4922_v6  ;;  %v4376_v13 = vand.u32 2147483648, %v14353_v41  ;;  %vm14566_vm9 = vcmp.eq.f32.partialorder %v5079_v53, 8.507059e+37  ;;  %v4908_v61 = vmul.f32 %v14489_v63, %v4907_v57 }
 0x434   : > { %v4936_v27 = vmul.f32 %v14537_v18, %v14468_v48  ;;  %vm4370_vm11 = vweird.f32 %v14353_v41  ;;  %v4374_v21 = vand.u32 2147483647, %v14353_v41  ;;  %6079 = vadd.xlane.f32.xlu1 %v17207_v38  ;;  %vm4926_vm12 = vweird.f32 %v14471_v44  ;;  %v17217_v41 = vld [vmem:[#allocation27_spill] sm:$0xff] }
 0x435   : > { %v7975_v6 = vpop.eup %7974  ;;  %v4916_v15 = vand.u32 2147483648, %v14389_v25  ;;  %v5116_v53 = vmul.f32 %v14546_v31, %v14483_v52  ;;  %vm14582_vm14 = vmor %vm4370_vm11, %vm4371_vm13  ;;  %v2673_v7 = vsub.f32 0.0, %v14544_v36  ;;  %vm14595_vm3 = vcmp.eq.f32.partialorder %v4929_v49, 8.507059e+37  ;;  %6065 = vadd.xlane.f32.xlu0 %v5670_v5 }
 0x436   : > { %v14599_v38 = vadd.f32 1.0, %v7973_v40  ;;  %v4373_v56 = vsel %vm14582_vm14, %v14420_v9, %v4369_v46  ;;  %v2689_v45 = vsub.f32 0.0, %v14553_v39  ;;  %v14607_v28 = vadd.f32 %v17214_v24, %v13754_v30  ;;  %v14609_v4 = vpop.eup %7976  ;;  %v14619_v30 = vpop.f32.mrf.mxu3  ;;  %vm14633_vm4 = vmor %vm4925_vm10, %vm4926_vm12 }
 0x437   : > { %v5078_v49 = vsel %vm14591_vm15, %v14410_v17, %v5074_v62  ;;  %v4924_v40 = vadd.f32 %v14471_v44, %v4923_v51  ;;  %vm4911_vm0 = vweird.f32 %v14489_v63  ;;  %v4377_v23 = vor.u32 1.1754944e-38, %v4376_v13  ;;  %v7979_v57 = vpop.eup %7978  ;;  %17215 = vst [vmem:[#allocation29_spill] sm:$0xff] %v14619_v30 }
 0x438   : > { %v4909_v9 = vadd.f32 %v14489_v63, %v4908_v61  ;;  %v4937_v46 = vsub.f32 1.0, %v4936_v27  ;;  %v14617_v16 = vadd.f32 1.0, %v7975_v6  ;;  %vm4375_vm2 = vcmp.eq.f32.partialorder %v4374_v21, 8.507059e+37  ;;  %v17220_v27 = vld [vmem:[#allocation100_spill] sm:$0xff]  ;;  %v14654_v6 = vpop.permute.xlu2 %1554 }
 0x439   : > { %v5117_v24 = vsub.f32 1.0, %v5116_v53  ;;  %v4378_v5 = vsel %vm4375_vm2, %v4377_v23, %v4373_v56  ;;  %v2951_v8 = vmul.f32 1.442695, %v2673_v7  ;;  %v14623_v17 = vadd.f32 %v17217_v41, %v17216_v58  ;;  %v17224_v53 = vld [vmem:[#allocation20_spill] sm:$0xff] }
 0x43a   : > { %v4951_v62 = vmul.f32 %v14609_v4, %v14520_v47  ;;  %7980 = vrcp.f32 %v14599_v38  ;;  %v2983_v51 = vmul.f32 1.442695, %v2689_v45  ;;  %v2679_v13 = vsub.f32 0.0, %v14607_v28  ;;  %6081 = vadd.xlane.f32.xlu2 %v17220_v27 }
 0x43b   : > { %vm4910_vm5 = vweird.f32 %v14389_v25  ;;  %v4914_v23 = vand.u32 2147483647, %v14389_v25  ;;  %v4917_v58 = vor.u32 1.1754944e-38, %v4916_v15  ;;  %v14639_v56 = vadd.f32 1.0, %v7979_v57  ;;  %v14656_v15 = vpop.permute.xlu1 %1549  ;;  %v14666_v57 = vpop.permute.xlu0 %1559 }
 0x43c   : > { %v4928_v45 = vsel %vm14633_vm4, %v14471_v44, %v4924_v40  ;;  %vm14647_vm6 = vmor %vm4910_vm5, %vm4911_vm0  ;;  %v4938_v21 = vmul.f32 %v14537_v18, %v4937_v46  ;;  %7982 = vrcp.f32 %v14617_v16  ;;  %v5673_v25 = vmul.f32 %v4378_v5, %v14174_v42  ;;  %17223 = vst [vmem:[#allocation21_spill] sm:$0xff] %v14656_v15  ;;  %6085 = vadd.xlane.f32.xlu1 %v17224_v53  ;;  %v5758_v15 = vld [vmem:[#allocation2 + $0x18] sm:$0xff] }
 0x43d   : > { %v5083_v44 = vsel %vm14566_vm9, %v14534_v14, %v5078_v49  ;;  %v4913_v7 = vsel %vm14647_vm6, %v14489_v63, %v4909_v9  ;;  %7984 = vpow2.f32 %v2951_v8  ;;  %v2678_v40 = vsub.f32 0.0, %v14623_v17  ;;  %17225 = vst [vmem:[#allocation43_spill] sm:$0xff] %v14666_v57 }
 0x43e   : > { %v5118_v42 = vmul.f32 %v14546_v31, %v5117_v24  ;;  %v4952_v46 = vsub.f32 1.0, %v4951_v62  ;;  %7986 = vpow2.f32 %v2983_v51  ;;  %v2963_v5 = vmul.f32 1.442695, %v2679_v13  ;;  %6071 = vadd.xlane.f32.xlu0 %v5673_v25  ;;  %v14689_v61 = vpop.f32.mrf.mxu3  ;;  %v17231_v25 = vld [vmem:[#allocation115_spill] sm:$0xff] }
 0x43f   : > { %v4933_v37 = vsel %vm14595_vm3, %v14540_v29, %v4928_v45  ;;  %vm4915_vm1 = vcmp.eq.f32.partialorder %v4914_v23, 8.507059e+37  ;;  %v4944_v14 = vand.u32 2147483647, %v14468_v48  ;;  %7988 = vrcp.f32 %v14639_v56  ;;  %v17230_v45 = vld [vmem:[#allocation103_spill] sm:$0xff] }
 0x440   : > { %v14674_v8 = vpop.eup %7980  ;;  %v4918_v63 = vsel %vm4915_vm1, %v4917_v58, %v4913_v7  ;;  %v4939_v49 = vadd.f32 %v14537_v18, %v4938_v21  ;;  %vm4941_vm7 = vweird.f32 %v14537_v18  ;;  %v4946_v9 = vand.u32 2147483648, %v14468_v48 }
 0x441   : > { %v14680_v24 = vmul.f32 %v5083_v44, %v14149_v32  ;;  %vm4940_vm8 = vweird.f32 %v14468_v48  ;;  %v5126_v29 = vand.u32 2147483648, %v14483_v52  ;;  %v2961_v20 = vmul.f32 1.442695, %v2678_v40 }
 0x442   : > { %v14684_v41 = vpop.eup %7982  ;;  %v5119_v62 = vadd.f32 %v14546_v31, %v5118_v42  ;;  %vm5121_vm10 = vweird.f32 %v14546_v31  ;;  %v4953_v51 = vmul.f32 %v14609_v4, %v4952_v46  ;;  %7990 = vpow2.f32 %v2963_v5  ;;  %vm14699_vm13 = vmor %vm4940_vm8, %vm4941_vm7  ;;  %6087 = vadd.xlane.f32.xlu2 %v17230_v45  ;;  %v2432_v42 = vpop.f32.mrf.mxu2 }
 0x443   : > { %v7985_v13 = vpop.eup %7984  ;;  %v14692_v32 = vmul.f32 %v4933_v37, %v14201_v55  ;;  %v14695_v48 = vmul.f32 %v4918_v63, %v14213_v22  ;;  %vm14703_vm9 = vcmp.eq.f32.partialorder %v4944_v14, 8.507059e+37  ;;  %v5161_v27 = vmul.f32 %v14674_v8, %v14599_v38  ;;  %v14733_v37 = vpop.permute.xlu2 %1569  ;;  %v17236_v63 = vld [vmem:[#allocation111_spill] sm:$0xff] }
 0x444   : > { %v7987_v55 = vpop.eup %7986  ;;  %v4943_v22 = vsel %vm14699_vm13, %v14537_v18, %v4939_v49  ;;  %v4947_v0 = vor.u32 1.1754944e-38, %v4946_v9  ;;  %vm5120_vm11 = vweird.f32 %v14483_v52  ;;  %v5124_v21 = vand.u32 2147483647, %v14483_v52  ;;  %6091 = vadd.xlane.f32.xlu1 %v17231_v25  ;;  %17234 = vst [vmem:[#allocation28_spill] sm:$0xff] %v14733_v37  ;;  %v14735_v14 = vpop.permute.xlu1 %1564 }
 0x445   : > { %v14716_v53 = vpop.eup %7988  ;;  %vm14720_vm12 = vmor %vm5120_vm11, %vm5121_vm10  ;;  %v5127_v7 = vor.u32 1.1754944e-38, %v5126_v29  ;;  %v4959_v40 = vand.u32 2147483647, %v14520_v47  ;;  %v4961_v18 = vand.u32 2147483648, %v14520_v47  ;;  %7992 = vpow2.f32 %v2961_v20  ;;  %17235 = vst [vmem:[#allocation68_spill] sm:$0xff] %v14735_v14  ;;  %v14744_v20 = vpop.permute.xlu0 %1574 }
 0x446   : > { %v5123_v52 = vsel %vm14720_vm12, %v14546_v31, %v5119_v62  ;;  %v4954_v46 = vadd.f32 %v14609_v4, %v4953_v51  ;;  %vm4956_vm14 = vweird.f32 %v14609_v4  ;;  %v14731_v5 = vadd.f32 1.0, %v7985_v13  ;;  %6077 = vadd.xlane.f32.xlu0 %v17236_v63  ;;  %17237 = vst [vmem:[#allocation12_spill] sm:$0xff] %v14744_v20  ;;  %v17238_v13 = vld [vmem:[#allocation76_spill] sm:$0xff] }
 0x447   : > { %v4948_v49 = vsel %vm14703_vm9, %v4947_v0, %v4943_v22  ;;  %v5162_v9 = vsub.f32 1.0, %v5161_v27  ;;  %v5011_v29 = vmul.f32 %v14684_v41, %v14617_v16  ;;  %v14742_v31 = vadd.f32 1.0, %v7987_v55 }
 0x448   : > { %v7991_v62 = vpop.eup %7990  ;;  %vm5125_vm15 = vcmp.eq.f32.partialorder %v5124_v21, 8.507059e+37  ;;  %vm4955_vm3 = vweird.f32 %v14520_v47  ;;  %v4996_v51 = vmul.f32 %v14716_v53, %v14639_v56  ;;  %v14750_v23 = vadd.f32 %v2432_v42, %v17238_v13  ;;  %v17245_v42 = vld [vmem:[#allocation32_spill] sm:$0xff]  ;;  %v17249_v13 = vld [vmem:[#allocation47_spill] sm:$0xff] }
 0x449   : > { %v5128_v58 = vsel %vm5125_vm15, %v5127_v7, %v5123_v52  ;;  %vm14754_vm0 = vmor %vm4955_vm3, %vm4956_vm14  ;;  %vm14758_vm2 = vcmp.eq.f32.partialorder %v4959_v40, 8.507059e+37  ;;  %v4962_v55 = vor.u32 1.1754944e-38, %v4961_v18  ;;  %v14764_v47 = vadd.f32 %v14000_v26, %v14122_v11  ;;  %v17243_v26 = vld [vmem:[#allocation14_spill] sm:$0xff]  ;;  %v14785_v52 = vpop.f32.mrf.mxu3 }
 0x44a   : > { %v14767_v22 = vmul.f32 %v4948_v49, %v14290_v34  ;;  %v4958_v0 = vsel %vm14754_vm0, %v14609_v4, %v4954_v46  ;;  %v5169_v21 = vand.u32 2147483647, %v14599_v38  ;;  %7994 = vrcp.f32 %v14731_v5  ;;  %6093 = vadd.xlane.f32.xlu2 %v17243_v26  ;;  %v17246_v49 = vld [vmem:[#allocation52_spill] sm:$0xff] }
 0x44b   : > { %v7993_v25 = vpop.eup %7992  ;;  %v5163_v44 = vmul.f32 %v14674_v8, %v5162_v9  ;;  %v5012_v7 = vsub.f32 1.0, %v5011_v29  ;;  %7996 = vrcp.f32 %v14742_v31  ;;  %v14776_v40 = vadd.f32 1.0, %v7991_v62  ;;  %v5918_v27 = vpop.xlane.xlu2 %5917 }
 0x44c   : > { %v14780_v34 = vmul.f32 %v5128_v58, %v14308_v12  ;;  %v5171_v11 = vand.u32 2147483648, %v14599_v38  ;;  %v4997_v4 = vsub.f32 1.0, %v4996_v51  ;;  %v2674_v18 = vsub.f32 0.0, %v14750_v23  ;;  %6097 = vadd.xlane.f32.xlu1 %v17245_v42  ;;  %v5916_v26 = vpop.xlane.xlu1 %5915  ;;  %v17250_v42 = vld [vmem:[#allocation114_spill] sm:$0xff] }
 0x44d   : > { %vm5165_vm4 = vweird.f32 %v14599_v38  ;;  %v5021_v46 = vand.u32 2147483648, %v14617_v16  ;;  %v2692_v63 = vsub.f32 0.0, %v14764_v47  ;;  %v14792_v9 = vadd.f32 %v17246_v49, %v13859_v19  ;;  %v5756_v49 = vld [vmem:[#allocation2 + $0x8] sm:$0xff] }
 0x44e   : > { %17244 = vst [vmem:[#allocation16_spill] sm:$0xff] %v14780_v34  ;;  %v4963_v12 = vsel %vm14758_vm2, %v4962_v55, %v4958_v0  ;;  %vm14796_vm5 = vcmp.eq.f32.partialorder %v5169_v21, 8.507059e+37  ;;  %v5019_v62 = vand.u32 2147483647, %v14617_v16  ;;  %v14801_v51 = vadd.f32 1.0, %v7993_v25  ;;  %6083 = vadd.xlane.f32.xlu0 %v17250_v42  ;;  %v5920_v55 = vpop.xlane.xlu0 %5919  ;;  %v17256_v34 = vld [vmem:[#allocation63_spill] sm:$0xff] }
 0x44f   : > { %v14805_v58 = vadd.f32 %v17249_v13, %v13766_v10  ;;  %v5164_v19 = vadd.f32 %v14674_v8, %v5163_v44  ;;  %vm5166_vm6 = vweird.f32 %v14674_v8  ;;  %v5013_v45 = vmul.f32 %v14684_v41, %v5012_v7 }
 0x450   : > { %7998 = vrcp.f32 %v14776_v40  ;;  %v14812_v0 = vpop.eup %7994  ;;  %v5172_v21 = vor.u32 1.1754944e-38, %v5171_v11  ;;  %vm5015_vm1 = vweird.f32 %v14617_v16  ;;  %v4998_v10 = vmul.f32 %v14716_v53, %v4997_v4  ;;  %vm14828_vm7 = vmor %vm5165_vm4, %vm5166_vm6  ;;  %v17265_v4 = vld [vmem:[#allocation69_spill] sm:$0xff] }
 0x451   : > { %v2953_v25 = vmul.f32 1.442695, %v2674_v18  ;;  %v14816_v13 = vpop.eup %7996  ;;  %v14819_v44 = vmul.f32 %v4963_v12, %v14346_v54  ;;  %v14821_v42 = vor.u32 1.1754944e-38, %v5021_v46  ;;  %v2989_v7 = vmul.f32 1.442695, %v2692_v63  ;;  %v5755_v18 = vld [vmem:[#allocation2] sm:$0xff] }
 0x452   : > { %v2682_v20 = vsub.f32 0.0, %v14792_v9  ;;  %vm5016_vm8 = vweird.f32 %v14684_v41  ;;  %vm14833_vm10 = vcmp.eq.f32.partialorder %v5019_v62, 8.507059e+37  ;;  %8000 = vrcp.f32 %v14801_v51  ;;  %v5757_v46 = vld [vmem:[#allocation2 + $0x10] sm:$0xff]  ;;  %v17255_v62 = vld [vmem:[#allocation109_spill] sm:$0xff] }
 0x453   : > { %v2681_v54 = vsub.f32 0.0, %v14805_v58  ;;  %vm6395_vm13 = vcmask 7168   ;;  %v5168_v38 = vsel %vm14828_vm7, %v14674_v8, %v5164_v19  ;;  %v5014_v63 = vadd.f32 %v14684_v41, %v5013_v45  ;;  %6099 = vadd.xlane.f32.xlu2 %v17255_v62  ;;  %vm14858_vm11 = vmor %vm5015_vm1, %vm5016_vm8 }
 0x454   : > { %vm5001_vm9 = vweird.f32 %v14716_v53  ;;  %v6236_v12 = vadd.f32 %v5918_v27, %v5756_v49  ;;  %v4999_v57 = vadd.f32 %v14716_v53, %v4998_v10  ;;  %v4966_v37 = vmul.f32 %v14812_v0, %v14731_v5  ;;  %6103 = vadd.xlane.f32.xlu1 %v17256_v34  ;;  %v5759_v49 = vld [vmem:[#allocation2 + $0x20] sm:$0xff]  ;;  %v5761_v10 = vld [vmem:[#allocation2 + $0x30] sm:$0xff] }
 0x455   : > { %v5206_v14 = vmul.f32 %v14816_v13, %v14742_v31  ;;  %8002 = vpow2.f32 %v2953_v25  ;;  %v2969_v19 = vmul.f32 1.442695, %v2682_v20  ;;  %v6235_v27 = vadd.f32 %v5916_v26, %v5755_v18  ;;  %v5924_v26 = vpop.xlane.xlu1 %5923  ;;  %v14866_v18 = vpop.f32.mrf.mxu3 }
 0x456   : > { %v14851_v8 = vpop.eup %7998  ;;  %8004 = vpow2.f32 %v2989_v7  ;;  %6397 = vst.msk [vmem:[#allocation2 + $0x8] sm:$0xff] %vm6395_vm13, %v6236_v12  ;;  %v6237_v45 = vadd.f32 %v5920_v55, %v5757_v46  ;;  %vm5000_vm12 = vweird.f32 %v14639_v56  ;;  %v5004_v34 = vand.u32 2147483647, %v14639_v56  ;;  %v5922_v7 = vpop.xlane.xlu2 %5921  ;;  %v17259_v55 = vld [vmem:[#allocation7_spill] sm:$0xff] }
 0x457   : > { %v5006_v20 = vand.u32 2147483648, %v14639_v56  ;;  %v2967_v25 = vmul.f32 1.442695, %v2681_v54  ;;  %6089 = vadd.xlane.f32.xlu0 %v17259_v55  ;;  %17260 = vst [vmem:[#allocation78_spill] sm:$0xff] %v14866_v18  ;;  %v5173_v16 = vsel %vm14796_vm5, %v5172_v21, %v5168_v38  ;;  %v5018_v46 = vsel %vm14858_vm11, %v14684_v41, %v5014_v63  ;;  %v5928_v62 = vpop.xlane.xlu0 %5927  ;;  %vm14884_vm14 = vmor %vm5000_vm12, %vm5001_vm9 }
 0x458   : > { %v14875_v12 = vadd.f32 %v14264_v3, %v14219_v2  ;;  %6396 = vst.msk [vmem:[#allocation2] sm:$0xff] %vm6395_vm13, %v6235_v27  ;;  %v6238_v54 = vadd.f32 %v5922_v7, %v5758_v15  ;;  %v14878_v30 = vpop.eup %8000  ;;  %v4976_v41 = vand.u32 2147483648, %v14731_v5  ;;  %v5056_v2 = vmul.f32 %v14851_v8, %v14776_v40 }
 0x459   : > { %6398 = vst.msk [vmem:[#allocation2 + $0x10] sm:$0xff] %vm6395_vm13, %v6237_v45  ;;  %v6239_v3 = vadd.f32 %v5924_v26, %v5759_v49  ;;  %v6241_v15 = vadd.f32 %v5928_v62, %v5761_v10  ;;  %v5003_v21 = vsel %vm14884_vm14, %v14716_v53, %v4999_v57  ;;  %v4967_v38 = vsub.f32 1.0, %v4966_v37  ;;  %v5760_v10 = vld [vmem:[#allocation2 + $0x28] sm:$0xff] }
 0x45a   : > { %v5207_v63 = vsub.f32 1.0, %v5206_v14  ;;  %8006 = vpow2.f32 %v2969_v19  ;;  %6399 = vst.msk [vmem:[#allocation2 + $0x18] sm:$0xff] %vm6395_vm13, %v6238_v54  ;;  %v14897_v27 = vmul.f32 %v5173_v16, %v14407_v60  ;;  %vm5005_vm15 = vcmp.eq.f32.partialorder %v5004_v34, 8.507059e+37  ;;  %v17264_v60 = vld [vmem:[#allocation113_spill] sm:$0xff]  ;;  %v5762_v34 = vld [vmem:[#allocation2 + $0x38] sm:$0xff] }
 0x45b   : > { %v8003_v56 = vpop.eup %8002  ;;  %v5007_v11 = vor.u32 1.1754944e-38, %v5006_v20  ;;  %8008 = vpow2.f32 %v2967_v25  ;;  %6400 = vst.msk [vmem:[#allocation2 + $0x20] sm:$0xff] %vm6395_vm13, %v6239_v3  ;;  %v14903_v49 = vsel %vm14833_vm10, %v14821_v42, %v5018_v46  ;;  %vm4970_vm3 = vweird.f32 %v14731_v5  ;;  %6105 = vadd.xlane.f32.xlu2 %v17264_v60  ;;  %v17266_v20 = vld [vmem:[#allocation59_spill] sm:$0xff]  ;;  %v5764_v16 = vld [vmem:[#allocation2 + $0x48] sm:$0xff] }
 0x45c   : > { %17263 = vst [vmem:[#allocation35_spill] sm:$0xff] %v14897_v27  ;;  %v8005_v45 = vpop.eup %8004  ;;  %v5041_v57 = vmul.f32 %v14878_v30, %v14801_v51  ;;  %v2695_v53 = vsub.f32 0.0, %v14875_v12  ;;  %v4974_v14 = vand.u32 2147483647, %v14731_v5  ;;  %v5057_v19 = vsub.f32 1.0, %v5056_v2  ;;  %6109 = vadd.xlane.f32.xlu1 %v17266_v20  ;;  %v17267_v2 = vld [vmem:[#allocation60_spill] sm:$0xff] }
 0x45d   : > { %6402 = vst.msk [vmem:[#allocation2 + $0x30] sm:$0xff] %vm6395_vm13, %v6241_v15  ;;  %v14911_v37 = vsel %vm5005_vm15, %v5007_v11, %v5003_v21  ;;  %v14916_v42 = vadd.f32 %v17265_v4, %v13940_v1  ;;  %v4968_v25 = vmul.f32 %v14812_v0, %v4967_v38  ;;  %v14920_v7 = vor.u32 1.1754944e-38, %v4976_v41  ;;  %v5930_v29 = vpop.xlane.xlu1 %5929 }
 0x45e   : > { %v5208_v26 = vmul.f32 %v14816_v13, %v5207_v63  ;;  %v14923_v55 = vadd.f32 1.0, %v8003_v56  ;;  %vm5210_vm0 = vweird.f32 %v14742_v31  ;;  %v5214_v46 = vand.u32 2147483647, %v14742_v31  ;;  %v5926_v62 = vpop.xlane.xlu2 %5925 }
 0x45f   : > { %v5216_v1 = vand.u32 2147483648, %v14742_v31  ;;  %v14928_v54 = vadd.f32 1.0, %v8005_v45  ;;  %6095 = vadd.xlane.f32.xlu0 %v17267_v2  ;;  %v5042_v41 = vsub.f32 1.0, %v5041_v57  ;;  %v2995_v15 = vmul.f32 1.442695, %v2695_v53  ;;  %v5934_v63 = vpop.xlane.xlu0 %5933  ;;  %v14934_v45 = vpop.f32.mrf.mxu3 }
 0x460   : > { %v8007_v3 = vpop.eup %8006  ;;  %v6240_v21 = vadd.f32 %v5926_v62, %v5760_v10  ;;  %v6242_v38 = vadd.f32 %v5930_v29, %v5762_v34  ;;  %vm4971_vm2 = vweird.f32 %v14812_v0  ;;  %v5058_v11 = vmul.f32 %v14851_v8, %v5057_v19  ;;  %v17270_v19 = vld [vmem:[#allocation65_spill] sm:$0xff]  ;;  %v5763_v29 = vld [vmem:[#allocation2 + $0x40] sm:$0xff] }
 0x461   : > { %v8009_v56 = vpop.eup %8008  ;;  %v2685_v60 = vsub.f32 0.0, %v14916_v42  ;;  %v6244_v4 = vadd.f32 %v5934_v63, %v5764_v16  ;;  %v4969_v20 = vadd.f32 %v14812_v0, %v4968_v25  ;;  %vm14937_vm4 = vcmp.eq.f32.partialorder %v4974_v14, 8.507059e+37  ;;  %vm14958_vm1 = vmor %vm4970_vm3, %vm4971_vm2 }
 0x462   : > { %v5209_v57 = vadd.f32 %v14816_v13, %v5208_v26  ;;  %vm5211_vm5 = vweird.f32 %v14816_v13  ;;  %8010 = vrcp.f32 %v14923_v55  ;;  %6401 = vst.msk [vmem:[#allocation2 + $0x28] sm:$0xff] %vm6395_vm13, %v6240_v21  ;;  %vm5060_vm6 = vweird.f32 %v14776_v40 }
 0x463   : > { %8012 = vrcp.f32 %v14928_v54  ;;  %v14947_v53 = vadd.f32 1.0, %v8007_v3  ;;  %v14951_v14 = vadd.f32 %v17270_v19, %v13875_v33  ;;  %6403 = vst.msk [vmem:[#allocation2 + $0x38] sm:$0xff] %vm6395_vm13, %v6242_v38  ;;  %vm14962_vm7 = vcmp.eq.f32.partialorder %v5214_v46, 8.507059e+37  ;;  %v17275_v33 = vld [vmem:[#allocation38_spill] sm:$0xff]  ;;  %vm14975_vm8 = vmor %vm5210_vm0, %vm5211_vm5  ;;  %v5767_v38 = vld [vmem:[#allocation2 + $0x60] sm:$0xff] }
 0x464   : > { %v5043_v25 = vmul.f32 %v14878_v30, %v5042_v41  ;;  %v14967_v26 = vadd.f32 1.0, %v8009_v56  ;;  %8014 = vpow2.f32 %v2995_v15  ;;  %6405 = vst.msk [vmem:[#allocation2 + $0x48] sm:$0xff] %vm6395_vm13, %v6244_v4  ;;  %6111 = vadd.xlane.f32.xlu2 %v17275_v33  ;;  %v5217_v16 = vor.u32 1.1754944e-38, %v5216_v1  ;;  %v5765_v3 = vld [vmem:[#allocation2 + $0x50] sm:$0xff]  ;;  %v17278_v41 = vld [vmem:[#allocation71_spill] sm:$0xff]  ;;  %v17279_v56 = vld [vmem:[#allocation9_spill] sm:$0xff] }
 0x465   : > { %v5059_v46 = vadd.f32 %v14851_v8, %v5058_v11  ;;  %vm5061_vm10 = vweird.f32 %v14851_v8  ;;  %v2975_v62 = vmul.f32 1.442695, %v2685_v60  ;;  %6115 = vadd.xlane.f32.xlu1 %v17278_v41  ;;  %v4973_v15 = vsel %vm14958_vm1, %v14812_v0, %v4969_v20  ;;  %v5936_v60 = vpop.xlane.xlu1 %5935  ;;  %v17280_v4 = vld [vmem:[#allocation66_spill] sm:$0xff] }
 0x466   : > { %v5213_v31 = vsel %vm14975_vm8, %v14816_v13, %v5209_v57  ;;  %v5064_v21 = vand.u32 2147483647, %v14776_v40  ;;  %v5066_v1 = vand.u32 2147483648, %v14776_v40  ;;  %vm5046_vm9 = vweird.f32 %v14878_v30  ;;  %v5932_v0 = vpop.xlane.xlu2 %5931  ;;  %vm15004_vm11 = vmor %vm5060_vm6, %vm5061_vm10 }
 0x467   : > { %8016 = vrcp.f32 %v14947_v53  ;;  %v2684_v63 = vsub.f32 0.0, %v14951_v14  ;;  %v14995_v11 = vadd.f32 %v14526_v59, %v17279_v56  ;;  %6101 = vadd.xlane.f32.xlu0 %v17280_v4  ;;  %v5044_v57 = vadd.f32 %v14878_v30, %v5043_v25  ;;  %v5940_v10 = vpop.xlane.xlu0 %5939  ;;  %v15036_v2 = vpop.f32.mrf.mxu3 }
 0x468   : > { %v14998_v13 = vpop.eup %8010  ;;  %8018 = vrcp.f32 %v14967_v26  ;;  %v6243_v59 = vadd.f32 %v5932_v0, %v5763_v29  ;;  %v6245_v19 = vadd.f32 %v5936_v60, %v5765_v3  ;;  %v5063_v5 = vsel %vm15004_vm11, %v14851_v8, %v5059_v46 }
 0x469   : > { %v15010_v33 = vpop.eup %8012  ;;  %v5051_v41 = vand.u32 2147483648, %v14801_v51  ;;  %8020 = vpow2.f32 %v2975_v62  ;;  %v6247_v40 = vadd.f32 %v5940_v10, %v5767_v38  ;;  %vm5065_vm12 = vcmp.eq.f32.partialorder %v5064_v21, 8.507059e+37  ;;  %v5768_v38 = vld [vmem:[#allocation2 + $0x68] sm:$0xff] }
 0x46a   : > { %v8015_v56 = vpop.eup %8014  ;;  %v5067_v4 = vor.u32 1.1754944e-38, %v5066_v1  ;;  %vm5045_vm14 = vweird.f32 %v14801_v51  ;;  %v5049_v25 = vand.u32 2147483647, %v14801_v51  ;;  %6404 = vst.msk [vmem:[#allocation2 + $0x40] sm:$0xff] %vm6395_vm13, %v6243_v59  ;;  %v4978_v29 = vsel %vm14937_vm4, %v14920_v7, %v4973_v15  ;;  %v5766_v1 = vld [vmem:[#allocation2 + $0x58] sm:$0xff] }
 0x46b   : > { %v5218_v8 = vsel %vm14962_vm7, %v5217_v16, %v5213_v31  ;;  %vm15026_vm15 = vmor %vm5045_vm14, %vm5046_vm9  ;;  %v2973_v62 = vmul.f32 1.442695, %v2684_v63  ;;  %v2698_v3 = vsub.f32 0.0, %v14995_v11  ;;  %6406 = vst.msk [vmem:[#allocation2 + $0x50] sm:$0xff] %vm6395_vm13, %v6245_v19  ;;  %v15034_v51 = vmul.f32 %v14903_v49, %v14435_v50  ;;  %v17285_v16 = vld [vmem:[#allocation54_spill] sm:$0xff]  ;;  %v17286_v63 = vld [vmem:[#allocation51_spill] sm:$0xff] }
 0x46c   : > { %v5068_v7 = vsel %vm5065_vm12, %v5067_v4, %v5063_v5  ;;  %v5048_v34 = vsel %vm15026_vm15, %v14878_v30, %v5044_v57  ;;  %6408 = vst.msk [vmem:[#allocation2 + $0x60] sm:$0xff] %vm6395_vm13, %v6247_v40  ;;  %6117 = vadd.xlane.f32.xlu2 %v17285_v16  ;;  %v5052_v31 = vor.u32 1.1754944e-38, %v5051_v41  ;;  %v4981_v21 = vmul.f32 %v14998_v13, %v14923_v55  ;;  %v5770_v57 = vld [vmem:[#allocation2 + $0x78] sm:$0xff]  ;;  %v17292_v16 = vld [vmem:[#allocation82_spill] sm:$0xff] }
 0x46d   : > { %v15043_v15 = vpop.eup %8016  ;;  %v5251_v50 = vmul.f32 %v15010_v33, %v14928_v54  ;;  %v15049_v49 = vadd.f32 1.0, %v8015_v56  ;;  %6121 = vadd.xlane.f32.xlu1 %v17286_v63  ;;  %v15056_v0 = vmul.f32 %v14911_v37, %v14453_v43  ;;  %v15059_v60 = vmul.f32 %v4978_v29, %v14544_v36  ;;  %v5942_v40 = vpop.xlane.xlu1 %5941  ;;  %v17289_v56 = vld [vmem:[#allocation49_spill] sm:$0xff] }
 0x46e   : > { %v15052_v30 = vpop.eup %8018  ;;  %v15062_v20 = vmul.f32 %v5218_v8, %v14553_v39  ;;  %vm5050_vm3 = vcmp.eq.f32.partialorder %v5049_v25, 8.507059e+37  ;;  %v15065_v19 = vmul.f32 %v5068_v7, %v14607_v28  ;;  %8022 = vpow2.f32 %v2973_v62  ;;  %v5938_v41 = vpop.xlane.xlu2 %5937 }
 0x46f   : > { %17287 = vst [vmem:[#allocation80_spill] sm:$0xff] %v15056_v0  ;;  %v8021_v59 = vpop.eup %8020  ;;  %v5053_v10 = vsel %vm5050_vm3, %v5052_v31, %v5048_v34  ;;  %v3001_v5 = vmul.f32 1.442695, %v2698_v3  ;;  %6107 = vadd.xlane.f32.xlu0 %v17289_v56  ;;  %v4991_v43 = vand.u32 2147483648, %v14923_v55  ;;  %v5261_v36 = vand.u32 2147483648, %v14928_v54  ;;  %v5946_v4 = vpop.xlane.xlu0 %5945  ;;  %v17291_v34 = vld [vmem:[#allocation105_spill] sm:$0xff] }
 0x470   : > { %17288 = vst [vmem:[#allocation85_spill] sm:$0xff] %v15062_v20  ;;  %v6246_v37 = vadd.f32 %v5938_v41, %v5766_v1  ;;  %v6248_v39 = vadd.f32 %v5942_v40, %v5768_v38  ;;  %v4982_v25 = vsub.f32 1.0, %v4981_v21  ;;  %v5252_v29 = vsub.f32 1.0, %v5251_v50  ;;  %v17294_v1 = vld [vmem:[#allocation17_spill] sm:$0xff]  ;;  %v5771_v41 = vld [vmem:[#allocation2 + $0x80] sm:$0xff]  ;;  %v15101_v56 = vpop.f32.mrf.mxu3 }
 0x471   : > { %8024 = vrcp.f32 %v15049_v49  ;;  %v6250_v28 = vadd.f32 %v5946_v4, %v5770_v57  ;;  %v15072_v8 = vmul.f32 %v5053_v10, %v14623_v17  ;;  %v5101_v46 = vmul.f32 %v15043_v15, %v14947_v53  ;;  %v17295_v40 = vld [vmem:[#allocation97_spill] sm:$0xff]  ;;  %17296 = vst [vmem:[#allocation88_spill] sm:$0xff] %v15101_v56 }
 0x472   : > { %v5086_v62 = vmul.f32 %v15052_v30, %v14967_v26  ;;  %v15078_v3 = vadd.f32 1.0, %v8021_v59  ;;  %6407 = vst.msk [vmem:[#allocation2 + $0x58] sm:$0xff] %vm6395_vm13, %v6246_v37  ;;  %vm4985_vm0 = vweird.f32 %v14923_v55  ;;  %v5111_v7 = vand.u32 2147483648, %v14947_v53 }
 0x473   : > { %17290 = vst [vmem:[#allocation13_spill] sm:$0xff] %v15072_v8  ;;  %8026 = vpow2.f32 %v3001_v5  ;;  %v15085_v31 = vadd.f32 %v17292_v16, %v17291_v34  ;;  %v4989_v17 = vand.u32 2147483647, %v14923_v55  ;;  %v15089_v21 = vor.u32 1.1754944e-38, %v4991_v43  ;;  %v5769_v5 = vld [vmem:[#allocation2 + $0x70] sm:$0xff]  ;;  %v17318_v55 = vld [vmem:[#allocation8_spill] sm:$0xff] }
 0x474   : > { %6409 = vst.msk [vmem:[#allocation2 + $0x68] sm:$0xff] %vm6395_vm13, %v6248_v39  ;;  %vm5255_vm2 = vweird.f32 %v14928_v54  ;;  %v5259_v50 = vand.u32 2147483647, %v14928_v54  ;;  %6123 = vadd.xlane.f32.xlu2 %v17294_v1  ;;  %v8023_v38 = vpop.eup %8022  ;;  %v4983_v63 = vmul.f32 %v14998_v13, %v4982_v25  ;;  %v5253_v57 = vmul.f32 %v15010_v33, %v5252_v29  ;;  %v5773_v39 = vld [vmem:[#allocation2 + $0x90] sm:$0xff]  ;;  %v17297_v29 = vld [vmem:[#allocation75_spill] sm:$0xff] }
 0x475   : > { %17293 = vst [vmem:[#allocation94_spill] sm:$0xff] %v15085_v31  ;;  %v15097_v59 = vor.u32 1.1754944e-38, %v5261_v36  ;;  %v5109_v10 = vand.u32 2147483647, %v14947_v53  ;;  %6127 = vadd.xlane.f32.xlu1 %v17295_v40  ;;  %vm4986_vm4 = vweird.f32 %v14998_v13  ;;  %v5102_v43 = vsub.f32 1.0, %v5101_v46  ;;  %v5948_v1 = vpop.xlane.xlu1 %5947  ;;  %v17300_v40 = vld [vmem:[#allocation89_spill] sm:$0xff] }
 0x476   : > { %6411 = vst.msk [vmem:[#allocation2 + $0x78] sm:$0xff] %vm6395_vm13, %v6250_v28  ;;  %v5087_v37 = vsub.f32 1.0, %v5086_v62  ;;  %8028 = vrcp.f32 %v15078_v3  ;;  %vm5256_vm5 = vweird.f32 %v15010_v33  ;;  %v15108_v36 = vor.u32 1.1754944e-38, %v5111_v7  ;;  %v17298_v28 = vld [vmem:[#allocation22_spill] sm:$0xff]  ;;  %v5944_v16 = vpop.xlane.xlu2 %5943  ;;  %vm15147_vm8 = vmor %vm4985_vm0, %vm4986_vm4 }
 0x477   : > { %v15105_v4 = vpop.eup %8024  ;;  %v2688_v25 = vsub.f32 0.0, %v15085_v31  ;;  %v15113_v34 = vadd.f32 %v17298_v28, %v17297_v29  ;;  %6113 = vadd.xlane.f32.xlu0 %v17300_v40  ;;  %v15116_v46 = vadd.f32 1.0, %v8023_v38  ;;  %v15120_v62 = vadd.f32 %v14785_v52, %v14391_v35  ;;  %v5952_v7 = vpop.xlane.xlu0 %5951  ;;  %v17306_v35 = vld [vmem:[#allocation77_spill] sm:$0xff]  ;;  %vm15161_vm9 = vmor %vm5255_vm2, %vm5256_vm5 }
 0x478   : > { %v6249_v56 = vadd.f32 %v5944_v16, %v5769_v5  ;;  %v6251_v20 = vadd.f32 %v5948_v1, %v5771_v41  ;;  %v4984_v18 = vadd.f32 %v14998_v13, %v4983_v63  ;;  %vm15123_vm6 = vcmp.eq.f32.partialorder %v4989_v17, 8.507059e+37  ;;  %v17307_v52 = vld [vmem:[#allocation41_spill] sm:$0xff] }
 0x479   : > { %17299 = vst [vmem:[#allocation93_spill] sm:$0xff] %v15113_v34  ;;  %v8027_v27 = vpop.eup %8026  ;;  %v5254_v29 = vadd.f32 %v15010_v33, %v5253_v57  ;;  %vm15128_vm1 = vcmp.eq.f32.partialorder %v5259_v50, 8.507059e+37  ;;  %vm5105_vm7 = vweird.f32 %v14947_v53  ;;  %v15135_v38 = vadd.f32 %v17307_v52, %v17306_v35  ;;  %v5774_v35 = vld [vmem:[#allocation2 + $0x98] sm:$0xff]  ;;  %v17316_v52 = vld [vmem:[#allocation104_spill] sm:$0xff] }
 0x47a   : > { %17301 = vst [vmem:[#allocation83_spill] sm:$0xff] %v15120_v62  ;;  %v6253_v5 = vadd.f32 %v5952_v7, %v5773_v39  ;;  %v5103_v41 = vmul.f32 %v15043_v15, %v5102_v43  ;;  %v5088_v17 = vmul.f32 %v15052_v30, %v5087_v37  ;;  %v5094_v63 = vand.u32 2147483647, %v14967_v26  ;;  %v5772_v7 = vld [vmem:[#allocation2 + $0x88] sm:$0xff]  ;;  %v17317_v50 = vld [vmem:[#allocation99_spill] sm:$0xff] }
 0x47b   : > { %17308 = vst [vmem:[#allocation92_spill] sm:$0xff] %v15135_v38  ;;  %v5296_v57 = vmul.f32 %v15105_v4, %v15049_v49  ;;  %vm5090_vm10 = vweird.f32 %v14967_v26  ;;  %v5096_v43 = vand.u32 2147483648, %v14967_v26  ;;  %v2981_v37 = vmul.f32 1.442695, %v2688_v25  ;;  %v17327_v26 = vld [vmem:[#allocation87_spill] sm:$0xff] }
 0x47c   : > { %6410 = vst.msk [vmem:[#allocation2 + $0x70] sm:$0xff] %vm6395_vm13, %v6249_v56  ;;  %v2687_v39 = vsub.f32 0.0, %v15113_v34  ;;  %v15155_v16 = vpop.eup %8028  ;;  %vm5106_vm11 = vweird.f32 %v15043_v15  ;;  %8030 = vrcp.f32 %v15116_v46  ;;  %v15167_v56 = vadd.f32 1.0, %v8027_v27 }
 0x47d   : > { %6412 = vst.msk [vmem:[#allocation2 + $0x80] sm:$0xff] %vm6395_vm13, %v6251_v20  ;;  %v2701_v25 = vsub.f32 0.0, %v15120_v62  ;;  %v17313_v20 = vld [vmem:[#allocation73_spill] sm:$0xff]  ;;  %v4988_v54 = vsel %vm15147_vm8, %v14998_v13, %v4984_v18  ;;  %v5258_v1 = vsel %vm15161_vm9, %v15010_v33, %v5254_v29  ;;  %vm15178_vm12 = vcmp.eq.f32.partialorder %v5109_v10, 8.507059e+37  ;;  %6133 = vadd.xlane.f32.xlu1 %v17316_v52  ;;  %v5954_v34 = vpop.xlane.xlu1 %5953  ;;  %vm15217_vm3 = vmor %vm5105_vm7, %vm5106_vm11 }
 0x47e   : > { %6414 = vst.msk [vmem:[#allocation2 + $0x90] sm:$0xff] %vm6395_vm13, %v6253_v5  ;;  %6129 = vadd.xlane.f32.xlu2 %v17313_v20  ;;  %vm5091_vm14 = vweird.f32 %v15052_v30  ;;  %v2691_v27 = vsub.f32 0.0, %v15135_v38  ;;  %v5104_v5 = vadd.f32 %v15043_v15, %v5103_v41  ;;  %v5089_v18 = vadd.f32 %v15052_v30, %v5088_v17  ;;  %v5776_v10 = vld [vmem:[#allocation2 + $0xa8] sm:$0xff]  ;;  %v17319_v38 = vld [vmem:[#allocation67_spill] sm:$0xff]  ;;  %v5950_v52 = vpop.xlane.xlu2 %5949  ;;  %v15198_v17 = vpop.f32.mrf.mxu3 }
 0x47f   : > { %v5297_v13 = vsub.f32 1.0, %v5296_v57  ;;  %v15189_v33 = vadd.f32 %v17318_v55, %v17317_v50  ;;  %v5146_v29 = vmul.f32 %v15155_v16, %v15078_v3  ;;  %8032 = vpow2.f32 %v2981_v37  ;;  %v17320_v41 = vld [vmem:[#allocation95_spill] sm:$0xff]  ;;  %v5958_v31 = vpop.xlane.xlu0 %5957  ;;  %vm15231_vm2 = vmor %vm5090_vm10, %vm5091_vm14 }
 0x480   : > { %v2979_v20 = vmul.f32 1.442695, %v2687_v39  ;;  %v15195_v62 = vadd.f32 %v15036_v2, %v17319_v38  ;;  %6119 = vadd.xlane.f32.xlu0 %v17320_v41  ;;  %8034 = vrcp.f32 %v15167_v56  ;;  %v3007_v57 = vmul.f32 1.442695, %v2701_v25 }
 0x481   : > { %v6252_v50 = vadd.f32 %v5950_v52, %v5772_v7  ;;  %v6254_v55 = vadd.f32 %v5954_v34, %v5774_v35  ;;  %vm15201_vm15 = vcmp.eq.f32.partialorder %v5094_v63, 8.507059e+37  ;;  %v5097_v37 = vor.u32 1.1754944e-38, %v5096_v43  ;;  %v5777_v7 = vld [vmem:[#allocation2 + $0xb0] sm:$0xff] }
 0x482   : > { %v2987_v39 = vmul.f32 1.442695, %v2691_v27  ;;  %v6256_v2 = vadd.f32 %v5958_v31, %v5776_v10  ;;  %v15205_v38 = vpop.eup %8030  ;;  %v4993_v41 = vsel %vm15123_vm6, %v15089_v21, %v4988_v54  ;;  %v5263_v25 = vsel %vm15128_vm1, %v15097_v59, %v5258_v1  ;;  %v17328_v35 = vld [vmem:[#allocation42_spill] sm:$0xff] }
 0x483   : > { %vm5300_vm0 = vweird.f32 %v15049_v49  ;;  %v5304_v31 = vand.u32 2147483647, %v15049_v49  ;;  %6413 = vst.msk [vmem:[#allocation2 + $0x88] sm:$0xff] %vm6395_vm13, %v6252_v50  ;;  %v5108_v8 = vsel %vm15217_vm3, %v15043_v15, %v5104_v5  ;;  %v5147_v21 = vsub.f32 1.0, %v5146_v29  ;;  %v5779_v29 = vld [vmem:[#allocation2 + $0xc0] sm:$0xff] }
 0x484   : > { %8036 = vpow2.f32 %v2979_v20  ;;  %v2690_v59 = vsub.f32 0.0, %v15189_v33  ;;  %6415 = vst.msk [vmem:[#allocation2 + $0x98] sm:$0xff] %vm6395_vm13, %v6254_v55  ;;  %v5093_v28 = vsel %vm15231_vm2, %v15052_v30, %v5089_v18  ;;  %v5298_v15 = vmul.f32 %v15105_v4, %v5297_v13  ;;  %v5775_v30 = vld [vmem:[#allocation2 + $0xa0] sm:$0xff]  ;;  %v17331_v55 = vld [vmem:[#allocation101_spill] sm:$0xff] }
 0x485   : > { %8038 = vpow2.f32 %v3007_v57  ;;  %v2704_v63 = vsub.f32 0.0, %v15195_v62  ;;  %6417 = vst.msk [vmem:[#allocation2 + $0xa8] sm:$0xff] %vm6395_vm13, %v6256_v2  ;;  %v8033_v43 = vpop.eup %8032  ;;  %v15245_v54 = vmul.f32 %v4993_v41, %v14750_v23  ;;  %v5306_v1 = vand.u32 2147483648, %v15049_v49  ;;  %6139 = vadd.xlane.f32.xlu1 %v17328_v35  ;;  %v5960_v50 = vpop.xlane.xlu1 %5959  ;;  %v17334_v49 = vld [vmem:[#allocation4_spill] sm:$0xff]  ;;  %v5778_v35 = vld [vmem:[#allocation2 + $0xb8] sm:$0xff] }
 0x486   : > { %6135 = vadd.xlane.f32.xlu2 %v17327_v26  ;;  %v5131_v27 = vmul.f32 %v15205_v38, %v15116_v46  ;;  %8040 = vpow2.f32 %v2987_v39  ;;  %v15251_v5 = vpop.eup %8034  ;;  %v15254_v18 = vmul.f32 %v5263_v25, %v14764_v47  ;;  %v5113_v23 = vsel %vm15178_vm12, %v15108_v36, %v5108_v8  ;;  %v5956_v57 = vpop.xlane.xlu2 %5955 }
 0x487   : > { %vm15259_vm4 = vcmp.eq.f32.partialorder %v5304_v31, 8.507059e+37  ;;  %v5156_v10 = vand.u32 2147483648, %v15078_v3  ;;  %v5098_v20 = vsel %vm15201_vm15, %v5097_v37, %v5093_v28  ;;  %vm5301_vm5 = vweird.f32 %v15105_v4  ;;  %v5964_v41 = vpop.xlane.xlu0 %5963  ;;  %v15279_v28 = vpop.f32.mrf.mxu3 }
 0x488   : > { %v5148_v52 = vmul.f32 %v15155_v16, %v5147_v21  ;;  %v2985_v47 = vmul.f32 1.442695, %v2690_v59  ;;  %6125 = vadd.xlane.f32.xlu0 %v17331_v55  ;;  %v5299_v36 = vadd.f32 %v15105_v4, %v5298_v15  ;;  %v3013_v40 = vmul.f32 1.442695, %v2704_v63  ;;  %vm15289_vm1 = vmor %vm5300_vm0, %vm5301_vm5 }
 0x489   : > { %v6255_v39 = vadd.f32 %v5956_v57, %v5775_v30  ;;  %v6257_v2 = vadd.f32 %v5960_v50, %v5777_v7  ;;  %v5132_v34 = vsub.f32 1.0, %v5131_v27  ;;  %v5341_v0 = vmul.f32 %v15251_v5, %v15167_v56  ;;  %v5782_v50 = vld [vmem:[#allocation2 + $0xd8] sm:$0xff] }
 0x48a   : > { %v8037_v25 = vpop.eup %8036  ;;  %v15272_v37 = vadd.f32 1.0, %v8033_v43  ;;  %v6259_v31 = vadd.f32 %v5964_v41, %v5779_v29  ;;  %v15275_v53 = vmul.f32 %v5113_v23, %v14792_v9  ;;  %v5307_v21 = vor.u32 1.1754944e-38, %v5306_v1  ;;  %v5780_v23 = vld [vmem:[#allocation2 + $0xc8] sm:$0xff]  ;;  %v17341_v41 = vld [vmem:[#allocation58_spill] sm:$0xff] }
 0x48b   : > { %v8039_v8 = vpop.eup %8038  ;;  %vm5150_vm6 = vweird.f32 %v15078_v3  ;;  %v5154_v59 = vand.u32 2147483647, %v15078_v3  ;;  %6416 = vst.msk [vmem:[#allocation2 + $0xa0] sm:$0xff] %vm6395_vm13, %v6255_v39  ;;  %v15283_v63 = vmul.f32 %v5098_v20, %v14805_v58  ;;  %v5149_v26 = vadd.f32 %v15155_v16, %v5148_v52  ;;  %v17337_v52 = vld [vmem:[#allocation45_spill] sm:$0xff]  ;;  %v17339_v39 = vld [vmem:[#allocation24_spill] sm:$0xff] }
 0x48c   : > { %v8041_v15 = vpop.eup %8040  ;;  %vm5151_vm7 = vweird.f32 %v15155_v16  ;;  %8042 = vpow2.f32 %v2985_v47  ;;  %6418 = vst.msk [vmem:[#allocation2 + $0xb0] sm:$0xff] %vm6395_vm13, %v6257_v2  ;;  %v5303_v58 = vsel %vm15289_vm1, %v15105_v4, %v5299_v36  ;;  %v5157_v43 = vor.u32 1.1754944e-38, %v5156_v10  ;;  %v17338_v47 = vld [vmem:[#allocation108_spill] sm:$0xff]  ;;  %v17340_v2 = vld [vmem:[#allocation110_spill] sm:$0xff] }
 0x48d   : > { %v15299_v1 = vadd.f32 1.0, %v8037_v25  ;;  %8044 = vpow2.f32 %v3013_v40  ;;  %6420 = vst.msk [vmem:[#allocation2 + $0xc0] sm:$0xff] %vm6395_vm13, %v6259_v31  ;;  %v5133_v27 = vmul.f32 %v15205_v38, %v5132_v34  ;;  %v5342_v30 = vsub.f32 1.0, %v5341_v0  ;;  %6145 = vadd.xlane.f32.xlu1 %v14692_v32  ;;  %vm15312_vm8 = vmor %vm5150_vm6, %vm5151_vm7  ;;  %v5966_v40 = vpop.xlane.xlu1 %5965 }
 0x48e   : > { %6141 = vadd.xlane.f32.xlu2 %v17334_v49  ;;  %8046 = vrcp.f32 %v15272_v37  ;;  %v15305_v7 = vadd.f32 1.0, %v8039_v8  ;;  %v5139_v10 = vand.u32 2147483647, %v15116_v46  ;;  %v5141_v29 = vand.u32 2147483648, %v15116_v46  ;;  %v5962_v36 = vpop.xlane.xlu2 %5961 }
 0x48f   : > { %v15318_v20 = vadd.f32 1.0, %v8041_v15  ;;  %v15322_v57 = vadd.f32 %v17338_v47, %v17337_v52  ;;  %v5308_v32 = vsel %vm15259_vm4, %v5307_v21, %v5303_v58  ;;  %v5153_v3 = vsel %vm15312_vm8, %v15155_v16, %v5149_v26  ;;  %v5970_v0 = vpop.xlane.xlu0 %5969  ;;  %v5783_v52 = vld [vmem:[#allocation2 + $0xe0] sm:$0xff] }
 0x490   : > { %vm5136_vm10 = vweird.f32 %v15205_v38  ;;  %v5349_v55 = vand.u32 2147483647, %v15167_v56  ;;  %6131 = vadd.xlane.f32.xlu0 %v17339_v39  ;;  %8048 = vrcp.f32 %v15299_v1  ;;  %v15335_v25 = vadd.f32 %v17341_v41, %v17340_v2  ;;  %v17348_v39 = vld [vmem:[#allocation72_spill] sm:$0xff]  ;;  %v17350_v2 = vld [vmem:[#allocation5_spill] sm:$0xff]  ;;  %v17351_v41 = vld [vmem:[#allocation34_spill] sm:$0xff] }
 0x491   : > { %v6258_v13 = vadd.f32 %v5962_v36, %v5778_v35  ;;  %v6260_v34 = vadd.f32 %v5966_v40, %v5780_v23  ;;  %v5134_v16 = vadd.f32 %v15205_v38, %v5133_v27  ;;  %v5343_v8 = vmul.f32 %v15251_v5, %v5342_v30  ;;  %v15366_v35 = vpop.f32.mrf.mxu3 }
 0x492   : > { %v8043_v31 = vpop.eup %8042  ;;  %8050 = vrcp.f32 %v15305_v7  ;;  %v6262_v21 = vadd.f32 %v5970_v0, %v5782_v50  ;;  %vm5155_vm9 = vcmp.eq.f32.partialorder %v5154_v59, 8.507059e+37  ;;  %vm5135_vm11 = vweird.f32 %v15116_v46  ;;  %v17352_v0 = vld [vmem:[#allocation44_spill] sm:$0xff] }
 0x493   : > { %v8045_v15 = vpop.eup %8044  ;;  %v5351_v9 = vand.u32 2147483648, %v15167_v56  ;;  %8052 = vrcp.f32 %v15318_v20  ;;  %6419 = vst.msk [vmem:[#allocation2 + $0xb8] sm:$0xff] %vm6395_vm13, %v6258_v13  ;;  %v5158_v58 = vsel %vm5155_vm9, %v5157_v43, %v5153_v3  ;;  %vm15346_vm12 = vcmp.eq.f32.partialorder %v5139_v10, 8.507059e+37  ;;  %vm15357_vm14 = vmor %vm5135_vm11, %vm5136_vm10  ;;  %v5785_v3 = vld [vmem:[#allocation2 + $0xf0] sm:$0xff] }
 0x494   : > { %v15344_v26 = vpop.eup %8046  ;;  %v5142_v27 = vor.u32 1.1754944e-38, %v5141_v29  ;;  %v2694_v30 = vsub.f32 0.0, %v15322_v57  ;;  %6421 = vst.msk [vmem:[#allocation2 + $0xc8] sm:$0xff] %vm6395_vm13, %v6260_v34  ;;  %v15353_v46 = vmul.f32 %v5308_v32, %v14875_v12  ;;  %vm5345_vm15 = vweird.f32 %v15167_v56  ;;  %v5781_v29 = vld [vmem:[#allocation2 + $0xd0] sm:$0xff] }
 0x495   : > { %vm15362_vm3 = vcmp.eq.f32.partialorder %v5349_v55, 8.507059e+37  ;;  %v2693_v23 = vsub.f32 0.0, %v15335_v25  ;;  %6423 = vst.msk [vmem:[#allocation2 + $0xd8] sm:$0xff] %vm6395_vm13, %v6262_v21  ;;  %v5138_v12 = vsel %vm15357_vm14, %v15205_v38, %v5134_v16  ;;  %v5344_v4 = vadd.f32 %v15251_v5, %v5343_v8  ;;  %6151 = vadd.xlane.f32.xlu1 %v15059_v60  ;;  %v5972_v34 = vpop.xlane.xlu1 %5971 }
 0x496   : > { %6147 = vadd.xlane.f32.xlu2 %v14767_v22  ;;  %vm5346_vm0 = vweird.f32 %v15251_v5  ;;  %v15376_v10 = vadd.f32 1.0, %v8043_v31  ;;  %v15379_v47 = vpop.eup %8048  ;;  %v15382_v50 = vmul.f32 %v5158_v58, %v14916_v42  ;;  %v5352_v22 = vor.u32 1.1754944e-38, %v5351_v9  ;;  %v5968_v13 = vpop.xlane.xlu2 %5967 }
 0x497   : > { %v5191_v32 = vmul.f32 %v15344_v26, %v15272_v37  ;;  %v15386_v38 = vadd.f32 1.0, %v8045_v15  ;;  %v5201_v36 = vand.u32 2147483648, %v15272_v37  ;;  %v2993_v40 = vmul.f32 1.442695, %v2694_v30  ;;  %vm15408_vm2 = vmor %vm5345_vm15, %vm5346_vm0  ;;  %v5976_v9 = vpop.xlane.xlu0 %5975 }
 0x498   : > { %v15388_v55 = vpop.eup %8050  ;;  %v15393_v60 = vadd.f32 %v15279_v28, %v17348_v39  ;;  %v15397_v42 = vadd.f32 %v17351_v41, %v17350_v2  ;;  %6137 = vadd.xlane.f32.xlu0 %v17352_v0  ;;  %v5143_v16 = vsel %vm15346_vm12, %v5142_v27, %v5138_v12  ;;  %v2991_v8 = vmul.f32 1.442695, %v2693_v23  ;;  %v5786_v39 = vld [vmem:[#allocation2 + $0xf8] sm:$0xff] }
 0x499   : > { %v15400_v31 = vpop.eup %8052  ;;  %v6261_v21 = vadd.f32 %v5968_v13, %v5781_v29  ;;  %v6263_v15 = vadd.f32 %v5972_v34, %v5783_v52  ;;  %v5348_v58 = vsel %vm15408_vm2, %v15251_v5, %v5344_v4  ;;  %v5186_v30 = vand.u32 2147483648, %v15299_v1 }
 0x49a   : > { %17349 = vst [vmem:[#allocation96_spill] sm:$0xff] %v15393_v60  ;;  %8054 = vrcp.f32 %v15376_v10  ;;  %v6265_v49 = vadd.f32 %v5976_v9, %v5785_v3  ;;  %v5192_v27 = vsub.f32 1.0, %v5191_v32  ;;  %v5176_v56 = vmul.f32 %v15379_v47, %v15299_v1 }
 0x49b   : > { %v5396_v59 = vand.u32 2147483648, %v15305_v7  ;;  %8056 = vrcp.f32 %v15386_v38  ;;  %6422 = vst.msk [vmem:[#allocation2 + $0xd0] sm:$0xff] %vm6395_vm13, %v6261_v21  ;;  %v5199_v23 = vand.u32 2147483647, %v15272_v37  ;;  %v5386_v5 = vmul.f32 %v15388_v55, %v15305_v7 }
 0x49c   : > { %v5236_v12 = vmul.f32 %v15400_v31, %v15318_v20  ;;  %8058 = vpow2.f32 %v2993_v40  ;;  %6424 = vst.msk [vmem:[#allocation2 + $0xe0] sm:$0xff] %vm6395_vm13, %v6263_v15  ;;  %v5353_v4 = vsel %vm15362_vm3, %v5352_v22, %v5348_v58  ;;  %vm5195_vm4 = vweird.f32 %v15272_v37  ;;  %v5784_v22 = vld [vmem:[#allocation2 + $0xe8] sm:$0xff] }
 0x49d   : > { %v5184_v29 = vand.u32 2147483647, %v15299_v1  ;;  %8060 = vpow2.f32 %v2991_v8  ;;  %v2697_v52 = vsub.f32 0.0, %v15397_v42  ;;  %6426 = vst.msk [vmem:[#allocation2 + $0xf0] sm:$0xff] %vm6395_vm13, %v6265_v49  ;;  %v15436_v32 = vmul.f32 %v5143_v16, %v14951_v14  ;;  %6157 = vadd.xlane.f32.xlu1 %v15034_v51  ;;  %v5788_v14 = vld [vmem:[#allocation2 + $0x108] sm:$0xff]  ;;  %v5978_v8 = vpop.xlane.xlu1 %5977 }
 0x49e   : > { %6153 = vadd.xlane.f32.xlu2 %v15245_v54  ;;  %v15438_v3 = vor.u32 1.1754944e-38, %v5201_v36  ;;  %v15440_v40 = vor.u32 1.1754944e-38, %v5186_v30  ;;  %v5394_v43 = vand.u32 2147483647, %v15305_v7  ;;  %v5193_v2 = vmul.f32 %v15344_v26, %v5192_v27  ;;  %v15448_v54 = vpop.f32.mrf.mxu3  ;;  %v5974_v51 = vpop.xlane.xlu2 %5973 }
 0x49f   : > { %vm5196_vm5 = vweird.f32 %v15344_v26  ;;  %v5177_v41 = vsub.f32 1.0, %v5176_v56  ;;  %v15446_v13 = vor.u32 1.1754944e-38, %v5396_v59  ;;  %v15453_v34 = vmul.f32 %v5353_v4, %v14995_v11  ;;  %v5982_v49 = vpop.xlane.xlu0 %5981  ;;  %v17356_v56 = vld [vmem:[#allocation26_spill] sm:$0xff] }
 0x4a0   : > { %v15450_v36 = vpop.eup %8054  ;;  %v5387_v0 = vsub.f32 1.0, %v5386_v5  ;;  %v5237_v16 = vsub.f32 1.0, %v5236_v12  ;;  %v2707_v28 = vsub.f32 0.0, %v15393_v60  ;;  %6143 = vadd.xlane.f32.xlu0 %v14695_v48  ;;  %vm5180_vm6 = vweird.f32 %v15299_v1  ;;  %vm15501_vm12 = vmor %vm5195_vm4, %vm5196_vm5 }
 0x4a1   : > { %17355 = vst [vmem:[#allocation37_spill] sm:$0xff] %v15453_v34  ;;  %v15457_v21 = vpop.eup %8056  ;;  %v5244_v15 = vand.u32 2147483647, %v15318_v20  ;;  %v2999_v9 = vmul.f32 1.442695, %v2697_v52  ;;  %v6264_v58 = vadd.f32 %v5974_v51, %v5784_v22  ;;  %v6266_v30 = vadd.f32 %v5978_v8, %v5786_v39 }
 0x4a2   : > { %v8059_v11 = vpop.eup %8058  ;;  %vm5181_vm1 = vweird.f32 %v15379_v47  ;;  %vm5390_vm7 = vweird.f32 %v15305_v7  ;;  %v5246_v27 = vand.u32 2147483648, %v15318_v20  ;;  %v15466_v48 = vadd.f32 %v14689_v61, %v17356_v56  ;;  %v5787_v56 = vld [vmem:[#allocation2 + $0x100] sm:$0xff] }
 0x4a3   : > { %v6268_v59 = vadd.f32 %v5982_v49, %v5788_v14  ;;  %v8061_v5 = vpop.eup %8060  ;;  %v5194_v12 = vadd.f32 %v15344_v26, %v5193_v2  ;;  %vm15469_vm8 = vcmp.eq.f32.partialorder %v5199_v23, 8.507059e+37  ;;  %v5178_v52 = vmul.f32 %v15379_v47, %v5177_v41  ;;  %6425 = vst.msk [vmem:[#allocation2 + $0xe8] sm:$0xff] %vm6395_vm13, %v6264_v58  ;;  %v17359_v23 = vld [vmem:[#allocation91_spill] sm:$0xff]  ;;  %v17360_v14 = vld [vmem:[#allocation10_spill] sm:$0xff]  ;;  %vm15534_vm0 = vmor %vm5180_vm6, %vm5181_vm1 }
 0x4a4   : > { %vm5391_vm10 = vweird.f32 %v15388_v55  ;;  %vm5240_vm9 = vweird.f32 %v15318_v20  ;;  %v5221_v22 = vmul.f32 %v15450_v36, %v15376_v10  ;;  %v5388_v61 = vmul.f32 %v15388_v55, %v5387_v0  ;;  %6427 = vst.msk [vmem:[#allocation2 + $0xf8] sm:$0xff] %vm6395_vm13, %v6266_v30  ;;  %v17363_v0 = vld [vmem:[#allocation106_spill] sm:$0xff]  ;;  %v5794_v41 = vld [vmem:[#allocation2 + $0x138] sm:$0xff] }
 0x4a5   : > { %v5238_v39 = vmul.f32 %v15400_v31, %v5237_v16  ;;  %v3019_v2 = vmul.f32 1.442695, %v2707_v28  ;;  %v15483_v51 = vadd.f32 %v17360_v14, %v17359_v23  ;;  %vm15486_vm11 = vcmp.eq.f32.partialorder %v5184_v29, 8.507059e+37  ;;  %6429 = vst.msk [vmem:[#allocation2 + $0x108] sm:$0xff] %vm6395_vm13, %v6268_v59  ;;  %v5789_v59 = vld [vmem:[#allocation2 + $0x110] sm:$0xff]  ;;  %6163 = vadd.xlane.f32.xlu1 %v15065_v19  ;;  %v5791_v23 = vld [vmem:[#allocation2 + $0x120] sm:$0xff]  ;;  %v5984_v29 = vpop.xlane.xlu1 %5983  ;;  %vm15547_vm4 = vmor %vm5390_vm7, %vm5391_vm10 }
 0x4a6   : > { %v5229_v8 = vand.u32 2147483647, %v15376_v10  ;;  %v5431_v58 = vmul.f32 %v15457_v21, %v15386_v38  ;;  %v15493_v49 = vadd.f32 1.0, %v8059_v11  ;;  %8062 = vpow2.f32 %v2999_v9  ;;  %6159 = vadd.xlane.f32.xlu2 %v17363_v0  ;;  %v5980_v60 = vpop.xlane.xlu2 %5979 }
 0x4a7   : > { %vm15505_vm14 = vcmp.eq.f32.partialorder %v5394_v43, 8.507059e+37  ;;  %v15509_v28 = vor.u32 1.1754944e-38, %v5246_v27  ;;  %v5231_v9 = vand.u32 2147483648, %v15376_v10  ;;  %v15512_v30 = vadd.f32 1.0, %v8061_v5  ;;  %v5988_v34 = vpop.xlane.xlu0 %5987 }
 0x4a8   : > { %v2700_v11 = vsub.f32 0.0, %v15466_v48  ;;  %v5198_v37 = vsel %vm15501_vm12, %v15344_v26, %v5194_v12  ;;  %v5179_v43 = vadd.f32 %v15379_v47, %v5178_v52  ;;  %vm5241_vm15 = vweird.f32 %v15400_v31  ;;  %6149 = vadd.xlane.f32.xlu0 %v14819_v44 }
 0x4a9   : > { %vm15521_vm3 = vcmp.eq.f32.partialorder %v5244_v15, 8.507059e+37  ;;  %v5222_v5 = vsub.f32 1.0, %v5221_v22  ;;  %v5389_v14 = vadd.f32 %v15388_v55, %v5388_v61  ;;  %v5239_v0 = vadd.f32 %v15400_v31, %v5238_v39  ;;  %v2540_v15 = vpop.f32.mrf.mxu3  ;;  %vm15569_vm6 = vmor %vm5240_vm9, %vm5241_vm15 }
 0x4aa   : > { %8064 = vpow2.f32 %v3019_v2  ;;  %v2696_v19 = vsub.f32 0.0, %v15483_v51  ;;  %v5432_v26 = vsub.f32 1.0, %v5431_v58  ;;  %v6267_v12 = vadd.f32 %v5980_v60, %v5787_v56 }
 0x4ab   : > { %8066 = vrcp.f32 %v15493_v49  ;;  %v6269_v52 = vadd.f32 %v5984_v29, %v5789_v59  ;;  %vm5225_vm2 = vweird.f32 %v15376_v10  ;;  %v3005_v44 = vmul.f32 1.442695, %v2700_v11 }
 0x4ac   : > { %8068 = vrcp.f32 %v15512_v30  ;;  %v6271_v61 = vadd.f32 %v5988_v34, %v5791_v23  ;;  %v8063_v39 = vpop.eup %8062  ;;  %v5183_v60 = vsel %vm15534_vm0, %v15379_v47, %v5179_v43  ;;  %v5223_v2 = vmul.f32 %v15450_v36, %v5222_v5  ;;  %v17374_v34 = vld [vmem:[#allocation23_spill] sm:$0xff]  ;;  %6428 = vst.msk [vmem:[#allocation2 + $0x100] sm:$0xff] %vm6395_vm13, %v6267_v12 }
 0x4ad   : > { %vm5435_vm5 = vweird.f32 %v15386_v38  ;;  %v5439_v58 = vand.u32 2147483647, %v15386_v38  ;;  %v15556_v11 = vadd.f32 %v14934_v45, %v17374_v34  ;;  %v5203_v7 = vsel %vm15469_vm8, %v15438_v3, %v5198_v37  ;;  %6430 = vst.msk [vmem:[#allocation2 + $0x110] sm:$0xff] %vm6395_vm13, %v6269_v52  ;;  %6169 = vadd.xlane.f32.xlu1 %v15275_v53 }
 0x4ae   : > { %v5393_v47 = vsel %vm15547_vm4, %v15388_v55, %v5389_v14  ;;  %v2997_v45 = vmul.f32 1.442695, %v2696_v19  ;;  %v15574_v59 = vadd.f32 %v2540_v15, %v14654_v6  ;;  %v5243_v3 = vsel %vm15569_vm6, %v15400_v31, %v5239_v0  ;;  %6432 = vst.msk [vmem:[#allocation2 + $0x120] sm:$0xff] %vm6395_vm13, %v6271_v61  ;;  %6165 = vadd.xlane.f32.xlu2 %v14680_v24  ;;  %v5790_v31 = vld [vmem:[#allocation2 + $0x118] sm:$0xff]  ;;  %v5986_v16 = vpop.xlane.xlu2 %5985  ;;  %v17379_v19 = vld [vmem:[#allocation80_spill] sm:$0xff]  ;;  %v17381_v15 = vld [vmem:[#allocation29_spill] sm:$0xff] }
 0x4af   : > { %vm15580_vm1 = vcmp.eq.f32.partialorder %v5229_v8, 8.507059e+37  ;;  %v5232_v4 = vor.u32 1.1754944e-38, %v5231_v9  ;;  %v5433_v20 = vmul.f32 %v15457_v21, %v5432_v26  ;;  %v5188_v6 = vsel %vm15486_vm11, %v15440_v40, %v5183_v60  ;;  %v5792_v8 = vld [vmem:[#allocation2 + $0x128] sm:$0xff]  ;;  %v17384_v60 = vld [vmem:[#allocation94_spill] sm:$0xff] }
 0x4b0   : > { %v8065_v37 = vpop.eup %8064  ;;  %v5441_v43 = vand.u32 2147483648, %v15386_v38  ;;  %v15591_v5 = vadd.f32 1.0, %v8063_v39  ;;  %8070 = vpow2.f32 %v3005_v44  ;;  %v5398_v24 = vsel %vm15505_vm14, %v15446_v13, %v5393_v47  ;;  %v5990_v13 = vpop.xlane.xlu1 %5989  ;;  %6155 = vadd.xlane.f32.xlu0 %v17379_v19  ;;  %v17380_v26 = vld [vmem:[#allocation61_spill] sm:$0xff] }
 0x4b1   : > { %v15594_v9 = vpop.eup %8066  ;;  %v5224_v23 = vadd.f32 %v15450_v36, %v5223_v2  ;;  %vm5226_vm7 = vweird.f32 %v15450_v36  ;;  %v2703_v40 = vsub.f32 0.0, %v15556_v11  ;;  %v5248_v0 = vsel %vm15521_vm3, %v15509_v28, %v5243_v3  ;;  %v5994_v44 = vpop.xlane.xlu0 %5993 }
 0x4b2   : > { %v15602_v14 = vpop.eup %8068  ;;  %vm5436_vm8 = vweird.f32 %v15457_v21  ;;  %8072 = vpow2.f32 %v2997_v45  ;;  %v2710_v53 = vsub.f32 0.0, %v15574_v59  ;;  %v5434_v29 = vadd.f32 %v15457_v21, %v5433_v20  ;;  %vm15619_vm10 = vmor %vm5225_vm2, %vm5226_vm7  ;;  %v15636_v34 = vpop.f32.mrf.mxu3  ;;  %v17385_v45 = vld [vmem:[#allocation93_spill] sm:$0xff] }
 0x4b3   : > { %v15613_v12 = vadd.f32 %v17381_v15, %v17380_v26  ;;  %v6270_v52 = vadd.f32 %v5986_v16, %v5790_v31  ;;  %v6272_v22 = vadd.f32 %v5990_v13, %v5792_v8  ;;  %v5281_v27 = vmul.f32 %v15594_v9, %v15493_v49  ;;  %vm15646_vm9 = vmor %vm5435_vm5, %vm5436_vm8  ;;  %v5795_v13 = vld [vmem:[#allocation2 + $0x140] sm:$0xff] }
 0x4b4   : > { %v15625_v61 = vadd.f32 1.0, %v8065_v37  ;;  %8074 = vrcp.f32 %v15591_v5  ;;  %v6274_v39 = vadd.f32 %v5994_v44, %v5794_v41  ;;  %v15629_v1 = vmul.f32 %v5203_v7, %v17384_v60  ;;  %v17390_v37 = vld [vmem:[#allocation79_spill] sm:$0xff]  ;;  %v17393_v41 = vld [vmem:[#allocation16_spill] sm:$0xff] }
 0x4b5   : > { %v5228_v2 = vsel %vm15619_vm10, %v15450_v36, %v5224_v23  ;;  %v5266_v10 = vmul.f32 %v15602_v14, %v15512_v30  ;;  %v3011_v47 = vmul.f32 1.442695, %v2703_v40  ;;  %6431 = vst.msk [vmem:[#allocation2 + $0x118] sm:$0xff] %vm6395_vm13, %v6270_v52  ;;  %v15640_v3 = vmul.f32 %v5188_v6, %v17385_v45  ;;  %v17391_v6 = vld [vmem:[#allocation83_spill] sm:$0xff]  ;;  %v17392_v23 = vld [vmem:[#allocation92_spill] sm:$0xff]  ;;  %6175 = vadd.xlane.f32.xlu1 %v15382_v50 }
 0x4b6   : > { %v8071_v56 = vpop.eup %8070  ;;  %vm15650_vm11 = vcmp.eq.f32.partialorder %v5439_v58, 8.507059e+37  ;;  %v3025_v20 = vmul.f32 1.442695, %v2710_v53  ;;  %v15656_v31 = vadd.f32 %v15198_v17, %v17390_v37  ;;  %6433 = vst.msk [vmem:[#allocation2 + $0x128] sm:$0xff] %vm6395_vm13, %v6272_v22  ;;  %v15660_v8 = vmul.f32 %v5398_v24, %v17391_v6  ;;  %6171 = vadd.xlane.f32.xlu2 %v17393_v41  ;;  %v5992_v50 = vpop.xlane.xlu2 %5991  ;;  %v17394_v22 = vld [vmem:[#allocation13_spill] sm:$0xff] }
 0x4b7   : > { %v15663_v38 = vmul.f32 %v5248_v0, %v17392_v23  ;;  %v5438_v58 = vsel %vm15646_vm9, %v15457_v21, %v5434_v29  ;;  %v5442_v40 = vor.u32 1.1754944e-38, %v5441_v43  ;;  %6435 = vst.msk [vmem:[#allocation2 + $0x138] sm:$0xff] %vm6395_vm13, %v6274_v39  ;;  %v5233_v17 = vsel %vm15580_vm1, %v5232_v4, %v5228_v2  ;;  %v5793_v0 = vld [vmem:[#allocation2 + $0x130] sm:$0xff] }
 0x4b8   : > { %v8073_v53 = vpop.eup %8072  ;;  %v5282_v16 = vsub.f32 1.0, %v5281_v27  ;;  %8076 = vrcp.f32 %v15625_v61  ;;  %v2699_v24 = vsub.f32 0.0, %v15613_v12  ;;  %v5289_v21 = vand.u32 2147483647, %v15493_v49  ;;  %v5797_v29 = vld [vmem:[#allocation2 + $0x150] sm:$0xff]  ;;  %v5996_v52 = vpop.xlane.xlu1 %5995  ;;  %6161 = vadd.xlane.f32.xlu0 %v17394_v22 }
 0x4b9   : > { %v5267_v43 = vsub.f32 1.0, %v5266_v10  ;;  %v15676_v19 = vadd.f32 1.0, %v8071_v56  ;;  %8078 = vpow2.f32 %v3011_v47  ;;  %v5443_v55 = vsel %vm15650_vm11, %v5442_v40, %v5438_v58  ;;  %v6000_v60 = vpop.xlane.xlu0 %5999  ;;  %v17397_v58 = vld [vmem:[#allocation21_spill] sm:$0xff] }
 0x4ba   : > { %v15678_v26 = vpop.eup %8074  ;;  %vm5285_vm12 = vweird.f32 %v15493_v49  ;;  %v5291_v4 = vand.u32 2147483648, %v15493_v49  ;;  %8080 = vpow2.f32 %v3025_v20  ;;  %v2706_v15 = vsub.f32 0.0, %v15656_v31  ;;  %v5803_v49 = vld [vmem:[#allocation2 + $0x180] sm:$0xff] }
 0x4bb   : > { %v5274_v44 = vand.u32 2147483647, %v15512_v30  ;;  %v15687_v28 = vadd.f32 1.0, %v8073_v53  ;;  %v6273_v27 = vadd.f32 %v5992_v50, %v5793_v0  ;;  %v6275_v39 = vadd.f32 %v5996_v52, %v5795_v13  ;;  %v17398_v53 = vld [vmem:[#allocation31_spill] sm:$0xff]  ;;  %v5800_v52 = vld [vmem:[#allocation2 + $0x168] sm:$0xff] }
 0x4bc   : > { %v5283_v2 = vmul.f32 %v15594_v9, %v5282_v16  ;;  %v5276_v10 = vand.u32 2147483648, %v15512_v30  ;;  %v3003_v47 = vmul.f32 1.442695, %v2699_v24  ;;  %v6277_v56 = vadd.f32 %v6000_v60, %v5797_v29  ;;  %v17400_v24 = vld [vmem:[#allocation35_spill] sm:$0xff]  ;;  %v5796_v29 = vld [vmem:[#allocation2 + $0x148] sm:$0xff] }
 0x4bd   : > { %v15692_v45 = vmul.f32 %v5233_v17, %v15189_v33  ;;  %v5268_v7 = vmul.f32 %v15602_v14, %v5267_v43  ;;  %v5326_v36 = vmul.f32 %v15678_v26, %v15591_v5  ;;  %8082 = vrcp.f32 %v15676_v19  ;;  %6434 = vst.msk [vmem:[#allocation2 + $0x130] sm:$0xff] %vm6395_vm13, %v6273_v27  ;;  %v17399_v17 = vld [vmem:[#allocation78_spill] sm:$0xff]  ;;  %6181 = vadd.xlane.f32.xlu1 %v15629_v1 }
 0x4be   : > { %v15699_v20 = vpop.eup %8076  ;;  %v15702_v37 = vmul.f32 %v5443_v55, %v15195_v62  ;;  %vm15704_vm14 = vcmp.eq.f32.partialorder %v5289_v21, 8.507059e+37  ;;  %v5292_v33 = vor.u32 1.1754944e-38, %v5291_v4  ;;  %v3017_v23 = vmul.f32 1.442695, %v2706_v15  ;;  %6436 = vst.msk [vmem:[#allocation2 + $0x140] sm:$0xff] %vm6395_vm13, %v6275_v39  ;;  %v2546_v62 = vpop.f32.mrf.mxu3  ;;  %6177 = vadd.xlane.f32.xlu2 %v17400_v24  ;;  %v5798_v55 = vld [vmem:[#allocation2 + $0x158] sm:$0xff] }
 0x4bf   : > { %v15710_v40 = vadd.f32 %v15448_v54, %v17397_v58  ;;  %v8079_v41 = vpop.eup %8078  ;;  %vm5286_vm15 = vweird.f32 %v15594_v9  ;;  %vm5270_vm3 = vweird.f32 %v15512_v30  ;;  %8084 = vrcp.f32 %v15687_v28  ;;  %6438 = vst.msk [vmem:[#allocation2 + $0x150] sm:$0xff] %vm6395_vm13, %v6277_v56  ;;  %v5998_v39 = vpop.xlane.xlu2 %5997 }
 0x4c0   : > { %v15718_v16 = vadd.f32 %v17399_v17, %v17398_v53  ;;  %v8081_v54 = vpop.eup %8080  ;;  %v5284_v0 = vadd.f32 %v15594_v9, %v5283_v2  ;;  %vm15723_vm0 = vcmp.eq.f32.partialorder %v5274_v44, 8.507059e+37  ;;  %v5277_v21 = vor.u32 1.1754944e-38, %v5276_v10  ;;  %v6002_v60 = vpop.xlane.xlu1 %6001  ;;  %6167 = vadd.xlane.f32.xlu0 %v15283_v63  ;;  %vm15744_vm4 = vmor %vm5285_vm12, %vm5286_vm15 }
 0x4c1   : > { %v5486_v43 = vand.u32 2147483648, %v15625_v61  ;;  %8086 = vpow2.f32 %v3003_v47  ;;  %v5269_v4 = vadd.f32 %v15602_v14, %v5268_v7  ;;  %vm5271_vm2 = vweird.f32 %v15602_v14 }
 0x4c2   : > { %v5476_v15 = vmul.f32 %v15699_v20, %v15625_v61  ;;  %v5327_v50 = vsub.f32 1.0, %v5326_v36  ;;  %v5336_v22 = vand.u32 2147483648, %v15591_v5  ;;  %v15734_v44 = vadd.f32 1.0, %v8079_v41  ;;  %v6006_v36 = vpop.xlane.xlu0 %6005  ;;  %vm15758_vm5 = vmor %vm5270_vm3, %vm5271_vm2 }
 0x4c3   : > { %8088 = vpow2.f32 %v3017_v23  ;;  %v2709_v27 = vsub.f32 0.0, %v15710_v40  ;;  %v15738_v1 = vpop.eup %8082  ;;  %v15748_v10 = vadd.f32 1.0, %v8081_v54  ;;  %v2702_v47 = vsub.f32 0.0, %v15718_v16 }
 0x4c4   : > { %v6276_v56 = vadd.f32 %v5998_v39, %v5796_v29  ;;  %v6278_v7 = vadd.f32 %v6002_v60, %v5798_v55  ;;  %v5288_v63 = vsel %vm15744_vm4, %v15594_v9, %v5284_v0  ;;  %v5484_v23 = vand.u32 2147483647, %v15625_v61  ;;  %v17407_v29 = vld [vmem:[#allocation68_spill] sm:$0xff]  ;;  %v17409_v39 = vld [vmem:[#allocation70_spill] sm:$0xff] }
 0x4c5   : > { %v15763_v58 = vor.u32 1.1754944e-38, %v5486_v43  ;;  %v6280_v41 = vadd.f32 %v6006_v36, %v5800_v52  ;;  %v15765_v53 = vpop.eup %8084  ;;  %v5273_v17 = vsel %vm15758_vm5, %v15602_v14, %v5269_v4  ;;  %v5477_v9 = vsub.f32 1.0, %v5476_v15  ;;  %v17410_v60 = vld [vmem:[#allocation88_spill] sm:$0xff]  ;;  %6187 = vadd.xlane.f32.xlu1 %v15663_v38 }
 0x4c6   : > { %v5328_v24 = vmul.f32 %v15678_v26, %v5327_v50  ;;  %vm5330_vm6 = vweird.f32 %v15591_v5  ;;  %v5334_v30 = vand.u32 2147483647, %v15591_v5  ;;  %6437 = vst.msk [vmem:[#allocation2 + $0x148] sm:$0xff] %vm6395_vm13, %v6276_v56  ;;  %v5371_v0 = vmul.f32 %v15738_v1, %v15676_v19  ;;  %v17408_v50 = vld [vmem:[#allocation85_spill] sm:$0xff] }
 0x4c7   : > { %v8087_v54 = vpop.eup %8086  ;;  %8090 = vrcp.f32 %v15734_v44  ;;  %v3023_v43 = vmul.f32 1.442695, %v2709_v27  ;;  %v15778_v55 = vadd.f32 %v2546_v62, %v17407_v29  ;;  %6439 = vst.msk [vmem:[#allocation2 + $0x158] sm:$0xff] %vm6395_vm13, %v6278_v7  ;;  %v5293_v14 = vsel %vm15704_vm14, %v5292_v33, %v5288_v63  ;;  %6183 = vadd.xlane.f32.xlu2 %v17408_v50  ;;  %v5799_v33 = vld [vmem:[#allocation2 + $0x160] sm:$0xff]  ;;  %v2549_v63 = vpop.f32.mrf.mxu3 }
 0x4c8   : > { %v15783_v4 = vor.u32 1.1754944e-38, %v5336_v22  ;;  %8092 = vrcp.f32 %v15748_v10  ;;  %v3009_v15 = vmul.f32 1.442695, %v2702_v47  ;;  %6441 = vst.msk [vmem:[#allocation2 + $0x168] sm:$0xff] %vm6395_vm13, %v6280_v41  ;;  %vm5331_vm1 = vweird.f32 %v15678_v26  ;;  %v5801_v22 = vld [vmem:[#allocation2 + $0x170] sm:$0xff]  ;;  %6173 = vadd.xlane.f32.xlu0 %v15436_v32 }
 0x4c9   : > { %v8089_v52 = vpop.eup %8088  ;;  %v5319_v62 = vand.u32 2147483647, %v15687_v28  ;;  %v5321_v27 = vand.u32 2147483648, %v15687_v28  ;;  %v15793_v6 = vadd.f32 %v17410_v60, %v17409_v39  ;;  %v5278_v2 = vsel %vm15723_vm0, %v5277_v21, %v5273_v17  ;;  %v6004_v21 = vpop.xlane.xlu2 %6003  ;;  %vm15835_vm9 = vmor %vm5330_vm6, %vm5331_vm1 }
 0x4ca   : > { %v5478_v47 = vmul.f32 %v15699_v20, %v5477_v9  ;;  %vm15799_vm7 = vcmp.eq.f32.partialorder %v5334_v30, 8.507059e+37  ;;  %v5311_v7 = vmul.f32 %v15765_v53, %v15687_v28  ;;  %v15805_v36 = vadd.f32 1.0, %v8087_v54  ;;  %v6008_v17 = vpop.xlane.xlu1 %6007  ;;  %v6012_v29 = vpop.xlane.xlu0 %6011 }
 0x4cb   : > { %vm5481_vm8 = vweird.f32 %v15699_v20  ;;  %v5329_v38 = vadd.f32 %v15678_v26, %v5328_v24  ;;  %v5372_v41 = vsub.f32 1.0, %v5371_v0  ;;  %8094 = vpow2.f32 %v3023_v43 }
 0x4cc   : > { %v2712_v13 = vsub.f32 0.0, %v15778_v55  ;;  %8096 = vpow2.f32 %v3009_v15  ;;  %v15811_v9 = vadd.f32 1.0, %v8089_v52  ;;  %v6279_v30 = vadd.f32 %v6004_v21, %v5799_v33  ;;  %v17413_v52 = vld [vmem:[#allocation28_spill] sm:$0xff] }
 0x4cd   : > { %v6281_v54 = vadd.f32 %v6008_v17, %v5801_v22  ;;  %v15813_v50 = vpop.eup %8090  ;;  %v5734_v39 = vmul.f32 %v5293_v14, %v15322_v57  ;;  %vm5480_vm10 = vweird.f32 %v15625_v61  ;;  %v15817_v24 = vor.u32 1.1754944e-38, %v5321_v27 }
 0x4ce   : > { %v2705_v0 = vsub.f32 0.0, %v15793_v6  ;;  %v6283_v43 = vadd.f32 %v6012_v29, %v5803_v49  ;;  %v15820_v60 = vpop.eup %8092  ;;  %v5312_v32 = vsub.f32 1.0, %v5311_v7  ;;  %8098 = vrcp.f32 %v15805_v36  ;;  %6440 = vst.msk [vmem:[#allocation2 + $0x160] sm:$0xff] %vm6395_vm13, %v6279_v30  ;;  %vm15890_vm0 = vmor %vm5480_vm10, %vm5481_vm8 }
 0x4cf   : > { %v15825_v33 = vadd.f32 %v2549_v63, %v17413_v52  ;;  %v15829_v57 = vmul.f32 %v5278_v2, %v15335_v25  ;;  %v5531_v27 = vand.u32 2147483648, %v15748_v10  ;;  %v5373_v22 = vmul.f32 %v15738_v1, %v5372_v41  ;;  %6442 = vst.msk [vmem:[#allocation2 + $0x170] sm:$0xff] %vm6395_vm13, %v6281_v54  ;;  %6189 = vadd.xlane.f32.xlu2 %v15254_v18  ;;  %v17416_v41 = vld [vmem:[#allocation53_spill] sm:$0xff]  ;;  %v5806_v54 = vld [vmem:[#allocation2 + $0x198] sm:$0xff] }
 0x4d0   : > { %v3029_v7 = vmul.f32 1.442695, %v2712_v13  ;;  %v15843_v63 = vadd.f32 %v15699_v20, %v5478_v47  ;;  %v5333_v25 = vsel %vm15835_vm9, %v15678_v26, %v5329_v38  ;;  %vm5315_vm11 = vweird.f32 %v15687_v28  ;;  %6444 = vst.msk [vmem:[#allocation2 + $0x180] sm:$0xff] %vm6395_vm13, %v6283_v43  ;;  %v5802_v38 = vld [vmem:[#allocation2 + $0x178] sm:$0xff]  ;;  %v5804_v13 = vld [vmem:[#allocation2 + $0x188] sm:$0xff]  ;;  %6193 = vadd.xlane.f32.xlu1 %v5734_v39  ;;  %6179 = vadd.xlane.f32.xlu0 %v15640_v3 }
 0x4d1   : > { %v5416_v5 = vmul.f32 %v15813_v50, %v15734_v44  ;;  %8100 = vrcp.f32 %v15811_v9  ;;  %v8095_v2 = vpop.eup %8094  ;;  %vm5316_vm12 = vweird.f32 %v15765_v53  ;;  %v5521_v47 = vmul.f32 %v15820_v60, %v15748_v10  ;;  %v6010_v39 = vpop.xlane.xlu2 %6009 }
 0x4d2   : > { %v3015_v49 = vmul.f32 1.442695, %v2705_v0  ;;  %v15859_v26 = vadd.f32 %v15366_v35, %v17416_v41  ;;  %v8097_v21 = vpop.eup %8096  ;;  %v5313_v17 = vmul.f32 %v15765_v53, %v5312_v32  ;;  %vm5375_vm14 = vweird.f32 %v15676_v19  ;;  %v6014_v0 = vpop.xlane.xlu1 %6013  ;;  %vm15936_vm5 = vmor %vm5315_vm11, %vm5316_vm12 }
 0x4d3   : > { %v5381_v18 = vand.u32 2147483648, %v15676_v19  ;;  %v2713_v30 = vsub.f32 0.0, %v15825_v33  ;;  %v5338_v29 = vsel %vm15799_vm7, %v15783_v4, %v5333_v25  ;;  %v5374_v35 = vadd.f32 %v15738_v1, %v5373_v22  ;;  %v6018_v15 = vpop.xlane.xlu0 %6017 }
 0x4d4   : > { %vm5376_vm15 = vweird.f32 %v15738_v1  ;;  %8102 = vpow2.f32 %v3029_v7  ;;  %v15871_v43 = vpop.eup %8098  ;;  %v5417_v32 = vsub.f32 1.0, %v5416_v5  ;;  %v15873_v52 = vadd.f32 1.0, %v8095_v2  ;;  %v17430_v5 = vld [vmem:[#allocation37_spill] sm:$0xff] }
 0x4d5   : > { %v6282_v14 = vadd.f32 %v6010_v39, %v5802_v38  ;;  %v6284_v41 = vadd.f32 %v6014_v0, %v5804_v13  ;;  %vm15877_vm3 = vcmp.eq.f32.partialorder %v5484_v23, 8.507059e+37  ;;  %v15881_v56 = vadd.f32 1.0, %v8097_v21  ;;  %vm15910_vm4 = vmor %vm5375_vm14, %vm5376_vm15 }
 0x4d6   : > { %8104 = vpow2.f32 %v3015_v49  ;;  %v2708_v22 = vsub.f32 0.0, %v15859_v26  ;;  %v6286_v3 = vadd.f32 %v6018_v15, %v5806_v54  ;;  %v5314_v23 = vadd.f32 %v15765_v53, %v5313_v17  ;;  %v5807_v54 = vld [vmem:[#allocation2 + $0x1a0] sm:$0xff] }
 0x4d7   : > { %v15884_v7 = vpop.eup %8100  ;;  %vm15897_vm2 = vcmp.eq.f32.partialorder %v5319_v62, 8.507059e+37  ;;  %v5522_v2 = vsub.f32 1.0, %v5521_v47  ;;  %v5379_v15 = vand.u32 2147483647, %v15676_v19  ;;  %v3031_v49 = vmul.f32 1.442695, %v2713_v30  ;;  %6195 = vadd.xlane.f32.xlu2 %v15353_v46 }
 0x4d8   : > { %6443 = vst.msk [vmem:[#allocation2 + $0x178] sm:$0xff] %vm6395_vm13, %v6282_v14  ;;  %v5737_v61 = vmul.f32 %v5338_v29, %v15397_v42  ;;  %v15904_v38 = vor.u32 1.1754944e-38, %v5531_v27  ;;  %v5356_v62 = vmul.f32 %v15871_v43, %v15805_v36  ;;  %v17425_v47 = vld [vmem:[#allocation43_spill] sm:$0xff]  ;;  %v5483_v42 = vsel %vm15890_vm0, %v15699_v20, %v15843_v63  ;;  %v5805_v30 = vld [vmem:[#allocation2 + $0x190] sm:$0xff]  ;;  %6185 = vadd.xlane.f32.xlu0 %v15692_v45 }
 0x4d9   : > { %v15918_v21 = vadd.f32 %v15636_v34, %v17425_v47  ;;  %6445 = vst.msk [vmem:[#allocation2 + $0x188] sm:$0xff] %vm6395_vm13, %v6284_v41  ;;  %v5378_v19 = vsel %vm15910_vm4, %v15738_v1, %v5374_v35  ;;  %v5418_v27 = vmul.f32 %v15813_v50, %v5417_v32  ;;  %8106 = vrcp.f32 %v15873_v52  ;;  %v5809_v29 = vld [vmem:[#allocation2 + $0x1b0] sm:$0xff]  ;;  %v6016_v32 = vpop.xlane.xlu2 %6015 }
 0x4da   : > { %6447 = vst.msk [vmem:[#allocation2 + $0x198] sm:$0xff] %vm6395_vm13, %v6286_v3  ;;  %v8103_v34 = vpop.eup %8102  ;;  %v5382_v20 = vor.u32 1.1754944e-38, %v5381_v18  ;;  %8108 = vrcp.f32 %v15881_v56  ;;  %v5461_v1 = vmul.f32 %v15884_v7, %v15811_v9  ;;  %v3021_v63 = vmul.f32 1.442695, %v2708_v22  ;;  %6199 = vadd.xlane.f32.xlu1 %v5737_v61  ;;  %v6020_v14 = vpop.xlane.xlu1 %6019 }
 0x4db   : > { %v5318_v46 = vsel %vm15936_vm5, %v15765_v53, %v5314_v23  ;;  %v5523_v28 = vmul.f32 %v15820_v60, %v5522_v2  ;;  %vm5380_vm6 = vcmp.eq.f32.partialorder %v5379_v15, 8.507059e+37  ;;  %8110 = vpow2.f32 %v3031_v49  ;;  %v6024_v25 = vpop.xlane.xlu0 %6023 }
 0x4dc   : > { %v8105_v35 = vpop.eup %8104  ;;  %v5383_v18 = vsel %vm5380_vm6, %v5382_v20, %v5378_v19  ;;  %v5357_v39 = vsub.f32 1.0, %v5356_v62  ;;  %vm5421_vm1 = vweird.f32 %v15813_v50  ;;  %v2711_v0 = vsub.f32 0.0, %v15918_v21  ;;  %v2552_v62 = vpop.f32.mrf.mxu3 }
 0x4dd   : > { %v5419_v41 = vadd.f32 %v15813_v50, %v5418_v27  ;;  %v15951_v22 = vadd.f32 1.0, %v8103_v34  ;;  %v6285_v53 = vadd.f32 %v6016_v32, %v5805_v30  ;;  %v6287_v3 = vadd.f32 %v6020_v14, %v5807_v54  ;;  %v5808_v54 = vld [vmem:[#allocation2 + $0x1a8] sm:$0xff] }
 0x4de   : > { %v5426_v23 = vand.u32 2147483648, %v15734_v44  ;;  %v5462_v2 = vsub.f32 1.0, %v5461_v1  ;;  %8112 = vpow2.f32 %v3021_v63  ;;  %v6289_v15 = vadd.f32 %v6024_v25, %v5809_v29  ;;  %v17431_v63 = vld [vmem:[#allocation12_spill] sm:$0xff]  ;;  %v5812_v29 = vld [vmem:[#allocation2 + $0x1c8] sm:$0xff] }
 0x4df   : > { %v15954_v49 = vpop.eup %8106  ;;  %v15959_v61 = vsel %vm15877_vm3, %v15763_v58, %v5483_v42  ;;  %vm5420_vm7 = vweird.f32 %v15734_v44  ;;  %v5424_v45 = vand.u32 2147483647, %v15734_v44  ;;  %v15963_v13 = vadd.f32 1.0, %v8105_v35  ;;  %6446 = vst.msk [vmem:[#allocation2 + $0x190] sm:$0xff] %vm6395_vm13, %v6285_v53  ;;  %6201 = vadd.xlane.f32.xlu2 %v17430_v5  ;;  %v17443_v5 = vld [vmem:[#allocation96_spill] sm:$0xff] }
 0x4e0   : > { %v15966_v47 = vpop.eup %8108  ;;  %v5323_v19 = vsel %vm15897_vm2, %v15817_v24, %v5318_v46  ;;  %v15972_v27 = vadd.f32 %v15820_v60, %v5523_v28  ;;  %v5740_v58 = vmul.f32 %v5383_v18, %v15466_v48  ;;  %v5358_v4 = vmul.f32 %v15871_v43, %v5357_v39  ;;  %vm15978_vm8 = vmor %vm5420_vm7, %vm5421_vm1  ;;  %6448 = vst.msk [vmem:[#allocation2 + $0x1a0] sm:$0xff] %vm6395_vm13, %v6287_v3  ;;  %v5810_v46 = vld [vmem:[#allocation2 + $0x1b8] sm:$0xff] }
 0x4e1   : > { %v8111_v42 = vpop.eup %8110  ;;  %v5364_v34 = vand.u32 2147483647, %v15805_v36  ;;  %v5423_v24 = vsel %vm15978_vm8, %v15813_v50, %v5419_v41  ;;  %8114 = vrcp.f32 %v15951_v22  ;;  %v3027_v48 = vmul.f32 1.442695, %v2711_v0  ;;  %6450 = vst.msk [vmem:[#allocation2 + $0x1b0] sm:$0xff] %vm6395_vm13, %v6289_v15  ;;  %v6022_v32 = vpop.xlane.xlu2 %6021  ;;  %6191 = vadd.xlane.f32.xlu0 %v15829_v57 }
 0x4e2   : > { %v5427_v17 = vor.u32 1.1754944e-38, %v5426_v23  ;;  %v5463_v20 = vmul.f32 %v15884_v7, %v5462_v2  ;;  %v5506_v1 = vmul.f32 %v15954_v49, %v15873_v52  ;;  %v15994_v30 = vadd.f32 %v2552_v62, %v17431_v63  ;;  %6205 = vadd.xlane.f32.xlu1 %v5740_v58  ;;  %v6026_v14 = vpop.xlane.xlu1 %6025 }
 0x4e3   : > { %v5366_v50 = vand.u32 2147483648, %v15805_v36  ;;  %vm5425_vm10 = vcmp.eq.f32.partialorder %v5424_v45, 8.507059e+37  ;;  %v5401_v28 = vmul.f32 %v15966_v47, %v15881_v56  ;;  %8116 = vrcp.f32 %v15963_v13  ;;  %v6030_v3 = vpop.xlane.xlu0 %6029 }
 0x4e4   : > { %v8113_v35 = vpop.eup %8112  ;;  %v5359_v18 = vadd.f32 %v15871_v43, %v5358_v4  ;;  %vm5361_vm9 = vweird.f32 %v15871_v43  ;;  %v5428_v39 = vsel %vm5425_vm10, %v5427_v17, %v5423_v24  ;;  %v16002_v0 = vadd.f32 1.0, %v8111_v42  ;;  %v5819_v4 = vld [vmem:[#allocation2 + $0x200] sm:$0xff] }
 0x4e5   : > { %vm5526_vm11 = vweird.f32 %v15820_v60  ;;  %vm5466_vm12 = vweird.f32 %v15884_v7  ;;  %8118 = vpow2.f32 %v3027_v48  ;;  %v6288_v41 = vadd.f32 %v6022_v32, %v5808_v54 }
 0x4e6   : > { %v6290_v53 = vadd.f32 %v6026_v14, %v5810_v46  ;;  %v5464_v25 = vadd.f32 %v15884_v7, %v5463_v20  ;;  %v5507_v23 = vsub.f32 1.0, %v5506_v1  ;;  %v2714_v2 = vsub.f32 0.0, %v15994_v30  ;;  %v5813_v20 = vld [vmem:[#allocation2 + $0x1d0] sm:$0xff] }
 0x4e7   : > { %v6292_v15 = vadd.f32 %v6030_v3, %v5812_v29  ;;  %v16009_v45 = vpop.eup %8114  ;;  %vm5525_vm14 = vweird.f32 %v15748_v10  ;;  %vm5360_vm15 = vweird.f32 %v15805_v36  ;;  %v5402_v57 = vsub.f32 1.0, %v5401_v28  ;;  %6449 = vst.msk [vmem:[#allocation2 + $0x1a8] sm:$0xff] %vm6395_vm13, %v6288_v41  ;;  %6207 = vadd.xlane.f32.xlu2 %v15660_v8  ;;  %v5815_v8 = vld [vmem:[#allocation2 + $0x1e0] sm:$0xff] }
 0x4e8   : > { %v5471_v62 = vand.u32 2147483648, %v15811_v9  ;;  %v16014_v58 = vadd.f32 1.0, %v8113_v35  ;;  %vm16019_vm3 = vmor %vm5360_vm15, %vm5361_vm9  ;;  %v5743_v44 = vmul.f32 %v5428_v39, %v15556_v11  ;;  %8120 = vrcp.f32 %v16002_v0  ;;  %6451 = vst.msk [vmem:[#allocation2 + $0x1b8] sm:$0xff] %vm6395_vm13, %v6290_v53 }
 0x4e9   : > { %vm5465_vm0 = vweird.f32 %v15811_v9  ;;  %v5469_v36 = vand.u32 2147483647, %v15811_v9  ;;  %v16028_v42 = vpop.eup %8116  ;;  %v5736_v24 = vmul.f32 %v5323_v19, %v15483_v51  ;;  %v5363_v48 = vsel %vm16019_vm3, %v15871_v43, %v5359_v18  ;;  %6453 = vst.msk [vmem:[#allocation2 + $0x1c8] sm:$0xff] %vm6395_vm13, %v6292_v15  ;;  %v6028_v29 = vpop.xlane.xlu2 %6027  ;;  %vm16074_vm7 = vmor %vm5525_vm14, %vm5526_vm11 }
 0x4ea   : > { %vm16034_vm2 = vcmp.eq.f32.partialorder %v5364_v34, 8.507059e+37  ;;  %v5367_v11 = vor.u32 1.1754944e-38, %v5366_v50  ;;  %vm16040_vm4 = vmor %vm5465_vm0, %vm5466_vm12  ;;  %v5508_v9 = vmul.f32 %v15954_v49, %v5507_v23  ;;  %v5551_v43 = vmul.f32 %v16009_v45, %v15951_v22  ;;  %v5811_v34 = vld [vmem:[#allocation2 + $0x1c0] sm:$0xff]  ;;  %6211 = vadd.xlane.f32.xlu1 %v5743_v44  ;;  %v6032_v35 = vpop.xlane.xlu1 %6031 }
 0x4eb   : > { %v5468_v51 = vsel %vm16040_vm4, %v15884_v7, %v5464_v25  ;;  %v3033_v19 = vmul.f32 1.442695, %v2714_v2  ;;  %v8119_v1 = vpop.eup %8118  ;;  %v5403_v63 = vmul.f32 %v15966_v47, %v5402_v57  ;;  %v5409_v54 = vand.u32 2147483647, %v15881_v56  ;;  %6197 = vadd.xlane.f32.xlu0 %v5736_v24  ;;  %v6036_v14 = vpop.xlane.xlu0 %6035  ;;  %v5825_v57 = vld [vmem:[#allocation2 + $0x230] sm:$0xff] }
 0x4ec   : > { %v5472_v46 = vor.u32 1.1754944e-38, %v5471_v62  ;;  %8122 = vrcp.f32 %v16014_v58  ;;  %v5368_v7 = vsel %vm16034_vm2, %v5367_v11, %v5363_v48  ;;  %v5411_v50 = vand.u32 2147483648, %v15881_v56 }
 0x4ed   : > { %vm5470_vm5 = vcmp.eq.f32.partialorder %v5469_v36, 8.507059e+37  ;;  %v5446_v28 = vmul.f32 %v16028_v42, %v15963_v13  ;;  %vm5511_vm6 = vweird.f32 %v15954_v49  ;;  %v6291_v39 = vadd.f32 %v6028_v29, %v5811_v34 }
 0x4ee   : > { %v5473_v18 = vsel %vm5470_vm5, %v5472_v46, %v5468_v51  ;;  %v6293_v32 = vadd.f32 %v6032_v35, %v5813_v20  ;;  %v16061_v41 = vpop.eup %8120  ;;  %v5509_v53 = vadd.f32 %v15954_v49, %v5508_v9  ;;  %v5552_v3 = vsub.f32 1.0, %v5551_v43  ;;  %v5814_v51 = vld [vmem:[#allocation2 + $0x1d8] sm:$0xff] }
 0x4ef   : > { %8124 = vpow2.f32 %v3033_v19  ;;  %v6295_v25 = vadd.f32 %v6036_v14, %v5815_v8  ;;  %v5404_v23 = vadd.f32 %v15966_v47, %v5403_v63  ;;  %vm5406_vm1 = vweird.f32 %v15966_v47  ;;  %6452 = vst.msk [vmem:[#allocation2 + $0x1c0] sm:$0xff] %vm6395_vm13, %v6291_v39  ;;  %6213 = vadd.xlane.f32.xlu2 %v15702_v37  ;;  %v5816_v37 = vld [vmem:[#allocation2 + $0x1e8] sm:$0xff]  ;;  %v5818_v19 = vld [vmem:[#allocation2 + $0x1f8] sm:$0xff] }
 0x4f0   : > { %v5516_v2 = vand.u32 2147483648, %v15873_v52  ;;  %v16067_v15 = vadd.f32 1.0, %v8119_v1  ;;  %v17440_v62 = vand.u32 2147483647, %v15748_v10  ;;  %v5746_v44 = vmul.f32 %v5473_v18, %v15656_v31  ;;  %6454 = vst.msk [vmem:[#allocation2 + $0x1d0] sm:$0xff] %vm6395_vm13, %v6293_v32 }
 0x4f1   : > { %v5447_v36 = vsub.f32 1.0, %v5446_v28  ;;  %vm5510_vm10 = vweird.f32 %v15873_v52  ;;  %v5514_v24 = vand.u32 2147483647, %v15873_v52  ;;  %v5747_v11 = vmul.f32 %v15959_v61, %v17443_v5  ;;  %6456 = vst.msk [vmem:[#allocation2 + $0x1e0] sm:$0xff] %vm6395_vm13, %v6295_v25  ;;  %v6034_v63 = vpop.xlane.xlu2 %6033 }
 0x4f2   : > { %vm16080_vm8 = vcmp.eq.f32.partialorder %v17440_v62, 8.507059e+37  ;;  %v16088_v48 = vpop.eup %8122  ;;  %v5528_v10 = vsel %vm16074_vm7, %v15820_v60, %v15972_v27  ;;  %vm5405_vm9 = vweird.f32 %v15881_v56  ;;  %v5566_v31 = vmul.f32 %v16061_v41, %v16002_v0  ;;  %vm16101_vm11 = vmor %vm5510_vm10, %vm5511_vm6  ;;  %6217 = vadd.xlane.f32.xlu1 %v5746_v44  ;;  %v5817_v62 = vld [vmem:[#allocation2 + $0x1f0] sm:$0xff] }
 0x4f3   : > { %v5739_v61 = vmul.f32 %v5368_v7, %v15613_v12  ;;  %vm16110_vm12 = vmor %vm5405_vm9, %vm5406_vm1  ;;  %vm16114_vm14 = vcmp.eq.f32.partialorder %v5409_v54, 8.507059e+37  ;;  %v5513_v27 = vsel %vm16101_vm11, %v15954_v49, %v5509_v53  ;;  %v5553_v17 = vmul.f32 %v16009_v45, %v5552_v3  ;;  %v6038_v54 = vpop.xlane.xlu1 %6037 }
 0x4f4   : > { %v5408_v12 = vsel %vm16110_vm12, %v15966_v47, %v5404_v23  ;;  %v5412_v9 = vor.u32 1.1754944e-38, %v5411_v50  ;;  %v5517_v43 = vor.u32 1.1754944e-38, %v5516_v2  ;;  %8126 = vrcp.f32 %v16067_v15  ;;  %v6042_v50 = vpop.xlane.xlu0 %6041 }
 0x4f5   : > { %v8125_v34 = vpop.eup %8124  ;;  %v5448_v20 = vmul.f32 %v16028_v42, %v5447_v36  ;;  %v5456_v1 = vand.u32 2147483648, %v15963_v13  ;;  %vm5515_vm15 = vcmp.eq.f32.partialorder %v5514_v24, 8.507059e+37  ;;  %v5491_v49 = vmul.f32 %v16088_v48, %v16014_v58  ;;  %6203 = vadd.xlane.f32.xlu0 %v5739_v61 }
 0x4f6   : > { %v5567_v46 = vsub.f32 1.0, %v5566_v31  ;;  %v5518_v8 = vsel %vm5515_vm15, %v5517_v43, %v5513_v27  ;;  %v6294_v47 = vadd.f32 %v6034_v63, %v5814_v51  ;;  %v6296_v7 = vadd.f32 %v6038_v54, %v5816_v37  ;;  %v5822_v63 = vld [vmem:[#allocation2 + $0x218] sm:$0xff]  ;;  %v5824_v54 = vld [vmem:[#allocation2 + $0x228] sm:$0xff] }
 0x4f7   : > { %v5413_v28 = vsel %vm16114_vm14, %v5412_v9, %v5408_v12  ;;  %v5554_v29 = vadd.f32 %v16009_v45, %v5553_v17  ;;  %vm5556_vm3 = vweird.f32 %v16009_v45  ;;  %v6298_v35 = vadd.f32 %v6042_v50, %v5818_v19  ;;  %6219 = vadd.xlane.f32.xlu2 %v5747_v11  ;;  %v5831_v12 = vld [vmem:[#allocation2 + $0x260] sm:$0xff] }
 0x4f8   : > { %vm5451_vm0 = vweird.f32 %v16028_v42  ;;  %vm5555_vm2 = vweird.f32 %v15951_v22  ;;  %v5561_v18 = vand.u32 2147483648, %v15951_v22  ;;  %v16137_v39 = vadd.f32 1.0, %v8125_v34  ;;  %6455 = vst.msk [vmem:[#allocation2 + $0x1d8] sm:$0xff] %vm6395_vm13, %v6294_v47 }
 0x4f9   : > { %v5449_v32 = vadd.f32 %v16028_v42, %v5448_v20  ;;  %v5749_v14 = vmul.f32 %v5518_v8, %v15710_v40  ;;  %v5492_v53 = vsub.f32 1.0, %v5491_v49  ;;  %v5559_v3 = vand.u32 2147483647, %v15951_v22  ;;  %6457 = vst.msk [vmem:[#allocation2 + $0x1e8] sm:$0xff] %vm6395_vm13, %v6296_v7  ;;  %vm16152_vm4 = vmor %vm5555_vm2, %vm5556_vm3  ;;  %v6040_v11 = vpop.xlane.xlu2 %6039  ;;  %v5820_v49 = vld [vmem:[#allocation2 + $0x208] sm:$0xff] }
 0x4fa   : > { %v16144_v25 = vpop.eup %8126  ;;  %v5533_v23 = vsel %vm16080_vm8, %v15904_v38, %v5528_v10  ;;  %v5568_v2 = vmul.f32 %v16061_v41, %v5567_v46  ;;  %6459 = vst.msk [vmem:[#allocation2 + $0x1f8] sm:$0xff] %vm6395_vm13, %v6298_v35  ;;  %v5742_v40 = vmul.f32 %v5413_v28, %v15718_v16  ;;  %vm5450_vm5 = vweird.f32 %v15963_v13 }
 0x4fb   : > { %v5454_v22 = vand.u32 2147483647, %v15963_v13  ;;  %v5558_v38 = vsel %vm16152_vm4, %v16009_v45, %v5554_v29  ;;  %6223 = vadd.xlane.f32.xlu1 %v5749_v14  ;;  %vm5571_vm6 = vweird.f32 %v16061_v41  ;;  %vm16166_vm1 = vmor %vm5450_vm5, %vm5451_vm0  ;;  %v5457_v16 = vor.u32 1.1754944e-38, %v5456_v1  ;;  %v5821_v13 = vld [vmem:[#allocation2 + $0x210] sm:$0xff]  ;;  %v6044_v10 = vpop.xlane.xlu1 %6043 }
 0x4fc   : > { %v5562_v36 = vor.u32 1.1754944e-38, %v5561_v18  ;;  %8128 = vrcp.f32 %v16137_v39  ;;  %v5453_v45 = vsel %vm16166_vm1, %v16028_v42, %v5449_v32  ;;  %v5493_v24 = vmul.f32 %v16088_v48, %v5492_v53  ;;  %v6048_v56 = vpop.xlane.xlu0 %6047 }
 0x4fd   : > { %vm5560_vm7 = vcmp.eq.f32.partialorder %v5559_v3, 8.507059e+37  ;;  %v5536_v5 = vmul.f32 %v16144_v25, %v16067_v15  ;;  %6209 = vadd.xlane.f32.xlu0 %v5742_v40  ;;  %v5569_v31 = vadd.f32 %v16061_v41, %v5568_v2  ;;  %v6297_v61 = vadd.f32 %v6040_v11, %v5817_v62  ;;  %v5823_v2 = vld [vmem:[#allocation2 + $0x220] sm:$0xff]  ;;  %v5826_v11 = vld [vmem:[#allocation2 + $0x238] sm:$0xff] }
 0x4fe   : > { %v5563_v52 = vsel %vm5560_vm7, %v5562_v36, %v5558_v38  ;;  %v6299_v60 = vadd.f32 %v6044_v10, %v5819_v4  ;;  %v5576_v27 = vand.u32 2147483648, %v16002_v0  ;;  %vm5455_vm8 = vcmp.eq.f32.partialorder %v5454_v22, 8.507059e+37  ;;  %v5827_v40 = vld [vmem:[#allocation2 + $0x240] sm:$0xff]  ;;  %v5828_v10 = vld [vmem:[#allocation2 + $0x248] sm:$0xff] }
 0x4ff   : > { %v6301_v17 = vadd.f32 %v6048_v56, %v5821_v13  ;;  %v5750_v42 = vmul.f32 %v5533_v23, %v15574_v59  ;;  %vm5570_vm10 = vweird.f32 %v16002_v0  ;;  %v5574_v51 = vand.u32 2147483647, %v16002_v0  ;;  %6458 = vst.msk [vmem:[#allocation2 + $0x1f0] sm:$0xff] %vm6395_vm13, %v6297_v61 }
 0x500   : > { %v5458_v37 = vsel %vm5455_vm8, %v5457_v16, %v5453_v45  ;;  %vm16185_vm9 = vmor %vm5570_vm10, %vm5571_vm6  ;;  %v5494_v9 = vadd.f32 %v16088_v48, %v5493_v24  ;;  %vm5496_vm11 = vweird.f32 %v16088_v48  ;;  %v5752_v43 = vmul.f32 %v5563_v52, %v15778_v55  ;;  %6460 = vst.msk [vmem:[#allocation2 + $0x200] sm:$0xff] %vm6395_vm13, %v6299_v60 }
 0x501   : > { %v5537_v59 = vsub.f32 1.0, %v5536_v5  ;;  %v5573_v0 = vsel %vm16185_vm9, %v16061_v41, %v5569_v31  ;;  %v5501_v34 = vand.u32 2147483648, %v16014_v58  ;;  %6462 = vst.msk [vmem:[#allocation2 + $0x210] sm:$0xff] %vm6395_vm13, %v6301_v17  ;;  %6225 = vadd.xlane.f32.xlu2 %v5750_v42  ;;  %v5577_v20 = vor.u32 1.1754944e-38, %v5576_v27  ;;  %v6046_v47 = vpop.xlane.xlu2 %6045  ;;  %v5830_v31 = vld [vmem:[#allocation2 + $0x258] sm:$0xff] }
 0x502   : > { %v16193_v19 = vpop.eup %8128  ;;  %v5745_v1 = vmul.f32 %v5458_v37, %v15793_v6  ;;  %vm5495_vm12 = vweird.f32 %v16014_v58  ;;  %v5499_v55 = vand.u32 2147483647, %v16014_v58  ;;  %vm5575_vm14 = vcmp.eq.f32.partialorder %v5574_v51, 8.507059e+37  ;;  %v5829_v37 = vld [vmem:[#allocation2 + $0x250] sm:$0xff] }
 0x503   : > { %6229 = vadd.xlane.f32.xlu1 %v5752_v43  ;;  %vm16205_vm15 = vmor %vm5495_vm12, %vm5496_vm11  ;;  %v5578_v46 = vsel %vm5575_vm14, %v5577_v20, %v5573_v0  ;;  %v5538_v8 = vmul.f32 %v16144_v25, %v5537_v59  ;;  %v5581_v58 = vmul.f32 %v16193_v19, %v16137_v39  ;;  %v6050_v7 = vpop.xlane.xlu1 %6049  ;;  %v5502_v50 = vor.u32 1.1754944e-38, %v5501_v34 }
 0x504   : > { %v5498_v6 = vsel %vm16205_vm15, %v16088_v48, %v5494_v9  ;;  %v6300_v28 = vadd.f32 %v6046_v47, %v5820_v49  ;;  %v6302_v29 = vadd.f32 %v6050_v7, %v5822_v63  ;;  %v6054_v35 = vpop.xlane.xlu0 %6053  ;;  %vm5500_vm3 = vcmp.eq.f32.partialorder %v5499_v55, 8.507059e+37  ;;  %v5833_v9 = vld [vmem:[#allocation2 + $0x270] sm:$0xff]  ;;  %v5834_v55 = vld [vmem:[#allocation2 + $0x278] sm:$0xff]  ;;  %v5836_v49 = vld [vmem:[#allocation2 + $0x288] sm:$0xff] }
 0x505   : > { %6215 = vadd.xlane.f32.xlu0 %v5745_v1  ;;  %v6304_v18 = vadd.f32 %v6054_v35, %v5824_v54  ;;  %v5753_v32 = vmul.f32 %v5578_v46, %v15825_v33  ;;  %v5503_v14 = vsel %vm5500_vm3, %v5502_v50, %v5498_v6  ;;  %v5539_v48 = vadd.f32 %v16144_v25, %v5538_v8  ;;  %v5832_v1 = vld [vmem:[#allocation2 + $0x268] sm:$0xff]  ;;  %v5835_v8 = vld [vmem:[#allocation2 + $0x280] sm:$0xff] }
 0x506   : > { %6461 = vst.msk [vmem:[#allocation2 + $0x208] sm:$0xff] %vm6395_vm13, %v6300_v28  ;;  %vm5541_vm0 = vweird.f32 %v16144_v25  ;;  %v5582_v53 = vsub.f32 1.0, %v5581_v58  ;;  %v5546_v3 = vand.u32 2147483648, %v16067_v15  ;;  %v5748_v23 = vmul.f32 %v5503_v14, %v15859_v26  ;;  %v5837_v58 = vld [vmem:[#allocation2 + $0x290] sm:$0xff]  ;;  %v5839_v47 = vld [vmem:[#allocation2 + $0x2a0] sm:$0xff]  ;;  %v5840_v14 = vld [vmem:[#allocation2 + $0x2a8] sm:$0xff] }
 0x507   : > { %6463 = vst.msk [vmem:[#allocation2 + $0x218] sm:$0xff] %vm6395_vm13, %v6302_v29  ;;  %vm5540_vm2 = vweird.f32 %v16067_v15  ;;  %v5544_v33 = vand.u32 2147483647, %v16067_v15  ;;  %vm5586_vm6 = vweird.f32 %v16193_v19  ;;  %vm5585_vm1 = vweird.f32 %v16137_v39 }
 0x508   : > { %6465 = vst.msk [vmem:[#allocation2 + $0x228] sm:$0xff] %vm6395_vm13, %v6304_v18  ;;  %vm5542_vm4 = vmor %vm5540_vm2, %vm5541_vm0  ;;  %v5583_v38 = vmul.f32 %v16193_v19, %v5582_v53  ;;  %v5547_v44 = vor.u32 1.1754944e-38, %v5546_v3  ;;  %v5589_v5 = vand.u32 2147483647, %v16137_v39 }
 0x509   : > { %6231 = vadd.xlane.f32.xlu2 %v5753_v32  ;;  %v5543_v22 = vsel %vm5542_vm4, %v16144_v25, %v5539_v48  ;;  %v6052_v62 = vpop.xlane.xlu2 %6051  ;;  %vm5545_vm5 = vcmp.eq.f32.partialorder %v5544_v33, 8.507059e+37  ;;  %v5591_v25 = vand.u32 2147483648, %v16137_v39  ;;  %vm5587_vm7 = vmor %vm5585_vm1, %vm5586_vm6  ;;  %v5838_v32 = vld [vmem:[#allocation2 + $0x298] sm:$0xff] }
 0x50a   : > { %v6303_v16 = vadd.f32 %v6052_v62, %v5823_v2  ;;  %v5548_v45 = vsel %vm5545_vm5, %v5547_v44, %v5543_v22  ;;  %v5584_v15 = vadd.f32 %v16193_v19, %v5583_v38  ;;  %vm5590_vm8 = vcmp.eq.f32.partialorder %v5589_v5, 8.507059e+37  ;;  %v5842_v48 = vld [vmem:[#allocation2 + $0x2b8] sm:$0xff]  ;;  %v5843_v22 = vld [vmem:[#allocation2 + $0x2c0] sm:$0xff]  ;;  %v5845_v38 = vld [vmem:[#allocation2 + $0x2d0] sm:$0xff] }
 0x50b   : > { %v6056_v4 = vpop.xlane.xlu1 %6055  ;;  %v5751_v24 = vmul.f32 %v5548_v45, %v15918_v21  ;;  %v5592_v56 = vor.u32 1.1754944e-38, %v5591_v25  ;;  %v5846_v45 = vld [vmem:[#allocation2 + $0x2d8] sm:$0xff] }
 0x50c   : > { %v6305_v36 = vadd.f32 %v6056_v4, %v5825_v57  ;;  %v6060_v13 = vpop.xlane.xlu0 %6059  ;;  %6464 = vst.msk [vmem:[#allocation2 + $0x220] sm:$0xff] %vm6395_vm13, %v6303_v16  ;;  %v5588_v52 = vsel %vm5587_vm7, %v16193_v19, %v5584_v15  ;;  %v5848_v15 = vld [vmem:[#allocation2 + $0x2e8] sm:$0xff] }
 0x50d   : > { %6221 = vadd.xlane.f32.xlu0 %v5748_v23  ;;  %v6307_v26 = vadd.f32 %v6060_v13, %v5827_v40  ;;  %v5593_v21 = vsel %vm5590_vm8, %v5592_v56, %v5588_v52  ;;  %v5841_v40 = vld [vmem:[#allocation2 + $0x2b0] sm:$0xff]  ;;  %v5847_v52 = vld [vmem:[#allocation2 + $0x2e0] sm:$0xff] }
 0x50e   : > { %6466 = vst.msk [vmem:[#allocation2 + $0x230] sm:$0xff] %vm6395_vm13, %v6305_v36  ;;  %v5754_v39 = vmul.f32 %v5593_v21, %v15994_v30 }
 0x50f   : > { %6468 = vst.msk [vmem:[#allocation2 + $0x240] sm:$0xff] %vm6395_vm13, %v6307_v26  ;;  %v5844_v26 = vld [vmem:[#allocation2 + $0x2c8] sm:$0xff] }
 0x511   : > { %v6058_v61 = vpop.xlane.xlu2 %6057 }
 0x512   : > { %v6306_v27 = vadd.f32 %v6058_v61, %v5826_v11  ;;  %v5849_v61 = vld [vmem:[#allocation2 + $0x2f0] sm:$0xff] }
 0x513   : > { %v6062_v60 = vpop.xlane.xlu1 %6061 }
 0x514   : > { %v6308_v17 = vadd.f32 %v6062_v60, %v5828_v10  ;;  %v6066_v42 = vpop.xlane.xlu0 %6065  ;;  %6467 = vst.msk [vmem:[#allocation2 + $0x238] sm:$0xff] %vm6395_vm13, %v6306_v27  ;;  %v5851_v60 = vld [vmem:[#allocation2 + $0x300] sm:$0xff] }
 0x515   : > { %6227 = vadd.xlane.f32.xlu0 %v5751_v24  ;;  %v6310_v51 = vadd.f32 %v6066_v42, %v5830_v31 }
 0x516   : > { %6469 = vst.msk [vmem:[#allocation2 + $0x248] sm:$0xff] %vm6395_vm13, %v6308_v17 }
 0x517   : > { %6471 = vst.msk [vmem:[#allocation2 + $0x258] sm:$0xff] %vm6395_vm13, %v6310_v51 }
 0x519   : > { %v6064_v43 = vpop.xlane.xlu2 %6063 }
 0x51a   : > { %v6309_v19 = vadd.f32 %v6064_v43, %v5829_v37  ;;  %v5852_v37 = vld [vmem:[#allocation2 + $0x308] sm:$0xff] }
 0x51b   : > { %v6068_v59 = vpop.xlane.xlu1 %6067 }
 0x51c   : > { %v6311_v0 = vadd.f32 %v6068_v59, %v5831_v12  ;;  %v6072_v34 = vpop.xlane.xlu0 %6071  ;;  %6470 = vst.msk [vmem:[#allocation2 + $0x250] sm:$0xff] %vm6395_vm13, %v6309_v19  ;;  %v5854_v12 = vld [vmem:[#allocation2 + $0x318] sm:$0xff] }
 0x51d   : > { %6233 = vadd.xlane.f32.xlu0 %v5754_v39  ;;  %v6313_v20 = vadd.f32 %v6072_v34, %v5833_v9  ;;  %v5850_v39 = vld [vmem:[#allocation2 + $0x2f8] sm:$0xff] }
 0x51e   : > { %6472 = vst.msk [vmem:[#allocation2 + $0x260] sm:$0xff] %vm6395_vm13, %v6311_v0 }
 0x51f   : > { %6474 = vst.msk [vmem:[#allocation2 + $0x270] sm:$0xff] %vm6395_vm13, %v6313_v20  ;;  %v5853_v20 = vld [vmem:[#allocation2 + $0x310] sm:$0xff] }
 0x521   : > { %v6070_v30 = vpop.xlane.xlu2 %6069 }
 0x522   : > { %v6312_v41 = vadd.f32 %v6070_v30, %v5832_v1  ;;  %v5855_v1 = vld [vmem:[#allocation2 + $0x320] sm:$0xff] }
 0x523   : > { %v6074_v63 = vpop.xlane.xlu1 %6073 }
 0x524   : > { %v6314_v54 = vadd.f32 %v6074_v63, %v5834_v55  ;;  %v6078_v46 = vpop.xlane.xlu0 %6077  ;;  %6473 = vst.msk [vmem:[#allocation2 + $0x268] sm:$0xff] %vm6395_vm13, %v6312_v41  ;;  %v5857_v55 = vld [vmem:[#allocation2 + $0x330] sm:$0xff] }
 0x525   : > { %v6316_v6 = vadd.f32 %v6078_v46, %v5836_v49 }
 0x526   : > { %6475 = vst.msk [vmem:[#allocation2 + $0x278] sm:$0xff] %vm6395_vm13, %v6314_v54 }
 0x527   : > { %6477 = vst.msk [vmem:[#allocation2 + $0x288] sm:$0xff] %vm6395_vm13, %v6316_v6  ;;  %v5856_v6 = vld [vmem:[#allocation2 + $0x328] sm:$0xff] }
 0x529   : > { %v6076_v7 = vpop.xlane.xlu2 %6075 }
 0x52a   : > { %v6315_v28 = vadd.f32 %v6076_v7, %v5835_v8  ;;  %v5858_v8 = vld [vmem:[#allocation2 + $0x338] sm:$0xff] }
 0x52b   : > { %v6080_v50 = vpop.xlane.xlu1 %6079 }
 0x52c   : > { %v6317_v29 = vadd.f32 %v6080_v50, %v5837_v58  ;;  %v6084_v35 = vpop.xlane.xlu0 %6083  ;;  %6476 = vst.msk [vmem:[#allocation2 + $0x280] sm:$0xff] %vm6395_vm13, %v6315_v28  ;;  %v5860_v58 = vld [vmem:[#allocation2 + $0x348] sm:$0xff] }
 0x52d   : > { %v6319_v18 = vadd.f32 %v6084_v35, %v5839_v47 }
 0x52e   : > { %6478 = vst.msk [vmem:[#allocation2 + $0x290] sm:$0xff] %vm6395_vm13, %v6317_v29 }
 0x52f   : > { %6480 = vst.msk [vmem:[#allocation2 + $0x2a0] sm:$0xff] %vm6395_vm13, %v6319_v18  ;;  %v5859_v18 = vld [vmem:[#allocation2 + $0x340] sm:$0xff] }
 0x531   : > { %v6082_v53 = vpop.xlane.xlu2 %6081 }
 0x532   : > { %v6318_v23 = vadd.f32 %v6082_v53, %v5838_v32  ;;  %v5861_v32 = vld [vmem:[#allocation2 + $0x350] sm:$0xff] }
 0x533   : > { %v6086_v3 = vpop.xlane.xlu1 %6085 }
 0x534   : > { %v6320_v33 = vadd.f32 %v6086_v3, %v5840_v14  ;;  %v6090_v2 = vpop.xlane.xlu0 %6089  ;;  %6479 = vst.msk [vmem:[#allocation2 + $0x298] sm:$0xff] %vm6395_vm13, %v6318_v23  ;;  %v5863_v14 = vld [vmem:[#allocation2 + $0x360] sm:$0xff] }
 0x535   : > { %v6322_v57 = vadd.f32 %v6090_v2, %v5842_v48 }
 0x536   : > { %6481 = vst.msk [vmem:[#allocation2 + $0x2a8] sm:$0xff] %vm6395_vm13, %v6320_v33 }
 0x537   : > { %6483 = vst.msk [vmem:[#allocation2 + $0x2b8] sm:$0xff] %vm6395_vm13, %v6322_v57  ;;  %v5862_v57 = vld [vmem:[#allocation2 + $0x358] sm:$0xff] }
 0x539   : > { %v6088_v62 = vpop.xlane.xlu2 %6087 }
 0x53a   : > { %v6321_v44 = vadd.f32 %v6088_v62, %v5841_v40  ;;  %v5864_v40 = vld [vmem:[#allocation2 + $0x368] sm:$0xff] }
 0x53b   : > { %v6092_v4 = vpop.xlane.xlu1 %6091 }
 0x53c   : > { %v6323_v16 = vadd.f32 %v6092_v4, %v5843_v22  ;;  %v6096_v36 = vpop.xlane.xlu0 %6095  ;;  %6482 = vst.msk [vmem:[#allocation2 + $0x2b0] sm:$0xff] %vm6395_vm13, %v6321_v44  ;;  %v5866_v22 = vld [vmem:[#allocation2 + $0x378] sm:$0xff] }
 0x53d   : > { %v6325_v13 = vadd.f32 %v6096_v36, %v5845_v38 }
 0x53e   : > { %6484 = vst.msk [vmem:[#allocation2 + $0x2c0] sm:$0xff] %vm6395_vm13, %v6323_v16 }
 0x53f   : > { %6486 = vst.msk [vmem:[#allocation2 + $0x2d0] sm:$0xff] %vm6395_vm13, %v6325_v13  ;;  %v5865_v13 = vld [vmem:[#allocation2 + $0x370] sm:$0xff] }
 0x541   : > { %v6094_v25 = vpop.xlane.xlu2 %6093 }
 0x542   : > { %v6324_v5 = vadd.f32 %v6094_v25, %v5844_v26  ;;  %v5867_v26 = vld [vmem:[#allocation2 + $0x380] sm:$0xff] }
 0x543   : > { %v6098_v24 = vpop.xlane.xlu1 %6097 }
 0x544   : > { %v6326_v11 = vadd.f32 %v6098_v24, %v5846_v45  ;;  %v6102_v10 = vpop.xlane.xlu0 %6101  ;;  %6485 = vst.msk [vmem:[#allocation2 + $0x2c8] sm:$0xff] %vm6395_vm13, %v6324_v5  ;;  %v5869_v45 = vld [vmem:[#allocation2 + $0x390] sm:$0xff] }
 0x545   : > { %v6328_v31 = vadd.f32 %v6102_v10, %v5848_v15 }
 0x546   : > { %6487 = vst.msk [vmem:[#allocation2 + $0x2d8] sm:$0xff] %vm6395_vm13, %v6326_v11 }
 0x547   : > { %6489 = vst.msk [vmem:[#allocation2 + $0x2e8] sm:$0xff] %vm6395_vm13, %v6328_v31  ;;  %v5868_v31 = vld [vmem:[#allocation2 + $0x388] sm:$0xff] }
 0x549   : > { %v6100_v56 = vpop.xlane.xlu2 %6099 }
 0x54a   : > { %v6327_v17 = vadd.f32 %v6100_v56, %v5847_v52  ;;  %v5870_v52 = vld [vmem:[#allocation2 + $0x398] sm:$0xff] }
 0x54b   : > { %v6104_v27 = vpop.xlane.xlu1 %6103 }
 0x54c   : > { %v6329_v42 = vadd.f32 %v6104_v27, %v5849_v61  ;;  %v6108_v51 = vpop.xlane.xlu0 %6107  ;;  %6488 = vst.msk [vmem:[#allocation2 + $0x2e0] sm:$0xff] %vm6395_vm13, %v6327_v17  ;;  %v5872_v61 = vld [vmem:[#allocation2 + $0x3a8] sm:$0xff] }
 0x54d   : > { %v6331_v21 = vadd.f32 %v6108_v51, %v5851_v60 }
 0x54e   : > { %6490 = vst.msk [vmem:[#allocation2 + $0x2f0] sm:$0xff] %vm6395_vm13, %v6329_v42 }
 0x54f   : > { %6492 = vst.msk [vmem:[#allocation2 + $0x300] sm:$0xff] %vm6395_vm13, %v6331_v21  ;;  %v5871_v21 = vld [vmem:[#allocation2 + $0x3a0] sm:$0xff] }
 0x551   : > { %v6106_v9 = vpop.xlane.xlu2 %6105 }
 0x552   : > { %v6330_v59 = vadd.f32 %v6106_v9, %v5850_v39  ;;  %v5873_v39 = vld [vmem:[#allocation2 + $0x3b0] sm:$0xff] }
 0x553   : > { %v6110_v43 = vpop.xlane.xlu1 %6109 }
 0x554   : > { %v6332_v19 = vadd.f32 %v6110_v43, %v5852_v37  ;;  %v6114_v0 = vpop.xlane.xlu0 %6113  ;;  %6491 = vst.msk [vmem:[#allocation2 + $0x2f8] sm:$0xff] %vm6395_vm13, %v6330_v59  ;;  %v5875_v37 = vld [vmem:[#allocation2 + $0x3c0] sm:$0xff] }
 0x555   : > { %v6334_v34 = vadd.f32 %v6114_v0, %v5854_v12 }
 0x556   : > { %6493 = vst.msk [vmem:[#allocation2 + $0x308] sm:$0xff] %vm6395_vm13, %v6332_v19 }
 0x557   : > { %6495 = vst.msk [vmem:[#allocation2 + $0x318] sm:$0xff] %vm6395_vm13, %v6334_v34  ;;  %v5874_v34 = vld [vmem:[#allocation2 + $0x3b8] sm:$0xff] }
 0x559   : > { %v6112_v49 = vpop.xlane.xlu2 %6111 }
 0x55a   : > { %v6333_v63 = vadd.f32 %v6112_v49, %v5853_v20  ;;  %v5876_v20 = vld [vmem:[#allocation2 + $0x3c8] sm:$0xff] }
 0x55b   : > { %v6116_v30 = vpop.xlane.xlu1 %6115 }
 0x55c   : > { %v6335_v41 = vadd.f32 %v6116_v30, %v5855_v1  ;;  %v6120_v54 = vpop.xlane.xlu0 %6119  ;;  %6494 = vst.msk [vmem:[#allocation2 + $0x310] sm:$0xff] %vm6395_vm13, %v6333_v63  ;;  %v5878_v1 = vld [vmem:[#allocation2 + $0x3d8] sm:$0xff] }
 0x55d   : > { %v6337_v46 = vadd.f32 %v6120_v54, %v5857_v55 }
 0x55e   : > { %6496 = vst.msk [vmem:[#allocation2 + $0x320] sm:$0xff] %vm6395_vm13, %v6335_v41 }
 0x55f   : > { %6498 = vst.msk [vmem:[#allocation2 + $0x330] sm:$0xff] %vm6395_vm13, %v6337_v46  ;;  %v5877_v46 = vld [vmem:[#allocation2 + $0x3d0] sm:$0xff] }
 0x561   : > { %v6118_v47 = vpop.xlane.xlu2 %6117 }
 0x562   : > { %v6336_v50 = vadd.f32 %v6118_v47, %v5856_v6  ;;  %v5879_v6 = vld [vmem:[#allocation2 + $0x3e0] sm:$0xff] }
 0x563   : > { %v6122_v7 = vpop.xlane.xlu1 %6121 }
 0x564   : > { %v6338_v28 = vadd.f32 %v6122_v7, %v5858_v8  ;;  %v6126_v29 = vpop.xlane.xlu0 %6125  ;;  %6497 = vst.msk [vmem:[#allocation2 + $0x328] sm:$0xff] %vm6395_vm13, %v6336_v50  ;;  %v5881_v8 = vld [vmem:[#allocation2 + $0x3f0] sm:$0xff] }
 0x565   : > { %v6340_v35 = vadd.f32 %v6126_v29, %v5860_v58 }
 0x566   : > { %6499 = vst.msk [vmem:[#allocation2 + $0x338] sm:$0xff] %vm6395_vm13, %v6338_v28 }
 0x567   : > { %6501 = vst.msk [vmem:[#allocation2 + $0x348] sm:$0xff] %vm6395_vm13, %v6340_v35  ;;  %v5880_v35 = vld [vmem:[#allocation2 + $0x3e8] sm:$0xff] }
 0x569   : > { %v6124_v48 = vpop.xlane.xlu2 %6123 }
 0x56a   : > { %v6339_v3 = vadd.f32 %v6124_v48, %v5859_v18  ;;  %v5882_v18 = vld [vmem:[#allocation2 + $0x3f8] sm:$0xff] }
 0x56b   : > { %v6128_v53 = vpop.xlane.xlu1 %6127 }
 0x56c   : > { %v6341_v23 = vadd.f32 %v6128_v53, %v5861_v32  ;;  %v6132_v33 = vpop.xlane.xlu0 %6131  ;;  %6500 = vst.msk [vmem:[#allocation2 + $0x340] sm:$0xff] %vm6395_vm13, %v6339_v3  ;;  %v5884_v32 = vld [vmem:[#allocation2 + $0x408] sm:$0xff] }
 0x56d   : > { %v6343_v2 = vadd.f32 %v6132_v33, %v5863_v14 }
 0x56e   : > { %6502 = vst.msk [vmem:[#allocation2 + $0x350] sm:$0xff] %vm6395_vm13, %v6341_v23 }
 0x56f   : > { %6504 = vst.msk [vmem:[#allocation2 + $0x360] sm:$0xff] %vm6395_vm13, %v6343_v2  ;;  %v5883_v2 = vld [vmem:[#allocation2 + $0x400] sm:$0xff] }
 0x571   : > { %v6130_v38 = vpop.xlane.xlu2 %6129 }
 0x572   : > { %v6342_v4 = vadd.f32 %v6130_v38, %v5862_v57  ;;  %v5885_v57 = vld [vmem:[#allocation2 + $0x410] sm:$0xff] }
 0x573   : > { %v6134_v62 = vpop.xlane.xlu1 %6133 }
 0x574   : > { %v6344_v44 = vadd.f32 %v6134_v62, %v5864_v40  ;;  %v6138_v16 = vpop.xlane.xlu0 %6137  ;;  %6503 = vst.msk [vmem:[#allocation2 + $0x358] sm:$0xff] %vm6395_vm13, %v6342_v4  ;;  %v5887_v40 = vld [vmem:[#allocation2 + $0x420] sm:$0xff] }
 0x575   : > { %v6346_v36 = vadd.f32 %v6138_v16, %v5866_v22 }
 0x576   : > { %6505 = vst.msk [vmem:[#allocation2 + $0x368] sm:$0xff] %vm6395_vm13, %v6344_v44 }
 0x577   : > { %6507 = vst.msk [vmem:[#allocation2 + $0x378] sm:$0xff] %vm6395_vm13, %v6346_v36  ;;  %v5886_v36 = vld [vmem:[#allocation2 + $0x418] sm:$0xff] }
 0x579   : > { %v6136_v15 = vpop.xlane.xlu2 %6135 }
 0x57a   : > { %v6345_v24 = vadd.f32 %v6136_v15, %v5865_v13  ;;  %v5888_v13 = vld [vmem:[#allocation2 + $0x428] sm:$0xff] }
 0x57b   : > { %v6140_v25 = vpop.xlane.xlu1 %6139 }
 0x57c   : > { %v6347_v5 = vadd.f32 %v6140_v25, %v5867_v26  ;;  %v6144_v11 = vpop.xlane.xlu0 %6143  ;;  %6506 = vst.msk [vmem:[#allocation2 + $0x370] sm:$0xff] %vm6395_vm13, %v6345_v24  ;;  %v5890_v26 = vld [vmem:[#allocation2 + $0x438] sm:$0xff] }
 0x57d   : > { %v6349_v10 = vadd.f32 %v6144_v11, %v5869_v45 }
 0x57e   : > { %6508 = vst.msk [vmem:[#allocation2 + $0x380] sm:$0xff] %vm6395_vm13, %v6347_v5 }
 0x57f   : > { %6510 = vst.msk [vmem:[#allocation2 + $0x390] sm:$0xff] %vm6395_vm13, %v6349_v10  ;;  %v5889_v10 = vld [vmem:[#allocation2 + $0x430] sm:$0xff] }
 0x581   : > { %v6142_v60 = vpop.xlane.xlu2 %6141 }
 0x582   : > { %v6348_v27 = vadd.f32 %v6142_v60, %v5868_v31  ;;  %v5891_v31 = vld [vmem:[#allocation2 + $0x440] sm:$0xff] }
 0x583   : > { %v6146_v56 = vpop.xlane.xlu1 %6145 }
 0x584   : > { %v6350_v17 = vadd.f32 %v6146_v56, %v5870_v52  ;;  %v6150_v42 = vpop.xlane.xlu0 %6149  ;;  %6509 = vst.msk [vmem:[#allocation2 + $0x388] sm:$0xff] %vm6395_vm13, %v6348_v27  ;;  %v5893_v52 = vld [vmem:[#allocation2 + $0x450] sm:$0xff] }
 0x585   : > { %v6352_v51 = vadd.f32 %v6150_v42, %v5872_v61 }
 0x586   : > { %6511 = vst.msk [vmem:[#allocation2 + $0x398] sm:$0xff] %vm6395_vm13, %v6350_v17 }
 0x587   : > { %6513 = vst.msk [vmem:[#allocation2 + $0x3a8] sm:$0xff] %vm6395_vm13, %v6352_v51  ;;  %v5892_v51 = vld [vmem:[#allocation2 + $0x448] sm:$0xff] }
 0x589   : > { %v6148_v12 = vpop.xlane.xlu2 %6147 }
 0x58a   : > { %v6351_v43 = vadd.f32 %v6148_v12, %v5871_v21  ;;  %v5894_v21 = vld [vmem:[#allocation2 + $0x458] sm:$0xff] }
 0x58b   : > { %v6152_v9 = vpop.xlane.xlu1 %6151 }
 0x58c   : > { %v6353_v59 = vadd.f32 %v6152_v9, %v5873_v39  ;;  %v6156_v19 = vpop.xlane.xlu0 %6155  ;;  %6512 = vst.msk [vmem:[#allocation2 + $0x3a0] sm:$0xff] %vm6395_vm13, %v6351_v43  ;;  %v5896_v39 = vld [vmem:[#allocation2 + $0x468] sm:$0xff] }
 0x58d   : > { %v6355_v0 = vadd.f32 %v6156_v19, %v5875_v37 }
 0x58e   : > { %6514 = vst.msk [vmem:[#allocation2 + $0x3b0] sm:$0xff] %vm6395_vm13, %v6353_v59 }
 0x58f   : > { %6516 = vst.msk [vmem:[#allocation2 + $0x3c0] sm:$0xff] %vm6395_vm13, %v6355_v0  ;;  %v5895_v0 = vld [vmem:[#allocation2 + $0x460] sm:$0xff] }
 0x591   : > { %v6154_v55 = vpop.xlane.xlu2 %6153 }
 0x592   : > { %v6354_v30 = vadd.f32 %v6154_v55, %v5874_v34  ;;  %v5897_v34 = vld [vmem:[#allocation2 + $0x470] sm:$0xff] }
 0x593   : > { %v6158_v49 = vpop.xlane.xlu1 %6157 }
 0x594   : > { %v6356_v63 = vadd.f32 %v6158_v49, %v5876_v20  ;;  %v6162_v41 = vpop.xlane.xlu0 %6161  ;;  %6515 = vst.msk [vmem:[#allocation2 + $0x3b8] sm:$0xff] %vm6395_vm13, %v6354_v30  ;;  %v5899_v20 = vld [vmem:[#allocation2 + $0x480] sm:$0xff] }
 0x595   : > { %v6358_v54 = vadd.f32 %v6162_v41, %v5878_v1 }
 0x596   : > { %6517 = vst.msk [vmem:[#allocation2 + $0x3c8] sm:$0xff] %vm6395_vm13, %v6356_v63 }
 0x597   : > { %6519 = vst.msk [vmem:[#allocation2 + $0x3d8] sm:$0xff] %vm6395_vm13, %v6358_v54  ;;  %v5898_v54 = vld [vmem:[#allocation2 + $0x478] sm:$0xff] }
 0x599   : > { %v6160_v58 = vpop.xlane.xlu2 %6159 }
 0x59a   : > { %v6357_v7 = vadd.f32 %v6160_v58, %v5877_v46  ;;  %v5900_v46 = vld [vmem:[#allocation2 + $0x488] sm:$0xff] }
 0x59b   : > { %v6164_v47 = vpop.xlane.xlu1 %6163 }
 0x59c   : > { %v6359_v50 = vadd.f32 %v6164_v47, %v5879_v6  ;;  %v6168_v28 = vpop.xlane.xlu0 %6167  ;;  %6518 = vst.msk [vmem:[#allocation2 + $0x3d0] sm:$0xff] %vm6395_vm13, %v6357_v7  ;;  %v5902_v6 = vld [vmem:[#allocation2 + $0x498] sm:$0xff] }
 0x59d   : > { %v6361_v29 = vadd.f32 %v6168_v28, %v5881_v8 }
 0x59e   : > { %6520 = vst.msk [vmem:[#allocation2 + $0x3e0] sm:$0xff] %vm6395_vm13, %v6359_v50 }
 0x59f   : > { %6522 = vst.msk [vmem:[#allocation2 + $0x3f0] sm:$0xff] %vm6395_vm13, %v6361_v29  ;;  %v5901_v29 = vld [vmem:[#allocation2 + $0x490] sm:$0xff] }
 0x5a1   : > { %v6166_v14 = vpop.xlane.xlu2 %6165 }
 0x5a2   : > { %v6360_v53 = vadd.f32 %v6166_v14, %v5880_v35  ;;  %v5903_v35 = vld [vmem:[#allocation2 + $0x4a0] sm:$0xff] }
 0x5a3   : > { %v6170_v48 = vpop.xlane.xlu1 %6169 }
 0x5a4   : > { %v6362_v3 = vadd.f32 %v6170_v48, %v5882_v18  ;;  %v6174_v23 = vpop.xlane.xlu0 %6173  ;;  %6521 = vst.msk [vmem:[#allocation2 + $0x3e8] sm:$0xff] %vm6395_vm13, %v6360_v53  ;;  %v5905_v18 = vld [vmem:[#allocation2 + $0x4b0] sm:$0xff] }
 0x5a5   : > { %v6364_v33 = vadd.f32 %v6174_v23, %v5884_v32 }
 0x5a6   : > { %6523 = vst.msk [vmem:[#allocation2 + $0x3f8] sm:$0xff] %vm6395_vm13, %v6362_v3 }
 0x5a7   : > { %6525 = vst.msk [vmem:[#allocation2 + $0x408] sm:$0xff] %vm6395_vm13, %v6364_v33  ;;  %v5904_v33 = vld [vmem:[#allocation2 + $0x4a8] sm:$0xff] }
 0x5a9   : > { %v6172_v22 = vpop.xlane.xlu2 %6171 }
 0x5aa   : > { %v6363_v62 = vadd.f32 %v6172_v22, %v5883_v2  ;;  %v5906_v2 = vld [vmem:[#allocation2 + $0x4b8] sm:$0xff] }
 0x5ab   : > { %v6176_v38 = vpop.xlane.xlu1 %6175 }
 0x5ac   : > { %v6365_v4 = vadd.f32 %v6176_v38, %v5885_v57  ;;  %v6180_v44 = vpop.xlane.xlu0 %6179  ;;  %6524 = vst.msk [vmem:[#allocation2 + $0x400] sm:$0xff] %vm6395_vm13, %v6363_v62  ;;  %v5908_v57 = vld [vmem:[#allocation2 + $0x4c8] sm:$0xff] }
 0x5ad   : > { %v6367_v16 = vadd.f32 %v6180_v44, %v5887_v40 }
 0x5ae   : > { %6526 = vst.msk [vmem:[#allocation2 + $0x410] sm:$0xff] %vm6395_vm13, %v6365_v4 }
 0x5af   : > { %6528 = vst.msk [vmem:[#allocation2 + $0x420] sm:$0xff] %vm6395_vm13, %v6367_v16  ;;  %v5907_v16 = vld [vmem:[#allocation2 + $0x4c0] sm:$0xff] }
 0x5b1   : > { %v6178_v45 = vpop.xlane.xlu2 %6177 }
 0x5b2   : > { %v6366_v25 = vadd.f32 %v6178_v45, %v5886_v36  ;;  %v5909_v36 = vld [vmem:[#allocation2 + $0x4d0] sm:$0xff] }
 0x5b3   : > { %v6182_v15 = vpop.xlane.xlu1 %6181 }
 0x5b4   : > { %v6368_v24 = vadd.f32 %v6182_v15, %v5888_v13  ;;  %v6186_v5 = vpop.xlane.xlu0 %6185  ;;  %6527 = vst.msk [vmem:[#allocation2 + $0x418] sm:$0xff] %vm6395_vm13, %v6366_v25  ;;  %v5911_v13 = vld [vmem:[#allocation2 + $0x4e0] sm:$0xff] }
 0x5b5   : > { %v6370_v11 = vadd.f32 %v6186_v5, %v5890_v26 }
 0x5b6   : > { %6529 = vst.msk [vmem:[#allocation2 + $0x428] sm:$0xff] %vm6395_vm13, %v6368_v24 }
 0x5b7   : > { %6531 = vst.msk [vmem:[#allocation2 + $0x438] sm:$0xff] %vm6395_vm13, %v6370_v11  ;;  %v5910_v11 = vld [vmem:[#allocation2 + $0x4d8] sm:$0xff] }
 0x5b9   : > { %v6184_v61 = vpop.xlane.xlu2 %6183 }
 0x5ba   : > { %v6369_v56 = vadd.f32 %v6184_v61, %v5889_v10  ;;  %v5912_v10 = vld [vmem:[#allocation2 + $0x4e8] sm:$0xff] }
 0x5bb   : > { %v6188_v60 = vpop.xlane.xlu1 %6187 }
 0x5bc   : > { %v6371_v27 = vadd.f32 %v6188_v60, %v5891_v31  ;;  %v6192_v17 = vpop.xlane.xlu0 %6191  ;;  %6530 = vst.msk [vmem:[#allocation2 + $0x430] sm:$0xff] %vm6395_vm13, %v6369_v56  ;;  %v5914_v31 = vld [vmem:[#allocation2 + $0x4f8] sm:$0xff] }
 0x5bd   : > { %v6373_v42 = vadd.f32 %v6192_v17, %v5893_v52 }
 0x5be   : > { %6532 = vst.msk [vmem:[#allocation2 + $0x440] sm:$0xff] %vm6395_vm13, %v6371_v27 }
 0x5bf   : > { %6534 = vst.msk [vmem:[#allocation2 + $0x450] sm:$0xff] %vm6395_vm13, %v6373_v42  ;;  %v5913_v42 = vld [vmem:[#allocation2 + $0x4f0] sm:$0xff] }
 0x5c1   : > { %v6190_v37 = vpop.xlane.xlu2 %6189 }
 0x5c2   : > { %v6372_v9 = vadd.f32 %v6190_v37, %v5892_v51 }
 0x5c3   : > { %v6194_v12 = vpop.xlane.xlu1 %6193 }
 0x5c4   : > { %v6374_v43 = vadd.f32 %v6194_v12, %v5894_v21  ;;  %v6198_v59 = vpop.xlane.xlu0 %6197  ;;  %6533 = vst.msk [vmem:[#allocation2 + $0x448] sm:$0xff] %vm6395_vm13, %v6372_v9 }
 0x5c5   : > { %v6376_v19 = vadd.f32 %v6198_v59, %v5896_v39 }
 0x5c6   : > { %6535 = vst.msk [vmem:[#allocation2 + $0x458] sm:$0xff] %vm6395_vm13, %v6374_v43 }
 0x5c7   : > { %6537 = vst.msk [vmem:[#allocation2 + $0x468] sm:$0xff] %vm6395_vm13, %v6376_v19 }
 0x5c9   : > { %v6196_v1 = vpop.xlane.xlu2 %6195 }
 0x5ca   : > { %v6375_v49 = vadd.f32 %v6196_v1, %v5895_v0 }
 0x5cb   : > { %v6200_v55 = vpop.xlane.xlu1 %6199 }
 0x5cc   : > { %v6377_v30 = vadd.f32 %v6200_v55, %v5897_v34  ;;  %v6204_v63 = vpop.xlane.xlu0 %6203  ;;  %6536 = vst.msk [vmem:[#allocation2 + $0x460] sm:$0xff] %vm6395_vm13, %v6375_v49 }
 0x5cd   : > { %v6379_v41 = vadd.f32 %v6204_v63, %v5899_v20 }
 0x5ce   : > { %6538 = vst.msk [vmem:[#allocation2 + $0x470] sm:$0xff] %vm6395_vm13, %v6377_v30 }
 0x5cf   : > { %6540 = vst.msk [vmem:[#allocation2 + $0x480] sm:$0xff] %vm6395_vm13, %v6379_v41 }
 0x5d1   : > { %v6202_v8 = vpop.xlane.xlu2 %6201 }
 0x5d2   : > { %v6378_v47 = vadd.f32 %v6202_v8, %v5898_v54 }
 0x5d3   : > { %v6206_v58 = vpop.xlane.xlu1 %6205 }
 0x5d4   : > { %v6380_v7 = vadd.f32 %v6206_v58, %v5900_v46  ;;  %v6210_v50 = vpop.xlane.xlu0 %6209  ;;  %6539 = vst.msk [vmem:[#allocation2 + $0x478] sm:$0xff] %vm6395_vm13, %v6378_v47 }
 0x5d5   : > { %v6382_v28 = vadd.f32 %v6210_v50, %v5902_v6 }
 0x5d6   : > { %6541 = vst.msk [vmem:[#allocation2 + $0x488] sm:$0xff] %vm6395_vm13, %v6380_v7 }
 0x5d7   : > { %6543 = vst.msk [vmem:[#allocation2 + $0x498] sm:$0xff] %vm6395_vm13, %v6382_v28 }
 0x5d9   : > { %v6208_v32 = vpop.xlane.xlu2 %6207 }
 0x5da   : > { %v6381_v48 = vadd.f32 %v6208_v32, %v5901_v29 }
 0x5db   : > { %v6212_v14 = vpop.xlane.xlu1 %6211 }
 0x5dc   : > { %v6383_v53 = vadd.f32 %v6212_v14, %v5903_v35  ;;  %v6216_v3 = vpop.xlane.xlu0 %6215  ;;  %6542 = vst.msk [vmem:[#allocation2 + $0x490] sm:$0xff] %vm6395_vm13, %v6381_v48 }
 0x5dd   : > { %v6385_v23 = vadd.f32 %v6216_v3, %v5905_v18 }
 0x5de   : > { %6544 = vst.msk [vmem:[#allocation2 + $0x4a0] sm:$0xff] %vm6395_vm13, %v6383_v53 }
 0x5df   : > { %6546 = vst.msk [vmem:[#allocation2 + $0x4b0] sm:$0xff] %vm6395_vm13, %v6385_v23 }
 0x5e1   : > { %v6214_v40 = vpop.xlane.xlu2 %6213 }
 0x5e2   : > { %v6384_v38 = vadd.f32 %v6214_v40, %v5904_v33 }
 0x5e3   : > { %v6218_v22 = vpop.xlane.xlu1 %6217 }
 0x5e4   : > { %v6386_v62 = vadd.f32 %v6218_v22, %v5906_v2  ;;  %v6222_v4 = vpop.xlane.xlu0 %6221  ;;  %6545 = vst.msk [vmem:[#allocation2 + $0x4a8] sm:$0xff] %vm6395_vm13, %v6384_v38 }
 0x5e5   : > { %v6388_v44 = vadd.f32 %v6222_v4, %v5908_v57 }
 0x5e6   : > { %6547 = vst.msk [vmem:[#allocation2 + $0x4b8] sm:$0xff] %vm6395_vm13, %v6386_v62 }
 0x5e7   : > { %6549 = vst.msk [vmem:[#allocation2 + $0x4c8] sm:$0xff] %vm6395_vm13, %v6388_v44 }
 0x5e9   : > { %v6220_v26 = vpop.xlane.xlu2 %6219 }
 0x5ea   : > { %v6387_v15 = vadd.f32 %v6220_v26, %v5907_v16 }
 0x5eb   : > { %v6224_v45 = vpop.xlane.xlu1 %6223 }
 0x5ec   : > { %v6389_v25 = vadd.f32 %v6224_v45, %v5909_v36  ;;  %v6228_v24 = vpop.xlane.xlu0 %6227  ;;  %6548 = vst.msk [vmem:[#allocation2 + $0x4c0] sm:$0xff] %vm6395_vm13, %v6387_v15 }
 0x5ed   : > { %v6391_v5 = vadd.f32 %v6228_v24, %v5911_v13 }
 0x5ee   : > { %6550 = vst.msk [vmem:[#allocation2 + $0x4d0] sm:$0xff] %vm6395_vm13, %v6389_v25 }
 0x5ef   : > { %6552 = vst.msk [vmem:[#allocation2 + $0x4e0] sm:$0xff] %vm6395_vm13, %v6391_v5 }
 0x5f1   : > { %v6226_v52 = vpop.xlane.xlu2 %6225 }
 0x5f2   : > { %v6390_v60 = vadd.f32 %v6226_v52, %v5910_v11 }
 0x5f3   : > { %v6230_v61 = vpop.xlane.xlu1 %6229 }
 0x5f4   : > { %v6392_v56 = vadd.f32 %v6230_v61, %v5912_v10  ;;  %v6234_v27 = vpop.xlane.xlu0 %6233  ;;  %6551 = vst.msk [vmem:[#allocation2 + $0x4d8] sm:$0xff] %vm6395_vm13, %v6390_v60 }
 0x5f5   : > { %v6394_v17 = vadd.f32 %v6234_v27, %v5914_v31 }
 0x5f6   : > { %6553 = vst.msk [vmem:[#allocation2 + $0x4e8] sm:$0xff] %vm6395_vm13, %v6392_v56 }
 0x5f7   : > { %6555 = vst.msk [vmem:[#allocation2 + $0x4f8] sm:$0xff] %vm6395_vm13, %v6394_v17 }
 0x5f8   : > { %6559 = sbr.rel (%p7381_p12) target bundleno = 1777 (0x6f1), region = 86 }
 0x5f9   : > { %v6232_v51 = vpop.xlane.xlu2 %6231 }
 0x5fa   : > { %v6393_v21 = vadd.f32 %v6232_v51, %v5913_v42 }
 0x5fc   : > { %6554 = vst.msk [vmem:[#allocation2 + $0x4f0] sm:$0xff] %vm6395_vm13, %v6393_v21 }
 0x5fd   : > { %v6575_v39 = vld [vmem:[#allocation2 + $0x78] sm:$0xff]  ;;  %v6574_v12 = vld [vmem:[#allocation2 + $0x70] sm:$0xff]  ;;  %v6573_v49 = vld [vmem:[#allocation2 + $0x68] sm:$0xff]  ;;  %vm7133_vm10 = vcmask 1024  }
 0x5fe   : > { %v6607_v37 = vld [vmem:[#allocation2 + $0x178] sm:$0xff]  ;;  %v6735_v9 = vmul.f32 0.00390625, %v6575_v39  ;;  %v6734_v59 = vmul.f32 0.00390625, %v6574_v12  ;;  %v6606_v0 = vld [vmem:[#allocation2 + $0x170] sm:$0xff]  ;;  %v6605_v63 = vld [vmem:[#allocation2 + $0x168] sm:$0xff]  ;;  %v6733_v41 = vmul.f32 0.00390625, %v6573_v49 }
 0x5ff   : > { %v6767_v43 = vmul.f32 0.00390625, %v6607_v37  ;;  %v6591_v19 = vld [vmem:[#allocation2 + $0xf8] sm:$0xff]  ;;  %v6766_v1 = vmul.f32 0.00390625, %v6606_v0  ;;  %v6590_v30 = vld [vmem:[#allocation2 + $0xf0] sm:$0xff]  ;;  %v6765_v46 = vmul.f32 0.00390625, %v6605_v63  ;;  %v6572_v8 = vld [vmem:[#allocation2 + $0x60] sm:$0xff] }
 0x600   : > { %v6623_v34 = vld [vmem:[#allocation2 + $0x1f8] sm:$0xff]  ;;  %v6751_v20 = vmul.f32 0.00390625, %v6591_v19  ;;  %6902 = vmatpush.msra.mxu0 %v6735_v9  ;;  %v6750_v54 = vmul.f32 0.00390625, %v6590_v30  ;;  %v6622_v6 = vld [vmem:[#allocation2 + $0x1f0] sm:$0xff]  ;;  %v6589_v58 = vld [vmem:[#allocation2 + $0xe8] sm:$0xff]  ;;  %v6732_v35 = vmul.f32 0.00390625, %v6572_v8 }
 0x601   : > { %v6783_v55 = vmul.f32 0.00390625, %v6623_v34  ;;  %6948 = vmatpush.msra.mxu2 %v6767_v43  ;;  %v6782_v47 = vmul.f32 0.00390625, %v6622_v6  ;;  %v6749_v7 = vmul.f32 0.00390625, %v6589_v58  ;;  %v6604_v50 = vld [vmem:[#allocation2 + $0x160] sm:$0xff]  ;;  %v6621_v28 = vld [vmem:[#allocation2 + $0x1e8] sm:$0xff]  ;;  %v6571_v29 = vld [vmem:[#allocation2 + $0x58] sm:$0xff] }
 0x602   : > { %6925 = vmatpush.msra.mxu1 %v6751_v20  ;;  %6903 = vmatpush.msra.mxu0 %v6734_v59  ;;  %v6764_v18 = vmul.f32 0.00390625, %v6604_v50  ;;  %v6781_v32 = vmul.f32 0.00390625, %v6621_v28  ;;  %v6588_v14 = vld [vmem:[#allocation2 + $0xe0] sm:$0xff]  ;;  %v6603_v48 = vld [vmem:[#allocation2 + $0x158] sm:$0xff]  ;;  %v6570_v33 = vld [vmem:[#allocation2 + $0x50] sm:$0xff]  ;;  %v6731_v40 = vmul.f32 0.00390625, %v6571_v29 }
 0x603   : > { %6971 = vmatpush.msra.mxu3 %v6783_v55  ;;  %6949 = vmatpush.msra.mxu2 %v6766_v1  ;;  %v6620_v53 = vld [vmem:[#allocation2 + $0x1e0] sm:$0xff]  ;;  %v6748_v3 = vmul.f32 0.00390625, %v6588_v14  ;;  %v6587_v2 = vld [vmem:[#allocation2 + $0xd8] sm:$0xff]  ;;  %v6602_v57 = vld [vmem:[#allocation2 + $0x150] sm:$0xff]  ;;  %v6763_v22 = vmul.f32 0.00390625, %v6603_v48  ;;  %v6730_v26 = vmul.f32 0.00390625, %v6570_v33 }
 0x604   : > { %6926 = vmatpush.msra.mxu1 %v6750_v54  ;;  %v6780_v23 = vmul.f32 0.00390625, %v6620_v53  ;;  %6904 = vmatpush.msra.mxu0 %v6733_v41  ;;  %v6619_v38 = vld [vmem:[#allocation2 + $0x1d8] sm:$0xff]  ;;  %v6586_v62 = vld [vmem:[#allocation2 + $0xd0] sm:$0xff]  ;;  %v6747_v4 = vmul.f32 0.00390625, %v6587_v2  ;;  %v6569_v16 = vld [vmem:[#allocation2 + $0x48] sm:$0xff]  ;;  %v6762_v45 = vmul.f32 0.00390625, %v6602_v57 }
 0x605   : > { %6972 = vmatpush.msra.mxu3 %v6782_v47  ;;  %6950 = vmatpush.msra.mxu2 %v6765_v46  ;;  %v6779_v44 = vmul.f32 0.00390625, %v6619_v38  ;;  %v6601_v36 = vld [vmem:[#allocation2 + $0x148] sm:$0xff]  ;;  %v6618_v13 = vld [vmem:[#allocation2 + $0x1d0] sm:$0xff]  ;;  %v6746_v24 = vmul.f32 0.00390625, %v6586_v62  ;;  %v6568_v11 = vld [vmem:[#allocation2 + $0x40] sm:$0xff]  ;;  %v6729_v31 = vmul.f32 0.00390625, %v6569_v16 }
 0x606   : > { %6927 = vmatpush.msra.mxu1 %v6749_v7  ;;  %6905 = vmatpush.msra.mxu0 %v6732_v35  ;;  %v6585_v15 = vld [vmem:[#allocation2 + $0xc8] sm:$0xff]  ;;  %v6778_v5 = vmul.f32 0.00390625, %v6618_v13  ;;  %v6600_v10 = vld [vmem:[#allocation2 + $0x140] sm:$0xff]  ;;  %v6761_v52 = vmul.f32 0.00390625, %v6601_v36  ;;  %v6567_v17 = vld [vmem:[#allocation2 + $0x38] sm:$0xff]  ;;  %v6728_v51 = vmul.f32 0.00390625, %v6568_v11 }
 0x607   : > { %6973 = vmatpush.msra.mxu3 %v6781_v32  ;;  %6951 = vmatpush.msra.mxu2 %v6764_v18  ;;  %v6617_v25 = vld [vmem:[#allocation2 + $0x1c8] sm:$0xff]  ;;  %v6584_v61 = vld [vmem:[#allocation2 + $0xc0] sm:$0xff]  ;;  %v6745_v56 = vmul.f32 0.00390625, %v6585_v15  ;;  %v6599_v42 = vld [vmem:[#allocation2 + $0x138] sm:$0xff]  ;;  %v6760_v21 = vmul.f32 0.00390625, %v6600_v10  ;;  %v6727_v19 = vmul.f32 0.00390625, %v6567_v17 }
 0x608   : > { %6928 = vmatpush.msra.mxu1 %v6748_v3  ;;  %6906 = vmatpush.msra.mxu0 %v6731_v40  ;;  %v6616_v60 = vld [vmem:[#allocation2 + $0x1c0] sm:$0xff]  ;;  %v6777_v27 = vmul.f32 0.00390625, %v6617_v25  ;;  %v6583_v39 = vld [vmem:[#allocation2 + $0xb8] sm:$0xff]  ;;  %v6744_v12 = vmul.f32 0.00390625, %v6584_v61  ;;  %v6566_v43 = vld [vmem:[#allocation2 + $0x30] sm:$0xff]  ;;  %v6759_v0 = vmul.f32 0.00390625, %v6599_v42 }
 0x609   : > { %6974 = vmatpush.msra.mxu3 %v6780_v23  ;;  %6952 = vmatpush.msra.mxu2 %v6763_v22  ;;  %v6615_v37 = vld [vmem:[#allocation2 + $0x1b8] sm:$0xff]  ;;  %v6776_v9 = vmul.f32 0.00390625, %v6616_v60  ;;  %v6598_v59 = vld [vmem:[#allocation2 + $0x130] sm:$0xff]  ;;  %v6743_v1 = vmul.f32 0.00390625, %v6583_v39  ;;  %v6565_v49 = vld [vmem:[#allocation2 + $0x28] sm:$0xff]  ;;  %v6726_v63 = vmul.f32 0.00390625, %v6566_v43 }
 0x60a   : > { %6929 = vmatpush.msra.mxu1 %v6747_v4  ;;  %6907 = vmatpush.msra.mxu0 %v6730_v26  ;;  %v6582_v34 = vld [vmem:[#allocation2 + $0xb0] sm:$0xff]  ;;  %v6775_v55 = vmul.f32 0.00390625, %v6615_v37  ;;  %v6597_v30 = vld [vmem:[#allocation2 + $0x128] sm:$0xff]  ;;  %v6758_v41 = vmul.f32 0.00390625, %v6598_v59  ;;  %v6564_v58 = vld [vmem:[#allocation2 + $0x20] sm:$0xff]  ;;  %v6725_v7 = vmul.f32 0.00390625, %v6565_v49 }
 0x60b   : > { %6975 = vmatpush.msra.mxu3 %v6779_v44  ;;  %6953 = vmatpush.msra.mxu2 %v6762_v45  ;;  %v6614_v20 = vld [vmem:[#allocation2 + $0x1b0] sm:$0xff]  ;;  %v6581_v54 = vld [vmem:[#allocation2 + $0xa8] sm:$0xff]  ;;  %v6742_v6 = vmul.f32 0.00390625, %v6582_v34  ;;  %v6596_v47 = vld [vmem:[#allocation2 + $0x120] sm:$0xff]  ;;  %v6757_v50 = vmul.f32 0.00390625, %v6597_v30  ;;  %v6724_v48 = vmul.f32 0.00390625, %v6564_v58 }
 0x60c   : > { %6930 = vmatpush.msra.mxu1 %v6746_v24  ;;  %6908 = vmatpush.msra.mxu0 %v6729_v31  ;;  %v6613_v46 = vld [vmem:[#allocation2 + $0x1a8] sm:$0xff]  ;;  %v6774_v8 = vmul.f32 0.00390625, %v6614_v20  ;;  %v6580_v28 = vld [vmem:[#allocation2 + $0xa0] sm:$0xff]  ;;  %v6741_v35 = vmul.f32 0.00390625, %v6581_v54  ;;  %v6563_v32 = vld [vmem:[#allocation2 + $0x18] sm:$0xff]  ;;  %v6756_v53 = vmul.f32 0.00390625, %v6596_v47 }
 0x60d   : > { %6976 = vmatpush.msra.mxu3 %v6778_v5  ;;  %6954 = vmatpush.msra.mxu2 %v6761_v52  ;;  %v6612_v29 = vld [vmem:[#allocation2 + $0x1a0] sm:$0xff]  ;;  %v6773_v18 = vmul.f32 0.00390625, %v6613_v46  ;;  %v6595_v14 = vld [vmem:[#allocation2 + $0x118] sm:$0xff]  ;;  %v6740_v33 = vmul.f32 0.00390625, %v6580_v28  ;;  %v6562_v57 = vld [vmem:[#allocation2 + $0x10] sm:$0xff]  ;;  %v6723_v22 = vmul.f32 0.00390625, %v6563_v32 }
 0x60e   : > { %6931 = vmatpush.msra.mxu1 %v6745_v56  ;;  %6909 = vmatpush.msra.mxu0 %v6728_v51  ;;  %v6579_v3 = vld [vmem:[#allocation2 + $0x98] sm:$0xff]  ;;  %v6772_v2 = vmul.f32 0.00390625, %v6612_v29  ;;  %v6594_v40 = vld [vmem:[#allocation2 + $0x110] sm:$0xff]  ;;  %v6755_v38 = vmul.f32 0.00390625, %v6595_v14  ;;  %v6561_v36 = vld [vmem:[#allocation2 + $0x8] sm:$0xff]  ;;  %v6722_v26 = vmul.f32 0.00390625, %v6562_v57 }
 0x60f   : > { %6977 = vmatpush.msra.mxu3 %v6777_v27  ;;  %6955 = vmatpush.msra.mxu2 %v6760_v21  ;;  %v6611_v23 = vld [vmem:[#allocation2 + $0x198] sm:$0xff]  ;;  %v6578_v62 = vld [vmem:[#allocation2 + $0x90] sm:$0xff]  ;;  %v6739_v44 = vmul.f32 0.00390625, %v6579_v3  ;;  %v6593_v13 = vld [vmem:[#allocation2 + $0x108] sm:$0xff]  ;;  %v6754_v45 = vmul.f32 0.00390625, %v6594_v40  ;;  %v6721_v31 = vmul.f32 0.00390625, %v6561_v36 }
 0x610   : > { %6932 = vmatpush.msra.mxu1 %v6744_v12  ;;  %6910 = vmatpush.msra.mxu0 %v6727_v19  ;;  %v6610_v4 = vld [vmem:[#allocation2 + $0x190] sm:$0xff]  ;;  %v6771_v16 = vmul.f32 0.00390625, %v6611_v23  ;;  %v6577_v15 = vld [vmem:[#allocation2 + $0x88] sm:$0xff]  ;;  %v6738_v24 = vmul.f32 0.00390625, %v6578_v62  ;;  %v6560_v11 = vld [vmem:[#allocation2] sm:$0xff]  ;;  %v6753_v52 = vmul.f32 0.00390625, %v6593_v13 }
 0x611   : > { %6978 = vmatpush.msra.mxu3 %v6776_v9  ;;  %6956 = vmatpush.msra.mxu2 %v6759_v0  ;;  %v6609_v25 = vld [vmem:[#allocation2 + $0x188] sm:$0xff]  ;;  %v6770_v5 = vmul.f32 0.00390625, %v6610_v4  ;;  %v6592_v10 = vld [vmem:[#allocation2 + $0x100] sm:$0xff]  ;;  %v6639_v61 = vld [vmem:[#allocation2 + $0x278] sm:$0xff]  ;;  %v6737_v56 = vmul.f32 0.00390625, %v6577_v15  ;;  %v6720_v51 = vmul.f32 0.00390625, %v6560_v11 }
 0x612   : > { %6933 = vmatpush.msra.mxu1 %v6743_v1  ;;  %6911 = vmatpush.msra.mxu0 %v6726_v63  ;;  %v6671_v60 = vld [vmem:[#allocation2 + $0x378] sm:$0xff]  ;;  %v6769_v27 = vmul.f32 0.00390625, %v6609_v25  ;;  %v6576_v17 = vld [vmem:[#allocation2 + $0x80] sm:$0xff]  ;;  %v6752_v21 = vmul.f32 0.00390625, %v6592_v10  ;;  %v6638_v39 = vld [vmem:[#allocation2 + $0x270] sm:$0xff]  ;;  %v6799_v12 = vmul.f32 0.00390625, %v6639_v61 }
 0x613   : > { %6979 = vmatpush.msra.mxu3 %v6775_v55  ;;  %6957 = vmatpush.msra.mxu2 %v6758_v41  ;;  %v6608_v42 = vld [vmem:[#allocation2 + $0x180] sm:$0xff]  ;;  %v6655_v37 = vld [vmem:[#allocation2 + $0x2f8] sm:$0xff]  ;;  %v6831_v9 = vmul.f32 0.00390625, %v6671_v60  ;;  %v6670_v43 = vld [vmem:[#allocation2 + $0x370] sm:$0xff]  ;;  %v6736_v19 = vmul.f32 0.00390625, %v6576_v17  ;;  %v6798_v1 = vmul.f32 0.00390625, %v6638_v39 }
 0x614   : > { %6934 = vmatpush.msra.mxu1 %v6742_v6  ;;  %6912 = vmatpush.msra.mxu0 %v6725_v7  ;;  %v6687_v59 = vld [vmem:[#allocation2 + $0x3f8] sm:$0xff]  ;;  %v6768_v0 = vmul.f32 0.00390625, %v6608_v42  ;;  %v6637_v34 = vld [vmem:[#allocation2 + $0x268] sm:$0xff]  ;;  %v6654_v20 = vld [vmem:[#allocation2 + $0x2f0] sm:$0xff]  ;;  %v6815_v55 = vmul.f32 0.00390625, %v6655_v37  ;;  %v6830_v63 = vmul.f32 0.00390625, %v6670_v43 }
 0x615   : > { %6980 = vmatpush.msra.mxu3 %v6774_v8  ;;  %6958 = vmatpush.msra.mxu2 %v6757_v50  ;;  %v6669_v49 = vld [vmem:[#allocation2 + $0x368] sm:$0xff]  ;;  %v6686_v30 = vld [vmem:[#allocation2 + $0x3f0] sm:$0xff]  ;;  %v6847_v41 = vmul.f32 0.00390625, %v6687_v59  ;;  %v6636_v54 = vld [vmem:[#allocation2 + $0x260] sm:$0xff]  ;;  %v6797_v6 = vmul.f32 0.00390625, %v6637_v34  ;;  %v6814_v8 = vmul.f32 0.00390625, %v6654_v20 }
 0x616   : > { %6935 = vmatpush.msra.mxu1 %v6741_v35  ;;  %6913 = vmatpush.msra.mxu0 %v6724_v48  ;;  %v6653_v46 = vld [vmem:[#allocation2 + $0x2e8] sm:$0xff]  ;;  %v6668_v58 = vld [vmem:[#allocation2 + $0x360] sm:$0xff]  ;;  %v6829_v7 = vmul.f32 0.00390625, %v6669_v49  ;;  %v6846_v50 = vmul.f32 0.00390625, %v6686_v30  ;;  %v6635_v28 = vld [vmem:[#allocation2 + $0x258] sm:$0xff]  ;;  %v6796_v35 = vmul.f32 0.00390625, %v6636_v54 }
 0x617   : > { %6981 = vmatpush.msra.mxu3 %v6773_v18  ;;  %6959 = vmatpush.msra.mxu2 %v6756_v53  ;;  %v6685_v47 = vld [vmem:[#allocation2 + $0x3e8] sm:$0xff]  ;;  %v6652_v29 = vld [vmem:[#allocation2 + $0x2e0] sm:$0xff]  ;;  %v6813_v18 = vmul.f32 0.00390625, %v6653_v46  ;;  %v6667_v32 = vld [vmem:[#allocation2 + $0x358] sm:$0xff]  ;;  %v6828_v48 = vmul.f32 0.00390625, %v6668_v58 }
 0x618   : > { %6936 = vmatpush.msra.mxu1 %v6740_v33  ;;  %6914 = vmatpush.msra.mxu0 %v6723_v22  ;;  %v6684_v14 = vld [vmem:[#allocation2 + $0x3e0] sm:$0xff]  ;;  %v6845_v53 = vmul.f32 0.00390625, %v6685_v47  ;;  %v6634_v3 = vld [vmem:[#allocation2 + $0x250] sm:$0xff]  ;;  %v6651_v23 = vld [vmem:[#allocation2 + $0x2d8] sm:$0xff]  ;;  %v6795_v33 = vmul.f32 0.00390625, %v6635_v28  ;;  %v6827_v22 = vmul.f32 0.00390625, %v6667_v32 }
 0x619   : > { %6982 = vmatpush.msra.mxu3 %v6772_v2  ;;  %6960 = vmatpush.msra.mxu2 %v6755_v38  ;;  %v6812_v2 = vmul.f32 0.00390625, %v6652_v29  ;;  %v6666_v57 = vld [vmem:[#allocation2 + $0x350] sm:$0xff]  ;;  %v6683_v40 = vld [vmem:[#allocation2 + $0x3d8] sm:$0xff]  ;;  %v6844_v38 = vmul.f32 0.00390625, %v6684_v14  ;;  %v6633_v62 = vld [vmem:[#allocation2 + $0x248] sm:$0xff] }
 0x61a   : > { %6937 = vmatpush.msra.mxu1 %v6739_v44  ;;  %6915 = vmatpush.msra.mxu0 %v6722_v26  ;;  %v6650_v4 = vld [vmem:[#allocation2 + $0x2d0] sm:$0xff]  ;;  %v6794_v44 = vmul.f32 0.00390625, %v6634_v3  ;;  %v6665_v36 = vld [vmem:[#allocation2 + $0x348] sm:$0xff]  ;;  %v6826_v26 = vmul.f32 0.00390625, %v6666_v57  ;;  %v6632_v15 = vld [vmem:[#allocation2 + $0x240] sm:$0xff] }
 0x61b   : > { %6983 = vmatpush.msra.mxu3 %v6771_v16  ;;  %6961 = vmatpush.msra.mxu2 %v6754_v45  ;;  %v6811_v16 = vmul.f32 0.00390625, %v6651_v23  ;;  %v6682_v13 = vld [vmem:[#allocation2 + $0x3d0] sm:$0xff]  ;;  %v6843_v45 = vmul.f32 0.00390625, %v6683_v40  ;;  %v6649_v25 = vld [vmem:[#allocation2 + $0x2c8] sm:$0xff]  ;;  %v6664_v11 = vld [vmem:[#allocation2 + $0x340] sm:$0xff] }
 0x61c   : > { %6938 = vmatpush.msra.mxu1 %v6738_v24  ;;  %6916 = vmatpush.msra.mxu0 %v6721_v31  ;;  %v6793_v24 = vmul.f32 0.00390625, %v6633_v62  ;;  %v6681_v10 = vld [vmem:[#allocation2 + $0x3c8] sm:$0xff]  ;;  %v6825_v31 = vmul.f32 0.00390625, %v6665_v36  ;;  %v6631_v61 = vld [vmem:[#allocation2 + $0x238] sm:$0xff]  ;;  %v6648_v60 = vld [vmem:[#allocation2 + $0x2c0] sm:$0xff] }
 0x61d   : > { %6984 = vmatpush.msra.mxu3 %v6770_v5  ;;  %6962 = vmatpush.msra.mxu2 %v6753_v52  ;;  %v6810_v5 = vmul.f32 0.00390625, %v6650_v4  ;;  %v6842_v52 = vmul.f32 0.00390625, %v6682_v13  ;;  %v6663_v17 = vld [vmem:[#allocation2 + $0x338] sm:$0xff]  ;;  %v6680_v42 = vld [vmem:[#allocation2 + $0x3c0] sm:$0xff]  ;;  %v6630_v39 = vld [vmem:[#allocation2 + $0x230] sm:$0xff] }
 0x61e   : > { %6939 = vmatpush.msra.mxu1 %v6737_v56  ;;  %6917 = vmatpush.msra.mxu0 %v6720_v51  ;;  %v6792_v56 = vmul.f32 0.00390625, %v6632_v15  ;;  %v6824_v51 = vmul.f32 0.00390625, %v6664_v11  ;;  %v6647_v37 = vld [vmem:[#allocation2 + $0x2b8] sm:$0xff]  ;;  %v6662_v43 = vld [vmem:[#allocation2 + $0x330] sm:$0xff]  ;;  %v6629_v34 = vld [vmem:[#allocation2 + $0x228] sm:$0xff] }
 0x61f   : > { %6985 = vmatpush.msra.mxu3 %v6769_v27  ;;  %6963 = vmatpush.msra.mxu2 %v6752_v21  ;;  %v6809_v27 = vmul.f32 0.00390625, %v6649_v25  ;;  %v6841_v21 = vmul.f32 0.00390625, %v6681_v10  ;;  %v6679_v59 = vld [vmem:[#allocation2 + $0x3b8] sm:$0xff]  ;;  %v6646_v20 = vld [vmem:[#allocation2 + $0x2b0] sm:$0xff]  ;;  %v6661_v49 = vld [vmem:[#allocation2 + $0x328] sm:$0xff]  ;;  %v6789_v46 = vmul.f32 0.00390625, %v6629_v34 }
 0x620   : > { %6994 = vmatpush.msrb.mxu0 %v6799_v12  ;;  %6940 = vmatpush.msra.mxu1 %v6736_v19  ;;  %v6791_v12 = vmul.f32 0.00390625, %v6631_v61  ;;  %v6823_v19 = vmul.f32 0.00390625, %v6663_v17  ;;  %v6678_v30 = vld [vmem:[#allocation2 + $0x3b0] sm:$0xff]  ;;  %v6628_v54 = vld [vmem:[#allocation2 + $0x220] sm:$0xff]  ;;  %v6821_v47 = vmul.f32 0.00390625, %v6661_v49  ;;  %v6627_v29 = vld [vmem:[#allocation2 + $0x218] sm:$0xff] }
 0x621   : > { %7040 = vmatpush.msrb.mxu2 %v6831_v9  ;;  %6986 = vmatpush.msra.mxu3 %v6768_v0  ;;  %v6808_v9 = vmul.f32 0.00390625, %v6648_v60  ;;  %v6840_v0 = vmul.f32 0.00390625, %v6680_v42  ;;  %v6660_v58 = vld [vmem:[#allocation2 + $0x320] sm:$0xff]  ;;  %v6788_v28 = vmul.f32 0.00390625, %v6628_v54  ;;  %v6643_v57 = vld [vmem:[#allocation2 + $0x298] sm:$0xff]  ;;  %v6658_v62 = vld [vmem:[#allocation2 + $0x310] sm:$0xff] }
 0x622   : > { %6995 = vmatpush.msrb.mxu0 %v6798_v1  ;;  %7017 = vmatpush.msrb.mxu1 %v6815_v55  ;;  %v6790_v1 = vmul.f32 0.00390625, %v6630_v39  ;;  %v6807_v55 = vmul.f32 0.00390625, %v6647_v37  ;;  %v6820_v32 = vmul.f32 0.00390625, %v6660_v58  ;;  %v6644_v14 = vld [vmem:[#allocation2 + $0x2a0] sm:$0xff]  ;;  %v6883_v40 = vld [vmem:[%s16420_s3 + $0x18] sm:$0xff]  ;;  %v6642_v36 = vld [vmem:[#allocation2 + $0x290] sm:$0xff] }
 0x623   : > { %7041 = vmatpush.msrb.mxu2 %v6830_v63  ;;  %7063 = vmatpush.msrb.mxu3 %v6847_v41  ;;  %v6822_v63 = vmul.f32 0.00390625, %v6662_v43  ;;  %v6839_v41 = vmul.f32 0.00390625, %v6679_v59  ;;  %v6676_v3 = vld [vmem:[#allocation2 + $0x3a0] sm:$0xff]  ;;  %v6675_v4 = vld [vmem:[#allocation2 + $0x398] sm:$0xff]  ;;  %v6881_v13 = vld [vmem:[%s16420_s3 + $0x8] sm:$0xff] }
 0x624   : > { %6996 = vmatpush.msrb.mxu0 %v6797_v6  ;;  %7018 = vmatpush.msrb.mxu1 %v6814_v8  ;;  %v6806_v6 = vmul.f32 0.00390625, %v6646_v20  ;;  %v6645_v8 = vld [vmem:[#allocation2 + $0x2a8] sm:$0xff]  ;;  %v6880_v23 = vld [vmem:[%s16420_s3] sm:$0xff]  ;;  %v6674_v25 = vld [vmem:[#allocation2 + $0x390] sm:$0xff] }
 0x625   : > { %7042 = vmatpush.msrb.mxu2 %v6829_v7  ;;  %7064 = vmatpush.msrb.mxu3 %v6846_v50  ;;  %v6838_v7 = vmul.f32 0.00390625, %v6678_v30  ;;  %v6677_v50 = vld [vmem:[#allocation2 + $0x3a8] sm:$0xff]  ;;  %v6624_v11 = vld [vmem:[#allocation2 + $0x200] sm:$0xff]  ;;  %v6703_v17 = vld [vmem:[#allocation2 + $0x478] sm:$0xff] }
 0x626   : > { %6997 = vmatpush.msrb.mxu0 %v6796_v35  ;;  %7019 = vmatpush.msrb.mxu1 %v6813_v18  ;;  %v6882_v35 = vld [vmem:[%s16420_s3 + $0x10] sm:$0xff]  ;;  %v6805_v18 = vmul.f32 0.00390625, %v6645_v8  ;;  %v6657_v15 = vld [vmem:[#allocation2 + $0x308] sm:$0xff]  ;;  %v6656_v61 = vld [vmem:[#allocation2 + $0x300] sm:$0xff]  ;;  %v6784_v42 = vmul.f32 0.00390625, %v6624_v11 }
 0x627   : > { %7043 = vmatpush.msrb.mxu2 %v6828_v48  ;;  %7065 = vmatpush.msrb.mxu3 %v6845_v53  ;;  %v6659_v48 = vld [vmem:[#allocation2 + $0x318] sm:$0xff]  ;;  %v6837_v53 = vmul.f32 0.00390625, %v6677_v50  ;;  %v6817_v60 = vmul.f32 0.00390625, %v6657_v15  ;;  %v6816_v39 = vmul.f32 0.00390625, %v6656_v61  ;;  %v6640_v37 = vld [vmem:[#allocation2 + $0x280] sm:$0xff]  ;;  %v6702_v59 = vld [vmem:[#allocation2 + $0x470] sm:$0xff] }
 0x628   : > { %6998 = vmatpush.msrb.mxu0 %v6795_v33  ;;  %7020 = vmatpush.msrb.mxu1 %v6812_v2  ;;  %v6787_v33 = vmul.f32 0.00390625, %v6627_v29  ;;  %v6626_v2 = vld [vmem:[#allocation2 + $0x210] sm:$0xff]  ;;  %v6672_v43 = vld [vmem:[#allocation2 + $0x380] sm:$0xff]  ;;  %v6800_v34 = vmul.f32 0.00390625, %v6640_v37  ;;  %v6893_v20 = vld [vmem:[%s16420_s3 + $0x68] sm:$0x3] }
 0x629   : > { %7044 = vmatpush.msrb.mxu2 %v6827_v22  ;;  %7066 = vmatpush.msrb.mxu3 %v6844_v38  ;;  %v6804_v22 = vmul.f32 0.00390625, %v6644_v14  ;;  %v6819_v38 = vmul.f32 0.00390625, %v6659_v48  ;;  %v6701_v49 = vld [vmem:[#allocation2 + $0x468] sm:$0xff]  ;;  %v6891_v54 = vld [vmem:[%s16420_s3 + $0x58] sm:$0x3]  ;;  %v6698_v29 = vld [vmem:[#allocation2 + $0x450] sm:$0xff] }
 0x62a   : > { %6999 = vmatpush.msrb.mxu0 %v6794_v44  ;;  %7021 = vmatpush.msrb.mxu1 %v6811_v16  ;;  %v6836_v44 = vmul.f32 0.00390625, %v6676_v3  ;;  %v6625_v16 = vld [vmem:[#allocation2 + $0x208] sm:$0xff]  ;;  %v6699_v58 = vld [vmem:[#allocation2 + $0x458] sm:$0xff]  ;;  %v6884_v14 = vld [vmem:[%s16420_s3 + $0x20] sm:$0xff]  ;;  %v6858_v48 = vmul.f32 0.00390625, %v6698_v29 }
 0x62b   : > { %7045 = vmatpush.msrb.mxu2 %v6826_v26  ;;  %7067 = vmatpush.msrb.mxu3 %v6843_v45  ;;  %v6786_v26 = vmul.f32 0.00390625, %v6626_v2  ;;  %v6803_v45 = vmul.f32 0.00390625, %v6643_v57  ;;  %v6785_v10 = vmul.f32 0.00390625, %v6625_v16  ;;  %v6887_v3 = vld [vmem:[%s16420_s3 + $0x38] sm:$0xff]  ;;  %v6696_v2 = vld [vmem:[#allocation2 + $0x440] sm:$0xff]  ;;  %v6885_v57 = vld [vmem:[%s16420_s3 + $0x28] sm:$0xff] }
 0x62c   : > { %7000 = vmatpush.msrb.mxu0 %v6793_v24  ;;  %7022 = vmatpush.msrb.mxu1 %v6810_v5  ;;  %v6818_v24 = vmul.f32 0.00390625, %v6658_v62  ;;  %v6835_v5 = vmul.f32 0.00390625, %v6675_v4  ;;  %v6695_v62 = vld [vmem:[#allocation2 + $0x438] sm:$0xff]  ;;  %v6856_v4 = vmul.f32 0.00390625, %v6696_v2  ;;  %v6897_v11 = vld [vmem:[%s16420_s3 + $0x88] sm:$0x3] }
 0x62d   : > { %7046 = vmatpush.msrb.mxu2 %v6825_v31  ;;  %7068 = vmatpush.msrb.mxu3 %v6842_v52  ;;  %v6802_v31 = vmul.f32 0.00390625, %v6642_v36  ;;  %v6641_v52 = vld [vmem:[#allocation2 + $0x288] sm:$0xff]  ;;  %v6855_v36 = vmul.f32 0.00390625, %v6695_v62  ;;  %v6711_v15 = vld [vmem:[#allocation2 + $0x4b8] sm:$0xff] }
 0x62e   : > { %7001 = vmatpush.msrb.mxu0 %v6792_v56  ;;  %7023 = vmatpush.msrb.mxu1 %v6809_v27  ;;  %v6834_v56 = vmul.f32 0.00390625, %v6674_v25  ;;  %v6673_v27 = vld [vmem:[#allocation2 + $0x388] sm:$0xff]  ;;  %v6894_v25 = vld [vmem:[%s16420_s3 + $0x70] sm:$0x3]  ;;  %v6895_v61 = vld [vmem:[%s16420_s3 + $0x78] sm:$0x3] }
 0x62f   : > { %7047 = vmatpush.msrb.mxu2 %v6824_v51  ;;  %7069 = vmatpush.msrb.mxu3 %v6841_v21  ;;  %v6892_v51 = vld [vmem:[%s16420_s3 + $0x60] sm:$0x3]  ;;  %v6801_v21 = vmul.f32 0.00390625, %v6641_v52 }
 0x630   : > { %7002 = vmatpush.msrb.mxu0 %v6791_v12  ;;  %7024 = vmatpush.msrb.mxu1 %v6808_v9  ;;  %v6833_v12 = vmul.f32 0.00390625, %v6673_v27  ;;  %v6863_v9 = vmul.f32 0.00390625, %v6703_v17  ;;  %v6692_v52 = vld [vmem:[#allocation2 + $0x420] sm:$0xff]  ;;  %v6691_v17 = vld [vmem:[#allocation2 + $0x418] sm:$0xff] }
 0x631   : > { %7048 = vmatpush.msrb.mxu2 %v6823_v19  ;;  %7070 = vmatpush.msrb.mxu3 %v6840_v0  ;;  %v6719_v19 = vld [vmem:[#allocation2 + $0x4f8] sm:$0xff]  ;;  %v6890_v0 = vld [vmem:[%s16420_s3 + $0x50] sm:$0x3]  ;;  %v6851_v37 = vmul.f32 0.00390625, %v6691_v17 }
 0x632   : > { %7003 = vmatpush.msrb.mxu0 %v6790_v1  ;;  %7025 = vmatpush.msrb.mxu1 %v6807_v55  ;;  %v6832_v1 = vmul.f32 0.00390625, %v6672_v43  ;;  %v6862_v55 = vmul.f32 0.00390625, %v6702_v59  ;;  %v6879_v30 = vmul.f32 0.00390625, %v6719_v19  ;;  %v6689_v43 = vld [vmem:[#allocation2 + $0x408] sm:$0xff]  ;;  %v6706_v19 = vld [vmem:[#allocation2 + $0x490] sm:$0xff] }
 0x633   : > { %7049 = vmatpush.msrb.mxu2 %v6822_v63  ;;  %7071 = vmatpush.msrb.mxu3 %v6839_v41  ;;  %v6718_v63 = vld [vmem:[#allocation2 + $0x4f0] sm:$0xff]  ;;  %v6700_v41 = vld [vmem:[#allocation2 + $0x460] sm:$0xff] }
 0x634   : > { %7004 = vmatpush.msrb.mxu0 %v6789_v46  ;;  %7026 = vmatpush.msrb.mxu1 %v6806_v6  ;;  %v6861_v46 = vmul.f32 0.00390625, %v6701_v49  ;;  %v6717_v6 = vld [vmem:[#allocation2 + $0x4e8] sm:$0xff]  ;;  %v6878_v8 = vmul.f32 0.00390625, %v6718_v63 }
 0x635   : > { %7050 = vmatpush.msrb.mxu2 %v6821_v47  ;;  %7072 = vmatpush.msrb.mxu3 %v6838_v7  ;;  %v6860_v47 = vmul.f32 0.00390625, %v6700_v41  ;;  %v6716_v7 = vld [vmem:[#allocation2 + $0x4e0] sm:$0xff]  ;;  %v6877_v50 = vmul.f32 0.00390625, %v6717_v6  ;;  %v6889_v6 = vld [vmem:[%s16420_s3 + $0x48] sm:$0xff] }
 0x636   : > { %6964 = vmatmul.f32.vlgmr.msra.gmra.mxu2 %v6882_v35  ;;  %7005 = vmatpush.msrb.mxu0 %v6788_v28  ;;  %v6859_v28 = vmul.f32 0.00390625, %v6699_v58  ;;  %v6886_v35 = vld [vmem:[%s16420_s3 + $0x30] sm:$0xff]  ;;  %v6888_v41 = vld [vmem:[%s16420_s3 + $0x40] sm:$0xff] }
 0x637   : > { %7027 = vmatpush.msrb.mxu1 %v6805_v18  ;;  %7051 = vmatpush.msrb.mxu2 %v6820_v32  ;;  %v6876_v18 = vmul.f32 0.00390625, %v6716_v7  ;;  %v6715_v32 = vld [vmem:[#allocation2 + $0x4d8] sm:$0xff]  ;;  %v6900_v7 = vld [vmem:[%s16421_s4] sm:$0xff] }
 0x638   : > { %7073 = vmatpush.msrb.mxu3 %v6837_v53  ;;  %6918 = vmatmul.f32.vlgmr.msra.gmra.mxu0 %v6880_v23  ;;  %v6697_v53 = vld [vmem:[#allocation2 + $0x448] sm:$0xff]  ;;  %v6875_v23 = vmul.f32 0.00390625, %v6715_v32 }
 0x639   : > { %6987 = vmatmul.f32.vlgmr.msra.gmra.mxu3 %v6883_v40  ;;  %7006 = vmatpush.msrb.mxu0 %v6787_v33  ;;  %v6714_v33 = vld [vmem:[#allocation2 + $0x4d0] sm:$0xff]  ;;  %v6857_v40 = vmul.f32 0.00390625, %v6697_v53 }
 0x63a   : > { %7028 = vmatpush.msrb.mxu1 %v6804_v22  ;;  %7052 = vmatpush.msrb.mxu2 %v6819_v38  ;;  %v6713_v22 = vld [vmem:[#allocation2 + $0x4c8] sm:$0xff]  ;;  %v6874_v38 = vmul.f32 0.00390625, %v6714_v33 }
 0x63b   : > { %7074 = vmatpush.msrb.mxu3 %v6836_v44  ;;  %6941 = vmatmul.f32.vlgmr.msra.gmra.mxu1 %v6881_v13  ;;  %v6712_v44 = vld [vmem:[#allocation2 + $0x4c0] sm:$0xff]  ;;  %v6873_v16 = vmul.f32 0.00390625, %v6713_v22  ;;  %v6694_v13 = vld [vmem:[#allocation2 + $0x430] sm:$0xff] }
 0x63c   : > { %7007 = vmatpush.msrb.mxu0 %v6786_v26  ;;  %7029 = vmatpush.msrb.mxu1 %v6803_v45  ;;  %v6896_v26 = vld [vmem:[%s16420_s3 + $0x80] sm:$0x3]  ;;  %v6872_v45 = vmul.f32 0.00390625, %v6712_v44 }
 0x63d   : > { %7053 = vmatpush.msrb.mxu2 %v6818_v24  ;;  %7075 = vmatpush.msrb.mxu3 %v6835_v5  ;;  %v6854_v24 = vmul.f32 0.00390625, %v6694_v13  ;;  %v6693_v5 = vld [vmem:[#allocation2 + $0x428] sm:$0xff] }
 0x63e   : > { %7008 = vmatpush.msrb.mxu0 %v6785_v10  ;;  %7030 = vmatpush.msrb.mxu1 %v6802_v31  ;;  %v6871_v10 = vmul.f32 0.00390625, %v6711_v15  ;;  %v6710_v31 = vld [vmem:[#allocation2 + $0x4b0] sm:$0xff] }
 0x63f   : > { %7054 = vmatpush.msrb.mxu2 %v6817_v60  ;;  %7076 = vmatpush.msrb.mxu3 %v6834_v56  ;;  %v6853_v60 = vmul.f32 0.00390625, %v6693_v5  ;;  %v6709_v56 = vld [vmem:[#allocation2 + $0x4a8] sm:$0xff]  ;;  %v6870_v27 = vmul.f32 0.00390625, %v6710_v31 }
 0x640   : > { %6967 = vmatmul.f32.gmra.mxu2 %v6892_v51  ;;  %7009 = vmatpush.msrb.mxu0 %v6784_v42  ;;  %v6852_v42 = vmul.f32 0.00390625, %v6692_v52  ;;  %v6708_v51 = vld [vmem:[#allocation2 + $0x4a0] sm:$0xff] }
 0x641   : > { %7031 = vmatpush.msrb.mxu1 %v6801_v21  ;;  %7055 = vmatpush.msrb.mxu2 %v6816_v39  ;;  %v6869_v21 = vmul.f32 0.00390625, %v6709_v56  ;;  %v6690_v39 = vld [vmem:[#allocation2 + $0x410] sm:$0xff] }
 0x642   : > { %7077 = vmatpush.msrb.mxu3 %v6833_v12  ;;  %7086 = vmatpush.msra.mxu0 %v6863_v9  ;;  %v6707_v12 = vld [vmem:[#allocation2 + $0x498] sm:$0xff]  ;;  %v6850_v59 = vmul.f32 0.00390625, %v6690_v39 }
 0x643   : > { %7397 = vmatpush.msra.mxu2 %v6863_v9  ;;  %6921 = vmatmul.f32.gmra.mxu0 %v6890_v0  ;;  %v6868_v9 = vmul.f32 0.00390625, %v6708_v51  ;;  %v6867_v0 = vmul.f32 0.00390625, %v6707_v12 }
 0x644   : > { %6990 = vmatmul.f32.gmra.mxu3 %v6893_v20  ;;  %7032 = vmatpush.msrb.mxu1 %v6800_v34  ;;  %v6688_v34 = vld [vmem:[#allocation2 + $0x400] sm:$0xff]  ;;  %v6849_v20 = vmul.f32 0.00390625, %v6689_v43 }
 0x645   : > { %7078 = vmatpush.msrb.mxu3 %v6832_v1  ;;  %7087 = vmatpush.msra.mxu0 %v6862_v55  ;;  %v6705_v1 = vld [vmem:[#allocation2 + $0x488] sm:$0xff]  ;;  %v6848_v49 = vmul.f32 0.00390625, %v6688_v34 }
 0x646   : > { %7398 = vmatpush.msra.mxu2 %v6862_v55  ;;  %7109 = vmatpush.msra.mxu1 %v6879_v30  ;;  %v6866_v55 = vmul.f32 0.00390625, %v6706_v19  ;;  %v6865_v63 = vmul.f32 0.00390625, %v6705_v1 }
 0x647   : > { %7413 = vmatpush.msra.mxu3 %v6879_v30  ;;  %6944 = vmatmul.f32.gmra.mxu1 %v6891_v54  ;;  %v6704_v30 = vld [vmem:[#allocation2 + $0x480] sm:$0xff]  ;;  %v6898_v54 = vld [vmem:[%s16420_s3 + $0x90] sm:$0x3] }
 0x648   : > { %7088 = vmatpush.msra.mxu0 %v6861_v46  ;;  %7399 = vmatpush.msra.mxu2 %v6861_v46  ;;  %v6864_v46 = vmul.f32 0.00390625, %v6704_v30 }
 0x649   : > { %7110 = vmatpush.msra.mxu1 %v6878_v8  ;;  %7414 = vmatpush.msra.mxu3 %v6878_v8  ;;  %v6899_v8 = vld [vmem:[%s16420_s3 + $0x98] sm:$0x3] }
 0x64a   : > { %7089 = vmatpush.msra.mxu0 %v6860_v47  ;;  %7400 = vmatpush.msra.mxu2 %v6860_v47 }
 0x64b   : > { %7111 = vmatpush.msra.mxu1 %v6877_v50  ;;  %7415 = vmatpush.msra.mxu3 %v6877_v50 }
 0x64c   : > { %7056 = vmatmul.f32.vlgmr.msrb.gmra.mxu2 %v6886_v35  ;;  %7090 = vmatpush.msra.mxu0 %v6859_v28 }
 0x64d   : > { %7401 = vmatpush.msra.mxu2 %v6859_v28  ;;  %7112 = vmatpush.msra.mxu1 %v6876_v18 }
 0x64e   : > { %7416 = vmatpush.msra.mxu3 %v6876_v18  ;;  %7010 = vmatmul.f32.vlgmr.msrb.gmra.mxu0 %v6884_v14  ;;  %v6901_v18 = vld [vmem:[%s16421_s4 + $0x8] sm:$0x3] }
 0x64f   : > { %7079 = vmatmul.f32.vlgmr.msrb.gmra.mxu3 %v6887_v3  ;;  %7091 = vmatpush.msra.mxu0 %v6858_v48 }
 0x650   : > { %7402 = vmatpush.msra.mxu2 %v6858_v48  ;;  %7113 = vmatpush.msra.mxu1 %v6875_v23 }
 0x651   : > { %7417 = vmatpush.msra.mxu3 %v6875_v23  ;;  %7033 = vmatmul.f32.vlgmr.msrb.gmra.mxu1 %v6885_v57 }
 0x652   : > { %7092 = vmatpush.msra.mxu0 %v6857_v40  ;;  %7403 = vmatpush.msra.mxu2 %v6857_v40 }
 0x653   : > { %7114 = vmatpush.msra.mxu1 %v6874_v38  ;;  %7418 = vmatpush.msra.mxu3 %v6874_v38 }
 0x654   : > { %7093 = vmatpush.msra.mxu0 %v6856_v4  ;;  %7404 = vmatpush.msra.mxu2 %v6856_v4 }
 0x655   : > { %7115 = vmatpush.msra.mxu1 %v6873_v16  ;;  %7419 = vmatpush.msra.mxu3 %v6873_v16 }
 0x656   : > { %7059 = vmatmul.f32.gmra.mxu2 %v6896_v26  ;;  %7094 = vmatpush.msra.mxu0 %v6855_v36 }
 0x657   : > { %7405 = vmatpush.msra.mxu2 %v6855_v36  ;;  %7116 = vmatpush.msra.mxu1 %v6872_v45 }
 0x658   : > { %7420 = vmatpush.msra.mxu3 %v6872_v45  ;;  %7013 = vmatmul.f32.gmra.mxu0 %v6894_v25 }
 0x659   : > { %7082 = vmatmul.f32.gmra.mxu3 %v6897_v11  ;;  %7095 = vmatpush.msra.mxu0 %v6854_v24 }
 0x65a   : > { %7406 = vmatpush.msra.mxu2 %v6854_v24  ;;  %7117 = vmatpush.msra.mxu1 %v6871_v10 }
 0x65b   : > { %7421 = vmatpush.msra.mxu3 %v6871_v10  ;;  %7036 = vmatmul.f32.gmra.mxu1 %v6895_v61 }
 0x65c   : > { %7096 = vmatpush.msra.mxu0 %v6853_v60  ;;  %7407 = vmatpush.msra.mxu2 %v6853_v60 }
 0x65d   : > { %7118 = vmatpush.msra.mxu1 %v6870_v27  ;;  %7422 = vmatpush.msra.mxu3 %v6870_v27 }
 0x65e   : > { %7097 = vmatpush.msra.mxu0 %v6852_v42  ;;  %7408 = vmatpush.msra.mxu2 %v6852_v42 }
 0x65f   : > { %7119 = vmatpush.msra.mxu1 %v6869_v21  ;;  %7423 = vmatpush.msra.mxu3 %v6869_v21 }
 0x660   : > { %7098 = vmatpush.msra.mxu0 %v6851_v37  ;;  %7409 = vmatpush.msra.mxu2 %v6851_v37 }
 0x661   : > { %7120 = vmatpush.msra.mxu1 %v6868_v9  ;;  %7424 = vmatpush.msra.mxu3 %v6868_v9 }
 0x662   : > { %7099 = vmatpush.msra.mxu0 %v6850_v59  ;;  %7410 = vmatpush.msra.mxu2 %v6850_v59 }
 0x663   : > { %7121 = vmatpush.msra.mxu1 %v6867_v0  ;;  %7425 = vmatpush.msra.mxu3 %v6867_v0 }
 0x664   : > { %7100 = vmatpush.msra.mxu0 %v6849_v20  ;;  %7411 = vmatpush.msra.mxu2 %v6849_v20 }
 0x665   : > { %7122 = vmatpush.msra.mxu1 %v6866_v55  ;;  %7426 = vmatpush.msra.mxu3 %v6866_v55 }
 0x666   : > { %7101 = vmatpush.msra.mxu0 %v6848_v49  ;;  %7412 = vmatpush.msra.mxu2 %v6848_v49 }
 0x667   : > { %7123 = vmatpush.msra.mxu1 %v6865_v63  ;;  %7427 = vmatpush.msra.mxu3 %v6865_v63 }
 0x668   : > { %7102 = vmatmul.f32.vlgmr.msra.gmra.mxu0 %v6888_v41  ;;  %7105 = vmatmul.f32.vlgmr.msra.gmra.mxu2 %v6898_v54 }
 0x669   : > { %7124 = vmatpush.msra.mxu1 %v6864_v46  ;;  %7428 = vmatpush.msra.mxu3 %v6864_v46 }
 0x66a   : > { %7125 = vmatmul.f32.vlgmr.msra.gmra.mxu1 %v6889_v6  ;;  %7128 = vmatmul.f32.vlgmr.msra.gmra.mxu3 %v6899_v8 }
 0x6b5   : > { %v6919_v58 = vpop.f32.mrf.mxu0 }
 0x6b6   : > { %v6920_v35 = vadd.f32 %v6919_v58, %v6900_v7 }
 0x6b8   : > { %v6942_v47 = vpop.f32.mrf.mxu1 }
 0x6b9   : > { %v6965_v50 = vpop.f32.mrf.mxu2  ;;  %v6943_v14 = vadd.f32 %v6942_v47, %v6920_v35 }
 0x6bb   : > { %v6966_v3 = vadd.f32 %v6965_v50, %v6943_v14 }
 0x6bc   : > { %v6988_v28 = vpop.f32.mrf.mxu3 }
 0x6bd   : > { %v6989_v57 = vadd.f32 %v6988_v28, %v6966_v3 }
 0x6c0   : > { %v6922_v29 = vpop.f32.mrf.mxu0 }
 0x6c1   : > { %v6923_v48 = vadd.f32 %v6922_v29, %v6901_v18 }
 0x6c3   : > { %v6968_v53 = vpop.f32.mrf.mxu2 }
 0x6c4   : > { %v6945_v32 = vpop.f32.mrf.mxu1 }
 0x6c5   : > { %v6946_v2 = vadd.f32 %v6945_v32, %v6923_v48 }
 0x6c7   : > { %v6991_v23 = vpop.f32.mrf.mxu3  ;;  %v6969_v22 = vadd.f32 %v6968_v53, %v6946_v2 }
 0x6c9   : > { %v6992_v4 = vadd.f32 %v6991_v23, %v6969_v22 }
 0x6cb   : > { %v7011_v33 = vpop.f32.mrf.mxu0 }
 0x6cc   : > { %v7012_v38 = vadd.f32 %v7011_v33, %v6989_v57 }
 0x6ce   : > { %v7034_v40 = vpop.f32.mrf.mxu1 }
 0x6cf   : > { %v7057_v62 = vpop.f32.mrf.mxu2  ;;  %v7035_v36 = vadd.f32 %v7034_v40, %v7012_v38 }
 0x6d1   : > { %v7058_v45 = vadd.f32 %v7057_v62, %v7035_v36 }
 0x6d2   : > { %v7080_v44 = vpop.f32.mrf.mxu3 }
 0x6d3   : > { %v7081_v24 = vadd.f32 %v7080_v44, %v7058_v45 }
 0x6d5   : > { %v7014_v16 = vpop.f32.mrf.mxu0 }
 0x6d6   : > { %v7015_v13 = vadd.f32 %v7014_v16, %v6992_v4 }
 0x6d8   : > { %v7037_v26 = vpop.f32.mrf.mxu1 }
 0x6d9   : > { %v7038_v15 = vadd.f32 %v7037_v26, %v7015_v13  ;;  %v7060_v25 = vpop.f32.mrf.mxu2 }
 0x6db   : > { %v7061_v10 = vadd.f32 %v7060_v25, %v7038_v15 }
 0x6dc   : > { %v7083_v5 = vpop.f32.mrf.mxu3 }
 0x6dd   : > { %v7084_v60 = vadd.f32 %v7083_v5, %v7061_v10 }
 0x6e5   : > { %v7103_v11 = vpop.f32.mrf.mxu0 }
 0x6e6   : > { %v7104_v31 = vadd.f32 %v7103_v11, %v7081_v24 }
 0x6e7   : > { %v7126_v52 = vpop.f32.mrf.mxu1 }
 0x6e8   : > { %v7127_v61 = vadd.f32 %v7126_v52, %v7104_v31 }
 0x6ea   : > { %7132 = vst.msk [vmem:[%s8286_s30] sm:$0xff] %vm6395_vm13, %v7127_v61 }
 0x6eb   : > { %v7106_v56 = vpop.f32.mrf.mxu2 }
 0x6ec   : > { %v7107_v27 = vadd.f32 %v7106_v56, %v7084_v60 }
 0x6ed   : > { %v7129_v17 = vpop.f32.mrf.mxu3 }
 0x6ee   : > { %v7130_v42 = vadd.f32 %v7129_v17, %v7107_v27 }
 0x6f0   : > { %7134 = vst.msk [vmem:[%s8286_s30 + $0x8] sm:$0x3] %vm7133_vm10, %v7130_v42 }
 0x6f1 PF: > { %s15_s24 = sadd.s32 1, %s8184_s24   ;;  %s17458_s18 = smov %s8164_s19 }
 0x6f2   : > { %p12_p13 = scmp.ge.s32.totalorder %s15_s24, 6   ;;  %s17459_s19 = smov %s8269_s6 }
 0x6f3   : > { %s17460_s20 = smov %s8176_s22  ;;  %s17461_s21 = smov %s8180_s23 }
 0x6f4   : > { %s17462_s22 = smov %s17465_s25  ;;  %s17463_s23 = smov %s17469_s26 }
 0x6f5   :  { %14 = sbr.rel (!%p12_p13) target bundleno = 4 (0x4), region = 121 }

</bundles_post_ra>
